<compile_context>
chip_gen: v6e
topology: v6e:2x2x1
jax: 0.10.0
libtpu: 0.0.40
codegen_flags: <defaults>
</compile_context>

<pallas_src>
import math
from functools import partial

import jax
import jax.numpy as jnp
from jax.experimental import pallas as pl
from jax.experimental.pallas import tpu as pltpu  # noqa: F401  (TPU backend assumed)


def _layer_norm(x, g, b, eps=1e-5):
    mu = jnp.mean(x, axis=-1, keepdims=True)
    var = jnp.mean((x - mu) ** 2, axis=-1, keepdims=True)
    return (x - mu) * jax.lax.rsqrt(var + eps) * g + b


_ENC_PARAM_NAMES = ("wq", "wk", "wv", "bq", "bk", "bv", "wo", "bo",
                    "ff_w1", "ff_b1", "ff_w2", "ff_b2",
                    "ln1_g", "ln1_b", "ln2_g", "ln2_b")
_N_ENC_PARAMS = len(_ENC_PARAM_NAMES)


# -----------------------------------------------------------------------------
# The single fused kernel: modal merge + PE + encoder stack + pooling + heads.
# -----------------------------------------------------------------------------
def _fused_forward_kernel(*refs, B, S, n_mods, n_layers, n_heads, d_k,
                          d_model, padding):
    idx = 0
    x_refs = refs[idx:idx + n_mods]; idx += n_mods
    m_ref = refs[idx]; idx += 1
    tcol_ref = refs[idx]; idx += 1         # (B*S, 1)
    trow_ref = refs[idx]; idx += 1         # (B, S)
    pe_ref = refs[idx]; idx += 1           # (B*S, d_model)
    modal_refs = refs[idx:idx + 4 * n_mods]; idx += 4 * n_mods
    enc_refs = refs[idx:idx + _N_ENC_PARAMS * n_layers]
    idx += _N_ENC_PARAMS * n_layers
    tw1_ref, tb1_ref, tw2_ref, tb2_ref = refs[idx:idx + 4]; idx += 4
    o_ref = refs[idx]

    f32 = jnp.float32

    # ---- key-padding masks, computed in-kernel from t (both orientations
    #      passed as flat views so no in-kernel transpose is needed) ----
    valid_col = (tcol_ref[...] != padding).astype(f32)   # (B*S, 1) for pooling
    valid_row = trow_ref[...] != padding                  # (B, S) bool for attn

    # ---- ModalMerge (per-modality MLP, modality-mask weighted sum) + PE ----
    mm = m_ref[...]                                       # (B*S, n_mods)
    x = pe_ref[...].astype(f32)                           # start from PE (add is commutative)
    for i in range(n_mods):
        w1, b1, w2, b2 = modal_refs[4 * i:4 * i + 4]
        h = jnp.maximum(
            jnp.dot(x_refs[i][...], w1[...], preferred_element_type=f32) + b1[...], 0.0)
        h = jnp.dot(h, w2[...], preferred_element_type=f32) + b2[...]
        x = x + mm[:, i:i + 1] * h                         # (B*S, d_model)

    scale = 1.0 / math.sqrt(d_k)

    # ---- Encoder layers (post-LN transformer blocks), all in VMEM ----
    for l in range(n_layers):
        (wq, wk, wv, bq, bk, bv, wo, bo,
         ffw1, ffb1, ffw2, ffb2, ln1g, ln1b, ln2g, ln2b) = \
            enc_refs[_N_ENC_PARAMS * l:_N_ENC_PARAMS * (l + 1)]

        attn_rows = []
        for b in range(B):                                  # static, B small
            xb = x[b * S:(b + 1) * S, :]                    # (S, d) aligned sublane slice
            xh = jnp.broadcast_to(xb, (n_heads, S, d_model))
            # Head-major batched projections (weights pre-shaped (H, d, dk)).
            q = jnp.einsum('hsd,hde->hse', xh, wq[...], preferred_element_type=f32) + bq[...]
            k = jnp.einsum('hsd,hde->hse', xh, wk[...], preferred_element_type=f32) + bk[...]
            v = jnp.einsum('hsd,hde->hse', xh, wv[...], preferred_element_type=f32) + bv[...]
            s = jnp.einsum('hqd,hkd->hqk', q, k, preferred_element_type=f32) * scale
            kvalid = valid_row[b:b + 1, :]                  # (1, S)
            s = jnp.where(kvalid[None, :, :], s, -1e30)     # mask padded keys
            s = s - jnp.max(s, axis=-1, keepdims=True)
            p = jnp.exp(s)
            p = p * pl.reciprocal(jnp.sum(p, axis=-1, keepdims=True), approx=True)
            ctx = jnp.einsum('hqk,hkd->hqd', p, v, preferred_element_type=f32)   # (H,S,dk)
            per_head = jnp.einsum('hqd,hdm->hqm', ctx, wo[...], preferred_element_type=f32)
            attn_rows.append(jnp.sum(per_head, axis=0) + bo[...])                # (S, d)
        attn = jnp.concatenate(attn_rows, axis=0)           # (B*S, d_model)

        x = _layer_norm(x + attn, ln1g[...], ln1b[...])
        f = jnp.maximum(jnp.dot(x, ffw1[...], preferred_element_type=f32) + ffb1[...], 0.0)
        f = jnp.dot(f, ffw2[...], preferred_element_type=f32) + ffb2[...]
        x = _layer_norm(x + f, ln2g[...], ln2b[...])

    # ---- masked mean-pool (sublane reductions, no M=1 matmul) + task heads ----
    masked = x * valid_col
    pooled_rows = []
    for b in range(B):
        seg = masked[b * S:(b + 1) * S, :]
        cnt = jnp.maximum(
            jnp.sum(valid_col[b * S:(b + 1) * S, :], axis=0, keepdims=True), 1.0)  # (1,1)
        pooled_rows.append(jnp.sum(seg, axis=0, keepdims=True) / cnt)              # (1,d)
    pooled = jnp.concatenate(pooled_rows, axis=0)            # (B, d_model)

    # All task heads in one batched GEMM pair (stacked w1, block-diagonal w2).
    h = jnp.maximum(
        jnp.dot(pooled, tw1_ref[...], preferred_element_type=f32) + tb1_ref[...], 0.0)
    o = jnp.dot(h, tw2_ref[...], preferred_element_type=f32) + tb2_ref[...]         # (B, T*out)
    o_ref[...] = o.astype(o_ref.dtype)


# -----------------------------------------------------------------------------
# Positional encoding (standard interleaved sin/cos, evaluated at times t).
# Built in the wrapper (tiny XLA op) for lowering portability of sin/cos.
# TODO(synk): original Module.Positional_Encoding source unavailable; this
# assumes a sinusoidal PE indexed by the time values in t.
# -----------------------------------------------------------------------------
def positional_encoding(t, d_model):
    B, S, _ = t.shape
    half = d_model // 2
    i = jnp.arange(half, dtype=jnp.float32)
    div = jnp.exp(-(math.log(10000.0) / d_model) * (2.0 * i))
    ang = t * div                                            # (B, S, half)
    pe = jnp.stack([jnp.sin(ang), jnp.cos(ang)], axis=-1)    # interleave: even=sin, odd=cos
    return pe.reshape(B, S, d_model)


# -----------------------------------------------------------------------------
# Parameter construction (xavier-uniform like nn.init.xavier_uniform_).
# -----------------------------------------------------------------------------
def xavier(key, shape):
    fan_in, fan_out = shape[0], shape[1]
    limit = math.sqrt(6.0 / (fan_in + fan_out))
    return jax.random.uniform(key, shape, jnp.float32, -limit, limit)


def build_params(key, cfg):
    params = {}
    keys = iter(jax.random.split(key, 64))
    d_model, H, dk = cfg["d_model"], cfg["n_heads"], cfg["d_k"]

    # ModalMerge: per-modality MLP d_f -> hidden -> d_model.
    params["modal"] = []
    for d_f, hid in zip(cfg["mod_features"], cfg["mod_hidden"]):
        params["modal"].append({
            "w1": xavier(next(keys), (d_f, hid)),
            "b1": jnp.zeros((1, hid), jnp.float32),
            "w2": xavier(next(keys), (hid, d_model)),
            "b2": jnp.zeros((1, d_model), jnp.float32),
        })

    def head_major(w):   # (d_model, H*dk) -> (H, d_model, dk)  (host-side, free)
        return jnp.transpose(w.reshape(d_model, H, dk), (1, 0, 2))

    params["enc"] = []
    for _ in range(cfg["n_enc_lays"]):
        params["enc"].append({
            "wq": head_major(xavier(next(keys), (d_model, H * dk))),
            "wk": head_major(xavier(next(keys), (d_model, H * dk))),
            "wv": head_major(xavier(next(keys), (d_model, H * dk))),
            "bq": jnp.zeros((H, 1, dk), jnp.float32),
            "bk": jnp.zeros((H, 1, dk), jnp.float32),
            "bv": jnp.zeros((H, 1, dk), jnp.float32),
            "wo": xavier(next(keys), (H * dk, d_model)).reshape(H, dk, d_model),
            "bo": jnp.zeros((1, d_model), jnp.float32),
            "ff_w1": xavier(next(keys), (d_model, cfg["d_ff"])),
            "ff_b1": jnp.zeros((1, cfg["d_ff"]), jnp.float32),
            "ff_w2": xavier(next(keys), (cfg["d_ff"], d_model)),
            "ff_b2": jnp.zeros((1, d_model), jnp.float32),
            "ln1_g": jnp.ones((1, d_model), jnp.float32),
            "ln1_b": jnp.zeros((1, d_model), jnp.float32),
            "ln2_g": jnp.ones((1, d_model), jnp.float32),
            "ln2_b": jnp.zeros((1, d_model), jnp.float32),
        })

    # Task heads, batched: stacked w1, block-diagonal w2.
    T, hid, out = cfg["num_tasks"], cfg["task_hidden"], cfg["output_size"]
    w1s = [xavier(next(keys), (d_model, hid)) for _ in range(T)]
    w2s = [xavier(next(keys), (hid, out)) for _ in range(T)]
    w2_block = jnp.zeros((T * hid, T * out), jnp.float32)
    for ti, w2 in enumerate(w2s):
        w2_block = w2_block.at[ti * hid:(ti + 1) * hid, ti * out:(ti + 1) * out].set(w2)
    params["tasks"] = {
        "w1_all": jnp.concatenate(w1s, axis=1),
        "b1_all": jnp.zeros((1, T * hid), jnp.float32),
        "w2_block": w2_block,
        "b2_all": jnp.zeros((1, T * out), jnp.float32),
    }
    return params


# -----------------------------------------------------------------------------
# Forward pass: exactly ONE pallas_call.
# -----------------------------------------------------------------------------
def forward(params, cfg, x_list, t, m, covs=None, covs_index=None):
    # TODO(synk): the original Task module's covs/covs_index attention path is
    # unavailable; covs are None in this reference run and are ignored.
    B, S, _ = t.shape
    d_model = cfg["d_model"]
    n_mods = len(x_list)
    n_layers = cfg["n_enc_lays"]
    T, out_size = cfg["num_tasks"], cfg["output_size"]

    pe = positional_encoding(t, d_model).reshape(B * S, d_model)

    inputs = [xm.reshape(B * S, xm.shape[-1]) for xm in x_list]
    inputs.append(m.reshape(B * S, n_mods))
    inputs.append(t.reshape(B * S, 1))     # column view of t (pooling mask)
    inputs.append(t.reshape(B, S))         # row view of t (attention key mask)
    inputs.append(pe)
    for pm in params["modal"]:
        inputs.extend([pm["w1"], pm["b1"], pm["w2"], pm["b2"]])
    for lp in params["enc"]:
        inputs.extend([lp[name] for name in _ENC_PARAM_NAMES])
    tp = params["tasks"]
    inputs.extend([tp["w1_all"], tp["b1_all"], tp["w2_block"], tp["b2_all"]])

    kernel = partial(_fused_forward_kernel, B=B, S=S, n_mods=n_mods,
                     n_layers=n_layers, n_heads=cfg["n_heads"], d_k=cfg["d_k"],
                     d_model=d_model, padding=cfg["padding"])

    # No grid, no BlockSpecs: every operand is mapped whole into VMEM
    # (total footprint ~100 KB, far below every generation's VMEM).
    out = pl.pallas_call(
        kernel,
        out_shape=jax.ShapeDtypeStruct((B, T * out_size), jnp.float32),
    )(*inputs)
    return out.reshape(B, T, out_size)


# -----------------------------------------------------------------------------
# Main
# -----------------------------------------------------------------------------
if __name__ == "__main__":
    cfg = dict(
        mod_features=[6, 10],     # two modalities with feature dims 6 and 10
        mod_hidden=[16, 16],
        d_model=32,
        n_heads=4,
        d_k=8,
        n_enc_lays=2,
        d_ff=64,
        padding=-1.0,
        num_tasks=2,
        task_hidden=16,
        output_size=1,
    )
    B, S = 2, 8

    root = jax.random.PRNGKey(0)
    kp, kx1, kx2, km = jax.random.split(root, 4)
    params = build_params(kp, cfg)

    x_list = [
        jax.random.normal(kx1, (B, S, cfg["mod_features"][0]), jnp.float32),
        jax.random.normal(kx2, (B, S, cfg["mod_features"][1]), jnp.float32),
    ]
    # time tensor (B, S, 1); mark the last two steps of batch 1 as padding
    t = jnp.tile(jnp.arange(S, dtype=jnp.float32)[None, :, None], (B, 1, 1))
    t = t.at[1, S - 2:, 0].set(cfg["padding"])
    # modality presence mask (B, S, n_mods)
    m = (jax.random.uniform(km, (B, S, len(cfg["mod_features"]))) > 0.2).astype(jnp.float32)

    fwd = jax.jit(lambda p, xs, tt, mm: forward(p, cfg, xs, tt, mm))
    out = jax.block_until_ready(fwd(params, x_list, t, m))
    assert out.shape == (B, cfg["num_tasks"], cfg["output_size"])
    assert bool(jnp.all(jnp.isfinite(out)))
    print("KERNEL_OK")
</pallas_src>

<mosaic_0001>
module attributes {stable_mosaic.version = 11 : i64} {
  func.func @_fused_forward_kernel(%arg0: memref<16x6xf32, #tpu.memory_space<vmem>>, %arg1: memref<16x10xf32, #tpu.memory_space<vmem>>, %arg2: memref<16x2xf32, #tpu.memory_space<vmem>>, %arg3: memref<16x1xf32, #tpu.memory_space<vmem>>, %arg4: memref<2x8xf32, #tpu.memory_space<vmem>>, %arg5: memref<16x32xf32, #tpu.memory_space<vmem>>, %arg6: memref<6x16xf32, #tpu.memory_space<vmem>>, %arg7: memref<1x16xf32, #tpu.memory_space<vmem>>, %arg8: memref<16x32xf32, #tpu.memory_space<vmem>>, %arg9: memref<1x32xf32, #tpu.memory_space<vmem>>, %arg10: memref<10x16xf32, #tpu.memory_space<vmem>>, %arg11: memref<1x16xf32, #tpu.memory_space<vmem>>, %arg12: memref<16x32xf32, #tpu.memory_space<vmem>>, %arg13: memref<1x32xf32, #tpu.memory_space<vmem>>, %arg14: memref<4x32x8xf32, #tpu.memory_space<vmem>>, %arg15: memref<4x32x8xf32, #tpu.memory_space<vmem>>, %arg16: memref<4x32x8xf32, #tpu.memory_space<vmem>>, %arg17: memref<4x1x8xf32, #tpu.memory_space<vmem>>, %arg18: memref<4x1x8xf32, #tpu.memory_space<vmem>>, %arg19: memref<4x1x8xf32, #tpu.memory_space<vmem>>, %arg20: memref<4x8x32xf32, #tpu.memory_space<vmem>>, %arg21: memref<1x32xf32, #tpu.memory_space<vmem>>, %arg22: memref<32x64xf32, #tpu.memory_space<vmem>>, %arg23: memref<1x64xf32, #tpu.memory_space<vmem>>, %arg24: memref<64x32xf32, #tpu.memory_space<vmem>>, %arg25: memref<1x32xf32, #tpu.memory_space<vmem>>, %arg26: memref<1x32xf32, #tpu.memory_space<vmem>>, %arg27: memref<1x32xf32, #tpu.memory_space<vmem>>, %arg28: memref<1x32xf32, #tpu.memory_space<vmem>>, %arg29: memref<1x32xf32, #tpu.memory_space<vmem>>, %arg30: memref<4x32x8xf32, #tpu.memory_space<vmem>>, %arg31: memref<4x32x8xf32, #tpu.memory_space<vmem>>, %arg32: memref<4x32x8xf32, #tpu.memory_space<vmem>>, %arg33: memref<4x1x8xf32, #tpu.memory_space<vmem>>, %arg34: memref<4x1x8xf32, #tpu.memory_space<vmem>>, %arg35: memref<4x1x8xf32, #tpu.memory_space<vmem>>, %arg36: memref<4x8x32xf32, #tpu.memory_space<vmem>>, %arg37: memref<1x32xf32, #tpu.memory_space<vmem>>, %arg38: memref<32x64xf32, #tpu.memory_space<vmem>>, %arg39: memref<1x64xf32, #tpu.memory_space<vmem>>, %arg40: memref<64x32xf32, #tpu.memory_space<vmem>>, %arg41: memref<1x32xf32, #tpu.memory_space<vmem>>, %arg42: memref<1x32xf32, #tpu.memory_space<vmem>>, %arg43: memref<1x32xf32, #tpu.memory_space<vmem>>, %arg44: memref<1x32xf32, #tpu.memory_space<vmem>>, %arg45: memref<1x32xf32, #tpu.memory_space<vmem>>, %arg46: memref<32x32xf32, #tpu.memory_space<vmem>>, %arg47: memref<1x32xf32, #tpu.memory_space<vmem>>, %arg48: memref<32x2xf32, #tpu.memory_space<vmem>>, %arg49: memref<1x2xf32, #tpu.memory_space<vmem>>, %arg50: memref<2x2xf32, #tpu.memory_space<vmem>>) attributes {dimension_semantics = [], scalar_prefetch = 0 : i64, scratch_operands = 0 : i64, tpu.core_type = #tpu.core_type<tc>} {
    %c0 = arith.constant 0 : index
    %c0_0 = arith.constant 0 : index
    %0 = vector.load %arg3[%c0, %c0_0] : memref<16x1xf32, #tpu.memory_space<vmem>>, vector<16x1xf32>
    %cst = arith.constant -1.000000e+00 : f32
    %1 = vector.broadcast %cst : f32 to vector<16x1xf32>
    %2 = arith.cmpf one, %0, %1 : vector<16x1xf32>
    %3 = arith.extui %2 : vector<16x1xi1> to vector<16x1xi32>
    %4 = arith.sitofp %3 : vector<16x1xi32> to vector<16x1xf32>
    %c0_1 = arith.constant 0 : index
    %c0_2 = arith.constant 0 : index
    %5 = vector.load %arg4[%c0_1, %c0_2] : memref<2x8xf32, #tpu.memory_space<vmem>>, vector<2x8xf32>
    %cst_3 = arith.constant -1.000000e+00 : f32
    %6 = vector.broadcast %cst_3 : f32 to vector<2x8xf32>
    %7 = arith.cmpf one, %5, %6 : vector<2x8xf32>
    %c0_4 = arith.constant 0 : index
    %c0_5 = arith.constant 0 : index
    %8 = vector.load %arg2[%c0_4, %c0_5] : memref<16x2xf32, #tpu.memory_space<vmem>>, vector<16x2xf32>
    %c0_6 = arith.constant 0 : index
    %c0_7 = arith.constant 0 : index
    %9 = vector.load %arg5[%c0_6, %c0_7] : memref<16x32xf32, #tpu.memory_space<vmem>>, vector<16x32xf32>
    %c0_8 = arith.constant 0 : index
    %c0_9 = arith.constant 0 : index
    %10 = vector.load %arg0[%c0_8, %c0_9] : memref<16x6xf32, #tpu.memory_space<vmem>>, vector<16x6xf32>
    %c0_10 = arith.constant 0 : index
    %c0_11 = arith.constant 0 : index
    %11 = vector.load %arg6[%c0_10, %c0_11] : memref<6x16xf32, #tpu.memory_space<vmem>>, vector<6x16xf32>
    %cst_12 = arith.constant dense<0.000000e+00> : vector<16x16xf32>
    %12 = tpu.matmul %10, %11, %cst_12 {dimension_numbers = #tpu.dot_dimension_numbers<[1], [0], [0], [1], [0, 0, 1, 1], [], []>} : vector<16x6xf32>, vector<6x16xf32>, vector<16x16xf32> -> vector<16x16xf32>
    %c0_13 = arith.constant 0 : index
    %c0_14 = arith.constant 0 : index
    %13 = vector.load %arg7[%c0_13, %c0_14] : memref<1x16xf32, #tpu.memory_space<vmem>>, vector<1x16xf32>
    %14 = vector.broadcast %13 : vector<1x16xf32> to vector<16x16xf32>
    %15 = arith.addf %12, %14 : vector<16x16xf32>
    %cst_15 = arith.constant 0.000000e+00 : f32
    %16 = vector.broadcast %cst_15 : f32 to vector<16x16xf32>
    %17 = arith.maximumf %15, %16 : vector<16x16xf32>
    %c0_16 = arith.constant 0 : index
    %c0_17 = arith.constant 0 : index
    %18 = vector.load %arg8[%c0_16, %c0_17] : memref<16x32xf32, #tpu.memory_space<vmem>>, vector<16x32xf32>
    %cst_18 = arith.constant dense<0.000000e+00> : vector<16x32xf32>
    %19 = tpu.matmul %17, %18, %cst_18 {dimension_numbers = #tpu.dot_dimension_numbers<[1], [0], [0], [1], [0, 0, 1, 1], [], []>} : vector<16x16xf32>, vector<16x32xf32>, vector<16x32xf32> -> vector<16x32xf32>
    %c0_19 = arith.constant 0 : index
    %c0_20 = arith.constant 0 : index
    %20 = vector.load %arg9[%c0_19, %c0_20] : memref<1x32xf32, #tpu.memory_space<vmem>>, vector<1x32xf32>
    %21 = vector.broadcast %20 : vector<1x32xf32> to vector<16x32xf32>
    %22 = arith.addf %19, %21 : vector<16x32xf32>
    %23 = vector.extract_strided_slice %8 {offsets = [0, 0], sizes = [16, 1], strides = [1, 1]} : vector<16x2xf32> to vector<16x1xf32>
    %24 = vector.broadcast %23 : vector<16x1xf32> to vector<16x32xf32>
    %25 = arith.mulf %24, %22 : vector<16x32xf32>
    %26 = arith.addf %9, %25 : vector<16x32xf32>
    %c0_21 = arith.constant 0 : index
    %c0_22 = arith.constant 0 : index
    %27 = vector.load %arg1[%c0_21, %c0_22] : memref<16x10xf32, #tpu.memory_space<vmem>>, vector<16x10xf32>
    %c0_23 = arith.constant 0 : index
    %c0_24 = arith.constant 0 : index
    %28 = vector.load %arg10[%c0_23, %c0_24] : memref<10x16xf32, #tpu.memory_space<vmem>>, vector<10x16xf32>
    %cst_25 = arith.constant dense<0.000000e+00> : vector<16x16xf32>
    %29 = tpu.matmul %27, %28, %cst_25 {dimension_numbers = #tpu.dot_dimension_numbers<[1], [0], [0], [1], [0, 0, 1, 1], [], []>} : vector<16x10xf32>, vector<10x16xf32>, vector<16x16xf32> -> vector<16x16xf32>
    %c0_26 = arith.constant 0 : index
    %c0_27 = arith.constant 0 : index
    %30 = vector.load %arg11[%c0_26, %c0_27] : memref<1x16xf32, #tpu.memory_space<vmem>>, vector<1x16xf32>
    %31 = vector.broadcast %30 : vector<1x16xf32> to vector<16x16xf32>
    %32 = arith.addf %29, %31 : vector<16x16xf32>
    %cst_28 = arith.constant 0.000000e+00 : f32
    %33 = vector.broadcast %cst_28 : f32 to vector<16x16xf32>
    %34 = arith.maximumf %32, %33 : vector<16x16xf32>
    %c0_29 = arith.constant 0 : index
    %c0_30 = arith.constant 0 : index
    %35 = vector.load %arg12[%c0_29, %c0_30] : memref<16x32xf32, #tpu.memory_space<vmem>>, vector<16x32xf32>
    %cst_31 = arith.constant dense<0.000000e+00> : vector<16x32xf32>
    %36 = tpu.matmul %34, %35, %cst_31 {dimension_numbers = #tpu.dot_dimension_numbers<[1], [0], [0], [1], [0, 0, 1, 1], [], []>} : vector<16x16xf32>, vector<16x32xf32>, vector<16x32xf32> -> vector<16x32xf32>
    %c0_32 = arith.constant 0 : index
    %c0_33 = arith.constant 0 : index
    %37 = vector.load %arg13[%c0_32, %c0_33] : memref<1x32xf32, #tpu.memory_space<vmem>>, vector<1x32xf32>
    %38 = vector.broadcast %37 : vector<1x32xf32> to vector<16x32xf32>
    %39 = arith.addf %36, %38 : vector<16x32xf32>
    %40 = vector.extract_strided_slice %8 {offsets = [0, 1], sizes = [16, 1], strides = [1, 1]} : vector<16x2xf32> to vector<16x1xf32>
    %41 = vector.broadcast %40 : vector<16x1xf32> to vector<16x32xf32>
    %42 = arith.mulf %41, %39 : vector<16x32xf32>
    %43 = arith.addf %26, %42 : vector<16x32xf32>
    %44 = vector.extract_strided_slice %43 {offsets = [0, 0], sizes = [8, 32], strides = [1, 1]} : vector<16x32xf32> to vector<8x32xf32>
    %45 = vector.shape_cast %44 : vector<8x32xf32> to vector<1x8x32xf32>
    %46 = vector.broadcast %45 : vector<1x8x32xf32> to vector<4x8x32xf32>
    %c0_34 = arith.constant 0 : index
    %c0_35 = arith.constant 0 : index
    %c0_36 = arith.constant 0 : index
    %47 = vector.load %arg14[%c0_34, %c0_35, %c0_36] : memref<4x32x8xf32, #tpu.memory_space<vmem>>, vector<4x32x8xf32>
    "tpu.trace_start"() <{level = 10 : i32, message = "hsd,hde->hse"}> : () -> ()
    %cst_37 = arith.constant dense<0.000000e+00> : vector<4x8x8xf32>
    %48 = tpu.matmul %46, %47, %cst_37 {dimension_numbers = #tpu.dot_dimension_numbers<[2], [1], [1], [2], [0, 0, 0, 1, 1, 2], [0], [0]>} : vector<4x8x32xf32>, vector<4x32x8xf32>, vector<4x8x8xf32> -> vector<4x8x8xf32>
    "tpu.trace_stop"() : () -> ()
    %c0_38 = arith.constant 0 : index
    %c0_39 = arith.constant 0 : index
    %c0_40 = arith.constant 0 : index
    %49 = vector.load %arg17[%c0_38, %c0_39, %c0_40] : memref<4x1x8xf32, #tpu.memory_space<vmem>>, vector<4x1x8xf32>
    %50 = vector.broadcast %49 : vector<4x1x8xf32> to vector<4x8x8xf32>
    %51 = arith.addf %48, %50 : vector<4x8x8xf32>
    %c0_41 = arith.constant 0 : index
    %c0_42 = arith.constant 0 : index
    %c0_43 = arith.constant 0 : index
    %52 = vector.load %arg15[%c0_41, %c0_42, %c0_43] : memref<4x32x8xf32, #tpu.memory_space<vmem>>, vector<4x32x8xf32>
    "tpu.trace_start"() <{level = 10 : i32, message = "hsd,hde->hse"}> : () -> ()
    %cst_44 = arith.constant dense<0.000000e+00> : vector<4x8x8xf32>
    %53 = tpu.matmul %46, %52, %cst_44 {dimension_numbers = #tpu.dot_dimension_numbers<[2], [1], [1], [2], [0, 0, 0, 1, 1, 2], [0], [0]>} : vector<4x8x32xf32>, vector<4x32x8xf32>, vector<4x8x8xf32> -> vector<4x8x8xf32>
    "tpu.trace_stop"() : () -> ()
    %c0_45 = arith.constant 0 : index
    %c0_46 = arith.constant 0 : index
    %c0_47 = arith.constant 0 : index
    %54 = vector.load %arg18[%c0_45, %c0_46, %c0_47] : memref<4x1x8xf32, #tpu.memory_space<vmem>>, vector<4x1x8xf32>
    %55 = vector.broadcast %54 : vector<4x1x8xf32> to vector<4x8x8xf32>
    %56 = arith.addf %53, %55 : vector<4x8x8xf32>
    %c0_48 = arith.constant 0 : index
    %c0_49 = arith.constant 0 : index
    %c0_50 = arith.constant 0 : index
    %57 = vector.load %arg16[%c0_48, %c0_49, %c0_50] : memref<4x32x8xf32, #tpu.memory_space<vmem>>, vector<4x32x8xf32>
    "tpu.trace_start"() <{level = 10 : i32, message = "hsd,hde->hse"}> : () -> ()
    %cst_51 = arith.constant dense<0.000000e+00> : vector<4x8x8xf32>
    %58 = tpu.matmul %46, %57, %cst_51 {dimension_numbers = #tpu.dot_dimension_numbers<[2], [1], [1], [2], [0, 0, 0, 1, 1, 2], [0], [0]>} : vector<4x8x32xf32>, vector<4x32x8xf32>, vector<4x8x8xf32> -> vector<4x8x8xf32>
    "tpu.trace_stop"() : () -> ()
    %c0_52 = arith.constant 0 : index
    %c0_53 = arith.constant 0 : index
    %c0_54 = arith.constant 0 : index
    %59 = vector.load %arg19[%c0_52, %c0_53, %c0_54] : memref<4x1x8xf32, #tpu.memory_space<vmem>>, vector<4x1x8xf32>
    %60 = vector.broadcast %59 : vector<4x1x8xf32> to vector<4x8x8xf32>
    %61 = arith.addf %58, %60 : vector<4x8x8xf32>
    "tpu.trace_start"() <{level = 10 : i32, message = "hqd,hkd->hqk"}> : () -> ()
    %cst_55 = arith.constant dense<0.000000e+00> : vector<4x8x8xf32>
    %62 = tpu.matmul %51, %56, %cst_55 {dimension_numbers = #tpu.dot_dimension_numbers<[2], [2], [1], [1], [0, 0, 0, 1, 1, 1], [0], [0]>} : vector<4x8x8xf32>, vector<4x8x8xf32>, vector<4x8x8xf32> -> vector<4x8x8xf32>
    "tpu.trace_stop"() : () -> ()
    %cst_56 = arith.constant 0.353553385 : f32
    %63 = vector.broadcast %cst_56 : f32 to vector<4x8x8xf32>
    %64 = arith.mulf %62, %63 : vector<4x8x8xf32>
    %65 = vector.extract_strided_slice %7 {offsets = [0, 0], sizes = [1, 8], strides = [1, 1]} : vector<2x8xi1> to vector<1x8xi1>
    %66 = vector.shape_cast %65 : vector<1x8xi1> to vector<1x1x8xi1>
    %cst_57 = arith.constant -1.000000e+30 : f32
    %67 = vector.shape_cast %66 : vector<1x1x8xi1> to vector<1x1x8xi1>
    %68 = vector.broadcast %67 : vector<1x1x8xi1> to vector<4x8x8xi1>
    %69 = vector.broadcast %cst_57 : f32 to vector<4x8x8xf32>
    %70 = arith.select %68, %64, %69 : vector<4x8x8xi1>, vector<4x8x8xf32>
    %cst_58 = arith.constant dense<0xFF800000> : vector<4x8xf32>
    %71 = vector.multi_reduction <maximumf>, %70, %cst_58 [2] : vector<4x8x8xf32> to vector<4x8xf32>
    %72 = vector.shape_cast %71 : vector<4x8xf32> to vector<4x8x1xf32>
    %73 = vector.broadcast %72 : vector<4x8x1xf32> to vector<4x8x8xf32>
    %74 = arith.subf %70, %73 : vector<4x8x8xf32>
    %75 = math.exp %74 : vector<4x8x8xf32>
    %cst_59 = arith.constant dense<0.000000e+00> : vector<4x8xf32>
    %76 = vector.multi_reduction <add>, %75, %cst_59 [2] : vector<4x8x8xf32> to vector<4x8xf32>
    %77 = vector.shape_cast %76 : vector<4x8xf32> to vector<4x8x1xf32>
    %78 = tpu.reciprocal %77 {approx = true} : vector<4x8x1xf32> -> vector<4x8x1xf32>
    %79 = vector.broadcast %78 : vector<4x8x1xf32> to vector<4x8x8xf32>
    %80 = arith.mulf %75, %79 : vector<4x8x8xf32>
    "tpu.trace_start"() <{level = 10 : i32, message = "hqk,hkd->hqd"}> : () -> ()
    %cst_60 = arith.constant dense<0.000000e+00> : vector<4x8x8xf32>
    %81 = tpu.matmul %80, %61, %cst_60 {dimension_numbers = #tpu.dot_dimension_numbers<[2], [1], [1], [2], [0, 0, 0, 1, 1, 2], [0], [0]>} : vector<4x8x8xf32>, vector<4x8x8xf32>, vector<4x8x8xf32> -> vector<4x8x8xf32>
    "tpu.trace_stop"() : () -> ()
    %c0_61 = arith.constant 0 : index
    %c0_62 = arith.constant 0 : index
    %c0_63 = arith.constant 0 : index
    %82 = vector.load %arg20[%c0_61, %c0_62, %c0_63] : memref<4x8x32xf32, #tpu.memory_space<vmem>>, vector<4x8x32xf32>
    "tpu.trace_start"() <{level = 10 : i32, message = "hqd,hdm->hqm"}> : () -> ()
    %cst_64 = arith.constant dense<0.000000e+00> : vector<4x8x32xf32>
    %83 = tpu.matmul %81, %82, %cst_64 {dimension_numbers = #tpu.dot_dimension_numbers<[2], [1], [1], [2], [0, 0, 0, 1, 1, 2], [0], [0]>} : vector<4x8x8xf32>, vector<4x8x32xf32>, vector<4x8x32xf32> -> vector<4x8x32xf32>
    "tpu.trace_stop"() : () -> ()
    %cst_65 = arith.constant dense<0.000000e+00> : vector<8x32xf32>
    %84 = vector.multi_reduction <add>, %83, %cst_65 [0] : vector<4x8x32xf32> to vector<8x32xf32>
    %c0_66 = arith.constant 0 : index
    %c0_67 = arith.constant 0 : index
    %85 = vector.load %arg21[%c0_66, %c0_67] : memref<1x32xf32, #tpu.memory_space<vmem>>, vector<1x32xf32>
    %86 = vector.broadcast %85 : vector<1x32xf32> to vector<8x32xf32>
    %87 = arith.addf %84, %86 : vector<8x32xf32>
    %88 = vector.extract_strided_slice %43 {offsets = [8, 0], sizes = [8, 32], strides = [1, 1]} : vector<16x32xf32> to vector<8x32xf32>
    %89 = vector.shape_cast %88 : vector<8x32xf32> to vector<1x8x32xf32>
    %90 = vector.broadcast %89 : vector<1x8x32xf32> to vector<4x8x32xf32>
    %c0_68 = arith.constant 0 : index
    %c0_69 = arith.constant 0 : index
    %c0_70 = arith.constant 0 : index
    %91 = vector.load %arg14[%c0_68, %c0_69, %c0_70] : memref<4x32x8xf32, #tpu.memory_space<vmem>>, vector<4x32x8xf32>
    "tpu.trace_start"() <{level = 10 : i32, message = "hsd,hde->hse"}> : () -> ()
    %cst_71 = arith.constant dense<0.000000e+00> : vector<4x8x8xf32>
    %92 = tpu.matmul %90, %91, %cst_71 {dimension_numbers = #tpu.dot_dimension_numbers<[2], [1], [1], [2], [0, 0, 0, 1, 1, 2], [0], [0]>} : vector<4x8x32xf32>, vector<4x32x8xf32>, vector<4x8x8xf32> -> vector<4x8x8xf32>
    "tpu.trace_stop"() : () -> ()
    %c0_72 = arith.constant 0 : index
    %c0_73 = arith.constant 0 : index
    %c0_74 = arith.constant 0 : index
    %93 = vector.load %arg17[%c0_72, %c0_73, %c0_74] : memref<4x1x8xf32, #tpu.memory_space<vmem>>, vector<4x1x8xf32>
    %94 = vector.broadcast %93 : vector<4x1x8xf32> to vector<4x8x8xf32>
    %95 = arith.addf %92, %94 : vector<4x8x8xf32>
    %c0_75 = arith.constant 0 : index
    %c0_76 = arith.constant 0 : index
    %c0_77 = arith.constant 0 : index
    %96 = vector.load %arg15[%c0_75, %c0_76, %c0_77] : memref<4x32x8xf32, #tpu.memory_space<vmem>>, vector<4x32x8xf32>
    "tpu.trace_start"() <{level = 10 : i32, message = "hsd,hde->hse"}> : () -> ()
    %cst_78 = arith.constant dense<0.000000e+00> : vector<4x8x8xf32>
    %97 = tpu.matmul %90, %96, %cst_78 {dimension_numbers = #tpu.dot_dimension_numbers<[2], [1], [1], [2], [0, 0, 0, 1, 1, 2], [0], [0]>} : vector<4x8x32xf32>, vector<4x32x8xf32>, vector<4x8x8xf32> -> vector<4x8x8xf32>
    "tpu.trace_stop"() : () -> ()
    %c0_79 = arith.constant 0 : index
    %c0_80 = arith.constant 0 : index
    %c0_81 = arith.constant 0 : index
    %98 = vector.load %arg18[%c0_79, %c0_80, %c0_81] : memref<4x1x8xf32, #tpu.memory_space<vmem>>, vector<4x1x8xf32>
    %99 = vector.broadcast %98 : vector<4x1x8xf32> to vector<4x8x8xf32>
    %100 = arith.addf %97, %99 : vector<4x8x8xf32>
    %c0_82 = arith.constant 0 : index
    %c0_83 = arith.constant 0 : index
    %c0_84 = arith.constant 0 : index
    %101 = vector.load %arg16[%c0_82, %c0_83, %c0_84] : memref<4x32x8xf32, #tpu.memory_space<vmem>>, vector<4x32x8xf32>
    "tpu.trace_start"() <{level = 10 : i32, message = "hsd,hde->hse"}> : () -> ()
    %cst_85 = arith.constant dense<0.000000e+00> : vector<4x8x8xf32>
    %102 = tpu.matmul %90, %101, %cst_85 {dimension_numbers = #tpu.dot_dimension_numbers<[2], [1], [1], [2], [0, 0, 0, 1, 1, 2], [0], [0]>} : vector<4x8x32xf32>, vector<4x32x8xf32>, vector<4x8x8xf32> -> vector<4x8x8xf32>
    "tpu.trace_stop"() : () -> ()
    %c0_86 = arith.constant 0 : index
    %c0_87 = arith.constant 0 : index
    %c0_88 = arith.constant 0 : index
    %103 = vector.load %arg19[%c0_86, %c0_87, %c0_88] : memref<4x1x8xf32, #tpu.memory_space<vmem>>, vector<4x1x8xf32>
    %104 = vector.broadcast %103 : vector<4x1x8xf32> to vector<4x8x8xf32>
    %105 = arith.addf %102, %104 : vector<4x8x8xf32>
    "tpu.trace_start"() <{level = 10 : i32, message = "hqd,hkd->hqk"}> : () -> ()
    %cst_89 = arith.constant dense<0.000000e+00> : vector<4x8x8xf32>
    %106 = tpu.matmul %95, %100, %cst_89 {dimension_numbers = #tpu.dot_dimension_numbers<[2], [2], [1], [1], [0, 0, 0, 1, 1, 1], [0], [0]>} : vector<4x8x8xf32>, vector<4x8x8xf32>, vector<4x8x8xf32> -> vector<4x8x8xf32>
    "tpu.trace_stop"() : () -> ()
    %cst_90 = arith.constant 0.353553385 : f32
    %107 = vector.broadcast %cst_90 : f32 to vector<4x8x8xf32>
    %108 = arith.mulf %106, %107 : vector<4x8x8xf32>
    %109 = vector.extract_strided_slice %7 {offsets = [1, 0], sizes = [1, 8], strides = [1, 1]} : vector<2x8xi1> to vector<1x8xi1>
    %110 = vector.shape_cast %109 : vector<1x8xi1> to vector<1x1x8xi1>
    %cst_91 = arith.constant -1.000000e+30 : f32
    %111 = vector.shape_cast %110 : vector<1x1x8xi1> to vector<1x1x8xi1>
    %112 = vector.broadcast %111 : vector<1x1x8xi1> to vector<4x8x8xi1>
    %113 = vector.broadcast %cst_91 : f32 to vector<4x8x8xf32>
    %114 = arith.select %112, %108, %113 : vector<4x8x8xi1>, vector<4x8x8xf32>
    %cst_92 = arith.constant dense<0xFF800000> : vector<4x8xf32>
    %115 = vector.multi_reduction <maximumf>, %114, %cst_92 [2] : vector<4x8x8xf32> to vector<4x8xf32>
    %116 = vector.shape_cast %115 : vector<4x8xf32> to vector<4x8x1xf32>
    %117 = vector.broadcast %116 : vector<4x8x1xf32> to vector<4x8x8xf32>
    %118 = arith.subf %114, %117 : vector<4x8x8xf32>
    %119 = math.exp %118 : vector<4x8x8xf32>
    %cst_93 = arith.constant dense<0.000000e+00> : vector<4x8xf32>
    %120 = vector.multi_reduction <add>, %119, %cst_93 [2] : vector<4x8x8xf32> to vector<4x8xf32>
    %121 = vector.shape_cast %120 : vector<4x8xf32> to vector<4x8x1xf32>
    %122 = tpu.reciprocal %121 {approx = true} : vector<4x8x1xf32> -> vector<4x8x1xf32>
    %123 = vector.broadcast %122 : vector<4x8x1xf32> to vector<4x8x8xf32>
    %124 = arith.mulf %119, %123 : vector<4x8x8xf32>
    "tpu.trace_start"() <{level = 10 : i32, message = "hqk,hkd->hqd"}> : () -> ()
    %cst_94 = arith.constant dense<0.000000e+00> : vector<4x8x8xf32>
    %125 = tpu.matmul %124, %105, %cst_94 {dimension_numbers = #tpu.dot_dimension_numbers<[2], [1], [1], [2], [0, 0, 0, 1, 1, 2], [0], [0]>} : vector<4x8x8xf32>, vector<4x8x8xf32>, vector<4x8x8xf32> -> vector<4x8x8xf32>
    "tpu.trace_stop"() : () -> ()
    %c0_95 = arith.constant 0 : index
    %c0_96 = arith.constant 0 : index
    %c0_97 = arith.constant 0 : index
    %126 = vector.load %arg20[%c0_95, %c0_96, %c0_97] : memref<4x8x32xf32, #tpu.memory_space<vmem>>, vector<4x8x32xf32>
    "tpu.trace_start"() <{level = 10 : i32, message = "hqd,hdm->hqm"}> : () -> ()
    %cst_98 = arith.constant dense<0.000000e+00> : vector<4x8x32xf32>
    %127 = tpu.matmul %125, %126, %cst_98 {dimension_numbers = #tpu.dot_dimension_numbers<[2], [1], [1], [2], [0, 0, 0, 1, 1, 2], [0], [0]>} : vector<4x8x8xf32>, vector<4x8x32xf32>, vector<4x8x32xf32> -> vector<4x8x32xf32>
    "tpu.trace_stop"() : () -> ()
    %cst_99 = arith.constant dense<0.000000e+00> : vector<8x32xf32>
    %128 = vector.multi_reduction <add>, %127, %cst_99 [0] : vector<4x8x32xf32> to vector<8x32xf32>
    %c0_100 = arith.constant 0 : index
    %c0_101 = arith.constant 0 : index
    %129 = vector.load %arg21[%c0_100, %c0_101] : memref<1x32xf32, #tpu.memory_space<vmem>>, vector<1x32xf32>
    %130 = vector.broadcast %129 : vector<1x32xf32> to vector<8x32xf32>
    %131 = arith.addf %128, %130 : vector<8x32xf32>
    %132 = tpu.concatenate %87, %131 in 0 : vector<8x32xf32>, vector<8x32xf32> -> vector<16x32xf32>
    %133 = arith.addf %43, %132 : vector<16x32xf32>
    %c0_102 = arith.constant 0 : index
    %c0_103 = arith.constant 0 : index
    %134 = vector.load %arg26[%c0_102, %c0_103] : memref<1x32xf32, #tpu.memory_space<vmem>>, vector<1x32xf32>
    %c0_104 = arith.constant 0 : index
    %c0_105 = arith.constant 0 : index
    %135 = vector.load %arg27[%c0_104, %c0_105] : memref<1x32xf32, #tpu.memory_space<vmem>>, vector<1x32xf32>
    %cst_106 = arith.constant dense<0.000000e+00> : vector<16xf32>
    %136 = vector.multi_reduction <add>, %133, %cst_106 [1] : vector<16x32xf32> to vector<16xf32>
    %137 = vector.shape_cast %136 : vector<16xf32> to vector<16x1xf32>
    %cst_107 = arith.constant 3.200000e+01 : f32
    %138 = vector.broadcast %cst_107 : f32 to vector<16x1xf32>
    %139 = arith.divf %137, %138 : vector<16x1xf32>
    %140 = vector.broadcast %139 : vector<16x1xf32> to vector<16x32xf32>
    %141 = arith.subf %133, %140 : vector<16x32xf32>
    %142 = arith.mulf %141, %141 : vector<16x32xf32>
    %cst_108 = arith.constant dense<0.000000e+00> : vector<16xf32>
    %143 = vector.multi_reduction <add>, %142, %cst_108 [1] : vector<16x32xf32> to vector<16xf32>
    %144 = vector.shape_cast %143 : vector<16xf32> to vector<16x1xf32>
    %cst_109 = arith.constant 3.200000e+01 : f32
    %145 = vector.broadcast %cst_109 : f32 to vector<16x1xf32>
    %146 = arith.divf %144, %145 : vector<16x1xf32>
    %147 = vector.broadcast %139 : vector<16x1xf32> to vector<16x32xf32>
    %148 = arith.subf %133, %147 : vector<16x32xf32>
    %cst_110 = arith.constant 9.99999974E-6 : f32
    %149 = vector.broadcast %cst_110 : f32 to vector<16x1xf32>
    %150 = arith.addf %146, %149 : vector<16x1xf32>
    %151 = math.rsqrt %150 : vector<16x1xf32>
    %152 = vector.broadcast %151 : vector<16x1xf32> to vector<16x32xf32>
    %153 = arith.mulf %148, %152 : vector<16x32xf32>
    %154 = vector.broadcast %134 : vector<1x32xf32> to vector<16x32xf32>
    %155 = arith.mulf %153, %154 : vector<16x32xf32>
    %156 = vector.broadcast %135 : vector<1x32xf32> to vector<16x32xf32>
    %157 = arith.addf %155, %156 : vector<16x32xf32>
    %c0_111 = arith.constant 0 : index
    %c0_112 = arith.constant 0 : index
    %158 = vector.load %arg22[%c0_111, %c0_112] : memref<32x64xf32, #tpu.memory_space<vmem>>, vector<32x64xf32>
    %cst_113 = arith.constant dense<0.000000e+00> : vector<16x64xf32>
    %159 = tpu.matmul %157, %158, %cst_113 {dimension_numbers = #tpu.dot_dimension_numbers<[1], [0], [0], [1], [0, 0, 1, 1], [], []>} : vector<16x32xf32>, vector<32x64xf32>, vector<16x64xf32> -> vector<16x64xf32>
    %c0_114 = arith.constant 0 : index
    %c0_115 = arith.constant 0 : index
    %160 = vector.load %arg23[%c0_114, %c0_115] : memref<1x64xf32, #tpu.memory_space<vmem>>, vector<1x64xf32>
    %161 = vector.broadcast %160 : vector<1x64xf32> to vector<16x64xf32>
    %162 = arith.addf %159, %161 : vector<16x64xf32>
    %cst_116 = arith.constant 0.000000e+00 : f32
    %163 = vector.broadcast %cst_116 : f32 to vector<16x64xf32>
    %164 = arith.maximumf %162, %163 : vector<16x64xf32>
    %c0_117 = arith.constant 0 : index
    %c0_118 = arith.constant 0 : index
    %165 = vector.load %arg24[%c0_117, %c0_118] : memref<64x32xf32, #tpu.memory_space<vmem>>, vector<64x32xf32>
    %cst_119 = arith.constant dense<0.000000e+00> : vector<16x32xf32>
    %166 = tpu.matmul %164, %165, %cst_119 {dimension_numbers = #tpu.dot_dimension_numbers<[1], [0], [0], [1], [0, 0, 1, 1], [], []>} : vector<16x64xf32>, vector<64x32xf32>, vector<16x32xf32> -> vector<16x32xf32>
    %c0_120 = arith.constant 0 : index
    %c0_121 = arith.constant 0 : index
    %167 = vector.load %arg25[%c0_120, %c0_121] : memref<1x32xf32, #tpu.memory_space<vmem>>, vector<1x32xf32>
    %168 = vector.broadcast %167 : vector<1x32xf32> to vector<16x32xf32>
    %169 = arith.addf %166, %168 : vector<16x32xf32>
    %170 = arith.addf %157, %169 : vector<16x32xf32>
    %c0_122 = arith.constant 0 : index
    %c0_123 = arith.constant 0 : index
    %171 = vector.load %arg28[%c0_122, %c0_123] : memref<1x32xf32, #tpu.memory_space<vmem>>, vector<1x32xf32>
    %c0_124 = arith.constant 0 : index
    %c0_125 = arith.constant 0 : index
    %172 = vector.load %arg29[%c0_124, %c0_125] : memref<1x32xf32, #tpu.memory_space<vmem>>, vector<1x32xf32>
    %cst_126 = arith.constant dense<0.000000e+00> : vector<16xf32>
    %173 = vector.multi_reduction <add>, %170, %cst_126 [1] : vector<16x32xf32> to vector<16xf32>
    %174 = vector.shape_cast %173 : vector<16xf32> to vector<16x1xf32>
    %cst_127 = arith.constant 3.200000e+01 : f32
    %175 = vector.broadcast %cst_127 : f32 to vector<16x1xf32>
    %176 = arith.divf %174, %175 : vector<16x1xf32>
    %177 = vector.broadcast %176 : vector<16x1xf32> to vector<16x32xf32>
    %178 = arith.subf %170, %177 : vector<16x32xf32>
    %179 = arith.mulf %178, %178 : vector<16x32xf32>
    %cst_128 = arith.constant dense<0.000000e+00> : vector<16xf32>
    %180 = vector.multi_reduction <add>, %179, %cst_128 [1] : vector<16x32xf32> to vector<16xf32>
    %181 = vector.shape_cast %180 : vector<16xf32> to vector<16x1xf32>
    %cst_129 = arith.constant 3.200000e+01 : f32
    %182 = vector.broadcast %cst_129 : f32 to vector<16x1xf32>
    %183 = arith.divf %181, %182 : vector<16x1xf32>
    %184 = vector.broadcast %176 : vector<16x1xf32> to vector<16x32xf32>
    %185 = arith.subf %170, %184 : vector<16x32xf32>
    %cst_130 = arith.constant 9.99999974E-6 : f32
    %186 = vector.broadcast %cst_130 : f32 to vector<16x1xf32>
    %187 = arith.addf %183, %186 : vector<16x1xf32>
    %188 = math.rsqrt %187 : vector<16x1xf32>
    %189 = vector.broadcast %188 : vector<16x1xf32> to vector<16x32xf32>
    %190 = arith.mulf %185, %189 : vector<16x32xf32>
    %191 = vector.broadcast %171 : vector<1x32xf32> to vector<16x32xf32>
    %192 = arith.mulf %190, %191 : vector<16x32xf32>
    %193 = vector.broadcast %172 : vector<1x32xf32> to vector<16x32xf32>
    %194 = arith.addf %192, %193 : vector<16x32xf32>
    %195 = vector.extract_strided_slice %194 {offsets = [0, 0], sizes = [8, 32], strides = [1, 1]} : vector<16x32xf32> to vector<8x32xf32>
    %196 = vector.shape_cast %195 : vector<8x32xf32> to vector<1x8x32xf32>
    %197 = vector.broadcast %196 : vector<1x8x32xf32> to vector<4x8x32xf32>
    %c0_131 = arith.constant 0 : index
    %c0_132 = arith.constant 0 : index
    %c0_133 = arith.constant 0 : index
    %198 = vector.load %arg30[%c0_131, %c0_132, %c0_133] : memref<4x32x8xf32, #tpu.memory_space<vmem>>, vector<4x32x8xf32>
    "tpu.trace_start"() <{level = 10 : i32, message = "hsd,hde->hse"}> : () -> ()
    %cst_134 = arith.constant dense<0.000000e+00> : vector<4x8x8xf32>
    %199 = tpu.matmul %197, %198, %cst_134 {dimension_numbers = #tpu.dot_dimension_numbers<[2], [1], [1], [2], [0, 0, 0, 1, 1, 2], [0], [0]>} : vector<4x8x32xf32>, vector<4x32x8xf32>, vector<4x8x8xf32> -> vector<4x8x8xf32>
    "tpu.trace_stop"() : () -> ()
    %c0_135 = arith.constant 0 : index
    %c0_136 = arith.constant 0 : index
    %c0_137 = arith.constant 0 : index
    %200 = vector.load %arg33[%c0_135, %c0_136, %c0_137] : memref<4x1x8xf32, #tpu.memory_space<vmem>>, vector<4x1x8xf32>
    %201 = vector.broadcast %200 : vector<4x1x8xf32> to vector<4x8x8xf32>
    %202 = arith.addf %199, %201 : vector<4x8x8xf32>
    %c0_138 = arith.constant 0 : index
    %c0_139 = arith.constant 0 : index
    %c0_140 = arith.constant 0 : index
    %203 = vector.load %arg31[%c0_138, %c0_139, %c0_140] : memref<4x32x8xf32, #tpu.memory_space<vmem>>, vector<4x32x8xf32>
    "tpu.trace_start"() <{level = 10 : i32, message = "hsd,hde->hse"}> : () -> ()
    %cst_141 = arith.constant dense<0.000000e+00> : vector<4x8x8xf32>
    %204 = tpu.matmul %197, %203, %cst_141 {dimension_numbers = #tpu.dot_dimension_numbers<[2], [1], [1], [2], [0, 0, 0, 1, 1, 2], [0], [0]>} : vector<4x8x32xf32>, vector<4x32x8xf32>, vector<4x8x8xf32> -> vector<4x8x8xf32>
    "tpu.trace_stop"() : () -> ()
    %c0_142 = arith.constant 0 : index
    %c0_143 = arith.constant 0 : index
    %c0_144 = arith.constant 0 : index
    %205 = vector.load %arg34[%c0_142, %c0_143, %c0_144] : memref<4x1x8xf32, #tpu.memory_space<vmem>>, vector<4x1x8xf32>
    %206 = vector.broadcast %205 : vector<4x1x8xf32> to vector<4x8x8xf32>
    %207 = arith.addf %204, %206 : vector<4x8x8xf32>
    %c0_145 = arith.constant 0 : index
    %c0_146 = arith.constant 0 : index
    %c0_147 = arith.constant 0 : index
    %208 = vector.load %arg32[%c0_145, %c0_146, %c0_147] : memref<4x32x8xf32, #tpu.memory_space<vmem>>, vector<4x32x8xf32>
    "tpu.trace_start"() <{level = 10 : i32, message = "hsd,hde->hse"}> : () -> ()
    %cst_148 = arith.constant dense<0.000000e+00> : vector<4x8x8xf32>
    %209 = tpu.matmul %197, %208, %cst_148 {dimension_numbers = #tpu.dot_dimension_numbers<[2], [1], [1], [2], [0, 0, 0, 1, 1, 2], [0], [0]>} : vector<4x8x32xf32>, vector<4x32x8xf32>, vector<4x8x8xf32> -> vector<4x8x8xf32>
    "tpu.trace_stop"() : () -> ()
    %c0_149 = arith.constant 0 : index
    %c0_150 = arith.constant 0 : index
    %c0_151 = arith.constant 0 : index
    %210 = vector.load %arg35[%c0_149, %c0_150, %c0_151] : memref<4x1x8xf32, #tpu.memory_space<vmem>>, vector<4x1x8xf32>
    %211 = vector.broadcast %210 : vector<4x1x8xf32> to vector<4x8x8xf32>
    %212 = arith.addf %209, %211 : vector<4x8x8xf32>
    "tpu.trace_start"() <{level = 10 : i32, message = "hqd,hkd->hqk"}> : () -> ()
    %cst_152 = arith.constant dense<0.000000e+00> : vector<4x8x8xf32>
    %213 = tpu.matmul %202, %207, %cst_152 {dimension_numbers = #tpu.dot_dimension_numbers<[2], [2], [1], [1], [0, 0, 0, 1, 1, 1], [0], [0]>} : vector<4x8x8xf32>, vector<4x8x8xf32>, vector<4x8x8xf32> -> vector<4x8x8xf32>
    "tpu.trace_stop"() : () -> ()
    %cst_153 = arith.constant 0.353553385 : f32
    %214 = vector.broadcast %cst_153 : f32 to vector<4x8x8xf32>
    %215 = arith.mulf %213, %214 : vector<4x8x8xf32>
    %216 = vector.extract_strided_slice %7 {offsets = [0, 0], sizes = [1, 8], strides = [1, 1]} : vector<2x8xi1> to vector<1x8xi1>
    %217 = vector.shape_cast %216 : vector<1x8xi1> to vector<1x1x8xi1>
    %cst_154 = arith.constant -1.000000e+30 : f32
    %218 = vector.shape_cast %217 : vector<1x1x8xi1> to vector<1x1x8xi1>
    %219 = vector.broadcast %218 : vector<1x1x8xi1> to vector<4x8x8xi1>
    %220 = vector.broadcast %cst_154 : f32 to vector<4x8x8xf32>
    %221 = arith.select %219, %215, %220 : vector<4x8x8xi1>, vector<4x8x8xf32>
    %cst_155 = arith.constant dense<0xFF800000> : vector<4x8xf32>
    %222 = vector.multi_reduction <maximumf>, %221, %cst_155 [2] : vector<4x8x8xf32> to vector<4x8xf32>
    %223 = vector.shape_cast %222 : vector<4x8xf32> to vector<4x8x1xf32>
    %224 = vector.broadcast %223 : vector<4x8x1xf32> to vector<4x8x8xf32>
    %225 = arith.subf %221, %224 : vector<4x8x8xf32>
    %226 = math.exp %225 : vector<4x8x8xf32>
    %cst_156 = arith.constant dense<0.000000e+00> : vector<4x8xf32>
    %227 = vector.multi_reduction <add>, %226, %cst_156 [2] : vector<4x8x8xf32> to vector<4x8xf32>
    %228 = vector.shape_cast %227 : vector<4x8xf32> to vector<4x8x1xf32>
    %229 = tpu.reciprocal %228 {approx = true} : vector<4x8x1xf32> -> vector<4x8x1xf32>
    %230 = vector.broadcast %229 : vector<4x8x1xf32> to vector<4x8x8xf32>
    %231 = arith.mulf %226, %230 : vector<4x8x8xf32>
    "tpu.trace_start"() <{level = 10 : i32, message = "hqk,hkd->hqd"}> : () -> ()
    %cst_157 = arith.constant dense<0.000000e+00> : vector<4x8x8xf32>
    %232 = tpu.matmul %231, %212, %cst_157 {dimension_numbers = #tpu.dot_dimension_numbers<[2], [1], [1], [2], [0, 0, 0, 1, 1, 2], [0], [0]>} : vector<4x8x8xf32>, vector<4x8x8xf32>, vector<4x8x8xf32> -> vector<4x8x8xf32>
    "tpu.trace_stop"() : () -> ()
    %c0_158 = arith.constant 0 : index
    %c0_159 = arith.constant 0 : index
    %c0_160 = arith.constant 0 : index
    %233 = vector.load %arg36[%c0_158, %c0_159, %c0_160] : memref<4x8x32xf32, #tpu.memory_space<vmem>>, vector<4x8x32xf32>
    "tpu.trace_start"() <{level = 10 : i32, message = "hqd,hdm->hqm"}> : () -> ()
    %cst_161 = arith.constant dense<0.000000e+00> : vector<4x8x32xf32>
    %234 = tpu.matmul %232, %233, %cst_161 {dimension_numbers = #tpu.dot_dimension_numbers<[2], [1], [1], [2], [0, 0, 0, 1, 1, 2], [0], [0]>} : vector<4x8x8xf32>, vector<4x8x32xf32>, vector<4x8x32xf32> -> vector<4x8x32xf32>
    "tpu.trace_stop"() : () -> ()
    %cst_162 = arith.constant dense<0.000000e+00> : vector<8x32xf32>
    %235 = vector.multi_reduction <add>, %234, %cst_162 [0] : vector<4x8x32xf32> to vector<8x32xf32>
    %c0_163 = arith.constant 0 : index
    %c0_164 = arith.constant 0 : index
    %236 = vector.load %arg37[%c0_163, %c0_164] : memref<1x32xf32, #tpu.memory_space<vmem>>, vector<1x32xf32>
    %237 = vector.broadcast %236 : vector<1x32xf32> to vector<8x32xf32>
    %238 = arith.addf %235, %237 : vector<8x32xf32>
    %239 = vector.extract_strided_slice %194 {offsets = [8, 0], sizes = [8, 32], strides = [1, 1]} : vector<16x32xf32> to vector<8x32xf32>
    %240 = vector.shape_cast %239 : vector<8x32xf32> to vector<1x8x32xf32>
    %241 = vector.broadcast %240 : vector<1x8x32xf32> to vector<4x8x32xf32>
    %c0_165 = arith.constant 0 : index
    %c0_166 = arith.constant 0 : index
    %c0_167 = arith.constant 0 : index
    %242 = vector.load %arg30[%c0_165, %c0_166, %c0_167] : memref<4x32x8xf32, #tpu.memory_space<vmem>>, vector<4x32x8xf32>
    "tpu.trace_start"() <{level = 10 : i32, message = "hsd,hde->hse"}> : () -> ()
    %cst_168 = arith.constant dense<0.000000e+00> : vector<4x8x8xf32>
    %243 = tpu.matmul %241, %242, %cst_168 {dimension_numbers = #tpu.dot_dimension_numbers<[2], [1], [1], [2], [0, 0, 0, 1, 1, 2], [0], [0]>} : vector<4x8x32xf32>, vector<4x32x8xf32>, vector<4x8x8xf32> -> vector<4x8x8xf32>
    "tpu.trace_stop"() : () -> ()
    %c0_169 = arith.constant 0 : index
    %c0_170 = arith.constant 0 : index
    %c0_171 = arith.constant 0 : index
    %244 = vector.load %arg33[%c0_169, %c0_170, %c0_171] : memref<4x1x8xf32, #tpu.memory_space<vmem>>, vector<4x1x8xf32>
    %245 = vector.broadcast %244 : vector<4x1x8xf32> to vector<4x8x8xf32>
    %246 = arith.addf %243, %245 : vector<4x8x8xf32>
    %c0_172 = arith.constant 0 : index
    %c0_173 = arith.constant 0 : index
    %c0_174 = arith.constant 0 : index
    %247 = vector.load %arg31[%c0_172, %c0_173, %c0_174] : memref<4x32x8xf32, #tpu.memory_space<vmem>>, vector<4x32x8xf32>
    "tpu.trace_start"() <{level = 10 : i32, message = "hsd,hde->hse"}> : () -> ()
    %cst_175 = arith.constant dense<0.000000e+00> : vector<4x8x8xf32>
    %248 = tpu.matmul %241, %247, %cst_175 {dimension_numbers = #tpu.dot_dimension_numbers<[2], [1], [1], [2], [0, 0, 0, 1, 1, 2], [0], [0]>} : vector<4x8x32xf32>, vector<4x32x8xf32>, vector<4x8x8xf32> -> vector<4x8x8xf32>
    "tpu.trace_stop"() : () -> ()
    %c0_176 = arith.constant 0 : index
    %c0_177 = arith.constant 0 : index
    %c0_178 = arith.constant 0 : index
    %249 = vector.load %arg34[%c0_176, %c0_177, %c0_178] : memref<4x1x8xf32, #tpu.memory_space<vmem>>, vector<4x1x8xf32>
    %250 = vector.broadcast %249 : vector<4x1x8xf32> to vector<4x8x8xf32>
    %251 = arith.addf %248, %250 : vector<4x8x8xf32>
    %c0_179 = arith.constant 0 : index
    %c0_180 = arith.constant 0 : index
    %c0_181 = arith.constant 0 : index
    %252 = vector.load %arg32[%c0_179, %c0_180, %c0_181] : memref<4x32x8xf32, #tpu.memory_space<vmem>>, vector<4x32x8xf32>
    "tpu.trace_start"() <{level = 10 : i32, message = "hsd,hde->hse"}> : () -> ()
    %cst_182 = arith.constant dense<0.000000e+00> : vector<4x8x8xf32>
    %253 = tpu.matmul %241, %252, %cst_182 {dimension_numbers = #tpu.dot_dimension_numbers<[2], [1], [1], [2], [0, 0, 0, 1, 1, 2], [0], [0]>} : vector<4x8x32xf32>, vector<4x32x8xf32>, vector<4x8x8xf32> -> vector<4x8x8xf32>
    "tpu.trace_stop"() : () -> ()
    %c0_183 = arith.constant 0 : index
    %c0_184 = arith.constant 0 : index
    %c0_185 = arith.constant 0 : index
    %254 = vector.load %arg35[%c0_183, %c0_184, %c0_185] : memref<4x1x8xf32, #tpu.memory_space<vmem>>, vector<4x1x8xf32>
    %255 = vector.broadcast %254 : vector<4x1x8xf32> to vector<4x8x8xf32>
    %256 = arith.addf %253, %255 : vector<4x8x8xf32>
    "tpu.trace_start"() <{level = 10 : i32, message = "hqd,hkd->hqk"}> : () -> ()
    %cst_186 = arith.constant dense<0.000000e+00> : vector<4x8x8xf32>
    %257 = tpu.matmul %246, %251, %cst_186 {dimension_numbers = #tpu.dot_dimension_numbers<[2], [2], [1], [1], [0, 0, 0, 1, 1, 1], [0], [0]>} : vector<4x8x8xf32>, vector<4x8x8xf32>, vector<4x8x8xf32> -> vector<4x8x8xf32>
    "tpu.trace_stop"() : () -> ()
    %cst_187 = arith.constant 0.353553385 : f32
    %258 = vector.broadcast %cst_187 : f32 to vector<4x8x8xf32>
    %259 = arith.mulf %257, %258 : vector<4x8x8xf32>
    %260 = vector.extract_strided_slice %7 {offsets = [1, 0], sizes = [1, 8], strides = [1, 1]} : vector<2x8xi1> to vector<1x8xi1>
    %261 = vector.shape_cast %260 : vector<1x8xi1> to vector<1x1x8xi1>
    %cst_188 = arith.constant -1.000000e+30 : f32
    %262 = vector.shape_cast %261 : vector<1x1x8xi1> to vector<1x1x8xi1>
    %263 = vector.broadcast %262 : vector<1x1x8xi1> to vector<4x8x8xi1>
    %264 = vector.broadcast %cst_188 : f32 to vector<4x8x8xf32>
    %265 = arith.select %263, %259, %264 : vector<4x8x8xi1>, vector<4x8x8xf32>
    %cst_189 = arith.constant dense<0xFF800000> : vector<4x8xf32>
    %266 = vector.multi_reduction <maximumf>, %265, %cst_189 [2] : vector<4x8x8xf32> to vector<4x8xf32>
    %267 = vector.shape_cast %266 : vector<4x8xf32> to vector<4x8x1xf32>
    %268 = vector.broadcast %267 : vector<4x8x1xf32> to vector<4x8x8xf32>
    %269 = arith.subf %265, %268 : vector<4x8x8xf32>
    %270 = math.exp %269 : vector<4x8x8xf32>
    %cst_190 = arith.constant dense<0.000000e+00> : vector<4x8xf32>
    %271 = vector.multi_reduction <add>, %270, %cst_190 [2] : vector<4x8x8xf32> to vector<4x8xf32>
    %272 = vector.shape_cast %271 : vector<4x8xf32> to vector<4x8x1xf32>
    %273 = tpu.reciprocal %272 {approx = true} : vector<4x8x1xf32> -> vector<4x8x1xf32>
    %274 = vector.broadcast %273 : vector<4x8x1xf32> to vector<4x8x8xf32>
    %275 = arith.mulf %270, %274 : vector<4x8x8xf32>
    "tpu.trace_start"() <{level = 10 : i32, message = "hqk,hkd->hqd"}> : () -> ()
    %cst_191 = arith.constant dense<0.000000e+00> : vector<4x8x8xf32>
    %276 = tpu.matmul %275, %256, %cst_191 {dimension_numbers = #tpu.dot_dimension_numbers<[2], [1], [1], [2], [0, 0, 0, 1, 1, 2], [0], [0]>} : vector<4x8x8xf32>, vector<4x8x8xf32>, vector<4x8x8xf32> -> vector<4x8x8xf32>
    "tpu.trace_stop"() : () -> ()
    %c0_192 = arith.constant 0 : index
    %c0_193 = arith.constant 0 : index
    %c0_194 = arith.constant 0 : index
    %277 = vector.load %arg36[%c0_192, %c0_193, %c0_194] : memref<4x8x32xf32, #tpu.memory_space<vmem>>, vector<4x8x32xf32>
    "tpu.trace_start"() <{level = 10 : i32, message = "hqd,hdm->hqm"}> : () -> ()
    %cst_195 = arith.constant dense<0.000000e+00> : vector<4x8x32xf32>
    %278 = tpu.matmul %276, %277, %cst_195 {dimension_numbers = #tpu.dot_dimension_numbers<[2], [1], [1], [2], [0, 0, 0, 1, 1, 2], [0], [0]>} : vector<4x8x8xf32>, vector<4x8x32xf32>, vector<4x8x32xf32> -> vector<4x8x32xf32>
    "tpu.trace_stop"() : () -> ()
    %cst_196 = arith.constant dense<0.000000e+00> : vector<8x32xf32>
    %279 = vector.multi_reduction <add>, %278, %cst_196 [0] : vector<4x8x32xf32> to vector<8x32xf32>
    %c0_197 = arith.constant 0 : index
    %c0_198 = arith.constant 0 : index
    %280 = vector.load %arg37[%c0_197, %c0_198] : memref<1x32xf32, #tpu.memory_space<vmem>>, vector<1x32xf32>
    %281 = vector.broadcast %280 : vector<1x32xf32> to vector<8x32xf32>
    %282 = arith.addf %279, %281 : vector<8x32xf32>
    %283 = tpu.concatenate %238, %282 in 0 : vector<8x32xf32>, vector<8x32xf32> -> vector<16x32xf32>
    %284 = arith.addf %194, %283 : vector<16x32xf32>
    %c0_199 = arith.constant 0 : index
    %c0_200 = arith.constant 0 : index
    %285 = vector.load %arg42[%c0_199, %c0_200] : memref<1x32xf32, #tpu.memory_space<vmem>>, vector<1x32xf32>
    %c0_201 = arith.constant 0 : index
    %c0_202 = arith.constant 0 : index
    %286 = vector.load %arg43[%c0_201, %c0_202] : memref<1x32xf32, #tpu.memory_space<vmem>>, vector<1x32xf32>
    %cst_203 = arith.constant dense<0.000000e+00> : vector<16xf32>
    %287 = vector.multi_reduction <add>, %284, %cst_203 [1] : vector<16x32xf32> to vector<16xf32>
    %288 = vector.shape_cast %287 : vector<16xf32> to vector<16x1xf32>
    %cst_204 = arith.constant 3.200000e+01 : f32
    %289 = vector.broadcast %cst_204 : f32 to vector<16x1xf32>
    %290 = arith.divf %288, %289 : vector<16x1xf32>
    %291 = vector.broadcast %290 : vector<16x1xf32> to vector<16x32xf32>
    %292 = arith.subf %284, %291 : vector<16x32xf32>
    %293 = arith.mulf %292, %292 : vector<16x32xf32>
    %cst_205 = arith.constant dense<0.000000e+00> : vector<16xf32>
    %294 = vector.multi_reduction <add>, %293, %cst_205 [1] : vector<16x32xf32> to vector<16xf32>
    %295 = vector.shape_cast %294 : vector<16xf32> to vector<16x1xf32>
    %cst_206 = arith.constant 3.200000e+01 : f32
    %296 = vector.broadcast %cst_206 : f32 to vector<16x1xf32>
    %297 = arith.divf %295, %296 : vector<16x1xf32>
    %298 = vector.broadcast %290 : vector<16x1xf32> to vector<16x32xf32>
    %299 = arith.subf %284, %298 : vector<16x32xf32>
    %cst_207 = arith.constant 9.99999974E-6 : f32
    %300 = vector.broadcast %cst_207 : f32 to vector<16x1xf32>
    %301 = arith.addf %297, %300 : vector<16x1xf32>
    %302 = math.rsqrt %301 : vector<16x1xf32>
    %303 = vector.broadcast %302 : vector<16x1xf32> to vector<16x32xf32>
    %304 = arith.mulf %299, %303 : vector<16x32xf32>
    %305 = vector.broadcast %285 : vector<1x32xf32> to vector<16x32xf32>
    %306 = arith.mulf %304, %305 : vector<16x32xf32>
    %307 = vector.broadcast %286 : vector<1x32xf32> to vector<16x32xf32>
    %308 = arith.addf %306, %307 : vector<16x32xf32>
    %c0_208 = arith.constant 0 : index
    %c0_209 = arith.constant 0 : index
    %309 = vector.load %arg38[%c0_208, %c0_209] : memref<32x64xf32, #tpu.memory_space<vmem>>, vector<32x64xf32>
    %cst_210 = arith.constant dense<0.000000e+00> : vector<16x64xf32>
    %310 = tpu.matmul %308, %309, %cst_210 {dimension_numbers = #tpu.dot_dimension_numbers<[1], [0], [0], [1], [0, 0, 1, 1], [], []>} : vector<16x32xf32>, vector<32x64xf32>, vector<16x64xf32> -> vector<16x64xf32>
    %c0_211 = arith.constant 0 : index
    %c0_212 = arith.constant 0 : index
    %311 = vector.load %arg39[%c0_211, %c0_212] : memref<1x64xf32, #tpu.memory_space<vmem>>, vector<1x64xf32>
    %312 = vector.broadcast %311 : vector<1x64xf32> to vector<16x64xf32>
    %313 = arith.addf %310, %312 : vector<16x64xf32>
    %cst_213 = arith.constant 0.000000e+00 : f32
    %314 = vector.broadcast %cst_213 : f32 to vector<16x64xf32>
    %315 = arith.maximumf %313, %314 : vector<16x64xf32>
    %c0_214 = arith.constant 0 : index
    %c0_215 = arith.constant 0 : index
    %316 = vector.load %arg40[%c0_214, %c0_215] : memref<64x32xf32, #tpu.memory_space<vmem>>, vector<64x32xf32>
    %cst_216 = arith.constant dense<0.000000e+00> : vector<16x32xf32>
    %317 = tpu.matmul %315, %316, %cst_216 {dimension_numbers = #tpu.dot_dimension_numbers<[1], [0], [0], [1], [0, 0, 1, 1], [], []>} : vector<16x64xf32>, vector<64x32xf32>, vector<16x32xf32> -> vector<16x32xf32>
    %c0_217 = arith.constant 0 : index
    %c0_218 = arith.constant 0 : index
    %318 = vector.load %arg41[%c0_217, %c0_218] : memref<1x32xf32, #tpu.memory_space<vmem>>, vector<1x32xf32>
    %319 = vector.broadcast %318 : vector<1x32xf32> to vector<16x32xf32>
    %320 = arith.addf %317, %319 : vector<16x32xf32>
    %321 = arith.addf %308, %320 : vector<16x32xf32>
    %c0_219 = arith.constant 0 : index
    %c0_220 = arith.constant 0 : index
    %322 = vector.load %arg44[%c0_219, %c0_220] : memref<1x32xf32, #tpu.memory_space<vmem>>, vector<1x32xf32>
    %c0_221 = arith.constant 0 : index
    %c0_222 = arith.constant 0 : index
    %323 = vector.load %arg45[%c0_221, %c0_222] : memref<1x32xf32, #tpu.memory_space<vmem>>, vector<1x32xf32>
    %cst_223 = arith.constant dense<0.000000e+00> : vector<16xf32>
    %324 = vector.multi_reduction <add>, %321, %cst_223 [1] : vector<16x32xf32> to vector<16xf32>
    %325 = vector.shape_cast %324 : vector<16xf32> to vector<16x1xf32>
    %cst_224 = arith.constant 3.200000e+01 : f32
    %326 = vector.broadcast %cst_224 : f32 to vector<16x1xf32>
    %327 = arith.divf %325, %326 : vector<16x1xf32>
    %328 = vector.broadcast %327 : vector<16x1xf32> to vector<16x32xf32>
    %329 = arith.subf %321, %328 : vector<16x32xf32>
    %330 = arith.mulf %329, %329 : vector<16x32xf32>
    %cst_225 = arith.constant dense<0.000000e+00> : vector<16xf32>
    %331 = vector.multi_reduction <add>, %330, %cst_225 [1] : vector<16x32xf32> to vector<16xf32>
    %332 = vector.shape_cast %331 : vector<16xf32> to vector<16x1xf32>
    %cst_226 = arith.constant 3.200000e+01 : f32
    %333 = vector.broadcast %cst_226 : f32 to vector<16x1xf32>
    %334 = arith.divf %332, %333 : vector<16x1xf32>
    %335 = vector.broadcast %327 : vector<16x1xf32> to vector<16x32xf32>
    %336 = arith.subf %321, %335 : vector<16x32xf32>
    %cst_227 = arith.constant 9.99999974E-6 : f32
    %337 = vector.broadcast %cst_227 : f32 to vector<16x1xf32>
    %338 = arith.addf %334, %337 : vector<16x1xf32>
    %339 = math.rsqrt %338 : vector<16x1xf32>
    %340 = vector.broadcast %339 : vector<16x1xf32> to vector<16x32xf32>
    %341 = arith.mulf %336, %340 : vector<16x32xf32>
    %342 = vector.broadcast %322 : vector<1x32xf32> to vector<16x32xf32>
    %343 = arith.mulf %341, %342 : vector<16x32xf32>
    %344 = vector.broadcast %323 : vector<1x32xf32> to vector<16x32xf32>
    %345 = arith.addf %343, %344 : vector<16x32xf32>
    %346 = vector.broadcast %4 : vector<16x1xf32> to vector<16x32xf32>
    %347 = arith.mulf %345, %346 : vector<16x32xf32>
    %348 = vector.extract_strided_slice %347 {offsets = [0, 0], sizes = [8, 32], strides = [1, 1]} : vector<16x32xf32> to vector<8x32xf32>
    %349 = vector.extract_strided_slice %4 {offsets = [0, 0], sizes = [8, 1], strides = [1, 1]} : vector<16x1xf32> to vector<8x1xf32>
    %cst_228 = arith.constant dense<0.000000e+00> : vector<1xf32>
    %350 = vector.multi_reduction <add>, %349, %cst_228 [0] : vector<8x1xf32> to vector<1xf32>
    %351 = vector.shape_cast %350 : vector<1xf32> to vector<1x1xf32>
    %cst_229 = arith.constant 1.000000e+00 : f32
    %352 = vector.broadcast %cst_229 : f32 to vector<1x1xf32>
    %353 = arith.maximumf %351, %352 : vector<1x1xf32>
    %cst_230 = arith.constant dense<0.000000e+00> : vector<32xf32>
    %354 = vector.multi_reduction <add>, %348, %cst_230 [0] : vector<8x32xf32> to vector<32xf32>
    %355 = vector.shape_cast %354 : vector<32xf32> to vector<1x32xf32>
    %356 = vector.broadcast %353 : vector<1x1xf32> to vector<1x32xf32>
    %357 = arith.divf %355, %356 : vector<1x32xf32>
    %358 = vector.extract_strided_slice %347 {offsets = [8, 0], sizes = [8, 32], strides = [1, 1]} : vector<16x32xf32> to vector<8x32xf32>
    %359 = vector.extract_strided_slice %4 {offsets = [8, 0], sizes = [8, 1], strides = [1, 1]} : vector<16x1xf32> to vector<8x1xf32>
    %cst_231 = arith.constant dense<0.000000e+00> : vector<1xf32>
    %360 = vector.multi_reduction <add>, %359, %cst_231 [0] : vector<8x1xf32> to vector<1xf32>
    %361 = vector.shape_cast %360 : vector<1xf32> to vector<1x1xf32>
    %cst_232 = arith.constant 1.000000e+00 : f32
    %362 = vector.broadcast %cst_232 : f32 to vector<1x1xf32>
    %363 = arith.maximumf %361, %362 : vector<1x1xf32>
    %cst_233 = arith.constant dense<0.000000e+00> : vector<32xf32>
    %364 = vector.multi_reduction <add>, %358, %cst_233 [0] : vector<8x32xf32> to vector<32xf32>
    %365 = vector.shape_cast %364 : vector<32xf32> to vector<1x32xf32>
    %366 = vector.broadcast %363 : vector<1x1xf32> to vector<1x32xf32>
    %367 = arith.divf %365, %366 : vector<1x32xf32>
    %368 = tpu.concatenate %357, %367 in 0 : vector<1x32xf32>, vector<1x32xf32> -> vector<2x32xf32>
    %c0_234 = arith.constant 0 : index
    %c0_235 = arith.constant 0 : index
    %369 = vector.load %arg46[%c0_234, %c0_235] : memref<32x32xf32, #tpu.memory_space<vmem>>, vector<32x32xf32>
    %cst_236 = arith.constant dense<0.000000e+00> : vector<2x32xf32>
    %370 = tpu.matmul %368, %369, %cst_236 {dimension_numbers = #tpu.dot_dimension_numbers<[1], [0], [0], [1], [0, 0, 1, 1], [], []>} : vector<2x32xf32>, vector<32x32xf32>, vector<2x32xf32> -> vector<2x32xf32>
    %c0_237 = arith.constant 0 : index
    %c0_238 = arith.constant 0 : index
    %371 = vector.load %arg47[%c0_237, %c0_238] : memref<1x32xf32, #tpu.memory_space<vmem>>, vector<1x32xf32>
    %372 = vector.broadcast %371 : vector<1x32xf32> to vector<2x32xf32>
    %373 = arith.addf %370, %372 : vector<2x32xf32>
    %cst_239 = arith.constant 0.000000e+00 : f32
    %374 = vector.broadcast %cst_239 : f32 to vector<2x32xf32>
    %375 = arith.maximumf %373, %374 : vector<2x32xf32>
    %c0_240 = arith.constant 0 : index
    %c0_241 = arith.constant 0 : index
    %376 = vector.load %arg48[%c0_240, %c0_241] : memref<32x2xf32, #tpu.memory_space<vmem>>, vector<32x2xf32>
    %cst_242 = arith.constant dense<0.000000e+00> : vector<2x2xf32>
    %377 = tpu.matmul %375, %376, %cst_242 {dimension_numbers = #tpu.dot_dimension_numbers<[1], [0], [0], [1], [0, 0, 1, 1], [], []>} : vector<2x32xf32>, vector<32x2xf32>, vector<2x2xf32> -> vector<2x2xf32>
    %c0_243 = arith.constant 0 : index
    %c0_244 = arith.constant 0 : index
    %378 = vector.load %arg49[%c0_243, %c0_244] : memref<1x2xf32, #tpu.memory_space<vmem>>, vector<1x2xf32>
    %379 = vector.broadcast %378 : vector<1x2xf32> to vector<2x2xf32>
    %380 = arith.addf %377, %379 : vector<2x2xf32>
    %c0_245 = arith.constant 0 : index
    %c0_246 = arith.constant 0 : index
    %381 = vector.load %arg50[%c0_245, %c0_246] : memref<2x2xf32, #tpu.memory_space<vmem>>, vector<2x2xf32>
    tpu.vector_store %arg50[%c0_245, %c0_246], %380 {strides = array<i32>} : memref<2x2xf32, #tpu.memory_space<vmem>>, vector<2x2xf32>,
    return
  }
}

</mosaic_0001>

<bundles_post_ra>
// kernel: _lambda_.1
= control target key start
LH: loop header
LB: loop body
LE: loop exit
PB: predicated region body
PF: predicated region fallthrough
CT: control target
= control target key end

     0   :  { %s13591_s6 = smov 1   ;;  %s13592_s10 = smov 2   ;;  %s16729_s0 = inlined_call_operand.smem [shape: u32[51], index: -1, kind: input, shape index: {}] }
   0x1   :  { %s13654_s5 = sld [smem:[%s16729_s0]]   ;;  %s13593_s14 = smov 3  }
   0x2   :  { %s13659_s9 = sld [smem:[%s16729_s0 + %s13591_s6]]   ;;  %s13594_s18 = smov 4  }
   0x3   :  { %s13664_s13 = sld [smem:[%s16729_s0 + %s13592_s10]]   ;;  %s13595_s22 = smov 5  }
   0x4   :  { %s13669_s17 = sld [smem:[%s16729_s0 + %s13593_s14]]   ;;  %s13596_s26 = smov 6  }
   0x5   :  { %s13674_s21 = sld [smem:[%s16729_s0 + %s13594_s18]]   ;;  %s13597_s30 = smov 7  }
   0x6   :  { %s13679_s25 = sld [smem:[%s16729_s0 + %s13595_s22]]   ;;  %s13598_s4 = smov 8  }
   0x7   :  { %s13684_s29 = sld [smem:[%s16729_s0 + %s13596_s26]]   ;;  %s13599_s10 = smov 9  }
   0x8   :  { %s13689_s3 = sld [smem:[%s16729_s0 + %s13597_s30]]   ;;  %s13600_s15 = smov 10  }
   0x9   :  { %s13694_s8 = sld [smem:[%s16729_s0 + %s13598_s4]]   ;;  %s13601_s20 = smov 11  }
   0xa   :  { %16752 = sst [smem:[#allocation5_spill]] %s13669_s17  ;;  %s13602_s26 = smov 12  }
   0xb   :  { %16753 = sst [smem:[#allocation6_spill]] %s13674_s21  ;;  %s13603_s1 = smov 13  }
   0xc   :  { %s13699_s14 = sld [smem:[%s16729_s0 + %s13599_s10]]   ;;  %s13604_s7 = smov 14  }
   0xd   :  { %s13704_s19 = sld [smem:[%s16729_s0 + %s13600_s15]]   ;;  %s13605_s15 = smov 15  }
   0xe   :  { %s13709_s24 = sld [smem:[%s16729_s0 + %s13601_s20]]   ;;  %s13606_s22 = smov 16  }
   0xf   :  { %s13714_s30 = sld [smem:[%s16729_s0 + %s13602_s26]]   ;;  %s13607_s28 = smov 17  }
  0x10   :  { %s13719_s6 = sld [smem:[%s16729_s0 + %s13603_s1]]  }
  0x11   :  { %s13724_s12 = sld [smem:[%s16729_s0 + %s13604_s7]]   ;;  %s13608_s7 = smov 18  }
  0x12   :  { %s13729_s20 = sld [smem:[%s16729_s0 + %s13605_s15]]   ;;  %s13609_s15 = smov 19  }
  0x13   :  { %s13734_s27 = sld [smem:[%s16729_s0 + %s13606_s22]]   ;;  %s13610_s22 = smov 20  }
  0x14   :  { %s13739_s4 = sld [smem:[%s16729_s0 + %s13607_s28]]   ;;  %s13611_s28 = smov 21  }
  0x15   :  { %s13744_s17 = sld [smem:[%s16729_s0 + %s13608_s7]]   ;;  %s13612_s7 = smov 22  }
  0x16   :  { %s13749_s21 = sld [smem:[%s16729_s0 + %s13609_s15]]   ;;  %s13613_s15 = smov 23  }
  0x19   :  { %16754 = sst [smem:[#allocation7_spill]] %s13734_s27 }
  0x1a   :  { %16755 = sst [smem:[#allocation8_spill]] %s13739_s4 }
  0x1b   :  { %16756 = sst [smem:[#allocation9_spill]] %s13744_s17 }
  0x1c   :  { %16757 = sst [smem:[#allocation10_spill]] %s13749_s21 }
  0x1d   :  { %s13754_s27 = sld [smem:[%s16729_s0 + %s13610_s22]]   ;;  %s13614_s22 = smov 24  }
  0x1e   :  { %s13759_s4 = sld [smem:[%s16729_s0 + %s13611_s28]]   ;;  %s13615_s28 = smov 25  }
  0x1f   :  { %s13764_s17 = sld [smem:[%s16729_s0 + %s13612_s7]]   ;;  %s13616_s7 = smov 26  }
  0x20   :  { %s13769_s21 = sld [smem:[%s16729_s0 + %s13613_s15]]   ;;  %s13617_s15 = smov 27  }
  0x23   :  { %16758 = sst [smem:[#allocation11_spill]] %s13754_s27 }
  0x24   :  { %16759 = sst [smem:[#allocation12_spill]] %s13759_s4 }
  0x25   :  { %16760 = sst [smem:[#allocation13_spill]] %s13764_s17 }
  0x26   :  { %16761 = sst [smem:[#allocation14_spill]] %s13769_s21 }
  0x27   :  { %s13774_s27 = sld [smem:[%s16729_s0 + %s13614_s22]]   ;;  %s13618_s22 = smov 28  }
  0x28   :  { %s13779_s4 = sld [smem:[%s16729_s0 + %s13615_s28]]   ;;  %s13619_s28 = smov 29  }
  0x29   :  { %s13784_s17 = sld [smem:[%s16729_s0 + %s13616_s7]]   ;;  %s13620_s7 = smov 30  }
  0x2a   :  { %s13789_s21 = sld [smem:[%s16729_s0 + %s13617_s15]]   ;;  %s13621_s15 = smov 31  }
  0x2d   :  { %16762 = sst [smem:[#allocation15_spill]] %s13774_s27 }
  0x2e   :  { %16763 = sst [smem:[#allocation16_spill]] %s13779_s4 }
  0x2f   :  { %16764 = sst [smem:[#allocation17_spill]] %s13784_s17 }
  0x30   :  { %16765 = sst [smem:[#allocation18_spill]] %s13789_s21 }
  0x31   :  { %s13794_s27 = sld [smem:[%s16729_s0 + %s13618_s22]]   ;;  %s13622_s22 = smov 32  }
  0x32   :  { %s13799_s4 = sld [smem:[%s16729_s0 + %s13619_s28]]   ;;  %s13623_s28 = smov 33  }
  0x33   :  { %s13804_s17 = sld [smem:[%s16729_s0 + %s13620_s7]]   ;;  %s13624_s7 = smov 34  }
  0x34   :  { %s13809_s21 = sld [smem:[%s16729_s0 + %s13621_s15]]   ;;  %s13625_s15 = smov 35  }
  0x37   :  { %16766 = sst [smem:[#allocation19_spill]] %s13794_s27 }
  0x38   :  { %16767 = sst [smem:[#allocation20_spill]] %s13799_s4 }
  0x39   :  { %16768 = sst [smem:[#allocation21_spill]] %s13804_s17 }
  0x3a   :  { %16769 = sst [smem:[#allocation22_spill]] %s13809_s21 }
  0x3b   :  { %s13814_s27 = sld [smem:[%s16729_s0 + %s13622_s22]]   ;;  %s13626_s22 = smov 36  }
  0x3c   :  { %s13819_s4 = sld [smem:[%s16729_s0 + %s13623_s28]]   ;;  %s13627_s28 = smov 37  }
  0x3d   :  { %s13824_s17 = sld [smem:[%s16729_s0 + %s13624_s7]]   ;;  %s13628_s7 = smov 38  }
  0x3e   :  { %s13829_s21 = sld [smem:[%s16729_s0 + %s13625_s15]]   ;;  %s13629_s15 = smov 39  }
  0x41   :  { %16770 = sst [smem:[#allocation23_spill]] %s13814_s27 }
  0x42   :  { %16771 = sst [smem:[#allocation24_spill]] %s13819_s4 }
  0x43   :  { %16772 = sst [smem:[#allocation25_spill]] %s13824_s17 }
  0x44   :  { %16773 = sst [smem:[#allocation26_spill]] %s13829_s21 }
  0x45   :  { %s13834_s27 = sld [smem:[%s16729_s0 + %s13626_s22]]   ;;  %s13630_s22 = smov 40  }
  0x46   :  { %s13839_s4 = sld [smem:[%s16729_s0 + %s13627_s28]]   ;;  %s13631_s28 = smov 41  }
  0x47   :  { %s13844_s17 = sld [smem:[%s16729_s0 + %s13628_s7]]   ;;  %s13632_s7 = smov 42  }
  0x48   :  { %s13849_s21 = sld [smem:[%s16729_s0 + %s13629_s15]]   ;;  %s13633_s15 = smov 43  }
  0x4b   :  { %16774 = sst [smem:[#allocation27_spill]] %s13834_s27 }
  0x4c   :  { %16775 = sst [smem:[#allocation28_spill]] %s13839_s4 }
  0x4d   :  { %16776 = sst [smem:[#allocation29_spill]] %s13844_s17 }
  0x4e   :  { %16777 = sst [smem:[#allocation30_spill]] %s13849_s21 }
  0x4f   :  { %s13854_s27 = sld [smem:[%s16729_s0 + %s13630_s22]]   ;;  %s13634_s22 = smov 44  }
  0x50   :  { %s13859_s4 = sld [smem:[%s16729_s0 + %s13631_s28]]   ;;  %s13635_s28 = smov 45  }
  0x51   :  { %s13864_s17 = sld [smem:[%s16729_s0 + %s13632_s7]]   ;;  %s13636_s7 = smov 46  }
  0x52   :  { %s13869_s21 = sld [smem:[%s16729_s0 + %s13633_s15]]   ;;  %s13637_s15 = smov 47  }
  0x55   :  { %16778 = sst [smem:[#allocation31_spill]] %s13854_s27 }
  0x56   :  { %16779 = sst [smem:[#allocation32_spill]] %s13859_s4 }
  0x57   :  { %16780 = sst [smem:[#allocation33_spill]] %s13864_s17 }
  0x58   :  { %16781 = sst [smem:[#allocation34_spill]] %s13869_s21 }
  0x59   :  { %s13874_s27 = sld [smem:[%s16729_s0 + %s13634_s22]]   ;;  %s13638_s22 = smov 48  }
  0x5a   :  { %s13879_s4 = sld [smem:[%s16729_s0 + %s13635_s28]]   ;;  %s13639_s28 = smov 49  }
  0x5b   :  { %s13884_s17 = sld [smem:[%s16729_s0 + %s13636_s7]]   ;;  %s13640_s7 = smov 50  }
  0x5c   :  { %s13889_s21 = sld [smem:[%s16729_s0 + %s13637_s15]]  }
  0x5f   :  { %16782 = sst [smem:[#allocation35_spill]] %s13874_s27 }
  0x60   :  { %16783 = sst [smem:[#allocation36_spill]] %s13879_s4 }
  0x61   :  { %16784 = sst [smem:[#allocation37_spill]] %s13884_s17 }
  0x62   :  { %s13894_s27 = sld [smem:[%s16729_s0 + %s13638_s22]]  }
  0x63   :  { %s13899_s4 = sld [smem:[%s16729_s0 + %s13639_s28]]  }
  0x64   :  { %s13904_s17 = sld [smem:[%s16729_s0 + %s13640_s7]]  }
  0x65   :  { %v223_v0 = vld [vmem:[%s13684_s29] sm:$0x3f]  ;;  %vm238_vm0 = vcmask 1045504   ;;  %v427_v1 = vld [vmem:[%s13704_s19 + $0x8] sm:$0x3]  ;;  %vm442_vm1 = vcmask 1041408  }
  0x66   :  { %12303 = vmatprep.subr.msk.mxu1 %vm238_vm0, %v223_v0  ;;  %12315 = vmatprep.subr.msk.mxu0 %vm442_vm1, %v427_v1  ;;  %v221_v2 = vld [vmem:[%s13654_s5] sm:$0xff]  ;;  %vm231_vm2 = vcmask 48128   ;;  %v222_v3 = vld [vmem:[%s13654_s5 + $0x8] sm:$0xff]  ;;  %vm435_vm3 = vcmask 80896  }
  0x67   :  { %v426_v4 = vld [vmem:[%s13704_s19] sm:$0xff]  ;;  %12304 = vmatpush3.msk.msra.mxu1 %vm238_vm0, %v223_v0  ;;  %12305 = vmatprep.mubr.msk.f32.mxu1 %vm231_vm2, %v221_v2 }
  0x68   :  { %v424_v5 = vld [vmem:[%s13659_s9] sm:$0xff] }
  0x69   :  { %106 = vsyncpa [#allocation3], 0  ;;  %12316 = vmatpush3.msk.msra.mxu0 %vm442_vm1, %v427_v1  ;;  %12306 = vmatmul.mubr.msk.f32.vlgmr.msra.gmra.mxu1 %vm231_vm2, %v222_v3  ;;  %v425_v6 = vld [vmem:[%s13659_s9 + $0x8] sm:$0xff]  ;;  %v319_v8 = vld [vmem:[%s13694_s8] sm:$0xff]  ;;  %v13641_v11 = vmov 0   ;;  %v13642_v12 = vmov 1  }
  0x6a   :  { %12317 = vmatprep.subr.mxu0 %v426_v4  ;;  %12319 = vmatprep.mubr.msk.f32.mxu0 %vm435_vm3, %v424_v5  ;;  %v320_v7 = vld [vmem:[%s13694_s8 + $0x8] sm:$0xff]  ;;  %v217_v10 = vld [vmem:[%s13664_s13] sm:$0xff]  ;;  %vm328_vm4 = vcmask 130048   ;;  %v13643_v28 = vmov 0.0   ;;  %v628_v29 = vld [vmem:[%s13724_s12 + $0x18] sm:$0xff]  ;;  %vm13644_vm5 = vmmov 0  }
  0x6b   :  { %12318 = vmatpush3.msra.mxu0 %v426_v4  ;;  %12308 = vmatprep.subr.mxu1 %v320_v7  ;;  %v524_v9 = vld [vmem:[%s13714_s30 + $0x8] sm:$0xff]  ;;  %v11708_v13 = vld [vmem:[%s13689_s3] ss:$0 sm:$0xff]  ;;  %v632_v30 = vld [vmem:[%s13724_s12 + $0x38] sm:$0xff]  ;;  %vm669_vm6 = vcmask 261120   ;;  %s16785_s0 = sld [smem:[#allocation7_spill]] }
  0x6c   :  { %12320 = vmatmul.mubr.msk.f32.vlgmr.msra.gmra.mxu0 %vm435_vm3, %v425_v6  ;;  %12309 = vmatpush3.msra.mxu1 %v320_v7  ;;  %v11715_v19 = vld [vmem:[%s13709_s24] ss:$0 sm:$0xff]  ;;  %v627_v31 = vld [vmem:[%s13724_s12 + $0x10] sm:$0xff]  ;;  %v626_v33 = vld [vmem:[%s13724_s12 + $0x8] sm:$0xff]  ;;  %s16786_s5 = sld [smem:[#allocation9_spill]]  ;;  %vm1601_vm7 = vcmask 64512  }
  0x6d   :  { %12310 = vmatprep.subr.mxu1 %v319_v8  ;;  %13234 = vset.pattern.permute.xlu0 %v13641_v11  ;;  %v523_v25 = vld [vmem:[%s13714_s30] sm:$0xff]  ;;  %v631_v32 = vld [vmem:[%s13724_s12 + $0x30] sm:$0xff]  ;;  %v630_v34 = vld [vmem:[%s13724_s12 + $0x28] sm:$0xff]  ;;  %s16787_s9 = sld [smem:[#allocation8_spill]]  ;;  %vm2041_vm9 = vcmask 1041409   ;;  %vm2044_vm10 = vcmask 1042434  }
  0x6e   :  { %12311 = vmatpush3.msra.mxu1 %v319_v8  ;;  %13236 = vset.pattern.permute.xlu1 %v13641_v11  ;;  %v625_v35 = vld [vmem:[%s13724_s12] sm:$0xff]  ;;  %v636_v54 = vld [vmem:[%s13724_s12 + $0x58] sm:$0xff]  ;;  %v635_v56 = vld [vmem:[%s13724_s12 + $0x50] sm:$0xff]  ;;  %s16788_s29 = sld [smem:[#allocation10_spill]]  ;;  %vm2047_vm11 = vcmask 1043459   ;;  %vm2050_vm12 = vcmask 1044484  }
  0x6f   :  { %12322 = vmatprep.subr.mxu1 %v524_v9  ;;  %412 = vperm.xlu0 %13234, %v217_v10   ;;  %v629_v36 = vld [vmem:[%s13724_s12 + $0x20] sm:$0xff]  ;;  %v640_v55 = vld [vmem:[%s13724_s12 + $0x78] sm:$0xff]  ;;  %v639_v57 = vld [vmem:[%s13724_s12 + $0x70] sm:$0xff]  ;;  %s16789_s3 = sld [smem:[#allocation6_spill]]  ;;  %vm2053_vm13 = vcmask 1045509   ;;  %vm2056_vm14 = vcmask 1046534  }
  0x70   :  { %12329 = vmatprep.subr.mxu0 %v13643_v28  ;;  %12337 = vmatprep.mubr.msk.f32.mxu0 %vm13644_vm5, %v13643_v28  ;;  %v11712_v37 = vld [vmem:[%s13699_s14] ss:$0 sm:$0xff]  ;;  %v634_v58 = vld [vmem:[%s13724_s12 + $0x48] sm:$0xff]  ;;  %v956_v62 = vld [vmem:[%s13729_s20 + $0x18] sm:$0xff]  ;;  %vm2059_vm15 = vcmask 1047559   ;;  %vm4641_vm0 = vcmask 64513  }
  0x71   :  { %12330 = vmatpush3.msra.mxu0 %v628_v29  ;;  %v11719_v42 = vld [vmem:[%s13719_s6] ss:$0 sm:$0xff]  ;;  %v638_v59 = vld [vmem:[%s13724_s12 + $0x68] sm:$0xff]  ;;  %v960_v63 = vld [vmem:[%s13729_s20 + $0x38] sm:$0xff]  ;;  %vm4645_vm1 = vcmask 57344   ;;  %s16792_s8 = sld [smem:[#allocation17_spill]] }
  0x72   :  { %12331 = vmatprep.subr.mxu0 %v13643_v28  ;;  %v219_v47 = vld [vmem:[%s13679_s25] sm:$0xff]  ;;  %v955_v0 = vld [vmem:[%s13729_s20 + $0x10] sm:$0xff]  ;;  %v954_v2 = vld [vmem:[%s13729_s20 + $0x8] sm:$0xff]  ;;  %s16793_s14 = sld [smem:[#allocation18_spill]]  ;;  %vm5898_vm2 = vcmask 523264  }
  0x73   :  { %13235 = vset.pattern.permute.xlu0 %v13642_v12  ;;  %12332 = vmatpush3.msra.mxu0 %v627_v31  ;;  %v633_v60 = vld [vmem:[%s13724_s12 + $0x40] sm:$0xff]  ;;  %v959_v1 = vld [vmem:[%s13729_s20 + $0x30] sm:$0xff]  ;;  %v958_v3 = vld [vmem:[%s13729_s20 + $0x28] sm:$0xff]  ;;  %s16794_s19 = sld [smem:[#allocation13_spill]] }
  0x74   :  { %614 = vperm.xlu0 %13235, %v217_v10   ;;  %12333 = vmatprep.subr.mxu0 %v13643_v28  ;;  %v637_v61 = vld [vmem:[%s13724_s12 + $0x60] sm:$0xff]  ;;  %v964_v6 = vld [vmem:[%s13729_s20 + $0x58] sm:$0xff]  ;;  %v963_v8 = vld [vmem:[%s13729_s20 + $0x50] sm:$0xff]  ;;  %s16795_s24 = sld [smem:[#allocation15_spill]] }
  0x75   :  { %12334 = vmatpush3.msra.mxu0 %v626_v33  ;;  %v953_v4 = vld [vmem:[%s13729_s20] sm:$0xff]  ;;  %v968_v7 = vld [vmem:[%s13729_s20 + $0x78] sm:$0xff]  ;;  %v962_v10 = vld [vmem:[%s13729_s20 + $0x48] sm:$0xff]  ;;  %s16796_s30 = sld [smem:[#allocation14_spill]] }
  0x76   :  { %12335 = vmatprep.subr.mxu0 %v13643_v28  ;;  %v957_v5 = vld [vmem:[%s13729_s20 + $0x20] sm:$0xff]  ;;  %v966_v12 = vld [vmem:[%s13729_s20 + $0x68] sm:$0xff]  ;;  %s16797_s6 = sld [smem:[#allocation16_spill]] }
  0x77   :  { %12336 = vmatpush3.msra.mxu0 %v625_v35  ;;  %v1290_v29 = vld [vmem:[%s16785_s0 + $0x68] sm:$0xff]  ;;  %v1289_v31 = vld [vmem:[%s16785_s0 + $0x60] sm:$0xff]  ;;  %s16800_s15 = sld [smem:[#allocation20_spill]] }
  0x78   :  { %12351 = vmatprep.subr.mxu0 %v13643_v28  ;;  %s16801_s16 = sld [smem:[#allocation22_spill]] }
  0x79   :  { %s16802_s18 = sld [smem:[#allocation23_spill]] }
  0x7a   :  { %s16803_s22 = sld [smem:[#allocation25_spill]] }
  0x7b   :  { %s16804_s23 = sld [smem:[#allocation24_spill]] }
  0x7c   :  { %s16805_s26 = sld [smem:[#allocation26_spill]] }
  0x7d   :  { %s16806_s28 = sld [smem:[#allocation27_spill]] }
  0x7e   :  { %s16807_s1 = sld [smem:[#allocation28_spill]] }
  0x7f   :  { %s16808_s2 = sld [smem:[#allocation33_spill]] }
  0x80   :  { %s16809_s7 = sld [smem:[#allocation34_spill]] }
  0x81   :  { %s16810_s10 = sld [smem:[#allocation29_spill]] }
  0x82   :  { %s16811_s11 = sld [smem:[#allocation31_spill]] }
  0xea   :  { %v413_v39 = vpop.permute.xlu0 %412 }
  0xef   :  { %v615_v49 = vpop.permute.xlu0 %614 }
 0x129   :  { %v12307_v14 = vpop.f32.mrf.mxu1 }
 0x12a   :  { %v314_v15 = vadd.f32 %v12307_v14, %v11708_v13  ;;  %v965_v14 = vld [vmem:[%s13729_s20 + $0x60] sm:$0xff] }
 0x12b   :  { %v308_v16 = vpop.f32.mrf.mxu1 }
 0x12c   :  { %v309_v17 = vadd.f32 %v11708_v13, %v308_v16  ;;  %v12321_v18 = vpop.f32.mrf.mxu0  ;;  %v318_v22 = vmax.f32 %v314_v15, 0.0  ;;  %v961_v13 = vld [vmem:[%s13729_s20 + $0x40] sm:$0xff]  ;;  %v1280_v15 = vld [vmem:[%s16785_s0 + $0x18] sm:$0xff] }
 0x12d   :  { %v518_v23 = vadd.f32 %v12321_v18, %v11715_v19  ;;  %v1284_v16 = vld [vmem:[%s16785_s0 + $0x38] sm:$0xff]  ;;  %v1283_v18 = vld [vmem:[%s16785_s0 + $0x30] sm:$0xff] }
 0x12e   :  { %v317_v20 = vmax.f32 %v309_v17, 0.0  ;;  %v512_v21 = vpop.f32.mrf.mxu0  ;;  %v1279_v17 = vld [vmem:[%s16785_s0 + $0x10] sm:$0xff] }
 0x12f   :  { %v513_v24 = vadd.f32 %v11715_v19, %v512_v21  ;;  %v522_v27 = vmax.f32 %v518_v23, 0.0  ;;  %v1278_v19 = vld [vmem:[%s16785_s0 + $0x8] sm:$0xff]  ;;  %v1277_v21 = vld [vmem:[%s16785_s0] sm:$0xff]  ;;  %v1288_v23 = vld [vmem:[%s16785_s0 + $0x58] sm:$0xff] }
 0x130   :  { %12312 = vmatprep.mubr.msk.f32.mxu1 %vm328_vm4, %v317_v20  ;;  %v1282_v20 = vld [vmem:[%s16785_s0 + $0x28] sm:$0xff] }
 0x131   :  { %v521_v26 = vmax.f32 %v513_v24, 0.0  ;;  %12313 = vmatmul.mubr.msk.f32.vlgmr.msra.gmra.mxu1 %vm328_vm4, %v318_v22  ;;  %v1281_v22 = vld [vmem:[%s16785_s0 + $0x20] sm:$0xff]  ;;  %v1292_v24 = vld [vmem:[%s16785_s0 + $0x78] sm:$0xff] }
 0x132   :  { %12323 = vmatpush3.msra.mxu1 %v524_v9  ;;  %v967_v9 = vld [vmem:[%s13729_s20 + $0x70] sm:$0xff] }
 0x133   :  { %12326 = vmatprep.mubr.msk.f32.mxu1 %vm328_vm4, %v521_v26  ;;  %12324 = vmatprep.subr.mxu1 %v523_v25  ;;  %v1291_v26 = vld [vmem:[%s16785_s0 + $0x70] sm:$0xff] }
 0x134   :  { %12325 = vmatpush3.msra.mxu1 %v523_v25  ;;  %v1287_v25 = vld [vmem:[%s16785_s0 + $0x50] sm:$0xff] }
 0x135   :  { %12327 = vmatmul.mubr.msk.f32.vlgmr.msra.gmra.mxu1 %vm328_vm4, %v522_v27  ;;  %12340 = vmatprep.subr.mxu1 %v13643_v28  ;;  %v1286_v27 = vld [vmem:[%s16785_s0 + $0x48] sm:$0xff]  ;;  %vm11424_vm4 = vcmask 7168  }
 0x136   :  { %12341 = vmatpush3.msra.mxu1 %v632_v30  ;;  %12348 = vmatprep.mubr.msk.f32.mxu1 %vm13644_vm5, %v13643_v28  ;;  %v1285_v30 = vld [vmem:[%s16785_s0 + $0x40] sm:$0xff] }
 0x137   :  { %12342 = vmatprep.subr.mxu1 %v13643_v28 }
 0x138   :  { %12343 = vmatpush3.msra.mxu1 %v631_v32 }
 0x139   :  { %12344 = vmatprep.subr.mxu1 %v13643_v28 }
 0x13a   :  { %12345 = vmatpush3.msra.mxu1 %v630_v34 }
 0x13b   :  { %12346 = vmatprep.subr.mxu1 %v13643_v28 }
 0x13c   :  { %12347 = vmatpush3.msra.mxu1 %v629_v36 }
 0x13d   :  { %12362 = vmatprep.subr.mxu1 %v13643_v28 }
 0x1f1   :  { %v12314_v38 = vpop.f32.mrf.mxu1 }
 0x1f2   :  { %v13945_v40 = vadd.f32 %v12314_v38, %v11712_v37 }
 0x1f3   :  { %v401_v41 = vpop.f32.mrf.mxu1 }
 0x1f4   :  { %v402_v43 = vadd.f32 %v11712_v37, %v401_v41  ;;  %v11730_v41 = vld [vmem:[%s16786_s5] ss:$0 sm:$0xff] }
 0x1f5   :  { %v12328_v44 = vpop.f32.mrf.mxu1 }
 0x1f6   :  { %v420_v45 = vmul.f32 %v413_v39, %v402_v43  ;;  %v13948_v46 = vadd.f32 %v12328_v44, %v11719_v42 }
 0x1f7   :  { %v604_v48 = vpop.f32.mrf.mxu1 }
 0x1f8   :  { %v605_v50 = vadd.f32 %v11719_v42, %v604_v48  ;;  %v422_v51 = vadd.f32 %v420_v45, %v219_v47  ;;  %v11731_v42 = vld [vmem:[%s16786_s5 + $0x1] ss:$0 sm:$0xff]  ;;  %v11722_v45 = vld [vmem:[%s16787_s9] ss:$0 sm:$0xff] }
 0x1f9   :  { %v11723_v47 = vld [vmem:[%s16787_s9 + $0x1] ss:$0 sm:$0xff] }
 0x1fa   :  { %v621_v52 = vmul.f32 %v615_v49, %v605_v50 }
 0x1fc   :  { %v13951_v53 = vadd.f32 %v621_v52, %v422_v51 }
 0x1fe   :  { %12338 = vmatmul.mubr.msk.f32.vlgmr.msra.gmra.mxu0 %vm669_vm6, %v13951_v53  ;;  %12349 = vmatmul.mubr.msk.f32.vlgmr.msra.gmra.mxu1 %vm669_vm6, %v13951_v53 }
 0x1ff   :  { %12352 = vmatpush3.msra.mxu0 %v636_v54  ;;  %12363 = vmatpush3.msra.mxu1 %v640_v55  ;;  %v11732_v55 = vld [vmem:[%s16786_s5 + $0x2] ss:$0 sm:$0xff] }
 0x200   :  { %12353 = vmatprep.subr.mxu0 %v13643_v28  ;;  %12364 = vmatprep.subr.mxu1 %v13643_v28 }
 0x201   :  { %12354 = vmatpush3.msra.mxu0 %v635_v56  ;;  %12365 = vmatpush3.msra.mxu1 %v639_v57  ;;  %v11733_v56 = vld [vmem:[%s16786_s5 + $0x3] ss:$0 sm:$0xff] }
 0x202   :  { %12355 = vmatprep.subr.mxu0 %v13643_v28  ;;  %12366 = vmatprep.subr.mxu1 %v13643_v28 }
 0x203   :  { %12356 = vmatpush3.msra.mxu0 %v634_v58  ;;  %12367 = vmatpush3.msra.mxu1 %v638_v59  ;;  %v11724_v59 = vld [vmem:[%s16787_s9 + $0x2] ss:$0 sm:$0xff] }
 0x204   :  { %12357 = vmatprep.subr.mxu0 %v13643_v28  ;;  %12368 = vmatprep.subr.mxu1 %v13643_v28 }
 0x205   :  { %12358 = vmatpush3.msra.mxu0 %v633_v60  ;;  %12359 = vmatprep.mubr.msk.f32.mxu0 %vm13644_vm5, %v13643_v28  ;;  %v11725_v60 = vld [vmem:[%s16787_s9 + $0x3] ss:$0 sm:$0xff] }
 0x206   :  { %12369 = vmatpush3.msra.mxu1 %v637_v61  ;;  %12370 = vmatprep.mubr.msk.f32.mxu1 %vm13644_vm5, %v13643_v28 }
 0x207   :  { %12360 = vmatmul.mubr.msk.f32.vlgmr.msra.gmra.mxu0 %vm669_vm6, %v13951_v53  ;;  %12371 = vmatmul.mubr.msk.f32.vlgmr.msra.gmra.mxu1 %vm669_vm6, %v13951_v53 }
 0x208   :  { %12373 = vmatprep.subr.mxu0 %v13643_v28  ;;  %12384 = vmatprep.subr.mxu1 %v13643_v28 }
 0x209   :  { %12374 = vmatpush3.msra.mxu0 %v956_v62  ;;  %12385 = vmatpush3.msra.mxu1 %v960_v63 }
 0x20a   :  { %12375 = vmatprep.subr.mxu0 %v13643_v28  ;;  %12386 = vmatprep.subr.mxu1 %v13643_v28 }
 0x20b   :  { %12376 = vmatpush3.msra.mxu0 %v955_v0  ;;  %12387 = vmatpush3.msra.mxu1 %v959_v1 }
 0x20c   :  { %12377 = vmatprep.subr.mxu0 %v13643_v28  ;;  %12388 = vmatprep.subr.mxu1 %v13643_v28 }
 0x20d   :  { %12378 = vmatpush3.msra.mxu0 %v954_v2  ;;  %12389 = vmatpush3.msra.mxu1 %v958_v3  ;;  %v11738_v3 = vld [vmem:[%s16788_s29] ss:$0 sm:$0xff] }
 0x20e   :  { %12379 = vmatprep.subr.mxu0 %v13643_v28  ;;  %12390 = vmatprep.subr.mxu1 %v13643_v28 }
 0x20f   :  { %12380 = vmatpush3.msra.mxu0 %v953_v4  ;;  %12381 = vmatprep.mubr.msk.f32.mxu0 %vm13644_vm5, %v13643_v28  ;;  %v11739_v4 = vld [vmem:[%s16788_s29 + $0x1] ss:$0 sm:$0xff] }
 0x210   :  { %12391 = vmatpush3.msra.mxu1 %v957_v5  ;;  %12392 = vmatprep.mubr.msk.f32.mxu1 %vm13644_vm5, %v13643_v28 }
 0x211   :  { %12382 = vmatmul.mubr.msk.f32.vlgmr.msra.gmra.mxu0 %vm669_vm6, %v13951_v53  ;;  %12393 = vmatmul.mubr.msk.f32.vlgmr.msra.gmra.mxu1 %vm669_vm6, %v13951_v53 }
 0x212   :  { %12395 = vmatprep.subr.mxu0 %v13643_v28  ;;  %12406 = vmatprep.subr.mxu1 %v13643_v28 }
 0x213   :  { %12396 = vmatpush3.msra.mxu0 %v964_v6  ;;  %12407 = vmatpush3.msra.mxu1 %v968_v7 }
 0x214   :  { %12397 = vmatprep.subr.mxu0 %v13643_v28  ;;  %12408 = vmatprep.subr.mxu1 %v13643_v28 }
 0x215   :  { %12398 = vmatpush3.msra.mxu0 %v963_v8  ;;  %12409 = vmatpush3.msra.mxu1 %v967_v9 }
 0x216   :  { %12399 = vmatprep.subr.mxu0 %v13643_v28  ;;  %12410 = vmatprep.subr.mxu1 %v13643_v28 }
 0x217   :  { %12400 = vmatpush3.msra.mxu0 %v962_v10  ;;  %12411 = vmatpush3.msra.mxu1 %v966_v12 }
 0x218   :  { %12401 = vmatprep.subr.mxu0 %v13643_v28  ;;  %12412 = vmatprep.subr.mxu1 %v13643_v28 }
 0x219   :  { %12402 = vmatpush3.msra.mxu0 %v961_v13  ;;  %12403 = vmatprep.mubr.msk.f32.mxu0 %vm13644_vm5, %v13643_v28 }
 0x21a   :  { %12413 = vmatpush3.msra.mxu1 %v965_v14  ;;  %12414 = vmatprep.mubr.msk.f32.mxu1 %vm13644_vm5, %v13643_v28 }
 0x21b   :  { %12404 = vmatmul.mubr.msk.f32.vlgmr.msra.gmra.mxu0 %vm669_vm6, %v13951_v53  ;;  %12415 = vmatmul.mubr.msk.f32.vlgmr.msra.gmra.mxu1 %vm669_vm6, %v13951_v53 }
 0x21c   :  { %12417 = vmatprep.subr.mxu0 %v13643_v28  ;;  %12428 = vmatprep.subr.mxu1 %v13643_v28 }
 0x21d   :  { %12418 = vmatpush3.msra.mxu0 %v1280_v15  ;;  %12429 = vmatpush3.msra.mxu1 %v1284_v16  ;;  %v14118_v16 = vld [vmem:[%s16789_s3] sm:$0x3]  ;;  %s16816_s3 = sld [smem:[#allocation35_spill]] }
 0x21e   :  { %12419 = vmatprep.subr.mxu0 %v13643_v28  ;;  %12430 = vmatprep.subr.mxu1 %v13643_v28  ;;  %vm216_vm8 = vcmp.ne.f32.partialorder %v14118_v16, -1.0 }
 0x21f   :  { %12420 = vmatpush3.msra.mxu0 %v1279_v17  ;;  %12431 = vmatpush3.msra.mxu1 %v1283_v18 }
 0x220   :  { %12421 = vmatprep.subr.mxu0 %v13643_v28  ;;  %12432 = vmatprep.subr.mxu1 %v13643_v28 }
 0x221   :  { %12422 = vmatpush3.msra.mxu0 %v1278_v19  ;;  %12433 = vmatpush3.msra.mxu1 %v1282_v20 }
 0x222   :  { %12423 = vmatprep.subr.mxu0 %v13643_v28  ;;  %12434 = vmatprep.subr.mxu1 %v13643_v28 }
 0x223   :  { %12424 = vmatpush3.msra.mxu0 %v1277_v21  ;;  %12425 = vmatprep.mubr.msk.f32.mxu0 %vm13644_vm5, %v13643_v28 }
 0x224   :  { %12435 = vmatpush3.msra.mxu1 %v1281_v22  ;;  %12436 = vmatprep.mubr.msk.f32.mxu1 %vm13644_vm5, %v13643_v28 }
 0x225   :  { %12426 = vmatmul.mubr.msk.f32.vlgmr.msra.gmra.mxu0 %vm669_vm6, %v13951_v53  ;;  %12437 = vmatmul.mubr.msk.f32.vlgmr.msra.gmra.mxu1 %vm669_vm6, %v13951_v53 }
 0x226   :  { %12439 = vmatprep.subr.mxu0 %v13643_v28  ;;  %12450 = vmatprep.subr.mxu1 %v13643_v28 }
 0x227   :  { %12440 = vmatpush3.msra.mxu0 %v1288_v23  ;;  %12451 = vmatpush3.msra.mxu1 %v1292_v24 }
 0x228   :  { %12441 = vmatprep.subr.mxu0 %v13643_v28  ;;  %12452 = vmatprep.subr.mxu1 %v13643_v28 }
 0x229   :  { %12442 = vmatpush3.msra.mxu0 %v1287_v25  ;;  %12453 = vmatpush3.msra.mxu1 %v1291_v26 }
 0x22a   :  { %12443 = vmatprep.subr.mxu0 %v13643_v28  ;;  %12454 = vmatprep.subr.mxu1 %v13643_v28 }
 0x22b   :  { %12444 = vmatpush3.msra.mxu0 %v1286_v27  ;;  %12455 = vmatpush3.msra.mxu1 %v1290_v29 }
 0x22c   :  { %12445 = vmatprep.subr.mxu0 %v13643_v28  ;;  %12456 = vmatprep.subr.mxu1 %v13643_v28 }
 0x22d   :  { %12446 = vmatpush3.msra.mxu0 %v1285_v30  ;;  %12447 = vmatprep.mubr.msk.f32.mxu0 %vm13644_vm5, %v13643_v28 }
 0x22e   :  { %12457 = vmatpush3.msra.mxu1 %v1289_v31  ;;  %12458 = vmatprep.mubr.msk.f32.mxu1 %vm13644_vm5, %v13643_v28 }
 0x22f   :  { %12448 = vmatmul.mubr.msk.f32.vlgmr.msra.gmra.mxu0 %vm669_vm6, %v13951_v53  ;;  %12459 = vmatmul.mubr.msk.f32.vlgmr.msra.gmra.mxu1 %vm669_vm6, %v13951_v53 }
 0x230   :  { %12461 = vmatprep.subr.mxu0 %v13643_v28  ;;  %12466 = vmatprep.subr.mxu1 %v13643_v28 }
 0x231   :  { %12463 = vmatprep.mubr.msk.f32.mxu0 %vm13644_vm5, %v13643_v28  ;;  %12468 = vmatprep.mubr.msk.f32.mxu1 %vm13644_vm5, %v13643_v28 }
 0x2be   :  { %v739_v32 = vpop.f32.mrf.mxu0  ;;  %v809_v33 = vpop.f32.mrf.mxu1 }
 0x2bf   :  { %v740_v52 = vadd.f32 %v11722_v45, %v739_v32  ;;  %v810_v54 = vadd.f32 %v11723_v47, %v809_v33 }
 0x2c0   :  { %v12339_v34 = vpop.f32.mrf.mxu0  ;;  %v12350_v35 = vpop.f32.mrf.mxu1 }
 0x2c7   :  { %v879_v36 = vpop.f32.mrf.mxu0  ;;  %v949_v37 = vpop.f32.mrf.mxu1 }
 0x2c8   :  { %v880_v1 = vadd.f32 %v11724_v59, %v879_v36  ;;  %v950_v2 = vadd.f32 %v11725_v60, %v949_v37 }
 0x2c9   :  { %v12361_v38 = vpop.f32.mrf.mxu0  ;;  %v12372_v39 = vpop.f32.mrf.mxu1 }
 0x2d1   :  { %v1063_v43 = vpop.f32.mrf.mxu0  ;;  %v1133_v44 = vpop.f32.mrf.mxu1 }
 0x2d2   :  { %v1064_v48 = vadd.f32 %v11730_v41, %v1063_v43  ;;  %v1134_v49 = vadd.f32 %v11731_v42, %v1133_v44 }
 0x2d3   :  { %v12383_v50 = vpop.f32.mrf.mxu0  ;;  %v12394_v51 = vpop.f32.mrf.mxu1 }
 0x2d4   :  { %12462 = vmatpush3.xpose.msk.msra.mxu0 %vm1601_vm7, %v1064_v48  ;;  %12467 = vmatpush3.xpose.msk.msra.mxu1 %vm1601_vm7, %v1134_v49 }
 0x2d5   :  { %12471 = vmatprep.subr.mxu0 %v13643_v28  ;;  %12476 = vmatprep.subr.mxu1 %v13643_v28 }
 0x2d7   :  { %12464 = vmatmul.mubr.msk.f32.vlgmr.msra.gmra.mxu0 %vm1601_vm7, %v740_v52  ;;  %12469 = vmatmul.mubr.msk.f32.vlgmr.msra.gmra.mxu1 %vm1601_vm7, %v810_v54 }
 0x2d8   :  { %12473 = vmatprep.mubr.msk.f32.mxu0 %vm13644_vm5, %v13643_v28  ;;  %12478 = vmatprep.mubr.msk.f32.mxu1 %vm13644_vm5, %v13643_v28 }
 0x2db   :  { %v1203_v57 = vpop.f32.mrf.mxu0  ;;  %v1273_v58 = vpop.f32.mrf.mxu1 }
 0x2dc   :  { %v1204_v61 = vadd.f32 %v11732_v55, %v1203_v57  ;;  %v1274_v62 = vadd.f32 %v11733_v56, %v1273_v58 }
 0x2dd   :  { %v12405_v63 = vpop.f32.mrf.mxu0  ;;  %v12416_v0 = vpop.f32.mrf.mxu1 }
 0x2de   :  { %12472 = vmatpush3.xpose.msk.msra.mxu0 %vm1601_vm7, %v1204_v61  ;;  %12477 = vmatpush3.xpose.msk.msra.mxu1 %vm1601_vm7, %v1274_v62 }
 0x2df   :  { %12481 = vmatprep.subr.mxu0 %v13643_v28  ;;  %12486 = vmatprep.subr.mxu1 %v13643_v28 }
 0x2e1   :  { %12474 = vmatmul.mubr.msk.f32.vlgmr.msra.gmra.mxu0 %vm1601_vm7, %v880_v1  ;;  %12479 = vmatmul.mubr.msk.f32.vlgmr.msra.gmra.mxu1 %vm1601_vm7, %v950_v2 }
 0x2e2   :  { %12483 = vmatprep.mubr.msk.f32.mxu0 %vm13644_vm5, %v13643_v28  ;;  %12488 = vmatprep.mubr.msk.f32.mxu1 %vm13644_vm5, %v13643_v28 }
 0x2e5   :  { %v1387_v5 = vpop.f32.mrf.mxu0  ;;  %v1457_v6 = vpop.f32.mrf.mxu1 }
 0x2e6   :  { %v1388_v7 = vadd.f32 %v11738_v3, %v1387_v5  ;;  %v1458_v8 = vadd.f32 %v11739_v4, %v1457_v6 }
 0x2e7   :  { %v12427_v9 = vpop.f32.mrf.mxu0  ;;  %v12438_v10 = vpop.f32.mrf.mxu1 }
 0x2e8   :  { %12482 = vmatpush3.msra.mxu0 %v1388_v7  ;;  %12487 = vmatpush3.msra.mxu1 %v1458_v8 }
 0x2e9   :  { %12491 = vmatprep.subr.mxu0 %v13643_v28  ;;  %12496 = vmatprep.subr.mxu1 %v13643_v28 }
 0x2ef   :  { %v14113_v12 = vpop.f32.mrf.mxu0  ;;  %v14115_v13 = vpop.f32.mrf.mxu1 }
 0x2f1   :  { %v12449_v14 = vpop.f32.mrf.mxu0  ;;  %v12460_v15 = vpop.f32.mrf.mxu1 }
 0x397   :  { %v1674_v17 = vpop.f32.mrf.mxu0  ;;  %v1750_v18 = vpop.f32.mrf.mxu1 }
 0x398   :  { %v1906_v19 = vmul.f32 0.35355338, %v1674_v17  ;;  %v1907_v26 = vmul.f32 0.35355338, %v1750_v18 }
 0x399   :  { %v12465_v20 = vpop.f32.mrf.mxu0  ;;  %v12470_v21 = vpop.f32.mrf.mxu1 }
 0x39a   :  { %v1916_v22 = vrot.slane %v1906_v19, 1  ;;  %v1917_v23 = vrot.slane %v1906_v19, 2  ;;  %v1918_v24 = vrot.slane %v1906_v19, 3  ;;  %v1919_v25 = vrot.slane %v1906_v19, 4 }
 0x39b   :  { %v1920_v27 = vrot.slane %v1906_v19, 5  ;;  %v1921_v29 = vrot.slane %v1906_v19, 6  ;;  %v1922_v30 = vrot.slane %v1906_v19, 7  ;;  %v14143_v36 = vsel %vm216_vm8, %v1906_v19, -1e+30 }
 0x39c   :  { %v14123_v31 = vsel %vm216_vm8, %v1916_v22, -1e+30  ;;  %v14127_v32 = vsel %vm216_vm8, %v1917_v23, -1e+30  ;;  %v14131_v33 = vsel %vm216_vm8, %v1918_v24, -1e+30 }
 0x39d   :  { %v14135_v34 = vsel %vm216_vm8, %v1919_v25, -1e+30  ;;  %v14139_v35 = vsel %vm216_vm8, %v1920_v27, -1e+30  ;;  %v14147_v37 = vsel %vm216_vm8, %v1921_v29, -1e+30 }
 0x39e   :  { %v2040_v38 = vrot.slane %v14123_v31, 7  ;;  %v2043_v39 = vrot.slane %v14127_v32, 6  ;;  %v14153_v41 = vsel %vm216_vm8, %v1922_v30, -1e+30  ;;  %v2046_v42 = vrot.slane %v14131_v33, 5 }
 0x39f   :  { %v2049_v43 = vrot.slane %v14135_v34, 4  ;;  %v2052_v44 = vrot.slane %v14139_v35, 3  ;;  %v1923_v47 = vrot.slane %v1907_v26, 1  ;;  %v1924_v48 = vrot.slane %v1907_v26, 2 }
 0x3a0   :  { %v2042_v45 = vsel %vm2041_vm9, %v2040_v38, %v14143_v36  ;;  %v1925_v49 = vrot.slane %v1907_v26, 3  ;;  %v2055_v54 = vrot.slane %v14147_v37, 2  ;;  %v1926_v55 = vrot.slane %v1907_v26, 4 }
 0x3a1   :  { %v1826_v50 = vpop.f32.mrf.mxu0  ;;  %v1902_v51 = vpop.f32.mrf.mxu1  ;;  %v2045_v52 = vsel %vm2044_vm10, %v2043_v39, %v2042_v45  ;;  %v1927_v56 = vrot.slane %v1907_v26, 5  ;;  %v2058_v58 = vrot.slane %v14153_v41, 1  ;;  %v1928_v59 = vrot.slane %v1907_v26, 6 }
 0x3a2   :  { %v2048_v57 = vsel %vm2047_vm11, %v2046_v42, %v2045_v52  ;;  %v1929_v60 = vrot.slane %v1907_v26, 7  ;;  %v14164_v61 = vmul.f32 0.35355338, %v1826_v50  ;;  %v14169_v1 = vsel %vm216_vm8, %v1923_v47, -1e+30 }
 0x3a3   :  { %v12475_v62 = vpop.f32.mrf.mxu0  ;;  %v12480_v63 = vpop.f32.mrf.mxu1  ;;  %v2051_v0 = vsel %vm2050_vm12, %v2049_v43, %v2048_v57  ;;  %v14173_v2 = vsel %vm216_vm8, %v1924_v48, -1e+30  ;;  %v1909_v3 = vmul.f32 0.35355338, %v1902_v51  ;;  %v14178_v5 = vsel %vm216_vm8, %v1925_v49, -1e+30 }
 0x3a4   :  { %v2054_v4 = vsel %vm2053_vm13, %v2052_v44, %v2051_v0  ;;  %v14182_v6 = vsel %vm216_vm8, %v1926_v55, -1e+30  ;;  %v14187_v8 = vsel %vm216_vm8, %v1907_v26, -1e+30  ;;  %v14191_v9 = vsel %vm216_vm8, %v1927_v56, -1e+30 }
 0x3a5   :  { %v2057_v7 = vsel %vm2056_vm14, %v2055_v54, %v2054_v4  ;;  %v2061_v10 = vrot.slane %v14169_v1, 7  ;;  %v14197_v15 = vsel %vm216_vm8, %v1928_v59, -1e+30  ;;  %v14201_v17 = vsel %vm216_vm8, %v1929_v60, -1e+30 }
 0x3a6   :  { %v2060_v14 = vsel %vm2059_vm15, %v2058_v58, %v2057_v7  ;;  %v2063_v18 = vrot.slane %v14173_v2, 6  ;;  %v2065_v21 = vrot.slane %v14178_v5, 5  ;;  %v2067_v22 = vrot.slane %v14182_v6, 4 }
 0x3a7   :  { %v2107_v19 = vsel %vm1601_vm7, %v2060_v14, -inf  ;;  %v2062_v20 = vsel %vm2041_vm9, %v2061_v10, %v14187_v8  ;;  %v2069_v24 = vrot.slane %v14191_v9, 3  ;;  %v1937_v25 = vrot.slane %v1909_v3, 1 }
 0x3a8   :  { %2108 = vmax.xlane.f32.xlu1 %v2107_v19  ;;  %v2064_v23 = vsel %vm2044_vm10, %v2063_v18, %v2062_v20  ;;  %v1938_v26 = vrot.slane %v1909_v3, 2  ;;  %v1939_v29 = vrot.slane %v1909_v3, 3  ;;  %v1940_v30 = vrot.slane %v1909_v3, 4 }
 0x3a9   :  { %v2066_v27 = vsel %vm2047_vm11, %v2065_v21, %v2064_v23  ;;  %v1941_v38 = vrot.slane %v1909_v3, 5  ;;  %v2071_v42 = vrot.slane %v14197_v15, 2  ;;  %v1942_v43 = vrot.slane %v1909_v3, 6 }
 0x3aa   :  { %v2068_v39 = vsel %vm2050_vm12, %v2067_v22, %v2066_v27  ;;  %v1943_v44 = vrot.slane %v1909_v3, 7  ;;  %v2073_v47 = vrot.slane %v14201_v17, 1  ;;  %v14218_v48 = vsel %vm216_vm8, %v1937_v25, -1e+30 }
 0x3ab   :  { %v2070_v45 = vsel %vm2053_vm13, %v2069_v24, %v2068_v39  ;;  %v14222_v49 = vsel %vm216_vm8, %v1938_v26, -1e+30  ;;  %v14227_v51 = vsel %vm216_vm8, %v1909_v3, -1e+30  ;;  %v14231_v52 = vsel %vm216_vm8, %v1939_v29, -1e+30 }
 0x3ac   :  { %v2072_v50 = vsel %vm2056_vm14, %v2071_v42, %v2070_v45  ;;  %v14235_v54 = vsel %vm216_vm8, %v1940_v30, -1e+30  ;;  %v14240_v56 = vsel %vm216_vm8, %v1941_v38, -1e+30  ;;  %v2089_v57 = vrot.slane %v14218_v48, 7 }
 0x3ad   :  { %v2074_v55 = vsel %vm2059_vm15, %v2073_v47, %v2072_v50  ;;  %v2091_v58 = vrot.slane %v14222_v49, 6  ;;  %v14247_v60 = vsel %vm216_vm8, %v1942_v43, -1e+30  ;;  %v14251_v62 = vsel %vm216_vm8, %v1943_v44, -1e+30 }
 0x3ae   :  { %v2110_v59 = vsel %vm1601_vm7, %v2074_v55, -inf  ;;  %v2090_v63 = vsel %vm2041_vm9, %v2089_v57, %v14227_v51  ;;  %v2093_v0 = vrot.slane %v14231_v52, 5  ;;  %v2095_v3 = vrot.slane %v14235_v54, 4 }
 0x3af   :  { %2111 = vmax.xlane.f32.xlu1 %v2110_v59  ;;  %v1930_v4 = vrot.slane %v14164_v61, 1  ;;  %v2092_v7 = vsel %vm2044_vm10, %v2091_v58, %v2090_v63  ;;  %v1931_v10 = vrot.slane %v14164_v61, 2  ;;  %v1932_v14 = vrot.slane %v14164_v61, 3 }
 0x3b0   :  { %v1933_v18 = vrot.slane %v14164_v61, 4  ;;  %v2094_v19 = vsel %vm2047_vm11, %v2093_v0, %v2092_v7  ;;  %v2097_v20 = vrot.slane %v14240_v56, 3  ;;  %v2099_v21 = vrot.slane %v14247_v60, 2 }
 0x3b1   :  { %v1934_v22 = vrot.slane %v14164_v61, 5  ;;  %v2096_v23 = vsel %vm2050_vm12, %v2095_v3, %v2094_v19  ;;  %v1935_v24 = vrot.slane %v14164_v61, 6  ;;  %v14270_v25 = vsel %vm216_vm8, %v1930_v4, -1e+30 }
 0x3b2   :  { %v14274_v26 = vsel %vm216_vm8, %v1931_v10, -1e+30  ;;  %v2098_v27 = vsel %vm2053_vm13, %v2097_v20, %v2096_v23  ;;  %v2101_v29 = vrot.slane %v14251_v62, 1  ;;  %v1936_v30 = vrot.slane %v14164_v61, 7 }
 0x3b3   :  { %v14281_v38 = vsel %vm216_vm8, %v1932_v14, -1e+30  ;;  %v2100_v39 = vsel %vm2056_vm14, %v2099_v21, %v2098_v27  ;;  %v14286_v42 = vsel %vm216_vm8, %v1933_v18, -1e+30  ;;  %v2075_v43 = vrot.slane %v14270_v25, 7 }
 0x3b4   :  { %v2102_v44 = vsel %vm2059_vm15, %v2101_v29, %v2100_v39  ;;  %v14293_v45 = vsel %vm216_vm8, %v14164_v61, -1e+30  ;;  %v14297_v47 = vsel %vm216_vm8, %v1934_v22, -1e+30  ;;  %v2077_v50 = vrot.slane %v14274_v26, 6  ;;  %v14324_v22 = vld [vmem:[%s13664_s13 + $0x8] sm:$0xff] }
 0x3b5   :  { %v2116_v55 = vsel %vm1601_vm7, %v2102_v44, -inf  ;;  %v14303_v57 = vsel %vm216_vm8, %v1935_v24, -1e+30  ;;  %v2076_v58 = vsel %vm2041_vm9, %v2075_v43, %v14293_v45  ;;  %v2079_v59 = vrot.slane %v14281_v38, 5  ;;  %s16790_s13 = sld [smem:[#allocation11_spill]] }
 0x3b6   :  { %2117 = vmax.xlane.f32.xlu0 %v2116_v55  ;;  %v14310_v61 = vsel %vm216_vm8, %v1936_v30, -1e+30  ;;  %v2078_v63 = vsel %vm2044_vm10, %v2077_v50, %v2076_v58  ;;  %v2081_v0 = vrot.slane %v14286_v42, 4  ;;  %v2083_v4 = vrot.slane %v14297_v47, 3 }
 0x3b7   :  { %v2080_v3 = vsel %vm2047_vm11, %v2079_v59, %v2078_v63  ;;  %v2085_v10 = vrot.slane %v14303_v57, 2  ;;  %v2087_v18 = vrot.slane %v14310_v61, 1 }
 0x3b8   :  { %v2082_v7 = vsel %vm2050_vm12, %v2081_v0, %v2080_v3 }
 0x3b9   :  { %v2084_v14 = vsel %vm2053_vm13, %v2083_v4, %v2082_v7 }
 0x3ba   :  { %v2086_v19 = vsel %vm2056_vm14, %v2085_v10, %v2084_v14 }
 0x3bb   :  { %v2088_v20 = vsel %vm2059_vm15, %v2087_v18, %v2086_v19 }
 0x3bc   :  { %v2113_v21 = vsel %vm1601_vm7, %v2088_v20, -inf }
 0x3bd   :  { %2114 = vmax.xlane.f32.xlu1 %v2113_v21 }
 0x3cc   :  { %618 = vperm.xlu0 %13235, %v14324_v22  }
 0x3d0   :  { %13237 = vset.pattern.permute.xlu0 %v13641_v11 }
 0x431   :  { %v2109_v23 = vpop.xlane.xlu1 %2108 }
 0x432   :  { %v2123_v24 = vrot.slane %v2109_v23, 1  ;;  %v2124_v27 = vrot.slane %v2109_v23, 2  ;;  %v2125_v29 = vrot.slane %v2109_v23, 3  ;;  %v2126_v30 = vrot.slane %v2109_v23, 4 }
 0x433   :  { %v2127_v39 = vrot.slane %v2109_v23, 5  ;;  %v2128_v43 = vrot.slane %v2109_v23, 6  ;;  %v2183_v44 = vsub.f32 %v14143_v36, %v2109_v23  ;;  %v2129_v50 = vrot.slane %v2109_v23, 7 }
 0x434   :  { %v2184_v55 = vsub.f32 %v14123_v31, %v2123_v24  ;;  %v2185_v58 = vsub.f32 %v14127_v32, %v2124_v27  ;;  %v2186_v59 = vsub.f32 %v14131_v33, %v2125_v29  ;;  %v2187_v63 = vsub.f32 %v14135_v34, %v2126_v30 }
 0x435   :  { %v2215_v0 = vmul.f32 1.442695, %v2183_v44  ;;  %v2188_v11 = vsub.f32 %v14139_v35, %v2127_v39  ;;  %v2189_v4 = vsub.f32 %v14147_v37, %v2128_v43  ;;  %v2190_v36 = vsub.f32 %v14153_v41, %v2129_v50 }
 0x436   :  { %v2217_v3 = vmul.f32 1.442695, %v2184_v55  ;;  %v2219_v7 = vmul.f32 1.442695, %v2185_v58  ;;  %v2221_v10 = vmul.f32 1.442695, %v2186_v59 }
 0x437   :  { %13243 = vpow2.f32 %v2215_v0  ;;  %v2223_v18 = vmul.f32 1.442695, %v2187_v63  ;;  %v2225_v33 = vmul.f32 1.442695, %v2188_v11  ;;  %v2227_v21 = vmul.f32 1.442695, %v2189_v4 }
 0x438   :  { %v2112_v14 = vpop.xlane.xlu1 %2111  ;;  %13245 = vpow2.f32 %v2217_v3 }
 0x439   :  { %v2130_v31 = vrot.slane %v2112_v14, 1  ;;  %v2131_v19 = vrot.slane %v2112_v14, 2  ;;  %v2132_v32 = vrot.slane %v2112_v14, 3  ;;  %v2133_v20 = vrot.slane %v2112_v14, 4 }
 0x43a   :  { %v2134_v34 = vrot.slane %v2112_v14, 5  ;;  %13247 = vpow2.f32 %v2219_v7  ;;  %v2191_v35 = vsub.f32 %v14187_v8, %v2112_v14  ;;  %v2135_v39 = vrot.slane %v2112_v14, 6 }
 0x43b   :  { %v2192_v37 = vsub.f32 %v14169_v1, %v2130_v31  ;;  %13249 = vpow2.f32 %v2221_v10  ;;  %v2193_v23 = vsub.f32 %v14173_v2, %v2131_v19  ;;  %v2194_v24 = vsub.f32 %v14178_v5, %v2132_v32 }
 0x43c   :  { %v2195_v41 = vsub.f32 %v14182_v6, %v2133_v20  ;;  %13251 = vpow2.f32 %v2223_v18  ;;  %v2196_v27 = vsub.f32 %v14191_v9, %v2134_v34  ;;  %v2231_v29 = vmul.f32 1.442695, %v2191_v35 }
 0x43d   :  { %v2233_v30 = vmul.f32 1.442695, %v2192_v37  ;;  %13253 = vpow2.f32 %v2225_v33  ;;  %v2235_v43 = vmul.f32 1.442695, %v2193_v23  ;;  %v2237_v44 = vmul.f32 1.442695, %v2194_v24 }
 0x43e   :  { %13255 = vpow2.f32 %v2227_v21  ;;  %v2229_v8 = vmul.f32 1.442695, %v2190_v36  ;;  %v2136_v50 = vrot.slane %v2112_v14, 7  ;;  %v2239_v1 = vmul.f32 1.442695, %v2195_v41 }
 0x43f   :  { %13257 = vpow2.f32 %v2231_v29  ;;  %v2241_v55 = vmul.f32 1.442695, %v2196_v27  ;;  %v14342_v2 = vpop.xlane.xlu0 %2117  ;;  %v2197_v58 = vsub.f32 %v14197_v15, %v2135_v39 }
 0x440   :  { %13259 = vpow2.f32 %v2233_v30  ;;  %v2144_v5 = vrot.slane %v14342_v2, 1  ;;  %v2145_v6 = vrot.slane %v14342_v2, 2  ;;  %v2146_v9 = vrot.slane %v14342_v2, 3 }
 0x441   :  { %13261 = vpow2.f32 %v2235_v43  ;;  %v2147_v59 = vrot.slane %v14342_v2, 4  ;;  %v2148_v63 = vrot.slane %v14342_v2, 5  ;;  %v2207_v0 = vsub.f32 %v14227_v51, %v14342_v2 }
 0x442   :  { %13263 = vpow2.f32 %v2237_v44  ;;  %v2208_v11 = vsub.f32 %v14218_v48, %v2144_v5  ;;  %v2209_v3 = vsub.f32 %v14222_v49, %v2145_v6  ;;  %v2210_v4 = vsub.f32 %v14231_v52, %v2146_v9 }
 0x443   :  { %13265 = vpow2.f32 %v2239_v1  ;;  %v2211_v7 = vsub.f32 %v14235_v54, %v2147_v59  ;;  %v2212_v15 = vsub.f32 %v14240_v56, %v2148_v63  ;;  %v2263_v14 = vmul.f32 1.442695, %v2207_v0 }
 0x444   :  { %v14356_v10 = vpop.eup %13243  ;;  %13267 = vpow2.f32 %v2241_v55  ;;  %v2265_v36 = vmul.f32 1.442695, %v2208_v11  ;;  %v14359_v18 = vmul.f32 1.442695, %v2197_v58  ;;  %v2267_v31 = vmul.f32 1.442695, %v2209_v3 }
 0x445   :  { %13269 = vpow2.f32 %v2229_v8  ;;  %v2198_v48 = vsub.f32 %v14201_v17, %v2136_v50  ;;  %v14362_v51 = vpop.eup %13245  ;;  %v2149_v49 = vrot.slane %v14342_v2, 6  ;;  %v2269_v52 = vmul.f32 1.442695, %v2210_v4 }
 0x446   :  { %13271 = vpow2.f32 %v2263_v14  ;;  %v2271_v54 = vmul.f32 1.442695, %v2211_v7  ;;  %v14365_v19 = vpop.xlane.xlu1 %2114  ;;  %v2273_v17 = vmul.f32 1.442695, %v2212_v15  ;;  %v2311_v27 = vrot.slane %v14362_v51, 7 }
 0x447   :  { %v14367_v32 = vpop.eup %13247  ;;  %13273 = vpow2.f32 %v2265_v36  ;;  %v2137_v56 = vrot.slane %v14365_v19, 1  ;;  %v2138_v33 = vrot.slane %v14365_v19, 2  ;;  %v2139_v20 = vrot.slane %v14365_v19, 3 }
 0x448   :  { %v14372_v34 = vpop.eup %13249  ;;  %13275 = vpow2.f32 %v2267_v31  ;;  %v2140_v21 = vrot.slane %v14365_v19, 4  ;;  %v2141_v35 = vrot.slane %v14365_v19, 5  ;;  %v2142_v23 = vrot.slane %v14365_v19, 6 }
 0x449   :  { %v14376_v37 = vpop.eup %13251  ;;  %v2199_v24 = vsub.f32 %v14293_v45, %v14365_v19  ;;  %v2200_v41 = vsub.f32 %v14270_v25, %v2137_v56  ;;  %13277 = vpow2.f32 %v2269_v52  ;;  %v2201_v30 = vsub.f32 %v14274_v26, %v2138_v33 }
 0x44a   :  { %v14383_v29 = vpop.eup %13253  ;;  %v2202_v39 = vsub.f32 %v14281_v38, %v2139_v20  ;;  %v2203_v43 = vsub.f32 %v14286_v42, %v2140_v21  ;;  %v2150_v8 = vrot.slane %v14342_v2, 7  ;;  %13279 = vpow2.f32 %v2271_v54 }
 0x44b   :  { %v14388_v44 = vpop.eup %13255  ;;  %v2204_v45 = vsub.f32 %v14297_v47, %v2141_v35  ;;  %v2247_v50 = vmul.f32 1.442695, %v2199_v24  ;;  %13281 = vpow2.f32 %v2273_v17  ;;  %v2249_v1 = vmul.f32 1.442695, %v2200_v41 }
 0x44c   :  { %v14392_v25 = vpop.eup %13257  ;;  %v2251_v55 = vmul.f32 1.442695, %v2201_v30  ;;  %v2253_v5 = vmul.f32 1.442695, %v2202_v39  ;;  %v2213_v26 = vsub.f32 %v14247_v60, %v2149_v49  ;;  %v2205_v38 = vsub.f32 %v14303_v57, %v2142_v23 }
 0x44d   :  { %v14394_v6 = vpop.eup %13259  ;;  %13283 = vpow2.f32 %v2247_v50  ;;  %v2255_v42 = vmul.f32 1.442695, %v2203_v43  ;;  %v2257_v2 = vmul.f32 1.442695, %v2204_v45  ;;  %v2312_v47 = vsel %vm2041_vm9, %v2311_v27, %v14356_v10 }
 0x44e   :  { %v14398_v9 = vpop.eup %13261  ;;  %13285 = vpow2.f32 %v2249_v1  ;;  %v2313_v58 = vrot.slane %v14367_v32, 6  ;;  %v2143_v63 = vrot.slane %v14365_v19, 7  ;;  %v2315_v60 = vrot.slane %v14372_v34, 5 }
 0x44f   :  { %v14403_v59 = vpop.eup %13263  ;;  %13287 = vpow2.f32 %v2251_v55  ;;  %v2317_v57 = vrot.slane %v14376_v37, 4  ;;  %v2245_v3 = vmul.f32 1.442695, %v2198_v48  ;;  %v2325_v4 = vrot.slane %v14394_v6, 7 }
 0x450   :  { %v14408_v0 = vpop.eup %13265  ;;  %13289 = vpow2.f32 %v2253_v5  ;;  %v2314_v11 = vsel %vm2044_vm10, %v2313_v58, %v2312_v47  ;;  %v2259_v15 = vmul.f32 1.442695, %v2205_v38  ;;  %v2319_v36 = vrot.slane %v14383_v29, 3 }
 0x451   :  { %v14412_v7 = vpop.eup %13267  ;;  %13291 = vpow2.f32 %v2255_v42  ;;  %v2316_v14 = vsel %vm2047_vm11, %v2315_v60, %v2314_v11  ;;  %v2275_v49 = vmul.f32 1.442695, %v2213_v26  ;;  %v2321_v54 = vrot.slane %v14388_v44, 2 }
 0x452   :  { %v14416_v31 = vpop.eup %13269  ;;  %13293 = vpow2.f32 %v2257_v2  ;;  %v2318_v52 = vsel %vm2050_vm12, %v2317_v57, %v2316_v14  ;;  %v2327_v33 = vrot.slane %v14398_v9, 6  ;;  %v2326_v21 = vsel %vm2041_vm9, %v2325_v4, %v14392_v25 }
 0x453   :  { %v14420_v19 = vpop.eup %13271  ;;  %v2320_v48 = vsel %vm2053_vm13, %v2319_v36, %v2318_v52  ;;  %v2323_v56 = vrot.slane %v14416_v31, 1  ;;  %13295 = vpow2.f32 %v14359_v18  ;;  %v2206_v24 = vsub.f32 %v14310_v61, %v2143_v63 }
 0x454   :  { %v14426_v20 = vpop.eup %13273  ;;  %v2322_v17 = vsel %vm2056_vm14, %v2321_v54, %v2320_v48  ;;  %13297 = vpow2.f32 %v2245_v3  ;;  %v2214_v18 = vsub.f32 %v14251_v62, %v2150_v8  ;;  %v2328_v30 = vsel %vm2044_vm10, %v2327_v33, %v2326_v21 }
 0x455   :  { %v14431_v35 = vpop.eup %13275  ;;  %v2324_v23 = vsel %vm2059_vm15, %v2323_v56, %v2322_v17  ;;  %13299 = vpow2.f32 %v2259_v15  ;;  %v2261_v39 = vmul.f32 1.442695, %v2206_v24  ;;  %v2353_v43 = vrot.slane %v14426_v20, 7 }
 0x456   :  { %v2371_v41 = vsel %vm1601_vm7, %v2324_v23, 0.0  ;;  %13301 = vpow2.f32 %v2275_v49  ;;  %v14437_v27 = vpop.eup %13277  ;;  %v2329_v50 = vrot.slane %v14403_v59, 5  ;;  %v2277_v1 = vmul.f32 1.442695, %v2214_v18 }
 0x457   :  { %2372 = vadd.xlane.f32.xlu1 %v2371_v41  ;;  %v14441_v45 = vpop.eup %13279  ;;  %v2355_v61 = vrot.slane %v14431_v35, 6  ;;  %13303 = vpow2.f32 %v2261_v39  ;;  %v2354_v62 = vsel %vm2041_vm9, %v2353_v43, %v14420_v19  ;;  %v2331_v38 = vrot.slane %v14408_v0, 4 }
 0x458   :  { %v14445_v55 = vpop.eup %13281  ;;  %v2330_v5 = vsel %vm2047_vm11, %v2329_v50, %v2328_v30  ;;  %13305 = vpow2.f32 %v2277_v1  ;;  %v2357_v57 = vrot.slane %v14437_v27, 5  ;;  %v2333_v3 = vrot.slane %v14412_v7, 3 }
 0x459   :  { %v2356_v47 = vsel %vm2044_vm10, %v2355_v61, %v2354_v62  ;;  %v2332_v63 = vsel %vm2050_vm12, %v2331_v38, %v2330_v5  ;;  %v2359_v33 = vrot.slane %v14441_v45, 4  ;;  %v2361_v1 = vrot.slane %v14445_v55, 3 }
 0x45a   :  { %v14449_v8 = vpop.eup %13283  ;;  %v2358_v52 = vsel %vm2047_vm11, %v2357_v57, %v2356_v47  ;;  %v2334_v48 = vsel %vm2053_vm13, %v2333_v3, %v2332_v63 }
 0x45b   :  { %v14452_v26 = vpop.eup %13285  ;;  %v2360_v30 = vsel %vm2050_vm12, %v2359_v33, %v2358_v52 }
 0x45c   :  { %v14455_v42 = vpop.eup %13287  ;;  %v2339_v2 = vrot.slane %v14452_v26, 7  ;;  %v2362_v38 = vsel %vm2053_vm13, %v2361_v1, %v2360_v30 }
 0x45d   :  { %v14459_v58 = vpop.eup %13289  ;;  %v2341_v60 = vrot.slane %v14455_v42, 6 }
 0x45e   :  { %v14464_v11 = vpop.eup %13291  ;;  %v2340_v4 = vsel %vm2041_vm9, %v2339_v2, %v14449_v8  ;;  %v2343_v15 = vrot.slane %v14459_v58, 5 }
 0x45f   :  { %v14470_v14 = vpop.eup %13293  ;;  %v2342_v36 = vsel %vm2044_vm10, %v2341_v60, %v2340_v4  ;;  %v2345_v49 = vrot.slane %v14464_v11, 4 }
 0x460   :  { %v14475_v54 = vpop.eup %13295  ;;  %v2344_v56 = vsel %vm2047_vm11, %v2343_v15, %v2342_v36  ;;  %v2347_v24 = vrot.slane %v14470_v14, 3 }
 0x461   :  { %v14480_v17 = vpop.eup %13297  ;;  %v2335_v21 = vrot.slane %v14475_v54, 2  ;;  %v2346_v23 = vsel %vm2050_vm12, %v2345_v49, %v2344_v56 }
 0x462   :  { %v14485_v41 = vpop.eup %13299  ;;  %v2337_v18 = vrot.slane %v14480_v17, 1  ;;  %v2348_v50 = vsel %vm2053_vm13, %v2347_v24, %v2346_v23 }
 0x463   :  { %v14489_v39 = vpop.eup %13301  ;;  %v2336_v43 = vsel %vm2056_vm14, %v2335_v21, %v2334_v48  ;;  %v2349_v62 = vrot.slane %v14485_v41, 2 }
 0x464   :  { %v2338_v61 = vsel %vm2059_vm15, %v2337_v18, %v2336_v43  ;;  %v14498_v2 = vpop.eup %13303  ;;  %v2363_v63 = vrot.slane %v14489_v39, 2 }
 0x465   :  { %v2374_v5 = vsel %vm1601_vm7, %v2338_v61, 0.0  ;;  %v2350_v47 = vsel %vm2056_vm14, %v2349_v62, %v2348_v50  ;;  %v14502_v60 = vpop.eup %13305  ;;  %v2351_v57 = vrot.slane %v14498_v2, 1 }
 0x466   :  { %2375 = vadd.xlane.f32.xlu1 %v2374_v5  ;;  %v2364_v3 = vsel %vm2056_vm14, %v2363_v63, %v2362_v38  ;;  %v2365_v15 = vrot.slane %v14502_v60, 1 }
 0x467   :  { %v2352_v4 = vsel %vm2059_vm15, %v2351_v57, %v2350_v47 }
 0x468   :  { %v2377_v36 = vsel %vm1601_vm7, %v2352_v4, 0.0  ;;  %v2366_v49 = vsel %vm2059_vm15, %v2365_v15, %v2364_v3 }
 0x469   :  { %v2380_v52 = vsel %vm1601_vm7, %v2366_v49, 0.0 }
 0x46a   :  { %2378 = vadd.xlane.f32.xlu1 %v2377_v36  ;;  %v11740_v36 = vld [vmem:[%s16788_s29 + $0x2] ss:$0 sm:$0xff] }
 0x46e   :  { %2381 = vadd.xlane.f32.xlu1 %v2380_v52 }
 0x47f   :  { %417 = vperm.xlu1 %13236, %v14324_v22  }
 0x4e0   :  { %v2373_v48 = vpop.xlane.xlu1 %2372 }
 0x4e1   :  { %13307 = vrcp.f32 %v2373_v48 }
 0x4ee   :  { %v13308_v56 = vpop.eup %13307 }
 0x4ef   :  { %v2376_v33 = vpop.xlane.xlu1 %2375  ;;  %v2391_v21 = vrot.slane %v13308_v56, 1  ;;  %v2392_v23 = vrot.slane %v13308_v56, 2  ;;  %v2393_v24 = vrot.slane %v13308_v56, 3  ;;  %v2394_v18 = vrot.slane %v13308_v56, 4 }
 0x4f0   :  { %13309 = vrcp.f32 %v2376_v33  ;;  %v2395_v30 = vrot.slane %v13308_v56, 5  ;;  %v2396_v43 = vrot.slane %v13308_v56, 6  ;;  %v2397_v50 = vrot.slane %v13308_v56, 7 }
 0x4f1   :  { %v2452_v1 = vmul.f32 %v14362_v51, %v2391_v21  ;;  %v2453_v61 = vmul.f32 %v14367_v32, %v2392_v23  ;;  %v2454_v62 = vmul.f32 %v14372_v34, %v2393_v24  ;;  %v2455_v22 = vmul.f32 %v14376_v37, %v2394_v18  ;;  %v220_v23 = vld [vmem:[%s13679_s25 + $0x8] sm:$0xff]  ;;  %s16791_s25 = sld [smem:[#allocation12_spill]] }
 0x4f2   :  { %v2451_v5 = vmul.f32 %v13308_v56, %v14356_v10  ;;  %v2456_v38 = vmul.f32 %v14383_v29, %v2395_v30  ;;  %v2457_v3 = vmul.f32 %v14388_v44, %v2396_v43  ;;  %v2458_v4 = vmul.f32 %v14416_v31, %v2397_v50  ;;  %v619_v31 = vpop.permute.xlu0 %618  ;;  %v11741_v50 = vld [vmem:[%s16788_s29 + $0x3] ss:$0 sm:$0xff] }
 0x4f3   :  { %v2491_v47 = vrot.slane %v2452_v1, 7  ;;  %v2493_v63 = vrot.slane %v2453_v61, 6  ;;  %v2379_v57 = vpop.xlane.xlu1 %2378  ;;  %v2495_v32 = vrot.slane %v2454_v62, 5  ;;  %v2497_v15 = vrot.slane %v2455_v22, 4 }
 0x4f4   :  { %13311 = vrcp.f32 %v2379_v57  ;;  %v2499_v10 = vrot.slane %v2456_v38, 3  ;;  %v2501_v52 = vrot.slane %v2457_v3, 2  ;;  %v2503_v48 = vrot.slane %v2458_v4, 1 }
 0x4f5   :  { %v2492_v51 = vsel %vm2041_vm9, %v2491_v47, %v2451_v5  ;;  %v1528_v33 = vadd.f32 %v11740_v36, %v14113_v12  ;;  %v622_v30 = vmul.f32 %v619_v31, %v13948_v46  ;;  %v1598_v57 = vadd.f32 %v11741_v50, %v14115_v13 }
 0x4f6   :  { %v2494_v34 = vsel %vm2044_vm10, %v2493_v63, %v2492_v51 }
 0x4f7   :  { %v2496_v37 = vsel %vm2047_vm11, %v2495_v32, %v2494_v34  ;;  %v2382_v29 = vpop.xlane.xlu1 %2381 }
 0x4f8   :  { %v2498_v49 = vsel %vm2050_vm12, %v2497_v15, %v2496_v37  ;;  %13313 = vrcp.f32 %v2382_v29 }
 0x4f9   :  { %v2500_v44 = vsel %vm2053_vm13, %v2499_v10, %v2498_v49 }
 0x4fa   :  { %v2502_v56 = vsel %vm2056_vm14, %v2501_v52, %v2500_v44 }
 0x4fb   :  { %v2504_v21 = vsel %vm2059_vm15, %v2503_v48, %v2502_v56  ;;  %v418_v24 = vpop.permute.xlu1 %417 }
 0x4fc   :  { %12484 = vmatmul.mubr.msk.f32.vlgmr.msra.gmra.mxu0 %vm1601_vm7, %v2504_v21  ;;  %v421_v43 = vmul.f32 %v418_v24, %v13945_v40 }
 0x4fd   :  { %v13310_v18 = vpop.eup %13309  ;;  %12492 = vmatpush3.msra.mxu0 %v1528_v33  ;;  %12493 = vmatprep.mubr.msk.f32.mxu0 %vm13644_vm5, %v13643_v28 }
 0x4fe   :  { %v2398_v1 = vrot.slane %v13310_v18, 1  ;;  %v2399_v61 = vrot.slane %v13310_v18, 2  ;;  %v2400_v12 = vrot.slane %v13310_v18, 3  ;;  %v2401_v62 = vrot.slane %v13310_v18, 4  ;;  %12501 = vmatprep.subr.mxu0 %v13643_v28 }
 0x4ff   :  { %v423_v22 = vadd.f32 %v421_v43, %v220_v23  ;;  %v2402_v5 = vrot.slane %v13310_v18, 5  ;;  %v2403_v38 = vrot.slane %v13310_v18, 6  ;;  %v2404_v47 = vrot.slane %v13310_v18, 7 }
 0x500   :  { %v2460_v63 = vmul.f32 %v14394_v6, %v2398_v1  ;;  %v2461_v46 = vmul.f32 %v14398_v9, %v2399_v61  ;;  %v2462_v40 = vmul.f32 %v14403_v59, %v2400_v12  ;;  %v2463_v4 = vmul.f32 %v14408_v0, %v2401_v62 }
 0x501   :  { %v14541_v3 = vadd.f32 %v622_v30, %v423_v22  ;;  %v2464_v51 = vmul.f32 %v14412_v7, %v2402_v5  ;;  %v13312_v32 = vpop.eup %13311  ;;  %v2459_v34 = vmul.f32 %v13310_v18, %v14392_v25  ;;  %v2465_v15 = vmul.f32 %v14475_v54, %v2403_v38 }
 0x502   :  { %v2585_v37 = vrot.slane %v2460_v63, 7  ;;  %v2587_v10 = vrot.slane %v2461_v46, 6  ;;  %v2466_v6 = vmul.f32 %v14480_v17, %v2404_v47  ;;  %v2589_v9 = vrot.slane %v2462_v40, 5 }
 0x503   :  { %v2591_v36 = vrot.slane %v2463_v4, 4  ;;  %v2405_v59 = vrot.slane %v13312_v32, 1  ;;  %v2593_v29 = vrot.slane %v2464_v51, 3  ;;  %v2406_v49 = vrot.slane %v13312_v32, 2 }
 0x504   :  { %v2586_v13 = vsel %vm2041_vm9, %v2585_v37, %v2459_v34  ;;  %v2407_v52 = vrot.slane %v13312_v32, 3  ;;  %v2408_v7 = vrot.slane %v13312_v32, 4  ;;  %v2409_v44 = vrot.slane %v13312_v32, 5 }
 0x505   :  { %v2588_v0 = vsel %vm2044_vm10, %v2587_v10, %v2586_v13  ;;  %v2410_v48 = vrot.slane %v13312_v32, 6  ;;  %v2595_v54 = vrot.slane %v2465_v15, 2  ;;  %v2411_v31 = vrot.slane %v13312_v32, 7  ;;  %v13314_v24 = vpop.eup %13313 }
 0x506   :  { %v2590_v25 = vsel %vm2047_vm11, %v2589_v9, %v2588_v0  ;;  %v2468_v56 = vmul.f32 %v14452_v26, %v2405_v59  ;;  %v2469_v33 = vmul.f32 %v14455_v42, %v2406_v49  ;;  %v2470_v21 = vmul.f32 %v14459_v58, %v2407_v52 }
 0x507   :  { %v2592_v17 = vsel %vm2050_vm12, %v2591_v36, %v2590_v25  ;;  %v2471_v23 = vmul.f32 %v14464_v11, %v2408_v7  ;;  %v2597_v30 = vrot.slane %v2466_v6, 1  ;;  %v2467_v43 = vmul.f32 %v13312_v32, %v14449_v8  ;;  %v2859_v25 = vld [vmem:[%s16790_s13] sm:$0xff] }
 0x508   :  { %v2594_v18 = vsel %vm2053_vm13, %v2593_v29, %v2592_v17  ;;  %v2472_v50 = vmul.f32 %v14470_v14, %v2409_v44  ;;  %v2473_v26 = vmul.f32 %v14485_v41, %v2410_v48  ;;  %v2679_v61 = vrot.slane %v2468_v56, 7 }
 0x509   :  { %v2596_v1 = vsel %vm2056_vm14, %v2595_v54, %v2594_v18  ;;  %v2681_v12 = vrot.slane %v2469_v33, 6  ;;  %v2474_v58 = vmul.f32 %v14498_v2, %v2411_v31  ;;  %v2683_v62 = vrot.slane %v2470_v21, 5  ;;  %v2860_v54 = vld [vmem:[%s16790_s13 + $0x8] sm:$0xff]  ;;  %v2861_v31 = vld [vmem:[%s16790_s13 + $0x10] sm:$0xff]  ;;  %v2862_v33 = vld [vmem:[%s16790_s13 + $0x18] sm:$0xff] }
 0x50a   :  { %v2598_v42 = vsel %vm2059_vm15, %v2597_v30, %v2596_v1  ;;  %v2685_v11 = vrot.slane %v2471_v23, 4  ;;  %v2680_v22 = vsel %vm2041_vm9, %v2679_v61, %v2467_v43  ;;  %v2687_v5 = vrot.slane %v2472_v50, 3  ;;  %v3172_v30 = vld [vmem:[%s13724_s12 + $0x10] sm:$0xff]  ;;  %v3171_v50 = vld [vmem:[%s13724_s12 + $0x8] sm:$0xff]  ;;  %v3170_v1 = vld [vmem:[%s13724_s12] sm:$0xff] }
 0x50b   :  { %12489 = vmatmul.mubr.msk.f32.vlgmr.msra.gmra.mxu1 %vm1601_vm7, %v2598_v42  ;;  %v2412_v8 = vrot.slane %v13314_v24, 1  ;;  %v2413_v38 = vrot.slane %v13314_v24, 2  ;;  %v2682_v14 = vsel %vm2044_vm10, %v2681_v12, %v2680_v22  ;;  %v2414_v41 = vrot.slane %v13314_v24, 3  ;;  %v3176_v12 = vld [vmem:[%s13724_s12 + $0x30] sm:$0xff]  ;;  %v3181_v42 = vld [vmem:[%s13724_s12 + $0x58] sm:$0xff]  ;;  %v3174_v22 = vld [vmem:[%s13724_s12 + $0x20] sm:$0xff] }
 0x50c   :  { %12497 = vmatpush3.msra.mxu1 %v1598_v57  ;;  %12498 = vmatprep.mubr.msk.f32.mxu1 %vm13644_vm5, %v13643_v28  ;;  %v2415_v47 = vrot.slane %v13314_v24, 4  ;;  %v2416_v63 = vrot.slane %v13314_v24, 5  ;;  %v2684_v2 = vsel %vm2047_vm11, %v2683_v62, %v2682_v14  ;;  %v2689_v46 = vrot.slane %v2473_v26, 2  ;;  %v3177_v26 = vld [vmem:[%s13724_s12 + $0x38] sm:$0xff]  ;;  %v3175_v62 = vld [vmem:[%s13724_s12 + $0x28] sm:$0xff]  ;;  %v3184_v14 = vld [vmem:[%s13724_s12 + $0x70] sm:$0xff] }
 0x50d   :  { %v2417_v40 = vrot.slane %v13314_v24, 6  ;;  %v2418_v4 = vrot.slane %v13314_v24, 7  ;;  %12506 = vmatprep.subr.mxu1 %v13643_v28  ;;  %v2686_v51 = vsel %vm2050_vm12, %v2685_v11, %v2684_v2  ;;  %v2476_v32 = vmul.f32 %v14426_v20, %v2412_v8  ;;  %v3180_v11 = vld [vmem:[%s13724_s12 + $0x50] sm:$0xff]  ;;  %v3185_v8 = vld [vmem:[%s13724_s12 + $0x78] sm:$0xff] }
 0x50e   :  { %v2477_v57 = vmul.f32 %v14431_v35, %v2413_v38  ;;  %v2478_v34 = vmul.f32 %v14437_v27, %v2414_v41  ;;  %v2688_v15 = vsel %vm2053_vm13, %v2687_v5, %v2686_v51  ;;  %v2691_v37 = vrot.slane %v2474_v58, 1  ;;  %v3179_v5 = vld [vmem:[%s13724_s12 + $0x48] sm:$0xff]  ;;  %v3178_v38 = vld [vmem:[%s13724_s12 + $0x40] sm:$0xff]  ;;  %v3499_v2 = vld [vmem:[%s13729_s20 + $0x10] sm:$0xff] }
 0x50f   :  { %v2475_v10 = vmul.f32 %v13314_v24, %v14420_v19  ;;  %v2479_v6 = vmul.f32 %v14441_v45, %v2415_v47  ;;  %v2690_v9 = vsel %vm2056_vm14, %v2689_v46, %v2688_v15  ;;  %v2480_v36 = vmul.f32 %v14445_v55, %v2416_v63  ;;  %v3173_v24 = vld [vmem:[%s13724_s12 + $0x18] sm:$0xff]  ;;  %v3183_v41 = vld [vmem:[%s13724_s12 + $0x68] sm:$0xff]  ;;  %v3182_v63 = vld [vmem:[%s13724_s12 + $0x60] sm:$0xff]  ;;  %s16798_s12 = sld [smem:[#allocation21_spill]] }
 0x510   :  { %v2773_v59 = vrot.slane %v2476_v32, 7  ;;  %v2775_v13 = vrot.slane %v2477_v57, 6  ;;  %v2692_v29 = vsel %vm2059_vm15, %v2691_v37, %v2690_v9  ;;  %v2481_v20 = vmul.f32 %v14489_v39, %v2417_v40  ;;  %v3500_v47 = vld [vmem:[%s13729_s20 + $0x18] sm:$0xff]  ;;  %v3498_v46 = vld [vmem:[%s13729_s20 + $0x8] sm:$0xff]  ;;  %v3503_v51 = vld [vmem:[%s13729_s20 + $0x30] sm:$0xff] }
 0x511   :  { %12494 = vmatmul.mubr.msk.f32.vlgmr.msra.gmra.mxu0 %vm1601_vm7, %v2692_v29  ;;  %v2482_v35 = vmul.f32 %v14502_v60, %v2418_v4  ;;  %v2777_v19 = vrot.slane %v2478_v34, 5  ;;  %v2779_v49 = vrot.slane %v2479_v6, 4  ;;  %v2781_v52 = vrot.slane %v2480_v36, 3  ;;  %v3504_v40 = vld [vmem:[%s13729_s20 + $0x38] sm:$0xff]  ;;  %v3497_v4 = vld [vmem:[%s13729_s20] sm:$0xff]  ;;  %v3502_v32 = vld [vmem:[%s13729_s20 + $0x28] sm:$0xff] }
 0x512   :  { %v2774_v27 = vsel %vm2041_vm9, %v2773_v59, %v2475_v10  ;;  %12503 = vmatprep.mubr.msk.f32.mxu0 %vm13644_vm5, %v13643_v28  ;;  %v2783_v0 = vrot.slane %v2481_v20, 2  ;;  %12502 = vmatpush3.msra.mxu0 %v2859_v25  ;;  %v3508_v57 = vld [vmem:[%s13729_s20 + $0x58] sm:$0xff]  ;;  %v3501_v34 = vld [vmem:[%s13729_s20 + $0x20] sm:$0xff]  ;;  %v3507_v15 = vld [vmem:[%s13729_s20 + $0x50] sm:$0xff] }
 0x513   :  { %v2776_v45 = vsel %vm2044_vm10, %v2775_v13, %v2774_v27  ;;  %v2785_v7 = vrot.slane %v2482_v35, 1  ;;  %12511 = vmatprep.subr.mxu0 %v13643_v28  ;;  %v3506_v37 = vld [vmem:[%s13729_s20 + $0x48] sm:$0xff]  ;;  %v3512_v10 = vld [vmem:[%s13729_s20 + $0x78] sm:$0xff]  ;;  %v3505_v6 = vld [vmem:[%s13729_s20 + $0x40] sm:$0xff] }
 0x514   :  { %v2778_v55 = vsel %vm2047_vm11, %v2777_v19, %v2776_v45  ;;  %v3511_v9 = vld [vmem:[%s13729_s20 + $0x70] sm:$0xff]  ;;  %v3510_v36 = vld [vmem:[%s13729_s20 + $0x68] sm:$0xff]  ;;  %v3824_v59 = vld [vmem:[%s16785_s0 + $0x18] sm:$0xff] }
 0x515   :  { %v2780_v39 = vsel %vm2050_vm12, %v2779_v49, %v2778_v55  ;;  %v3509_v13 = vld [vmem:[%s13729_s20 + $0x60] sm:$0xff]  ;;  %v3823_v29 = vld [vmem:[%s16785_s0 + $0x10] sm:$0xff]  ;;  %v3822_v20 = vld [vmem:[%s16785_s0 + $0x8] sm:$0xff]  ;;  %s16799_s20 = sld [smem:[#allocation19_spill]] }
 0x516   :  { %v2782_v60 = vsel %vm2053_vm13, %v2781_v52, %v2780_v39  ;;  %v3828_v35 = vld [vmem:[%s16785_s0 + $0x38] sm:$0xff]  ;;  %v3821_v27 = vld [vmem:[%s16785_s0] sm:$0xff]  ;;  %v3827_v19 = vld [vmem:[%s16785_s0 + $0x30] sm:$0xff] }
 0x517   :  { %v2784_v44 = vsel %vm2056_vm14, %v2783_v0, %v2782_v60  ;;  %v3826_v45 = vld [vmem:[%s16785_s0 + $0x28] sm:$0xff]  ;;  %v3832_v49 = vld [vmem:[%s16785_s0 + $0x58] sm:$0xff]  ;;  %v3825_v55 = vld [vmem:[%s16785_s0 + $0x20] sm:$0xff] }
 0x518   :  { %v2786_v48 = vsel %vm2059_vm15, %v2785_v7, %v2784_v44  ;;  %v3831_v52 = vld [vmem:[%s16785_s0 + $0x50] sm:$0xff]  ;;  %v3830_v39 = vld [vmem:[%s16785_s0 + $0x48] sm:$0xff]  ;;  %v3836_v0 = vld [vmem:[%s16785_s0 + $0x78] sm:$0xff] }
 0x519   :  { %12499 = vmatmul.mubr.msk.f32.vlgmr.msra.gmra.mxu1 %vm1601_vm7, %v2786_v48  ;;  %v3829_v60 = vld [vmem:[%s16785_s0 + $0x40] sm:$0xff]  ;;  %v3835_v7 = vld [vmem:[%s16785_s0 + $0x70] sm:$0xff]  ;;  %v3834_v44 = vld [vmem:[%s16785_s0 + $0x68] sm:$0xff] }
 0x51a   :  { %12508 = vmatprep.mubr.msk.f32.mxu1 %vm13644_vm5, %v13643_v28  ;;  %12507 = vmatpush3.msra.mxu1 %v2860_v54  ;;  %v3833_v48 = vld [vmem:[%s16785_s0 + $0x60] sm:$0xff]  ;;  %s16812_s0 = sld [smem:[#allocation30_spill]] }
 0x51b   :  { %12516 = vmatprep.subr.mxu1 %v13643_v28 }
 0x5bc   :  { %v2573_v56 = vpop.f32.mrf.mxu0 }
 0x5bd   :  { %12504 = vmatmul.mubr.msk.f32.vlgmr.msra.gmra.mxu0 %vm1601_vm7, %v2573_v56 }
 0x5be   :  { %v12485_v17 = vpop.f32.mrf.mxu0  ;;  %12512 = vmatpush3.msra.mxu0 %v2861_v31  ;;  %12513 = vmatprep.mubr.msk.f32.mxu0 %vm13644_vm5, %v13643_v28 }
 0x5bf   :  { %12521 = vmatprep.subr.mxu0 %v13643_v28 }
 0x5cb   :  { %v2667_v21 = vpop.f32.mrf.mxu1 }
 0x5cc   :  { %12509 = vmatmul.mubr.msk.f32.vlgmr.msra.gmra.mxu1 %vm1601_vm7, %v2667_v21 }
 0x5cd   :  { %v12490_v23 = vpop.f32.mrf.mxu1  ;;  %12517 = vmatpush3.msra.mxu1 %v2862_v33  ;;  %12518 = vmatprep.mubr.msk.f32.mxu1 %vm13644_vm5, %v13643_v28 }
 0x5ce   :  { %12532 = vmatprep.subr.mxu1 %v13643_v28 }
 0x5d1   :  { %v2761_v18 = vpop.f32.mrf.mxu0 }
 0x5d2   :  { %12514 = vmatmul.mubr.msk.f32.vlgmr.msra.gmra.mxu0 %vm1601_vm7, %v2761_v18 }
 0x5d3   :  { %12522 = vmatpush3.msra.mxu0 %v3173_v24  ;;  %v12495_v43 = vpop.f32.mrf.mxu0  ;;  %12529 = vmatprep.mubr.msk.f32.mxu0 %vm13644_vm5, %v13643_v28 }
 0x5d4   :  { %12523 = vmatprep.subr.mxu0 %v13643_v28 }
 0x5d5   :  { %12524 = vmatpush3.msra.mxu0 %v3172_v30 }
 0x5d6   :  { %12525 = vmatprep.subr.mxu0 %v13643_v28 }
 0x5d7   :  { %12526 = vmatpush3.msra.mxu0 %v3171_v50 }
 0x5d8   :  { %12527 = vmatprep.subr.mxu0 %v13643_v28 }
 0x5d9   :  { %v2855_v61 = vpop.f32.mrf.mxu1  ;;  %12528 = vmatpush3.msra.mxu0 %v3170_v1 }
 0x5da   :  { %12519 = vmatmul.mubr.msk.f32.vlgmr.msra.gmra.mxu1 %vm1601_vm7, %v2855_v61  ;;  %12530 = vmatmul.mubr.msk.f32.vlgmr.msra.gmra.mxu0 %vm669_vm6, %v14541_v3 }
 0x5db   :  { %12533 = vmatpush3.msra.mxu1 %v3177_v26  ;;  %v12500_v58 = vpop.f32.mrf.mxu1  ;;  %12543 = vmatprep.subr.mxu0 %v13643_v28 }
 0x5dc   :  { %12534 = vmatprep.subr.mxu1 %v13643_v28  ;;  %12544 = vmatpush3.msra.mxu0 %v3181_v42 }
 0x5dd   :  { %12535 = vmatpush3.msra.mxu1 %v3176_v12  ;;  %12545 = vmatprep.subr.mxu0 %v13643_v28 }
 0x5de   :  { %12536 = vmatprep.subr.mxu1 %v13643_v28  ;;  %12540 = vmatprep.mubr.msk.f32.mxu1 %vm13644_vm5, %v13643_v28 }
 0x5df   :  { %12537 = vmatpush3.msra.mxu1 %v3175_v62  ;;  %12546 = vmatpush3.msra.mxu0 %v3180_v11 }
 0x5e0   :  { %12538 = vmatprep.subr.mxu1 %v13643_v28  ;;  %12547 = vmatprep.subr.mxu0 %v13643_v28 }
 0x5e1   :  { %12539 = vmatpush3.msra.mxu1 %v3174_v22  ;;  %12548 = vmatpush3.msra.mxu0 %v3179_v5 }
 0x5e2   :  { %12541 = vmatmul.mubr.msk.f32.vlgmr.msra.gmra.mxu1 %vm669_vm6, %v14541_v3  ;;  %12554 = vmatprep.subr.mxu1 %v13643_v28 }
 0x5e3   :  { %12555 = vmatpush3.msra.mxu1 %v3185_v8  ;;  %12549 = vmatprep.subr.mxu0 %v13643_v28  ;;  %v11771_v8 = vld [vmem:[%s16786_s5] ss:$0 sm:$0xff] }
 0x5e4   :  { %12556 = vmatprep.subr.mxu1 %v13643_v28  ;;  %12550 = vmatpush3.msra.mxu0 %v3178_v38 }
 0x5e5   :  { %12551 = vmatprep.mubr.msk.f32.mxu0 %vm13644_vm5, %v13643_v28  ;;  %12557 = vmatpush3.msra.mxu1 %v3184_v14  ;;  %v11763_v14 = vld [vmem:[%s16787_s9] ss:$0 sm:$0xff] }
 0x5e6   :  { %12552 = vmatmul.mubr.msk.f32.vlgmr.msra.gmra.mxu0 %vm669_vm6, %v14541_v3  ;;  %12558 = vmatprep.subr.mxu1 %v13643_v28 }
 0x5e7   :  { %12565 = vmatprep.subr.mxu0 %v13643_v28  ;;  %12559 = vmatpush3.msra.mxu1 %v3183_v41 }
 0x5e8   :  { %12566 = vmatpush3.msra.mxu0 %v3500_v47  ;;  %12560 = vmatprep.subr.mxu1 %v13643_v28 }
 0x5e9   :  { %12567 = vmatprep.subr.mxu0 %v13643_v28  ;;  %12561 = vmatpush3.msra.mxu1 %v3182_v63  ;;  %v11772_v63 = vld [vmem:[%s16786_s5 + $0x1] ss:$0 sm:$0xff] }
 0x5ea   :  { %12562 = vmatprep.mubr.msk.f32.mxu1 %vm13644_vm5, %v13643_v28  ;;  %12568 = vmatpush3.msra.mxu0 %v3499_v2 }
 0x5eb   :  { %12563 = vmatmul.mubr.msk.f32.vlgmr.msra.gmra.mxu1 %vm669_vm6, %v14541_v3  ;;  %12569 = vmatprep.subr.mxu0 %v13643_v28 }
 0x5ec   :  { %12576 = vmatprep.subr.mxu1 %v13643_v28  ;;  %12570 = vmatpush3.msra.mxu0 %v3498_v46 }
 0x5ed   :  { %12577 = vmatpush3.msra.mxu1 %v3504_v40  ;;  %12571 = vmatprep.subr.mxu0 %v13643_v28  ;;  %v11764_v40 = vld [vmem:[%s16787_s9 + $0x1] ss:$0 sm:$0xff] }
 0x5ee   :  { %12578 = vmatprep.subr.mxu1 %v13643_v28  ;;  %12572 = vmatpush3.msra.mxu0 %v3497_v4 }
 0x5ef   :  { %12573 = vmatprep.mubr.msk.f32.mxu0 %vm13644_vm5, %v13643_v28  ;;  %12579 = vmatpush3.msra.mxu1 %v3503_v51 }
 0x5f0   :  { %12574 = vmatmul.mubr.msk.f32.vlgmr.msra.gmra.mxu0 %vm669_vm6, %v14541_v3  ;;  %12580 = vmatprep.subr.mxu1 %v13643_v28 }
 0x5f1   :  { %12587 = vmatprep.subr.mxu0 %v13643_v28  ;;  %12581 = vmatpush3.msra.mxu1 %v3502_v32  ;;  %v11773_v32 = vld [vmem:[%s16786_s5 + $0x2] ss:$0 sm:$0xff] }
 0x5f2   :  { %12588 = vmatpush3.msra.mxu0 %v3508_v57  ;;  %12582 = vmatprep.subr.mxu1 %v13643_v28 }
 0x5f3   :  { %12589 = vmatprep.subr.mxu0 %v13643_v28  ;;  %12583 = vmatpush3.msra.mxu1 %v3501_v34 }
 0x5f4   :  { %12584 = vmatprep.mubr.msk.f32.mxu1 %vm13644_vm5, %v13643_v28  ;;  %12590 = vmatpush3.msra.mxu0 %v3507_v15  ;;  %v11765_v15 = vld [vmem:[%s16787_s9 + $0x2] ss:$0 sm:$0xff] }
 0x5f5   :  { %12585 = vmatmul.mubr.msk.f32.vlgmr.msra.gmra.mxu1 %vm669_vm6, %v14541_v3  ;;  %12591 = vmatprep.subr.mxu0 %v13643_v28 }
 0x5f6   :  { %12598 = vmatprep.subr.mxu1 %v13643_v28  ;;  %12592 = vmatpush3.msra.mxu0 %v3506_v37 }
 0x5f7   :  { %12599 = vmatpush3.msra.mxu1 %v3512_v10  ;;  %12593 = vmatprep.subr.mxu0 %v13643_v28 }
 0x5f8   :  { %12600 = vmatprep.subr.mxu1 %v13643_v28  ;;  %12594 = vmatpush3.msra.mxu0 %v3505_v6  ;;  %v11774_v6 = vld [vmem:[%s16786_s5 + $0x3] ss:$0 sm:$0xff]  ;;  %s16813_s5 = sld [smem:[#allocation32_spill]] }
 0x5f9   :  { %12595 = vmatprep.mubr.msk.f32.mxu0 %vm13644_vm5, %v13643_v28  ;;  %12601 = vmatpush3.msra.mxu1 %v3511_v9 }
 0x5fa   :  { %12596 = vmatmul.mubr.msk.f32.vlgmr.msra.gmra.mxu0 %vm669_vm6, %v14541_v3  ;;  %12602 = vmatprep.subr.mxu1 %v13643_v28 }
 0x5fb   :  { %12609 = vmatprep.subr.mxu0 %v13643_v28  ;;  %12603 = vmatpush3.msra.mxu1 %v3510_v36 }
 0x5fc   :  { %12610 = vmatpush3.msra.mxu0 %v3824_v59  ;;  %12604 = vmatprep.subr.mxu1 %v13643_v28  ;;  %v11766_v59 = vld [vmem:[%s16787_s9 + $0x3] ss:$0 sm:$0xff]  ;;  %s16814_s9 = sld [smem:[#allocation5_spill]] }
 0x5fd   :  { %12611 = vmatprep.subr.mxu0 %v13643_v28  ;;  %12605 = vmatpush3.msra.mxu1 %v3509_v13 }
 0x5fe   :  { %12606 = vmatprep.mubr.msk.f32.mxu1 %vm13644_vm5, %v13643_v28  ;;  %12612 = vmatpush3.msra.mxu0 %v3823_v29 }
 0x5ff   :  { %12607 = vmatmul.mubr.msk.f32.vlgmr.msra.gmra.mxu1 %vm669_vm6, %v14541_v3  ;;  %12613 = vmatprep.subr.mxu0 %v13643_v28 }
 0x600   :  { %12620 = vmatprep.subr.mxu1 %v13643_v28  ;;  %12614 = vmatpush3.msra.mxu0 %v3822_v20  ;;  %v11779_v20 = vld [vmem:[%s16788_s29] ss:$0 sm:$0xff] }
 0x601   :  { %12621 = vmatpush3.msra.mxu1 %v3828_v35  ;;  %12615 = vmatprep.subr.mxu0 %v13643_v28 }
 0x602   :  { %12622 = vmatprep.subr.mxu1 %v13643_v28  ;;  %12616 = vmatpush3.msra.mxu0 %v3821_v27 }
 0x603   :  { %12617 = vmatprep.mubr.msk.f32.mxu0 %vm13644_vm5, %v13643_v28  ;;  %12623 = vmatpush3.msra.mxu1 %v3827_v19 }
 0x604   :  { %12618 = vmatmul.mubr.msk.f32.vlgmr.msra.gmra.mxu0 %vm669_vm6, %v14541_v3  ;;  %12624 = vmatprep.subr.mxu1 %v13643_v28 }
 0x605   :  { %12631 = vmatprep.subr.mxu0 %v13643_v28  ;;  %12625 = vmatpush3.msra.mxu1 %v3826_v45 }
 0x606   :  { %12632 = vmatpush3.msra.mxu0 %v3832_v49  ;;  %12626 = vmatprep.subr.mxu1 %v13643_v28  ;;  %v11780_v49 = vld [vmem:[%s16788_s29 + $0x1] ss:$0 sm:$0xff] }
 0x607   :  { %12633 = vmatprep.subr.mxu0 %v13643_v28  ;;  %12627 = vmatpush3.msra.mxu1 %v3825_v55 }
 0x608   :  { %12628 = vmatprep.mubr.msk.f32.mxu1 %vm13644_vm5, %v13643_v28  ;;  %12634 = vmatpush3.msra.mxu0 %v3831_v52 }
 0x609   :  { %12629 = vmatmul.mubr.msk.f32.vlgmr.msra.gmra.mxu1 %vm669_vm6, %v14541_v3  ;;  %12635 = vmatprep.subr.mxu0 %v13643_v28 }
 0x60a   :  { %12642 = vmatprep.subr.mxu1 %v13643_v28  ;;  %12636 = vmatpush3.msra.mxu0 %v3830_v39 }
 0x60b   :  { %12643 = vmatpush3.msra.mxu1 %v3836_v0  ;;  %12637 = vmatprep.subr.mxu0 %v13643_v28 }
 0x60c   :  { %12644 = vmatprep.subr.mxu1 %v13643_v28  ;;  %12638 = vmatpush3.msra.mxu0 %v3829_v60 }
 0x60d   :  { %12639 = vmatprep.mubr.msk.f32.mxu0 %vm13644_vm5, %v13643_v28  ;;  %12645 = vmatpush3.msra.mxu1 %v3835_v7 }
 0x60e   :  { %12640 = vmatmul.mubr.msk.f32.vlgmr.msra.gmra.mxu0 %vm669_vm6, %v14541_v3  ;;  %12646 = vmatprep.subr.mxu1 %v13643_v28 }
 0x60f   :  { %12650 = vmatprep.mubr.msk.f32.mxu1 %vm13644_vm5, %v13643_v28  ;;  %12647 = vmatpush3.msra.mxu1 %v3834_v44 }
 0x610   :  { %12653 = vmatprep.subr.mxu0 %v13643_v28  ;;  %12648 = vmatprep.subr.mxu1 %v13643_v28 }
 0x611   :  { %12655 = vmatprep.mubr.msk.f32.mxu0 %vm13644_vm5, %v13643_v28  ;;  %12649 = vmatpush3.msra.mxu1 %v3833_v48 }
 0x612   :  { %12651 = vmatmul.mubr.msk.f32.vlgmr.msra.gmra.mxu1 %vm669_vm6, %v14541_v3  ;;  %12658 = vmatprep.subr.mxu1 %v13643_v28 }
 0x613   :  { %12660 = vmatprep.mubr.msk.f32.mxu1 %vm13644_vm5, %v13643_v28 }
 0x67d   :  { %v2932_v25 = vpop.f32.mrf.mxu0 }
 0x67e   :  { %v3155_v56 = vsel %vm669_vm6, %v2932_v25, 0.0 }
 0x67f   :  { %v12505_v54 = vpop.f32.mrf.mxu0 }
 0x68c   :  { %v3005_v31 = vpop.f32.mrf.mxu1 }
 0x68d   :  { %v3156_v17 = vsel %vm669_vm6, %v3005_v31, 0.0 }
 0x68e   :  { %v3157_v33 = vadd.f32 %v3156_v17, %v3155_v56  ;;  %v12510_v21 = vpop.f32.mrf.mxu1 }
 0x692   :  { %v3078_v23 = vpop.f32.mrf.mxu0 }
 0x693   :  { %v3158_v24 = vsel %vm669_vm6, %v3078_v23, 0.0 }
 0x694   :  { %v3159_v18 = vadd.f32 %v3158_v24, %v3157_v33  ;;  %v12515_v30 = vpop.f32.mrf.mxu0 }
 0x69a   :  { %v3151_v43 = vpop.f32.mrf.mxu1  ;;  %v3283_v1 = vpop.f32.mrf.mxu0 }
 0x69b   :  { %v3160_v50 = vsel %vm669_vm6, %v3151_v43, 0.0  ;;  %v3284_v2 = vadd.f32 %v11763_v14, %v3283_v1 }
 0x69c   :  { %v14763_v26 = vadd.f32 %v3160_v50, %v3159_v18  ;;  %v12520_v61 = vpop.f32.mrf.mxu1  ;;  %v12531_v12 = vpop.f32.mrf.mxu0 }
 0x6a2   :  { %v3353_v42 = vpop.f32.mrf.mxu1 }
 0x6a3   :  { %v3354_v57 = vadd.f32 %v11764_v40, %v3353_v42 }
 0x6a4   :  { %v12542_v58 = vpop.f32.mrf.mxu1 }
 0x6a6   :  { %v3423_v62 = vpop.f32.mrf.mxu0 }
 0x6a7   :  { %v3424_v9 = vadd.f32 %v11765_v15, %v3423_v62 }
 0x6a8   :  { %v12553_v11 = vpop.f32.mrf.mxu0 }
 0x6ab   :  { %v3493_v22 = vpop.f32.mrf.mxu1 }
 0x6ac   :  { %v3494_v35 = vadd.f32 %v11766_v59, %v3493_v22 }
 0x6ad   :  { %v12564_v5 = vpop.f32.mrf.mxu1 }
 0x6b0   :  { %v3607_v38 = vpop.f32.mrf.mxu0 }
 0x6b1   :  { %v3608_v41 = vadd.f32 %v11771_v8, %v3607_v38 }
 0x6b2   :  { %v12575_v47 = vpop.f32.mrf.mxu0 }
 0x6b3   :  { %12654 = vmatpush3.xpose.msk.msra.mxu0 %vm1601_vm7, %v3608_v41 }
 0x6b4   :  { %12663 = vmatprep.subr.mxu0 %v13643_v28 }
 0x6b5   :  { %v3677_v46 = vpop.f32.mrf.mxu1 }
 0x6b6   :  { %v3678_v4 = vadd.f32 %v11772_v63, %v3677_v46  ;;  %12656 = vmatmul.mubr.msk.f32.vlgmr.msra.gmra.mxu0 %vm1601_vm7, %v3284_v2 }
 0x6b7   :  { %v12586_v51 = vpop.f32.mrf.mxu1  ;;  %12665 = vmatprep.mubr.msk.f32.mxu0 %vm13644_vm5, %v13643_v28 }
 0x6b8   :  { %12659 = vmatpush3.xpose.msk.msra.mxu1 %vm1601_vm7, %v3678_v4 }
 0x6b9   :  { %12668 = vmatprep.subr.mxu1 %v13643_v28 }
 0x6ba   :  { %v3747_v34 = vpop.f32.mrf.mxu0 }
 0x6bb   :  { %v3748_v37 = vadd.f32 %v11773_v32, %v3747_v34  ;;  %12661 = vmatmul.mubr.msk.f32.vlgmr.msra.gmra.mxu1 %vm1601_vm7, %v3354_v57 }
 0x6bc   :  { %v12597_v10 = vpop.f32.mrf.mxu0  ;;  %12670 = vmatprep.mubr.msk.f32.mxu1 %vm13644_vm5, %v13643_v28 }
 0x6bd   :  { %12664 = vmatpush3.xpose.msk.msra.mxu0 %vm1601_vm7, %v3748_v37 }
 0x6be   :  { %12673 = vmatprep.subr.mxu0 %v13643_v28 }
 0x6bf   :  { %v3817_v36 = vpop.f32.mrf.mxu1 }
 0x6c0   :  { %v3818_v13 = vadd.f32 %v11774_v6, %v3817_v36  ;;  %12666 = vmatmul.mubr.msk.f32.vlgmr.msra.gmra.mxu0 %vm1601_vm7, %v3424_v9 }
 0x6c1   :  { %v12608_v29 = vpop.f32.mrf.mxu1  ;;  %12675 = vmatprep.mubr.msk.f32.mxu0 %vm13644_vm5, %v13643_v28 }
 0x6c2   :  { %12669 = vmatpush3.xpose.msk.msra.mxu1 %vm1601_vm7, %v3818_v13 }
 0x6c3   :  { %12678 = vmatprep.subr.mxu1 %v13643_v28 }
 0x6c4   :  { %v3931_v27 = vpop.f32.mrf.mxu0 }
 0x6c5   :  { %v3932_v19 = vadd.f32 %v11779_v20, %v3931_v27  ;;  %12671 = vmatmul.mubr.msk.f32.vlgmr.msra.gmra.mxu1 %vm1601_vm7, %v3494_v35 }
 0x6c6   :  { %v12619_v45 = vpop.f32.mrf.mxu0  ;;  %12680 = vmatprep.mubr.msk.f32.mxu1 %vm13644_vm5, %v13643_v28 }
 0x6c7   :  { %12674 = vmatpush3.msra.mxu0 %v3932_v19 }
 0x6c8   :  { %12683 = vmatprep.subr.mxu0 %v13643_v28 }
 0x6c9   :  { %v4001_v55 = vpop.f32.mrf.mxu1 }
 0x6ca   :  { %v4002_v52 = vadd.f32 %v11780_v49, %v4001_v55 }
 0x6cb   :  { %v12630_v39 = vpop.f32.mrf.mxu1 }
 0x6cc   :  { %12679 = vmatpush3.msra.mxu1 %v4002_v52 }
 0x6cd   :  { %12688 = vmatprep.subr.mxu1 %v13643_v28 }
 0x6ce   :  { %v14797_v0 = vpop.f32.mrf.mxu0 }
 0x6d0   :  { %v12641_v60 = vpop.f32.mrf.mxu0 }
 0x6d2   :  { %v14799_v7 = vpop.f32.mrf.mxu1 }
 0x6d4   :  { %v12652_v44 = vpop.f32.mrf.mxu1 }
 0x776   :  { %v4217_v48 = vpop.f32.mrf.mxu0 }
 0x777   :  { %v14801_v25 = vmul.f32 0.35355338, %v4217_v48 }
 0x778   :  { %v12657_v54 = vpop.f32.mrf.mxu0 }
 0x779   :  { %v4457_v31 = vrot.slane %v14801_v25, 7  ;;  %v4458_v56 = vrot.slane %v14801_v25, 1  ;;  %v4459_v17 = vrot.slane %v14801_v25, 2  ;;  %v4460_v33 = vrot.slane %v14801_v25, 3 }
 0x77a   :  { %v4461_v21 = vrot.slane %v14801_v25, 4  ;;  %v4462_v23 = vrot.slane %v14801_v25, 5  ;;  %v14812_v24 = vsel %vm216_vm8, %v14801_v25, -1e+30 }
 0x77b   :  { %v4293_v18 = vpop.f32.mrf.mxu1  ;;  %v14816_v30 = vsel %vm216_vm8, %v4457_v31, -1e+30  ;;  %v14820_v43 = vsel %vm216_vm8, %v4458_v56, -1e+30  ;;  %v14824_v50 = vsel %vm216_vm8, %v4459_v17, -1e+30 }
 0x77c   :  { %v14826_v1 = vmul.f32 0.35355338, %v4293_v18  ;;  %v14830_v61 = vsel %vm216_vm8, %v4460_v33, -1e+30  ;;  %v14834_v12 = vsel %vm216_vm8, %v4461_v21, -1e+30 }
 0x77d   :  { %v12662_v42 = vpop.f32.mrf.mxu1  ;;  %v14838_v58 = vsel %vm216_vm8, %v4462_v23, -1e+30  ;;  %v4581_v62 = vrot.slane %v14812_v24, 7  ;;  %v4583_v11 = vrot.slane %v14820_v43, 6  ;;  %v4585_v22 = vrot.slane %v14824_v50, 5 }
 0x77e   :  { %v4587_v5 = vrot.slane %v14830_v61, 4  ;;  %v4589_v8 = vrot.slane %v14834_v12, 3  ;;  %v4591_v38 = vrot.slane %v14838_v58, 2  ;;  %v4464_v14 = vrot.slane %v14826_v1, 7 }
 0x77f   :  { %v4582_v41 = vsel %vm2044_vm10, %v4581_v62, %v14816_v30  ;;  %v4465_v47 = vrot.slane %v14826_v1, 1  ;;  %v4466_v63 = vrot.slane %v14826_v1, 2  ;;  %v4467_v2 = vrot.slane %v14826_v1, 3 }
 0x780   :  { %v4369_v46 = vpop.f32.mrf.mxu0  ;;  %v4584_v40 = vsel %vm2047_vm11, %v4583_v11, %v4582_v41  ;;  %v4468_v4 = vrot.slane %v14826_v1, 4  ;;  %v4469_v51 = vrot.slane %v14826_v1, 5  ;;  %v14857_v32 = vsel %vm216_vm8, %v4464_v14, -1e+30 }
 0x781   :  { %v4451_v57 = vmul.f32 0.35355338, %v4369_v46  ;;  %v4586_v34 = vsel %vm2050_vm12, %v4585_v22, %v4584_v40  ;;  %v14863_v15 = vsel %vm216_vm8, %v14826_v1, -1e+30  ;;  %v14867_v37 = vsel %vm216_vm8, %v4465_v47, -1e+30 }
 0x782   :  { %v12667_v10 = vpop.f32.mrf.mxu0  ;;  %v4588_v6 = vsel %vm2053_vm13, %v4587_v5, %v4586_v34  ;;  %v14872_v9 = vsel %vm216_vm8, %v4466_v63, -1e+30  ;;  %v14876_v36 = vsel %vm216_vm8, %v4467_v2, -1e+30  ;;  %v14880_v59 = vsel %vm216_vm8, %v4468_v4, -1e+30 }
 0x783   :  { %v4590_v13 = vsel %vm2056_vm14, %v4589_v8, %v4588_v6  ;;  %v14885_v29 = vsel %vm216_vm8, %v4469_v51, -1e+30  ;;  %v4594_v20 = vrot.slane %v14863_v15, 7  ;;  %v4596_v35 = vrot.slane %v14867_v37, 6 }
 0x784   :  { %v4592_v27 = vsel %vm2059_vm15, %v4591_v38, %v4590_v13  ;;  %v4598_v19 = vrot.slane %v14872_v9, 5  ;;  %v4600_v45 = vrot.slane %v14876_v36, 4  ;;  %v4602_v39 = vrot.slane %v14880_v59, 3 }
 0x785   :  { %v4445_v49 = vpop.f32.mrf.mxu1  ;;  %v4642_v55 = vsel %vm4641_vm0, %v4592_v27, -inf  ;;  %v4595_v52 = vsel %vm2044_vm10, %v4594_v20, %v14857_v32  ;;  %v4477_v60 = vrot.slane %v4451_v57, 6  ;;  %v4604_v48 = vrot.slane %v14885_v29, 2 }
 0x786   :  { %4643 = vmax.xlane.f32.xlu1 %v4642_v55  ;;  %v4597_v44 = vsel %vm2047_vm11, %v4596_v35, %v4595_v52  ;;  %v4471_v54 = vrot.slane %v4451_v57, 7  ;;  %v4472_v31 = vrot.slane %v4451_v57, 1  ;;  %v4473_v21 = vrot.slane %v4451_v57, 2 }
 0x787   :  { %v12672_v56 = vpop.f32.mrf.mxu1  ;;  %v4599_v17 = vsel %vm2050_vm12, %v4598_v19, %v4597_v44  ;;  %v14901_v33 = vsel %vm216_vm8, %v4477_v60, -1e+30  ;;  %v4474_v23 = vrot.slane %v4451_v57, 3  ;;  %v4475_v62 = vrot.slane %v4451_v57, 4 }
 0x788   :  { %v4601_v18 = vsel %vm2053_vm13, %v4600_v45, %v4599_v17  ;;  %v4619_v42 = vrot.slane %v14901_v33, 1  ;;  %v4476_v11 = vrot.slane %v4451_v57, 5  ;;  %v14905_v22 = vmul.f32 0.35355338, %v4445_v49 }
 0x789   :  { %v4603_v5 = vsel %vm2056_vm14, %v4602_v39, %v4601_v18  ;;  %v14910_v8 = vsel %vm216_vm8, %v4451_v57, -1e+30  ;;  %v14914_v38 = vsel %vm216_vm8, %v4472_v31, -1e+30  ;;  %v14919_v41 = vsel %vm216_vm8, %v4471_v54, -1e+30 }
 0x78a   :  { %v4605_v14 = vsel %vm2059_vm15, %v4604_v48, %v4603_v5  ;;  %v14923_v47 = vsel %vm216_vm8, %v4473_v21, -1e+30  ;;  %v14927_v63 = vsel %vm216_vm8, %v4474_v23, -1e+30  ;;  %v4658_v46 = vsel %vm4645_vm1, %v4619_v42, -inf }
 0x78b   :  { %v4649_v2 = vsel %vm4641_vm0, %v4605_v14, -inf  ;;  %v14933_v40 = vsel %vm216_vm8, %v4475_v62, -1e+30  ;;  %v4607_v4 = vrot.slane %v14910_v8, 7  ;;  %v14938_v51 = vsel %vm216_vm8, %v4476_v11, -1e+30 }
 0x78c   :  { %4650 = vmax.xlane.f32.xlu0 %v4649_v2  ;;  %v4609_v57 = vrot.slane %v14914_v38, 6  ;;  %v4611_v34 = vrot.slane %v14923_v47, 5  ;;  %v4613_v10 = vrot.slane %v14927_v63, 4  ;;  %v4615_v13 = vrot.slane %v14933_v40, 3 }
 0x78d   :  { %v4608_v6 = vsel %vm2044_vm10, %v4607_v4, %v14919_v41  ;;  %v4478_v20 = vrot.slane %v14905_v22, 7  ;;  %v4479_v35 = vrot.slane %v14905_v22, 1  ;;  %v4480_v19 = vrot.slane %v14905_v22, 2 }
 0x78e   :  { %v4610_v27 = vsel %vm2047_vm11, %v4609_v57, %v4608_v6  ;;  %v4481_v45 = vrot.slane %v14905_v22, 3  ;;  %v4482_v49 = vrot.slane %v14905_v22, 4  ;;  %v4617_v52 = vrot.slane %v14938_v51, 2 }
 0x78f   :  { %v4612_v55 = vsel %vm2050_vm12, %v4611_v34, %v4610_v27  ;;  %v4483_v39 = vrot.slane %v14905_v22, 5  ;;  %v14958_v60 = vsel %vm216_vm8, %v14905_v22, -1e+30  ;;  %v14963_v48 = vsel %vm216_vm8, %v4478_v20, -1e+30 }
 0x790   :  { %4659 = vmax.xlane.f32.xlu0 %v4658_v46  ;;  %v4614_v44 = vsel %vm2053_vm13, %v4613_v10, %v4612_v55  ;;  %v14967_v54 = vsel %vm216_vm8, %v4479_v35, -1e+30  ;;  %v14971_v31 = vsel %vm216_vm8, %v4480_v19, -1e+30  ;;  %v14976_v17 = vsel %vm216_vm8, %v4481_v45, -1e+30 }
 0x791   :  { %v4616_v56 = vsel %vm2056_vm14, %v4615_v13, %v4614_v44  ;;  %v4620_v21 = vrot.slane %v14958_v60, 7  ;;  %v4463_v23 = vrot.slane %v14801_v25, 6  ;;  %v14983_v42 = vsel %vm216_vm8, %v4482_v49, -1e+30 }
 0x792   :  { %v4618_v18 = vsel %vm2059_vm15, %v4617_v52, %v4616_v56  ;;  %v4622_v62 = vrot.slane %v14967_v54, 6  ;;  %v4624_v11 = vrot.slane %v14971_v31, 5  ;;  %v14990_v14 = vsel %vm216_vm8, %v4483_v39, -1e+30 }
 0x793   :  { %v4655_v5 = vsel %vm4641_vm0, %v4618_v18, -inf  ;;  %v4621_v2 = vsel %vm2044_vm10, %v4620_v21, %v14963_v48  ;;  %v4626_v46 = vrot.slane %v14976_v17, 4  ;;  %v4628_v57 = vrot.slane %v14983_v42, 3 }
 0x794   :  { %4656 = vmax.xlane.f32.xlu1 %v4655_v5  ;;  %v4623_v25 = vsel %vm2047_vm11, %v4622_v62, %v4621_v2  ;;  %v4630_v10 = vrot.slane %v14990_v14, 2  ;;  %v15002_v6 = vsel %vm216_vm8, %v4463_v23, -1e+30  ;;  %v4470_v13 = vrot.slane %v14826_v1, 6 }
 0x795   :  { %v4625_v4 = vsel %vm2050_vm12, %v4624_v11, %v4623_v25  ;;  %v4593_v19 = vrot.slane %v15002_v6, 1  ;;  %v4484_v49 = vrot.slane %v14905_v22, 6 }
 0x796   :  { %v4627_v34 = vsel %vm2053_vm13, %v4626_v46, %v4625_v4  ;;  %v15011_v45 = vsel %vm216_vm8, %v4470_v13, -1e+30 }
 0x797   :  { %v4629_v20 = vsel %vm2056_vm14, %v4628_v57, %v4627_v34  ;;  %v4646_v55 = vsel %vm4645_vm1, %v4593_v19, -inf  ;;  %v4606_v52 = vrot.slane %v15011_v45, 1  ;;  %v15018_v1 = vsel %vm216_vm8, %v4484_v49, -1e+30 }
 0x798   :  { %v4631_v35 = vsel %vm2059_vm15, %v4630_v10, %v4629_v20  ;;  %v4632_v44 = vrot.slane %v15018_v1, 1 }
 0x799   :  { %v4661_v27 = vsel %vm4641_vm0, %v4631_v35, -inf  ;;  %v4652_v39 = vsel %vm4645_vm1, %v4606_v52, -inf }
 0x79a   :  { %4662 = vmax.xlane.f32.xlu1 %v4661_v27  ;;  %v4664_v56 = vsel %vm4645_vm1, %v4632_v44, -inf }
 0x79e   :  { %4647 = vmax.xlane.f32.xlu1 %v4646_v55 }
 0x7a2   :  { %4653 = vmax.xlane.f32.xlu1 %v4652_v39 }
 0x7a6   :  { %4665 = vmax.xlane.f32.xlu1 %v4664_v56 }
 0x80f   :  { %v4644_v21 = vpop.xlane.xlu1 %4643 }
 0x810   :  { %v4675_v23 = vrot.slane %v4644_v21, 1  ;;  %v4676_v22 = vrot.slane %v4644_v21, 2  ;;  %v4677_v18 = vrot.slane %v4644_v21, 3  ;;  %v4678_v62 = vrot.slane %v4644_v21, 4 }
 0x811   :  { %v4679_v11 = vrot.slane %v4644_v21, 5  ;;  %v4680_v5 = vrot.slane %v4644_v21, 6  ;;  %v4735_v2 = vsub.f32 %v14816_v30, %v4644_v21 }
 0x812   :  { %v4736_v25 = vsub.f32 %v14812_v24, %v4675_v23  ;;  %v4737_v46 = vsub.f32 %v14820_v43, %v4676_v22  ;;  %v4738_v4 = vsub.f32 %v14824_v50, %v4677_v18  ;;  %v4739_v57 = vsub.f32 %v14830_v61, %v4678_v62 }
 0x813   :  { %v4740_v34 = vsub.f32 %v14834_v12, %v4679_v11  ;;  %v4741_v10 = vsub.f32 %v14838_v58, %v4680_v5  ;;  %v4767_v13 = vmul.f32 1.442695, %v4735_v2 }
 0x814   :  { %v4769_v20 = vmul.f32 1.442695, %v4736_v25  ;;  %v4771_v35 = vmul.f32 1.442695, %v4737_v46  ;;  %v4773_v27 = vmul.f32 1.442695, %v4738_v4 }
 0x815   :  { %13315 = vpow2.f32 %v4767_v13  ;;  %v4775_v19 = vmul.f32 1.442695, %v4739_v57  ;;  %v4777_v49 = vmul.f32 1.442695, %v4740_v34  ;;  %v4779_v30 = vmul.f32 1.442695, %v4741_v10  ;;  %v4651_v55 = vpop.xlane.xlu0 %4650 }
 0x816   :  { %13317 = vpow2.f32 %v4769_v20  ;;  %v4682_v24 = vrot.slane %v4651_v55, 1  ;;  %v4683_v43 = vrot.slane %v4651_v55, 2  ;;  %v4684_v52 = vrot.slane %v4651_v55, 3 }
 0x817   :  { %13319 = vpow2.f32 %v4771_v35  ;;  %v4685_v50 = vrot.slane %v4651_v55, 4  ;;  %v4686_v61 = vrot.slane %v4651_v55, 5  ;;  %v4687_v39 = vrot.slane %v4651_v55, 6 }
 0x818   :  { %13321 = vpow2.f32 %v4773_v27  ;;  %v4743_v12 = vsub.f32 %v14857_v32, %v4651_v55  ;;  %v4744_v58 = vsub.f32 %v14863_v15, %v4682_v24  ;;  %v4745_v44 = vsub.f32 %v14867_v37, %v4683_v43 }
 0x819   :  { %13323 = vpow2.f32 %v4775_v19  ;;  %v4746_v56 = vsub.f32 %v14872_v9, %v4684_v52  ;;  %v4747_v21 = vsub.f32 %v14876_v36, %v4685_v50  ;;  %v4748_v23 = vsub.f32 %v14880_v59, %v4686_v61  ;;  %v4660_v22 = vpop.xlane.xlu0 %4659 }
 0x81a   :  { %13325 = vpow2.f32 %v4777_v49  ;;  %v4749_v18 = vsub.f32 %v14885_v29, %v4687_v39  ;;  %v4783_v62 = vmul.f32 1.442695, %v4743_v12  ;;  %v4785_v11 = vmul.f32 1.442695, %v4744_v58 }
 0x81b   :  { %13327 = vpow2.f32 %v4779_v30  ;;  %v4787_v5 = vmul.f32 1.442695, %v4745_v44  ;;  %v4789_v32 = vmul.f32 1.442695, %v4746_v56  ;;  %v4791_v15 = vmul.f32 1.442695, %v4747_v21 }
 0x81c   :  { %13329 = vpow2.f32 %v4783_v62  ;;  %v4695_v2 = vrot.slane %v4660_v22, 7  ;;  %v4793_v37 = vmul.f32 1.442695, %v4748_v23  ;;  %v4795_v25 = vmul.f32 1.442695, %v4749_v18 }
 0x81d   :  { %13331 = vpow2.f32 %v4785_v11  ;;  %v4657_v9 = vpop.xlane.xlu1 %4656 }
 0x81e   :  { %13333 = vpow2.f32 %v4787_v5  ;;  %v4758_v36 = vsub.f32 %v14901_v33, %v4695_v2  ;;  %v4689_v59 = vrot.slane %v4657_v9, 1  ;;  %v4690_v46 = vrot.slane %v4657_v9, 2 }
 0x81f   :  { %13335 = vpow2.f32 %v4789_v32  ;;  %v4691_v4 = vrot.slane %v4657_v9, 3  ;;  %v4692_v29 = vrot.slane %v4657_v9, 4  ;;  %v4693_v57 = vrot.slane %v4657_v9, 5 }
 0x820   :  { %13337 = vpow2.f32 %v4791_v15  ;;  %v4813_v34 = vmul.f32 1.442695, %v4758_v36  ;;  %v4694_v10 = vrot.slane %v4657_v9, 6  ;;  %v4751_v13 = vsub.f32 %v14919_v41, %v4657_v9 }
 0x821   :  { %13339 = vpow2.f32 %v4793_v37  ;;  %v4752_v20 = vsub.f32 %v14910_v8, %v4689_v59  ;;  %v4753_v35 = vsub.f32 %v14914_v38, %v4690_v46  ;;  %v4754_v27 = vsub.f32 %v14923_v47, %v4691_v4 }
 0x822   :  { %v15042_v19 = vpop.eup %13315  ;;  %13341 = vpow2.f32 %v4795_v25  ;;  %v4755_v33 = vsub.f32 %v14927_v63, %v4692_v29  ;;  %v4756_v49 = vsub.f32 %v14933_v40, %v4693_v57  ;;  %v4757_v30 = vsub.f32 %v14938_v51, %v4694_v10 }
 0x823   :  { %v15047_v55 = vpop.eup %13317  ;;  %13343 = vpow2.f32 %v4813_v34  ;;  %v4799_v41 = vmul.f32 1.442695, %v4751_v13  ;;  %v4801_v24 = vmul.f32 1.442695, %v4752_v20  ;;  %v4803_v43 = vmul.f32 1.442695, %v4753_v35  ;;  %v4663_v8 = vpop.xlane.xlu1 %4662 }
 0x824   :  { %v15049_v52 = vpop.eup %13319  ;;  %v4805_v38 = vmul.f32 1.442695, %v4754_v27  ;;  %v4807_v47 = vmul.f32 1.442695, %v4755_v33  ;;  %v4809_v50 = vmul.f32 1.442695, %v4756_v49  ;;  %v4759_v61 = vsub.f32 %v14963_v48, %v4663_v8 }
 0x825   :  { %v15052_v39 = vpop.eup %13321  ;;  %13345 = vpow2.f32 %v4799_v41  ;;  %v4811_v63 = vmul.f32 1.442695, %v4757_v30  ;;  %v4696_v40 = vrot.slane %v4663_v8, 1  ;;  %v4697_v51 = vrot.slane %v4663_v8, 2 }
 0x826   :  { %v15054_v12 = vpop.eup %13323  ;;  %13347 = vpow2.f32 %v4801_v24  ;;  %v4698_v58 = vrot.slane %v4663_v8, 3  ;;  %v4699_v44 = vrot.slane %v4663_v8, 4  ;;  %v4700_v56 = vrot.slane %v4663_v8, 5 }
 0x827   :  { %v15056_v21 = vpop.eup %13325  ;;  %13349 = vpow2.f32 %v4803_v43  ;;  %v4701_v23 = vrot.slane %v4663_v8, 6  ;;  %v4760_v22 = vsub.f32 %v14958_v60, %v4696_v40  ;;  %v4761_v48 = vsub.f32 %v14967_v54, %v4697_v51  ;;  %v4648_v18 = vpop.xlane.xlu1 %4647 }
 0x828   :  { %v15060_v62 = vpop.eup %13327  ;;  %13351 = vpow2.f32 %v4805_v38  ;;  %v4762_v11 = vsub.f32 %v14971_v31, %v4698_v58  ;;  %v4763_v5 = vsub.f32 %v14976_v17, %v4699_v44  ;;  %v4764_v32 = vsub.f32 %v14983_v42, %v4700_v56 }
 0x829   :  { %v15065_v15 = vpop.eup %13329  ;;  %13353 = vpow2.f32 %v4807_v47  ;;  %v4765_v2 = vsub.f32 %v14990_v14, %v4701_v23  ;;  %v4815_v37 = vmul.f32 1.442695, %v4759_v61  ;;  %v4817_v25 = vmul.f32 1.442695, %v4760_v22 }
 0x82a   :  { %v15068_v60 = vpop.eup %13331  ;;  %13355 = vpow2.f32 %v4809_v50  ;;  %v4819_v54 = vmul.f32 1.442695, %v4761_v48  ;;  %v4821_v9 = vmul.f32 1.442695, %v4762_v11  ;;  %v4823_v36 = vmul.f32 1.442695, %v4763_v5 }
 0x82b   :  { %v15070_v59 = vpop.eup %13333  ;;  %13357 = vpow2.f32 %v4811_v63  ;;  %v4825_v31 = vmul.f32 1.442695, %v4764_v32  ;;  %v4827_v17 = vmul.f32 1.442695, %v4765_v2  ;;  %v4681_v46 = vrot.slane %v4648_v18, 7  ;;  %v4654_v42 = vpop.xlane.xlu1 %4653 }
 0x82c   :  { %v15072_v4 = vpop.eup %13335  ;;  %13359 = vpow2.f32 %v4815_v37  ;;  %v4688_v29 = vrot.slane %v4654_v42, 7  ;;  %v4863_v14 = vrot.slane %v15047_v55, 7  ;;  %v4865_v57 = vrot.slane %v15049_v52, 6 }
 0x82d   :  { %v15076_v34 = vpop.eup %13337  ;;  %13361 = vpow2.f32 %v4817_v25  ;;  %v4742_v10 = vsub.f32 %v15002_v6, %v4681_v46  ;;  %v4867_v13 = vrot.slane %v15052_v39, 5  ;;  %v4869_v20 = vrot.slane %v15054_v12, 4 }
 0x82e   :  { %v15081_v35 = vpop.eup %13339  ;;  %13363 = vpow2.f32 %v4819_v54  ;;  %v4750_v27 = vsub.f32 %v15011_v45, %v4688_v29  ;;  %v4864_v33 = vsel %vm2044_vm10, %v4863_v14, %v15042_v19  ;;  %v4871_v49 = vrot.slane %v15056_v21, 3 }
 0x82f   :  { %v15087_v30 = vpop.eup %13341  ;;  %13365 = vpow2.f32 %v4821_v9  ;;  %v4781_v41 = vmul.f32 1.442695, %v4742_v10  ;;  %v4666_v24 = vpop.xlane.xlu1 %4665  ;;  %v4866_v6 = vsel %vm2047_vm11, %v4865_v57, %v4864_v33  ;;  %v4873_v43 = vrot.slane %v15060_v62, 2 }
 0x830   :  { %v15091_v8 = vpop.eup %13343  ;;  %13367 = vpow2.f32 %v4823_v36  ;;  %v4797_v38 = vmul.f32 1.442695, %v4750_v27  ;;  %v4702_v47 = vrot.slane %v4666_v24, 7  ;;  %v4868_v45 = vsel %vm2050_vm12, %v4867_v13, %v4866_v6 }
 0x831   :  { %13369 = vpow2.f32 %v4825_v31  ;;  %v4870_v50 = vsel %vm2053_vm13, %v4869_v20, %v4868_v45  ;;  %v4876_v61 = vrot.slane %v15068_v60, 7  ;;  %v4878_v63 = vrot.slane %v15070_v59, 6 }
 0x832   :  { %v15097_v40 = vpop.eup %13345  ;;  %13371 = vpow2.f32 %v4827_v17  ;;  %v4766_v51 = vsub.f32 %v15018_v1, %v4702_v47  ;;  %v4872_v58 = vsel %vm2056_vm14, %v4871_v49, %v4870_v50  ;;  %v4880_v44 = vrot.slane %v15072_v4, 5 }
 0x833   :  { %v15102_v56 = vpop.eup %13347  ;;  %13373 = vpow2.f32 %v4781_v41  ;;  %v4874_v23 = vsel %vm2059_vm15, %v4873_v43, %v4872_v58  ;;  %v4877_v22 = vsel %vm2044_vm10, %v4876_v61, %v15065_v15  ;;  %v4882_v48 = vrot.slane %v15076_v34, 4 }
 0x834   :  { %v15108_v18 = vpop.eup %13349  ;;  %13375 = vpow2.f32 %v4797_v38  ;;  %v4829_v11 = vmul.f32 1.442695, %v4766_v51  ;;  %v4923_v1 = vsel %vm4641_vm0, %v4874_v23, 0.0  ;;  %v4879_v5 = vsel %vm2047_vm11, %v4878_v63, %v4877_v22 }
 0x835   :  { %v15112_v32 = vpop.eup %13351  ;;  %4924 = vadd.xlane.f32.xlu0 %v4923_v1  ;;  %v4881_v2 = vsel %vm2050_vm12, %v4880_v44, %v4879_v5  ;;  %v4884_v37 = vrot.slane %v15081_v35, 3  ;;  %v4889_v25 = vrot.slane %v15102_v56, 7  ;;  %v4886_v36 = vrot.slane %v15087_v30, 2 }
 0x836   :  { %v15117_v54 = vpop.eup %13353  ;;  %13377 = vpow2.f32 %v4829_v11  ;;  %v4883_v9 = vsel %vm2053_vm13, %v4882_v48, %v4881_v2  ;;  %v4891_v31 = vrot.slane %v15108_v18, 6  ;;  %v4893_v29 = vrot.slane %v15112_v32, 5 }
 0x837   :  { %v15122_v17 = vpop.eup %13355  ;;  %v4885_v46 = vsel %vm2056_vm14, %v4884_v37, %v4883_v9  ;;  %v4890_v42 = vsel %vm2044_vm10, %v4889_v25, %v15097_v40  ;;  %v4895_v13 = vrot.slane %v15117_v54, 4  ;;  %v11762_v37 = vld [vmem:[%s16791_s25] ss:$0 sm:$0xff] }
 0x838   :  { %v15128_v14 = vpop.eup %13357  ;;  %v4887_v57 = vsel %vm2059_vm15, %v4886_v36, %v4885_v46  ;;  %v4892_v10 = vsel %vm2047_vm11, %v4891_v31, %v4890_v42  ;;  %v4897_v49 = vrot.slane %v15122_v17, 3 }
 0x839   :  { %v15133_v20 = vpop.eup %13359  ;;  %v4929_v27 = vsel %vm4641_vm0, %v4887_v57, 0.0  ;;  %v4894_v33 = vsel %vm2050_vm12, %v4893_v29, %v4892_v10  ;;  %v4899_v6 = vrot.slane %v15128_v14, 2  ;;  %v3169_v10 = vadd.f32 %v11762_v37, %v14763_v26  ;;  %v11781_v37 = vld [vmem:[%s16788_s29 + $0x2] ss:$0 sm:$0xff] }
 0x83a   :  { %v15138_v41 = vpop.eup %13361  ;;  %4930 = vadd.xlane.f32.xlu1 %v4929_v27  ;;  %v4896_v24 = vsel %vm2053_vm13, %v4895_v13, %v4894_v33  ;;  %v4901_v33 = vrot.slane %v15091_v8, 1 }
 0x83b   :  { %v15142_v43 = vpop.eup %13363  ;;  %v4898_v38 = vsel %vm2056_vm14, %v4897_v49, %v4896_v24  ;;  %v4902_v47 = vrot.slane %v15138_v41, 7 }
 0x83c   :  { %v15146_v45 = vpop.eup %13365  ;;  %v4900_v50 = vsel %vm2059_vm15, %v4899_v6, %v4898_v38  ;;  %v4904_v61 = vrot.slane %v15142_v43, 6  ;;  %v4938_v6 = vsel %vm4645_vm1, %v4901_v33, 0.0  ;;  %v15185_v38 = vadd.f32 %v3169_v10, %v13951_v53 }
 0x83d   :  { %v15150_v63 = vpop.eup %13367  ;;  %v4935_v51 = vsel %vm4641_vm0, %v4900_v50, 0.0  ;;  %v4903_v58 = vsel %vm2044_vm10, %v4902_v47, %v15133_v20  ;;  %v4906_v44 = vrot.slane %v15146_v45, 5 }
 0x83e   :  { %v15156_v23 = vpop.eup %13369  ;;  %4936 = vadd.xlane.f32.xlu0 %v4935_v51  ;;  %v4905_v22 = vsel %vm2047_vm11, %v4904_v61, %v4903_v58  ;;  %v4908_v48 = vrot.slane %v15150_v63, 4  ;;  %v5746_v47 = vsel %vm669_vm6, %v15185_v38, 0.0 }
 0x83f   :  { %v15160_v11 = vpop.eup %13371  ;;  %v4907_v1 = vsel %vm2050_vm12, %v4906_v44, %v4905_v22  ;;  %v4910_v5 = vrot.slane %v15156_v23, 3 }
 0x840   :  { %v15164_v2 = vpop.eup %13373  ;;  %v4909_v25 = vsel %vm2053_vm13, %v4908_v48, %v4907_v1  ;;  %v4912_v9 = vrot.slane %v15160_v11, 2 }
 0x841   :  { %v15169_v36 = vpop.eup %13375  ;;  %v4875_v31 = vrot.slane %v15164_v2, 1  ;;  %v4911_v46 = vsel %vm2056_vm14, %v4910_v5, %v4909_v25 }
 0x842   :  { %v4913_v42 = vsel %vm2059_vm15, %v4912_v9, %v4911_v46  ;;  %v4888_v29 = vrot.slane %v15169_v36, 1 }
 0x843   :  { %v15175_v57 = vpop.eup %13377  ;;  %v4926_v13 = vsel %vm4645_vm1, %v4875_v31, 0.0  ;;  %v4941_v27 = vsel %vm4641_vm0, %v4913_v42, 0.0 }
 0x844   :  { %4927 = vadd.xlane.f32.xlu1 %v4926_v13  ;;  %4942 = vadd.xlane.f32.xlu0 %v4941_v27  ;;  %v4932_v49 = vsel %vm4645_vm1, %v4888_v29, 0.0  ;;  %v4914_v24 = vrot.slane %v15175_v57, 1 }
 0x846   :  { %v4944_v26 = vsel %vm4645_vm1, %v4914_v24, 0.0  ;;  %v15199_v24 = vadd.f32 %v11781_v37, %v14797_v0 }
 0x848   :  { %4933 = vadd.xlane.f32.xlu1 %v4932_v49  ;;  %4939 = vadd.xlane.f32.xlu0 %v4938_v6 }
 0x84c   :  { %4945 = vadd.xlane.f32.xlu1 %v4944_v26  ;;  %5747 = vadd.xlane.f32.xlu0 %v5746_v47 }
 0x8be   :  { %v4925_v50 = vpop.xlane.xlu0 %4924 }
 0x8bf   :  { %13379 = vrcp.f32 %v4925_v50 }
 0x8c3   :  { %v4931_v61 = vpop.xlane.xlu1 %4930 }
 0x8c4   :  { %13381 = vrcp.f32 %v4931_v61 }
 0x8c7   :  { %v4937_v51 = vpop.xlane.xlu0 %4936 }
 0x8c8   :  { %13383 = vrcp.f32 %v4937_v51 }
 0x8cc   :  { %v13380_v58 = vpop.eup %13379 }
 0x8cd   :  { %v4928_v44 = vpop.xlane.xlu1 %4927  ;;  %v4943_v53 = vpop.xlane.xlu0 %4942  ;;  %v4963_v22 = vrot.slane %v13380_v58, 1  ;;  %v4964_v48 = vrot.slane %v13380_v58, 2  ;;  %v4965_v1 = vrot.slane %v13380_v58, 3  ;;  %v4966_v5 = vrot.slane %v13380_v58, 4 }
 0x8ce   :  { %13385 = vrcp.f32 %v4928_v44  ;;  %v4967_v25 = vrot.slane %v13380_v58, 5  ;;  %v4968_v9 = vrot.slane %v13380_v58, 6  ;;  %v5023_v31 = vmul.f32 %v13380_v58, %v15042_v19 }
 0x8cf   :  { %v5024_v46 = vmul.f32 %v15047_v55, %v4963_v22  ;;  %v5025_v42 = vmul.f32 %v15049_v52, %v4964_v48  ;;  %v5026_v29 = vmul.f32 %v15052_v39, %v4965_v1  ;;  %v5027_v10 = vmul.f32 %v15054_v12, %v4966_v5 }
 0x8d0   :  { %v5028_v13 = vmul.f32 %v15056_v21, %v4967_v25  ;;  %v5029_v27 = vmul.f32 %v15060_v62, %v4968_v9  ;;  %v5063_v33 = vrot.slane %v5023_v31, 1  ;;  %13387 = vrcp.f32 %v4943_v53 }
 0x8d1   :  { %v13382_v49 = vpop.eup %13381  ;;  %v4934_v6 = vpop.xlane.xlu1 %4933  ;;  %v5065_v26 = vrot.slane %v5025_v42, 7  ;;  %v5067_v55 = vrot.slane %v5026_v29, 6  ;;  %v5069_v39 = vrot.slane %v5027_v10, 5 }
 0x8d2   :  { %v4940_v19 = vpop.xlane.xlu0 %4939  ;;  %13389 = vrcp.f32 %v4934_v6  ;;  %v5064_v52 = vsel %vm2041_vm9, %v5024_v46, %v5063_v33  ;;  %v5071_v47 = vrot.slane %v5028_v13, 4  ;;  %v5073_v21 = vrot.slane %v5029_v27, 3 }
 0x8d3   :  { %13391 = vrcp.f32 %v4940_v19  ;;  %v5066_v12 = vsel %vm2044_vm10, %v5065_v26, %v5064_v52  ;;  %v4970_v62 = vrot.slane %v13382_v49, 1  ;;  %v4971_v61 = vrot.slane %v13382_v49, 2 }
 0x8d4   :  { %v5068_v50 = vsel %vm2047_vm11, %v5067_v55, %v5066_v12  ;;  %v4972_v0 = vrot.slane %v13382_v49, 3  ;;  %v4973_v51 = vrot.slane %v13382_v49, 4  ;;  %v4974_v22 = vrot.slane %v13382_v49, 5 }
 0x8d5   :  { %v4946_v58 = vpop.xlane.xlu1 %4945  ;;  %v5070_v53 = vsel %vm2050_vm12, %v5069_v39, %v5068_v50  ;;  %v4975_v48 = vrot.slane %v13382_v49, 6  ;;  %v5031_v1 = vmul.f32 %v13382_v49, %v15065_v15  ;;  %v13384_v5 = vpop.eup %13383  ;;  %v5032_v9 = vmul.f32 %v15068_v60, %v4970_v62 }
 0x8d6   :  { %v5748_v44 = vpop.xlane.xlu0 %5747  ;;  %13393 = vrcp.f32 %v4946_v58  ;;  %v5072_v25 = vsel %vm2053_vm13, %v5071_v47, %v5070_v53  ;;  %v5033_v46 = vmul.f32 %v15070_v59, %v4971_v61  ;;  %v5034_v42 = vmul.f32 %v15072_v4, %v4972_v0 }
 0x8d7   :  { %v5753_v37 = vmul.f32 0.03125, %v5748_v44  ;;  %v5074_v31 = vsel %vm2056_vm14, %v5073_v21, %v5072_v25  ;;  %v5035_v29 = vmul.f32 %v15076_v34, %v4973_v51  ;;  %v5036_v15 = vmul.f32 %v15081_v35, %v4974_v22 }
 0x8d8   :  { %v5037_v13 = vmul.f32 %v15087_v30, %v4975_v48  ;;  %v5157_v27 = vrot.slane %v5031_v1, 1  ;;  %v5159_v33 = vrot.slane %v5033_v46, 7  ;;  %v5161_v49 = vrot.slane %v5034_v42, 6 }
 0x8d9   :  { %v15213_v10 = vsub.f32 %v15185_v38, %v5753_v37  ;;  %v5163_v6 = vrot.slane %v5035_v29, 5  ;;  %v4977_v60 = vrot.slane %v13384_v5, 1  ;;  %v5165_v4 = vrot.slane %v5036_v15, 4 }
 0x8da   :  { %v5158_v59 = vsel %vm2041_vm9, %v5032_v9, %v5157_v27  ;;  %v5167_v26 = vrot.slane %v5037_v13, 3  ;;  %v4978_v55 = vrot.slane %v13384_v5, 2  ;;  %v4979_v52 = vrot.slane %v13384_v5, 3  ;;  %v11782_v27 = vld [vmem:[%s16788_s29 + $0x3] ss:$0 sm:$0xff]  ;;  %s16815_s29 = sld [smem:[#allocation37_spill]] }
 0x8db   :  { %v5757_v19 = vmul.f32 %v15213_v10, %v15213_v10  ;;  %v13386_v34 = vpop.eup %13385  ;;  %v5160_v38 = vsel %vm2044_vm10, %v5159_v33, %v5158_v59  ;;  %v4980_v35 = vrot.slane %v13384_v5, 4  ;;  %v4981_v12 = vrot.slane %v13384_v5, 5 }
 0x8dc   :  { %v4969_v39 = vrot.slane %v13386_v34, 7  ;;  %v5162_v47 = vsel %vm2047_vm11, %v5161_v49, %v5160_v38  ;;  %v4982_v62 = vrot.slane %v13384_v5, 6  ;;  %v5039_v50 = vmul.f32 %v13384_v5, %v15097_v40 }
 0x8dd   :  { %v5759_v30 = vsel %vm669_vm6, %v5757_v19, 0.0  ;;  %v5164_v21 = vsel %vm2050_vm12, %v5163_v6, %v5162_v47  ;;  %v5040_v61 = vmul.f32 %v15102_v56, %v4977_v60  ;;  %v13388_v0 = vpop.eup %13387  ;;  %v5041_v44 = vmul.f32 %v15108_v18, %v4978_v55 }
 0x8de   :  { %5760 = vadd.xlane.f32.xlu0 %v5759_v30  ;;  %v5030_v51 = vmul.f32 %v15164_v2, %v4969_v39  ;;  %v5166_v58 = vsel %vm2053_vm13, %v5165_v4, %v5164_v21  ;;  %v5042_v53 = vmul.f32 %v15112_v32, %v4979_v52  ;;  %v5043_v1 = vmul.f32 %v15117_v54, %v4980_v35 }
 0x8df   :  { %v13390_v22 = vpop.eup %13389  ;;  %v5168_v48 = vsel %vm2056_vm14, %v5167_v26, %v5166_v58  ;;  %v5044_v37 = vmul.f32 %v15122_v17, %v4981_v12  ;;  %v5045_v40 = vmul.f32 %v15128_v14, %v4982_v62  ;;  %v5251_v2 = vrot.slane %v5039_v50, 1 }
 0x8e0   :  { %v13392_v56 = vpop.eup %13391  ;;  %v5075_v5 = vrot.slane %v5030_v51, 2  ;;  %v4976_v25 = vrot.slane %v13390_v22, 7  ;;  %v5253_v9 = vrot.slane %v5041_v44, 7  ;;  %v5255_v42 = vrot.slane %v5042_v53, 6  ;;  %v5431_v22 = vld [vmem:[%s16790_s13] sm:$0xff] }
 0x8e1   :  { %v4983_v46 = vrot.slane %v13392_v56, 7  ;;  %v5257_v18 = vrot.slane %v5043_v1, 5  ;;  %v5259_v29 = vrot.slane %v5044_v37, 4  ;;  %v5252_v54 = vsel %vm2041_vm9, %v5040_v61, %v5251_v2  ;;  %v15284_v2 = vld [vmem:[%s16792_s8] ss:$0 sm:$0xff] }
 0x8e2   :  { %v5038_v32 = vmul.f32 %v15169_v36, %v4976_v25  ;;  %v5076_v15 = vsel %vm2059_vm15, %v5075_v5, %v5074_v31  ;;  %v5261_v13 = vrot.slane %v5045_v40, 3  ;;  %v5254_v33 = vsel %vm2044_vm10, %v5253_v9, %v5252_v54  ;;  %v5433_v25 = vld [vmem:[%s16790_s13 + $0x10] sm:$0xff] }
 0x8e3   :  { %v13394_v17 = vpop.eup %13393  ;;  %v5046_v14 = vmul.f32 %v15091_v8, %v4983_v46  ;;  %12676 = vmatmul.mubr.msk.f32.vlgmr.msra.gmra.mxu0 %vm1601_vm7, %v5076_v15  ;;  %v4984_v49 = vrot.slane %v13388_v0, 1  ;;  %v4985_v6 = vrot.slane %v13388_v0, 2  ;;  %v5256_v36 = vsel %vm2047_vm11, %v5255_v42, %v5254_v33 }
 0x8e4   :  { %v5169_v60 = vrot.slane %v5038_v32, 2  ;;  %v4990_v19 = vrot.slane %v13394_v17, 7  ;;  %12684 = vmatpush3.msra.mxu0 %v15199_v24  ;;  %12685 = vmatprep.mubr.msk.f32.mxu0 %vm13644_vm5, %v13643_v28  ;;  %v4986_v31 = vrot.slane %v13388_v0, 3  ;;  %v5258_v4 = vsel %vm2050_vm12, %v5257_v18, %v5256_v36  ;;  %v5434_v18 = vld [vmem:[%s16790_s13 + $0x18] sm:$0xff] }
 0x8e5   :  { %v5263_v59 = vrot.slane %v5046_v14, 2  ;;  %v4987_v8 = vrot.slane %v13388_v0, 4  ;;  %v4988_v26 = vrot.slane %v13388_v0, 5  ;;  %12693 = vmatprep.subr.mxu0 %v13643_v28  ;;  %v4142_v34 = vadd.f32 %v11782_v27, %v14799_v7 }
 0x8e6   :  { %v5170_v38 = vsel %vm2059_vm15, %v5169_v60, %v5168_v48  ;;  %v5260_v55 = vsel %vm2053_vm13, %v5259_v29, %v5258_v4  ;;  %v4989_v24 = vrot.slane %v13388_v0, 6  ;;  %v5047_v35 = vmul.f32 %v13388_v0, %v15133_v20  ;;  %v5432_v48 = vld [vmem:[%s16790_s13 + $0x8] sm:$0xff]  ;;  %v15292_v29 = vld [vmem:[%s16793_s14] ss:$0 sm:$0xff]  ;;  %s16817_s13 = sld [smem:[#allocation36_spill]] }
 0x8e7   :  { %12681 = vmatmul.mubr.msk.f32.vlgmr.msra.gmra.mxu1 %vm1601_vm7, %v5170_v38  ;;  %v5262_v52 = vsel %vm2056_vm14, %v5261_v13, %v5260_v55  ;;  %v5048_v39 = vmul.f32 %v15138_v41, %v4984_v49  ;;  %v5049_v30 = vmul.f32 %v15142_v43, %v4985_v6  ;;  %v5050_v7 = vmul.f32 %v15146_v45, %v4986_v31  ;;  %v11803_v38 = vld [vmem:[%s16791_s25] ss:$0 sm:$0xff]  ;;  %s13645_s25 = smov [#allocation2]  }
 0x8e8   :  { %12689 = vmatpush3.msra.mxu1 %v4142_v34  ;;  %v5264_v47 = vsel %vm2059_vm15, %v5263_v59, %v5262_v52  ;;  %12690 = vmatprep.mubr.msk.f32.mxu1 %vm13644_vm5, %v13643_v28  ;;  %v5051_v12 = vmul.f32 %v15150_v63, %v4987_v8  ;;  %v5054_v21 = vmul.f32 %v15175_v57, %v4990_v19  ;;  %v5345_v62 = vrot.slane %v5047_v35, 1  ;;  %s11648_s8 = sshll.u32 %s13645_s25, 4  ;;  %s11649_s8 = int_to_ptr.vmem [resolvable:$true] %s11648_s8 }
 0x8e9   :  { %12686 = vmatmul.mubr.msk.f32.vlgmr.msra.gmra.mxu0 %vm1601_vm7, %v5264_v47  ;;  %v5052_v20 = vmul.f32 %v15156_v23, %v4988_v26  ;;  %v5347_v41 = vrot.slane %v5049_v30, 7  ;;  %12698 = vmatprep.subr.mxu1 %v13643_v28  ;;  %v5053_v43 = vmul.f32 %v15160_v11, %v4989_v24  ;;  %v5349_v50 = vrot.slane %v5050_v7, 6  ;;  %p13574_p1 = scmp.lt.s32.totalorder %s11649_s8, %s11649_s8 }
 0x8ea   :  { %12695 = vmatprep.mubr.msk.f32.mxu0 %vm13644_vm5, %v13643_v28  ;;  %v5346_v45 = vsel %vm2041_vm9, %v5048_v39, %v5345_v62  ;;  %v5351_v57 = vrot.slane %v5051_v12, 5  ;;  %v5357_v61 = vrot.slane %v5054_v21, 2  ;;  %12694 = vmatpush3.msra.mxu0 %v5431_v22  ;;  %v5791_v62 = vld [vmem:[%s16794_s19 + $0x10] sm:$0xff]  ;;  %v5884_v22 = vld [vmem:[%s16795_s24 + $0x8] sm:$0xff] }
 0x8eb   :  { %v5348_v63 = vsel %vm2044_vm10, %v5347_v41, %v5346_v45  ;;  %v5353_v0 = vrot.slane %v5052_v20, 4  ;;  %v5355_v58 = vrot.slane %v5053_v43, 3  ;;  %12703 = vmatprep.subr.mxu0 %v13643_v28  ;;  %v5792_v20 = vld [vmem:[%s16794_s19 + $0x18] sm:$0xff]  ;;  %v5790_v41 = vld [vmem:[%s16794_s19 + $0x8] sm:$0xff] }
 0x8ec   :  { %v5350_v23 = vsel %vm2047_vm11, %v5349_v50, %v5348_v63  ;;  %v5890_v43 = vld [vmem:[%s16795_s24 + $0x38] sm:$0xff]  ;;  %v5889_v50 = vld [vmem:[%s16795_s24 + $0x30] sm:$0xff]  ;;  %v5888_v45 = vld [vmem:[%s16795_s24 + $0x28] sm:$0xff] }
 0x8ed   :  { %v5352_v51 = vsel %vm2050_vm12, %v5351_v57, %v5350_v23  ;;  %v5887_v63 = vld [vmem:[%s16795_s24 + $0x20] sm:$0xff] }
 0x8ee   :  { %v5354_v11 = vsel %vm2053_vm13, %v5353_v0, %v5352_v51 }
 0x8ef   :  { %v5356_v44 = vsel %vm2056_vm14, %v5355_v58, %v5354_v11 }
 0x8f0   :  { %v5358_v53 = vsel %vm2059_vm15, %v5357_v61, %v5356_v44  ;;  %v5886_v44 = vld [vmem:[%s16795_s24 + $0x18] sm:$0xff] }
 0x8f1   :  { %12691 = vmatmul.mubr.msk.f32.vlgmr.msra.gmra.mxu1 %vm1601_vm7, %v5358_v53  ;;  %v5885_v53 = vld [vmem:[%s16795_s24 + $0x10] sm:$0xff] }
 0x8f2   :  { %12700 = vmatprep.mubr.msk.f32.mxu1 %vm13644_vm5, %v13643_v28  ;;  %12699 = vmatpush3.msra.mxu1 %v5432_v48  ;;  %v5883_v48 = vld [vmem:[%s16795_s24] sm:$0xff] }
 0x8f3   :  { %12708 = vmatprep.subr.mxu1 %v13643_v28 }
 0x967   :  { %v5761_v1 = vpop.xlane.xlu0 %5760 }
 0x968   :  { %v5765_v37 = vmul.f32 0.03125, %v5761_v1  ;;  %v11806_v1 = vld [vmem:[%s16796_s30] ss:$0 sm:$0xff] }
 0x96a   :  { %v5767_v40 = vadd.f32 1e-05, %v5765_v37 }
 0x96c   :  { %13395 = vrsqrt.f32 %v5767_v40 }
 0x979   :  { %v13396_v56 = vpop.eup %13395 }
 0x97a   :  { %v5771_v5 = vmul.f32 %v13396_v56, %v15213_v10 }
 0x97c   :  { %v5779_v42 = vmul.f32 %v15284_v2, %v5771_v5 }
 0x97e   :  { %v15298_v54 = vadd.f32 %v15292_v29, %v5779_v42 }
 0x9a3   :  { %v5145_v9 = vpop.f32.mrf.mxu0 }
 0x9a4   :  { %12696 = vmatmul.mubr.msk.f32.vlgmr.msra.gmra.mxu0 %vm1601_vm7, %v5145_v9  ;;  %v11809_v9 = vld [vmem:[%s16797_s6] ss:$0 sm:$0xff] }
 0x9a5   :  { %v12677_v46 = vpop.f32.mrf.mxu0  ;;  %12704 = vmatpush3.msra.mxu0 %v5433_v25  ;;  %12705 = vmatprep.mubr.msk.f32.mxu0 %vm13644_vm5, %v13643_v28 }
 0x9a6   :  { %12713 = vmatprep.subr.mxu0 %v5792_v20 }
 0x9a7   :  { %v5239_v32 = vpop.f32.mrf.mxu1 }
 0x9a8   :  { %12701 = vmatmul.mubr.msk.f32.vlgmr.msra.gmra.mxu1 %vm1601_vm7, %v5239_v32 }
 0x9a9   :  { %v12682_v10 = vpop.f32.mrf.mxu1  ;;  %v5333_v15 = vpop.f32.mrf.mxu0  ;;  %12709 = vmatpush3.msra.mxu1 %v5434_v18  ;;  %12710 = vmatprep.mubr.msk.f32.mxu1 %vm13644_vm5, %v13643_v28 }
 0x9aa   :  { %12706 = vmatmul.mubr.msk.f32.vlgmr.msra.gmra.mxu0 %vm1601_vm7, %v5333_v15  ;;  %12724 = vmatprep.subr.mxu1 %v5890_v43 }
 0x9ab   :  { %v12687_v13 = vpop.f32.mrf.mxu0  ;;  %12721 = vmatprep.mubr.msk.f32.mxu0 %vm669_vm6, %v15298_v54  ;;  %12714 = vmatpush3.msra.mxu0 %v5792_v20  ;;  %v6353_v20 = vld [vmem:[%s16801_s16] sm:$0xff] }
 0x9ac   :  { %12715 = vmatprep.subr.mxu0 %v5791_v62 }
 0x9ad   :  { %12716 = vmatpush3.msra.mxu0 %v5791_v62  ;;  %v6041_v62 = vld [vmem:[%s16798_s12 + $0x78] sm:$0xff] }
 0x9ae   :  { %12717 = vmatprep.subr.mxu0 %v5790_v41 }
 0x9af   :  { %12718 = vmatpush3.msra.mxu0 %v5790_v41  ;;  %v6364_v41 = vld [vmem:[%s16801_s16 + $0x58] sm:$0xff] }
 0x9b1   :  { %v5427_v17 = vpop.f32.mrf.mxu1 }
 0x9b2   :  { %12711 = vmatmul.mubr.msk.f32.vlgmr.msra.gmra.mxu1 %vm1601_vm7, %v5427_v17 }
 0x9b3   :  { %v12692_v27 = vpop.f32.mrf.mxu1  ;;  %12725 = vmatpush3.msra.mxu1 %v5890_v43  ;;  %v6363_v43 = vld [vmem:[%s16801_s16 + $0x50] sm:$0xff] }
 0x9b4   :  { %12726 = vmatprep.subr.mxu1 %v5889_v50 }
 0x9b5   :  { %12727 = vmatpush3.msra.mxu1 %v5889_v50  ;;  %v6039_v50 = vld [vmem:[%s16798_s12 + $0x68] sm:$0xff] }
 0x9b6   :  { %12728 = vmatprep.subr.mxu1 %v5888_v45 }
 0x9b7   :  { %12729 = vmatpush3.msra.mxu1 %v5888_v45  ;;  %v6362_v45 = vld [vmem:[%s16801_s16 + $0x48] sm:$0xff] }
 0x9b8   :  { %12730 = vmatprep.subr.mxu1 %v5887_v63 }
 0x9b9   :  { %12731 = vmatpush3.msra.mxu1 %v5887_v63  ;;  %v6038_v63 = vld [vmem:[%s16798_s12 + $0x60] sm:$0xff] }
 0x9ba   :  { %12732 = vmatprep.subr.mxu1 %v5886_v44 }
 0x9bb   :  { %12733 = vmatpush3.msra.mxu1 %v5886_v44  ;;  %v6678_v44 = vld [vmem:[%s16802_s18 + $0x8] sm:$0xff] }
 0x9bc   :  { %12734 = vmatprep.subr.mxu1 %v5885_v53 }
 0x9bd   :  { %12735 = vmatpush3.msra.mxu1 %v5885_v53  ;;  %v6357_v53 = vld [vmem:[%s16801_s16 + $0x20] sm:$0xff] }
 0x9be   :  { %12736 = vmatprep.subr.mxu1 %v5884_v22 }
 0x9bf   :  { %12737 = vmatpush3.msra.mxu1 %v5884_v22  ;;  %v6677_v22 = vld [vmem:[%s16802_s18] sm:$0xff] }
 0x9c0   :  { %12738 = vmatprep.subr.mxu1 %v5883_v48 }
 0x9c1   :  { %12739 = vmatpush3.msra.mxu1 %v5883_v48  ;;  %v6368_v48 = vld [vmem:[%s16801_s16 + $0x78] sm:$0xff] }
 0x9c2   :  { %12765 = vmatprep.subr.mxu1 %v13643_v28 }
 0xa64   :  { %v5504_v14 = vpop.f32.mrf.mxu0 }
 0xa65   :  { %v5727_v36 = vsel %vm669_vm6, %v5504_v14, 0.0 }
 0xa66   :  { %v12697_v33 = vpop.f32.mrf.mxu0 }
 0xa67   :  { %v6029_v33 = vld [vmem:[%s16798_s12 + $0x18] sm:$0xff] }
 0xa68   :  { %v5577_v49 = vpop.f32.mrf.mxu1 }
 0xa69   :  { %v5728_v6 = vsel %vm669_vm6, %v5577_v49, 0.0  ;;  %v6037_v49 = vld [vmem:[%s16798_s12 + $0x58] sm:$0xff] }
 0xa6a   :  { %v12702_v60 = vpop.f32.mrf.mxu1  ;;  %v5650_v19 = vpop.f32.mrf.mxu0  ;;  %v5729_v59 = vadd.f32 %v5728_v6, %v5727_v36  ;;  %v6036_v6 = vld [vmem:[%s16798_s12 + $0x50] sm:$0xff]  ;;  %v6026_v36 = vld [vmem:[%s16798_s12] sm:$0xff] }
 0xa6b   :  { %v5730_v4 = vsel %vm669_vm6, %v5650_v19, 0.0  ;;  %v6027_v60 = vld [vmem:[%s16798_s12 + $0x8] sm:$0xff] }
 0xa6c   :  { %v12707_v31 = vpop.f32.mrf.mxu0  ;;  %v5731_v8 = vadd.f32 %v5730_v4, %v5729_v59  ;;  %v6035_v19 = vld [vmem:[%s16798_s12 + $0x48] sm:$0xff] }
 0xa6d   :  { %v6034_v31 = vld [vmem:[%s16798_s12 + $0x40] sm:$0xff] }
 0xa72   :  { %v5723_v26 = vpop.f32.mrf.mxu1 }
 0xa73   :  { %v5732_v34 = vsel %vm669_vm6, %v5723_v26, 0.0 }
 0xa74   :  { %v5733_v55 = vadd.f32 %v5732_v34, %v5731_v8  ;;  %v12712_v24 = vpop.f32.mrf.mxu1  ;;  %v11812_v34 = vld [vmem:[%s16799_s20] ss:$0 sm:$0xff] }
 0xa76   :  { %v5741_v52 = vadd.f32 %v11803_v38, %v5733_v55  ;;  %v11813_v55 = vld [vmem:[%s16800_s15] ss:$0 sm:$0xff] }
 0xa78   :  { %v5743_v35 = vadd.f32 %v5741_v52, %v14541_v3  ;;  %v5789_v3 = vld [vmem:[%s16794_s19] sm:$0xff] }
 0xa79   :  { %12719 = vmatprep.subr.mxu0 %v5789_v3 }
 0xa7a   :  { %v5749_v39 = vsel %vm669_vm6, %v5743_v35, 0.0  ;;  %12720 = vmatpush3.msra.mxu0 %v5789_v3  ;;  %v6040_v3 = vld [vmem:[%s16798_s12 + $0x70] sm:$0xff] }
 0xa7b   :  { %5750 = vadd.xlane.f32.xlu1 %v5749_v39  ;;  %12743 = vmatprep.subr.mxu0 %v13643_v28  ;;  %v6356_v39 = vld [vmem:[%s16801_s16 + $0x18] sm:$0xff] }
 0xb04   :  { %v5751_v30 = vpop.xlane.xlu1 %5750 }
 0xb05   :  { %v5754_v47 = vmul.f32 0.03125, %v5751_v30  ;;  %v6032_v30 = vld [vmem:[%s16798_s12 + $0x30] sm:$0xff] }
 0xb07   :  { %v5756_v7 = vsub.f32 %v5743_v35, %v5754_v47  ;;  %v6033_v35 = vld [vmem:[%s16798_s12 + $0x38] sm:$0xff]  ;;  %v6355_v47 = vld [vmem:[%s16801_s16 + $0x10] sm:$0xff] }
 0xb09   :  { %v5758_v12 = vmul.f32 %v5756_v7, %v5756_v7 }
 0xb0b   :  { %v5762_v21 = vsel %vm669_vm6, %v5758_v12, 0.0  ;;  %v6354_v12 = vld [vmem:[%s16801_s16 + $0x8] sm:$0xff] }
 0xb0c   :  { %5763 = vadd.xlane.f32.xlu1 %v5762_v21  ;;  %v6030_v21 = vld [vmem:[%s16798_s12 + $0x20] sm:$0xff] }
 0xb95   :  { %v5764_v57 = vpop.xlane.xlu1 %5763 }
 0xb96   :  { %v5766_v61 = vmul.f32 0.03125, %v5764_v57  ;;  %v6361_v57 = vld [vmem:[%s16801_s16 + $0x40] sm:$0xff] }
 0xb98   :  { %v5768_v23 = vadd.f32 1e-05, %v5766_v61  ;;  %v6360_v61 = vld [vmem:[%s16801_s16 + $0x38] sm:$0xff] }
 0xb9a   :  { %13397 = vrsqrt.f32 %v5768_v23  ;;  %v6680_v23 = vld [vmem:[%s16802_s18 + $0x18] sm:$0xff] }
 0xba7   :  { %v13398_v0 = vpop.eup %13397 }
 0xba8   :  { %v5772_v51 = vmul.f32 %v13398_v0, %v5756_v7  ;;  %v6031_v7 = vld [vmem:[%s16798_s12 + $0x28] sm:$0xff]  ;;  %v6359_v0 = vld [vmem:[%s16801_s16 + $0x30] sm:$0xff] }
 0xbaa   :  { %v5780_v58 = vmul.f32 %v15284_v2, %v5772_v51  ;;  %v6679_v51 = vld [vmem:[%s16802_s18 + $0x10] sm:$0xff] }
 0xbac   :  { %v15323_v11 = vadd.f32 %v15292_v29, %v5780_v58  ;;  %v6358_v58 = vld [vmem:[%s16801_s16 + $0x28] sm:$0xff] }
 0xbae   :  { %12722 = vmatmul.mubr.msk.f32.vlgmr.msra.gmra.mxu0 %vm669_vm6, %v15323_v11 }
 0xbaf   :  { %12751 = vmatprep.mubr.msk.f32.mxu0 %vm13644_vm5, %v13643_v28  ;;  %12744 = vmatpush3.msra.mxu0 %v6029_v33 }
 0xbb0   :  { %12745 = vmatprep.subr.mxu0 %v13643_v28 }
 0xc6e   :  { %v12723_v37 = vpop.f32.mrf.mxu0 }
 0xc6f   :  { %v5878_v40 = vadd.f32 %v12723_v37, %v11806_v1  ;;  %v6367_v37 = vld [vmem:[%s16801_s16 + $0x70] sm:$0xff] }
 0xc70   :  { %v5872_v56 = vpop.f32.mrf.mxu0 }
 0xc71   :  { %v5873_v5 = vadd.f32 %v11806_v1, %v5872_v56  ;;  %v5882_v2 = vmax.f32 %v5878_v40, 0.0  ;;  %v6688_v1 = vld [vmem:[%s16802_s18 + $0x58] sm:$0xff]  ;;  %v6687_v40 = vld [vmem:[%s16802_s18 + $0x50] sm:$0xff]  ;;  %v6366_v56 = vld [vmem:[%s16801_s16 + $0x68] sm:$0xff] }
 0xc73   :  { %v5881_v25 = vmax.f32 %v5873_v5, 0.0  ;;  %v6686_v5 = vld [vmem:[%s16802_s18 + $0x48] sm:$0xff] }
 0xc75   :  { %12740 = vmatprep.mubr.msk.f32.mxu1 %vm5898_vm2, %v5881_v25  ;;  %v6365_v25 = vld [vmem:[%s16801_s16 + $0x60] sm:$0xff] }
 0xc76   :  { %12741 = vmatmul.mubr.msk.f32.vlgmr.msra.gmra.mxu1 %vm5898_vm2, %v5882_v2  ;;  %v6685_v2 = vld [vmem:[%s16802_s18 + $0x40] sm:$0xff] }
 0xc77   :  { %12773 = vmatprep.mubr.msk.f32.mxu1 %vm13644_vm5, %v13643_v28  ;;  %12766 = vmatpush3.msra.mxu1 %v6037_v49  ;;  %v11822_v49 = vld [vmem:[%s16803_s22] ss:$0 sm:$0xff] }
 0xc78   :  { %12767 = vmatprep.subr.mxu1 %v13643_v28 }
 0xc79   :  { %12768 = vmatpush3.msra.mxu1 %v6036_v6 }
 0xc7a   :  { %12769 = vmatprep.subr.mxu1 %v13643_v28 }
 0xc7b   :  { %12770 = vmatpush3.msra.mxu1 %v6035_v19 }
 0xc7c   :  { %12771 = vmatprep.subr.mxu1 %v13643_v28 }
 0xc7d   :  { %12772 = vmatpush3.msra.mxu1 %v6034_v31 }
 0xc7e   :  { %12787 = vmatprep.subr.mxu1 %v13643_v28 }
 0xd36   :  { %v12742_v46 = vpop.f32.mrf.mxu1 }
 0xd37   :  { %v15340_v42 = vadd.f32 %v12742_v46, %v11809_v9  ;;  %v6683_v46 = vld [vmem:[%s16802_s18 + $0x30] sm:$0xff] }
 0xd38   :  { %v5971_v18 = vpop.f32.mrf.mxu1 }
 0xd39   :  { %v5972_v29 = vadd.f32 %v11809_v9, %v5971_v18  ;;  %v6684_v9 = vld [vmem:[%s16802_s18 + $0x38] sm:$0xff]  ;;  %v6682_v18 = vld [vmem:[%s16802_s18 + $0x28] sm:$0xff] }
 0xd3b   :  { %v5980_v32 = vadd.f32 %v5972_v29, %v15298_v54  ;;  %v6028_v54 = vld [vmem:[%s16798_s12 + $0x10] sm:$0xff]  ;;  %v6681_v29 = vld [vmem:[%s16802_s18 + $0x20] sm:$0xff] }
 0xd3c   :  { %12746 = vmatpush3.msra.mxu0 %v6028_v54 }
 0xd3d   :  { %v5984_v10 = vsel %vm669_vm6, %v5980_v32, 0.0  ;;  %12747 = vmatprep.subr.mxu0 %v13643_v28 }
 0xd3e   :  { %5985 = vadd.xlane.f32.xlu0 %v5984_v10  ;;  %12748 = vmatpush3.msra.mxu0 %v6027_v60  ;;  %v6691_v10 = vld [vmem:[%s16802_s18 + $0x70] sm:$0xff]  ;;  %v11814_v60 = vld [vmem:[%s16804_s23] ss:$0 sm:$0xff] }
 0xd3f   :  { %12749 = vmatprep.subr.mxu0 %v13643_v28 }
 0xd40   :  { %12750 = vmatpush3.msra.mxu0 %v6026_v36 }
 0xd41   :  { %12754 = vmatprep.subr.mxu0 %v13643_v28 }
 0xdc7   :  { %v5986_v15 = vpop.xlane.xlu0 %5985 }
 0xdc8   :  { %v5990_v13 = vmul.f32 0.03125, %v5986_v15  ;;  %v6690_v15 = vld [vmem:[%s16802_s18 + $0x68] sm:$0xff] }
 0xdca   :  { %v5992_v17 = vsub.f32 %v5980_v32, %v5990_v13  ;;  %v6692_v32 = vld [vmem:[%s16802_s18 + $0x78] sm:$0xff]  ;;  %v6689_v13 = vld [vmem:[%s16802_s18 + $0x60] sm:$0xff] }
 0xdcc   :  { %v5994_v27 = vmul.f32 %v5992_v17, %v5992_v17 }
 0xdce   :  { %v5996_v14 = vsel %vm669_vm6, %v5994_v27, 0.0 }
 0xdcf   :  { %5997 = vadd.xlane.f32.xlu1 %v5996_v14 }
 0xe58   :  { %v5998_v59 = vpop.xlane.xlu1 %5997 }
 0xe59   :  { %v6002_v4 = vmul.f32 0.03125, %v5998_v59 }
 0xe5b   :  { %v6004_v8 = vadd.f32 1e-05, %v6002_v4  ;;  %v11824_v4 = vld [vmem:[%s16803_s22 + $0x2] ss:$0 sm:$0xff] }
 0xe5d   :  { %13399 = vrsqrt.f32 %v6004_v8 }
 0xe6a   :  { %v13400_v26 = vpop.eup %13399 }
 0xe6b   :  { %v6008_v38 = vmul.f32 %v13400_v26, %v5992_v17 }
 0xe6d   :  { %v6016_v24 = vmul.f32 %v11812_v34, %v6008_v38  ;;  %v11816_v34 = vld [vmem:[%s16804_s23 + $0x2] ss:$0 sm:$0xff] }
 0xe6f   :  { %v15363_v52 = vadd.f32 %v11813_v55, %v6016_v24 }
 0xe71   :  { %12752 = vmatmul.mubr.msk.f32.vlgmr.msra.gmra.mxu0 %vm669_vm6, %v15363_v52  ;;  %12774 = vmatmul.mubr.msk.f32.vlgmr.msra.gmra.mxu1 %vm669_vm6, %v15363_v52 }
 0xe72   :  { %12755 = vmatpush3.msra.mxu0 %v6033_v35  ;;  %12788 = vmatpush3.msra.mxu1 %v6356_v39  ;;  %v11823_v39 = vld [vmem:[%s16803_s22 + $0x1] ss:$0 sm:$0xff] }
 0xe73   :  { %12756 = vmatprep.subr.mxu0 %v13643_v28  ;;  %12789 = vmatprep.subr.mxu1 %v13643_v28 }
 0xe74   :  { %12757 = vmatpush3.msra.mxu0 %v6032_v30  ;;  %12790 = vmatpush3.msra.mxu1 %v6355_v47  ;;  %v11830_v30 = vld [vmem:[%s16805_s26] ss:$0 sm:$0xff] }
 0xe75   :  { %12758 = vmatprep.subr.mxu0 %v13643_v28  ;;  %12791 = vmatprep.subr.mxu1 %v13643_v28 }
 0xe76   :  { %12759 = vmatpush3.msra.mxu0 %v6031_v7  ;;  %12792 = vmatpush3.msra.mxu1 %v6354_v12  ;;  %v11815_v7 = vld [vmem:[%s16804_s23 + $0x1] ss:$0 sm:$0xff] }
 0xe77   :  { %12760 = vmatprep.subr.mxu0 %v13643_v28  ;;  %12793 = vmatprep.subr.mxu1 %v13643_v28 }
 0xe78   :  { %12761 = vmatpush3.msra.mxu0 %v6030_v21  ;;  %12762 = vmatprep.mubr.msk.f32.mxu0 %vm13644_vm5, %v13643_v28 }
 0xe79   :  { %12794 = vmatpush3.msra.mxu1 %v6353_v20  ;;  %12795 = vmatprep.mubr.msk.f32.mxu1 %vm13644_vm5, %v13643_v28 }
 0xe7a   :  { %12763 = vmatmul.mubr.msk.f32.vlgmr.msra.gmra.mxu0 %vm669_vm6, %v15363_v52  ;;  %12776 = vmatprep.subr.mxu0 %v13643_v28 }
 0xe7b   :  { %12796 = vmatmul.mubr.msk.f32.vlgmr.msra.gmra.mxu1 %vm669_vm6, %v15363_v52  ;;  %12809 = vmatprep.subr.mxu1 %v13643_v28 }
 0xe7c   :  { %12777 = vmatpush3.msra.mxu0 %v6041_v62  ;;  %12810 = vmatpush3.msra.mxu1 %v6364_v41 }
 0xe7d   :  { %12778 = vmatprep.subr.mxu0 %v13643_v28  ;;  %12811 = vmatprep.subr.mxu1 %v13643_v28 }
 0xe7e   :  { %12779 = vmatpush3.msra.mxu0 %v6040_v3  ;;  %12812 = vmatpush3.msra.mxu1 %v6363_v43  ;;  %v11825_v43 = vld [vmem:[%s16803_s22 + $0x3] ss:$0 sm:$0xff] }
 0xe7f   :  { %12780 = vmatprep.subr.mxu0 %v13643_v28  ;;  %12813 = vmatprep.subr.mxu1 %v13643_v28 }
 0xe80   :  { %12781 = vmatpush3.msra.mxu0 %v6039_v50  ;;  %12814 = vmatpush3.msra.mxu1 %v6362_v45  ;;  %v11817_v45 = vld [vmem:[%s16804_s23 + $0x3] ss:$0 sm:$0xff] }
 0xe81   :  { %12782 = vmatprep.subr.mxu0 %v13643_v28  ;;  %12815 = vmatprep.subr.mxu1 %v13643_v28 }
 0xe82   :  { %12783 = vmatpush3.msra.mxu0 %v6038_v63  ;;  %12784 = vmatprep.mubr.msk.f32.mxu0 %vm13644_vm5, %v13643_v28 }
 0xe83   :  { %12816 = vmatpush3.msra.mxu1 %v6361_v57  ;;  %12817 = vmatprep.mubr.msk.f32.mxu1 %vm13644_vm5, %v13643_v28 }
 0xe84   :  { %12785 = vmatmul.mubr.msk.f32.vlgmr.msra.gmra.mxu0 %vm669_vm6, %v15363_v52  ;;  %12798 = vmatprep.subr.mxu0 %v13643_v28 }
 0xe85   :  { %12818 = vmatmul.mubr.msk.f32.vlgmr.msra.gmra.mxu1 %vm669_vm6, %v15363_v52  ;;  %12831 = vmatprep.subr.mxu1 %v13643_v28 }
 0xe86   :  { %12799 = vmatpush3.msra.mxu0 %v6360_v61  ;;  %12832 = vmatpush3.msra.mxu1 %v6680_v23 }
 0xe87   :  { %12800 = vmatprep.subr.mxu0 %v13643_v28  ;;  %12833 = vmatprep.subr.mxu1 %v13643_v28 }
 0xe88   :  { %12801 = vmatpush3.msra.mxu0 %v6359_v0  ;;  %12834 = vmatpush3.msra.mxu1 %v6679_v51  ;;  %v11831_v51 = vld [vmem:[%s16805_s26 + $0x1] ss:$0 sm:$0xff] }
 0xe89   :  { %12802 = vmatprep.subr.mxu0 %v13643_v28  ;;  %12835 = vmatprep.subr.mxu1 %v13643_v28 }
 0xe8a   :  { %12803 = vmatpush3.msra.mxu0 %v6358_v58  ;;  %12836 = vmatpush3.msra.mxu1 %v6678_v44 }
 0xe8b   :  { %12804 = vmatprep.subr.mxu0 %v13643_v28  ;;  %12837 = vmatprep.subr.mxu1 %v13643_v28 }
 0xe8c   :  { %12805 = vmatpush3.msra.mxu0 %v6357_v53  ;;  %12806 = vmatprep.mubr.msk.f32.mxu0 %vm13644_vm5, %v13643_v28 }
 0xe8d   :  { %12838 = vmatpush3.msra.mxu1 %v6677_v22  ;;  %12839 = vmatprep.mubr.msk.f32.mxu1 %vm13644_vm5, %v13643_v28 }
 0xe8e   :  { %12807 = vmatmul.mubr.msk.f32.vlgmr.msra.gmra.mxu0 %vm669_vm6, %v15363_v52  ;;  %12820 = vmatprep.subr.mxu0 %v13643_v28 }
 0xe8f   :  { %12840 = vmatmul.mubr.msk.f32.vlgmr.msra.gmra.mxu1 %vm669_vm6, %v15363_v52  ;;  %12853 = vmatprep.subr.mxu1 %v13643_v28 }
 0xe90   :  { %12821 = vmatpush3.msra.mxu0 %v6368_v48  ;;  %12854 = vmatpush3.msra.mxu1 %v6688_v1 }
 0xe91   :  { %12822 = vmatprep.subr.mxu0 %v13643_v28  ;;  %12855 = vmatprep.subr.mxu1 %v13643_v28 }
 0xe92   :  { %12823 = vmatpush3.msra.mxu0 %v6367_v37  ;;  %12856 = vmatpush3.msra.mxu1 %v6687_v40 }
 0xe93   :  { %12824 = vmatprep.subr.mxu0 %v13643_v28  ;;  %12857 = vmatprep.subr.mxu1 %v13643_v28 }
 0xe94   :  { %12825 = vmatpush3.msra.mxu0 %v6366_v56  ;;  %12858 = vmatpush3.msra.mxu1 %v6686_v5 }
 0xe95   :  { %12826 = vmatprep.subr.mxu0 %v13643_v28  ;;  %12859 = vmatprep.subr.mxu1 %v13643_v28 }
 0xe96   :  { %12827 = vmatpush3.msra.mxu0 %v6365_v25  ;;  %12828 = vmatprep.mubr.msk.f32.mxu0 %vm13644_vm5, %v13643_v28 }
 0xe97   :  { %12860 = vmatpush3.msra.mxu1 %v6685_v2  ;;  %12861 = vmatprep.mubr.msk.f32.mxu1 %vm13644_vm5, %v13643_v28 }
 0xe98   :  { %12829 = vmatmul.mubr.msk.f32.vlgmr.msra.gmra.mxu0 %vm669_vm6, %v15363_v52  ;;  %12842 = vmatprep.subr.mxu0 %v13643_v28 }
 0xe99   :  { %12862 = vmatmul.mubr.msk.f32.vlgmr.msra.gmra.mxu1 %vm669_vm6, %v15363_v52  ;;  %12843 = vmatpush3.msra.mxu0 %v6684_v9 }
 0xe9a   :  { %12844 = vmatprep.subr.mxu0 %v13643_v28  ;;  %12850 = vmatprep.mubr.msk.f32.mxu0 %vm13644_vm5, %v13643_v28 }
 0xe9b   :  { %12845 = vmatpush3.msra.mxu0 %v6683_v46  ;;  %12875 = vmatprep.subr.mxu1 %v13643_v28 }
 0xe9c   :  { %12846 = vmatprep.subr.mxu0 %v13643_v28  ;;  %12877 = vmatprep.mubr.msk.f32.mxu1 %vm13644_vm5, %v13643_v28 }
 0xe9d   :  { %12847 = vmatpush3.msra.mxu0 %v6682_v18 }
 0xe9e   :  { %12848 = vmatprep.subr.mxu0 %v13643_v28 }
 0xe9f   :  { %12849 = vmatpush3.msra.mxu0 %v6681_v29 }
 0xea0   :  { %12851 = vmatmul.mubr.msk.f32.vlgmr.msra.gmra.mxu0 %vm669_vm6, %v15363_v52  ;;  %12864 = vmatprep.subr.mxu0 %v13643_v28 }
 0xea1   :  { %12865 = vmatpush3.msra.mxu0 %v6692_v32  ;;  %12872 = vmatprep.mubr.msk.f32.mxu0 %vm13644_vm5, %v13643_v28 }
 0xea2   :  { %12866 = vmatprep.subr.mxu0 %v13643_v28 }
 0xea3   :  { %12867 = vmatpush3.msra.mxu0 %v6691_v10 }
 0xea4   :  { %12868 = vmatprep.subr.mxu0 %v13643_v28 }
 0xea5   :  { %12869 = vmatpush3.msra.mxu0 %v6690_v15 }
 0xea6   :  { %12870 = vmatprep.subr.mxu0 %v13643_v28 }
 0xea7   :  { %12871 = vmatpush3.msra.mxu0 %v6689_v13 }
 0xea8   :  { %12873 = vmatmul.mubr.msk.f32.vlgmr.msra.gmra.mxu0 %vm669_vm6, %v15363_v52  ;;  %12885 = vmatprep.subr.mxu0 %v13643_v28 }
 0xea9   :  { %12887 = vmatprep.mubr.msk.f32.mxu0 %vm13644_vm5, %v13643_v28 }
 0xf31   :  { %v6139_v17 = vpop.f32.mrf.mxu0  ;;  %v6279_v27 = vpop.f32.mrf.mxu1 }
 0xf32   :  { %v6140_v59 = vadd.f32 %v11814_v60, %v6139_v17  ;;  %v6280_v35 = vadd.f32 %v11816_v34, %v6279_v27 }
 0xf33   :  { %v12753_v14 = vpop.f32.mrf.mxu0  ;;  %v12775_v33 = vpop.f32.mrf.mxu1 }
 0xf3a   :  { %v6209_v54 = vpop.f32.mrf.mxu0 }
 0xf3b   :  { %v6463_v6 = vpop.f32.mrf.mxu1  ;;  %v6210_v3 = vadd.f32 %v11815_v7, %v6209_v54 }
 0xf3c   :  { %v6464_v19 = vadd.f32 %v11822_v49, %v6463_v6  ;;  %v12764_v36 = vpop.f32.mrf.mxu0 }
 0xf3d   :  { %v12797_v31 = vpop.f32.mrf.mxu1 }
 0xf3e   :  { %12876 = vmatpush3.xpose.msk.msra.mxu1 %vm1601_vm7, %v6464_v19 }
 0xf3f   :  { %12880 = vmatprep.subr.mxu1 %v13643_v28 }
 0xf41   :  { %12878 = vmatmul.mubr.msk.f32.vlgmr.msra.gmra.mxu1 %vm1601_vm7, %v6140_v59 }
 0xf42   :  { %12882 = vmatprep.mubr.msk.f32.mxu1 %vm13644_vm5, %v13643_v28 }
 0xf44   :  { %v6349_v8 = vpop.f32.mrf.mxu0 }
 0xf45   :  { %v6603_v26 = vpop.f32.mrf.mxu1  ;;  %v6350_v0 = vadd.f32 %v11817_v45, %v6349_v8 }
 0xf46   :  { %v6604_v38 = vadd.f32 %v11824_v4, %v6603_v26  ;;  %v12786_v55 = vpop.f32.mrf.mxu0 }
 0xf47   :  { %v12819_v24 = vpop.f32.mrf.mxu1 }
 0xf48   :  { %12886 = vmatpush3.xpose.msk.msra.mxu0 %vm1601_vm7, %v6604_v38 }
 0xf49   :  { %12895 = vmatprep.subr.mxu0 %v13643_v28 }
 0xf4b   :  { %12888 = vmatmul.mubr.msk.f32.vlgmr.msra.gmra.mxu0 %vm1601_vm7, %v6280_v35 }
 0xf4c   :  { %12897 = vmatprep.mubr.msk.f32.mxu0 %vm13644_vm5, %v13643_v28 }
 0xf4e   :  { %v6533_v47 = vpop.f32.mrf.mxu0 }
 0xf4f   :  { %v6534_v12 = vadd.f32 %v11823_v39, %v6533_v47  ;;  %v6787_v21 = vpop.f32.mrf.mxu1 }
 0xf50   :  { %v6788_v20 = vadd.f32 %v11830_v30, %v6787_v21  ;;  %v12808_v62 = vpop.f32.mrf.mxu0 }
 0xf51   :  { %v12841_v41 = vpop.f32.mrf.mxu1  ;;  %12881 = vmatpush3.xpose.msk.msra.mxu1 %vm1601_vm7, %v6534_v12 }
 0xf52   :  { %12896 = vmatpush3.msra.mxu0 %v6788_v20  ;;  %12890 = vmatprep.subr.mxu1 %v13643_v28 }
 0xf53   :  { %12905 = vmatprep.subr.mxu0 %v13643_v28 }
 0xf54   :  { %12883 = vmatmul.mubr.msk.f32.vlgmr.msra.gmra.mxu1 %vm1601_vm7, %v6210_v3 }
 0xf55   :  { %12892 = vmatprep.mubr.msk.f32.mxu1 %vm13644_vm5, %v13643_v28 }
 0xf58   :  { %v6673_v50 = vpop.f32.mrf.mxu0 }
 0xf59   :  { %v6674_v63 = vadd.f32 %v11825_v43, %v6673_v50  ;;  %v15518_v57 = vpop.f32.mrf.mxu1 }
 0xf5a   :  { %v12830_v61 = vpop.f32.mrf.mxu0 }
 0xf5b   :  { %v12863_v23 = vpop.f32.mrf.mxu1  ;;  %12891 = vmatpush3.xpose.msk.msra.mxu1 %vm1601_vm7, %v6674_v63 }
 0xf5c   :  { %12900 = vmatprep.subr.mxu1 %v13643_v28 }
 0xf5e   :  { %12893 = vmatmul.mubr.msk.f32.vlgmr.msra.gmra.mxu1 %vm1601_vm7, %v6350_v0 }
 0xf5f   :  { %12902 = vmatprep.mubr.msk.f32.mxu1 %vm13644_vm5, %v13643_v28 }
 0xf60   :  { %v6857_v58 = vpop.f32.mrf.mxu0 }
 0xf61   :  { %v6858_v44 = vadd.f32 %v11831_v51, %v6857_v58 }
 0xf62   :  { %v12852_v53 = vpop.f32.mrf.mxu0 }
 0xf63   :  { %12901 = vmatpush3.msra.mxu1 %v6858_v44 }
 0xf64   :  { %12910 = vmatprep.subr.mxu1 %v13643_v28 }
 0xf68   :  { %v15527_v22 = vpop.f32.mrf.mxu0 }
 0xf6a   :  { %v12874_v48 = vpop.f32.mrf.mxu0 }
0x1001   :  { %v7073_v1 = vpop.f32.mrf.mxu1 }
0x1002   :  { %v7305_v37 = vmul.f32 0.35355338, %v7073_v1 }
0x1003   :  { %v12879_v40 = vpop.f32.mrf.mxu1 }
0x1004   :  { %v7313_v56 = vrot.slane %v7305_v37, 1  ;;  %v7314_v5 = vrot.slane %v7305_v37, 2  ;;  %v7315_v25 = vrot.slane %v7305_v37, 3  ;;  %v7316_v2 = vrot.slane %v7305_v37, 4 }
0x1005   :  { %v7317_v9 = vrot.slane %v7305_v37, 5  ;;  %v7318_v46 = vrot.slane %v7305_v37, 6  ;;  %v7319_v18 = vrot.slane %v7305_v37, 7  ;;  %v15549_v27 = vsel %vm216_vm8, %v7305_v37, -1e+30 }
0x1006   :  { %v15531_v29 = vsel %vm216_vm8, %v7313_v56, -1e+30  ;;  %v15535_v32 = vsel %vm216_vm8, %v7314_v5, -1e+30  ;;  %v15539_v10 = vsel %vm216_vm8, %v7315_v25, -1e+30 }
0x1007   :  { %v15543_v15 = vsel %vm216_vm8, %v7316_v2, -1e+30  ;;  %v7437_v13 = vrot.slane %v15531_v29, 7  ;;  %v7439_v17 = vrot.slane %v15535_v32, 6  ;;  %v15553_v14 = vsel %vm216_vm8, %v7317_v9, -1e+30 }
0x1008   :  { %v15557_v33 = vsel %vm216_vm8, %v7318_v46, -1e+30  ;;  %v15561_v49 = vsel %vm216_vm8, %v7319_v18, -1e+30  ;;  %v7441_v6 = vrot.slane %v15539_v10, 5  ;;  %v7443_v36 = vrot.slane %v15543_v15, 4 }
0x1009   :  { %v7438_v54 = vsel %vm2041_vm9, %v7437_v13, %v15549_v27  ;;  %v7445_v4 = vrot.slane %v15553_v14, 3  ;;  %v7447_v34 = vrot.slane %v15557_v33, 2  ;;  %v7449_v38 = vrot.slane %v15561_v49, 1 }
0x100a   :  { %v7440_v19 = vsel %vm2044_vm10, %v7439_v17, %v7438_v54 }
0x100b   :  { %v7225_v60 = vpop.f32.mrf.mxu0  ;;  %v7442_v59 = vsel %vm2047_vm11, %v7441_v6, %v7440_v19 }
0x100c   :  { %v7307_v31 = vmul.f32 0.35355338, %v7225_v60  ;;  %v7444_v26 = vsel %vm2050_vm12, %v7443_v36, %v7442_v59 }
0x100d   :  { %v12889_v8 = vpop.f32.mrf.mxu0  ;;  %v7446_v55 = vsel %vm2053_vm13, %v7445_v4, %v7444_v26 }
0x100e   :  { %v7327_v24 = vrot.slane %v7307_v31, 1  ;;  %v7328_v35 = vrot.slane %v7307_v31, 2  ;;  %v7329_v39 = vrot.slane %v7307_v31, 3  ;;  %v7448_v30 = vsel %vm2056_vm14, %v7447_v34, %v7446_v55 }
0x100f   :  { %v7330_v47 = vrot.slane %v7307_v31, 4  ;;  %v7331_v7 = vrot.slane %v7307_v31, 5  ;;  %v7332_v12 = vrot.slane %v7307_v31, 6  ;;  %v7450_v21 = vsel %vm2059_vm15, %v7449_v38, %v7448_v30 }
0x1010   :  { %v7333_v20 = vrot.slane %v7307_v31, 7  ;;  %v15578_v62 = vsel %vm216_vm8, %v7327_v24, -1e+30  ;;  %v7497_v41 = vsel %vm1601_vm7, %v7450_v21, -inf  ;;  %v15583_v3 = vsel %vm216_vm8, %v7328_v35, -1e+30 }
0x1011   :  { %v15587_v43 = vsel %vm216_vm8, %v7329_v39, -1e+30  ;;  %v7465_v50 = vrot.slane %v15578_v62, 7  ;;  %7498 = vmax.xlane.f32.xlu0 %v7497_v41  ;;  %v15592_v45 = vsel %vm216_vm8, %v7307_v31, -1e+30  ;;  %v7467_v51 = vrot.slane %v15583_v3, 6 }
0x1012   :  { %v15596_v63 = vsel %vm216_vm8, %v7330_v47, -1e+30  ;;  %v15600_v61 = vsel %vm216_vm8, %v7331_v7, -1e+30  ;;  %v15604_v23 = vsel %vm216_vm8, %v7332_v12, -1e+30 }
0x1013   :  { %v7466_v0 = vsel %vm2041_vm9, %v7465_v50, %v15592_v45  ;;  %v7469_v44 = vrot.slane %v15587_v43, 5  ;;  %v15612_v48 = vsel %vm216_vm8, %v7333_v20, -1e+30  ;;  %v7471_v37 = vrot.slane %v15596_v63, 4 }
0x1014   :  { %v7149_v58 = vpop.f32.mrf.mxu1  ;;  %v7468_v1 = vsel %vm2044_vm10, %v7467_v51, %v7466_v0  ;;  %v7473_v5 = vrot.slane %v15600_v61, 3  ;;  %v7475_v25 = vrot.slane %v15604_v23, 2  ;;  %v7477_v17 = vrot.slane %v15612_v48, 1 }
0x1015   :  { %v7306_v53 = vmul.f32 0.35355338, %v7149_v58  ;;  %v7470_v56 = vsel %vm2047_vm11, %v7469_v44, %v7468_v1 }
0x1016   :  { %v12884_v40 = vpop.f32.mrf.mxu1  ;;  %v7472_v2 = vsel %vm2050_vm12, %v7471_v37, %v7470_v56 }
0x1017   :  { %v7320_v9 = vrot.slane %v7306_v53, 1  ;;  %v7321_v46 = vrot.slane %v7306_v53, 2  ;;  %v7322_v18 = vrot.slane %v7306_v53, 3  ;;  %v7474_v13 = vsel %vm2053_vm13, %v7473_v5, %v7472_v2 }
0x1018   :  { %v7323_v54 = vrot.slane %v7306_v53, 4  ;;  %v7324_v6 = vrot.slane %v7306_v53, 5  ;;  %v7476_v60 = vsel %vm2056_vm14, %v7475_v25, %v7474_v13  ;;  %v7325_v19 = vrot.slane %v7306_v53, 6 }
0x1019   :  { %v7326_v36 = vrot.slane %v7306_v53, 7  ;;  %v15625_v31 = vsel %vm216_vm8, %v7320_v9, -1e+30  ;;  %v7478_v59 = vsel %vm2059_vm15, %v7477_v17, %v7476_v60  ;;  %v15630_v4 = vsel %vm216_vm8, %v7321_v46, -1e+30 }
0x101a   :  { %v15634_v8 = vsel %vm216_vm8, %v7322_v18, -1e+30  ;;  %v7503_v26 = vsel %vm1601_vm7, %v7478_v59, -inf  ;;  %v15639_v34 = vsel %vm216_vm8, %v7323_v54, -1e+30  ;;  %v7451_v38 = vrot.slane %v15625_v31, 7 }
0x101b   :  { %7504 = vmax.xlane.f32.xlu0 %v7503_v26  ;;  %v15644_v55 = vsel %vm216_vm8, %v7306_v53, -1e+30  ;;  %v15648_v24 = vsel %vm216_vm8, %v7324_v6, -1e+30  ;;  %v7453_v35 = vrot.slane %v15630_v4, 6  ;;  %v7455_v7 = vrot.slane %v15634_v8, 5 }
0x101c   :  { %v15653_v39 = vsel %vm216_vm8, %v7325_v19, -1e+30  ;;  %v15657_v30 = vsel %vm216_vm8, %v7326_v36, -1e+30  ;;  %v7452_v47 = vsel %vm2041_vm9, %v7451_v38, %v15644_v55  ;;  %v7457_v20 = vrot.slane %v15639_v34, 4 }
0x101d   :  { %v7454_v21 = vsel %vm2044_vm10, %v7453_v35, %v7452_v47  ;;  %v7459_v0 = vrot.slane %v15648_v24, 3  ;;  %v7461_v44 = vrot.slane %v15653_v39, 2  ;;  %v7463_v53 = vrot.slane %v15657_v30, 1 }
0x101e   :  { %v7301_v12 = vpop.f32.mrf.mxu1  ;;  %v7456_v50 = vsel %vm2047_vm11, %v7455_v7, %v7454_v21 }
0x101f   :  { %v7308_v41 = vmul.f32 0.35355338, %v7301_v12  ;;  %v7458_v58 = vsel %vm2050_vm12, %v7457_v20, %v7456_v50 }
0x1020   :  { %v12894_v51 = vpop.f32.mrf.mxu1  ;;  %v7460_v1 = vsel %vm2053_vm13, %v7459_v0, %v7458_v58 }
0x1021   :  { %v7334_v37 = vrot.slane %v7308_v41, 1  ;;  %v7335_v40 = vrot.slane %v7308_v41, 2  ;;  %v7336_v56 = vrot.slane %v7308_v41, 3  ;;  %v7462_v5 = vsel %vm2056_vm14, %v7461_v44, %v7460_v1 }
0x1022   :  { %v7337_v25 = vrot.slane %v7308_v41, 4  ;;  %v7338_v2 = vrot.slane %v7308_v41, 5  ;;  %v7464_v9 = vsel %vm2059_vm15, %v7463_v53, %v7462_v5  ;;  %v7339_v46 = vrot.slane %v7308_v41, 6 }
0x1023   :  { %v7340_v18 = vrot.slane %v7308_v41, 7  ;;  %v15674_v13 = vsel %vm216_vm8, %v7334_v37, -1e+30  ;;  %v7500_v17 = vsel %vm1601_vm7, %v7464_v9, -inf  ;;  %v15679_v54 = vsel %vm216_vm8, %v7335_v40, -1e+30 }
0x1024   :  { %v15683_v6 = vsel %vm216_vm8, %v7336_v56, -1e+30  ;;  %v7479_v60 = vrot.slane %v15674_v13, 7  ;;  %7501 = vmax.xlane.f32.xlu1 %v7500_v17  ;;  %v15688_v19 = vsel %vm216_vm8, %v7308_v41, -1e+30  ;;  %v7481_v38 = vrot.slane %v15679_v54, 6 }
0x1025   :  { %v15692_v36 = vsel %vm216_vm8, %v7337_v25, -1e+30  ;;  %v15696_v59 = vsel %vm216_vm8, %v7338_v2, -1e+30  ;;  %v15703_v35 = vsel %vm216_vm8, %v7339_v46, -1e+30 }
0x1026   :  { %v7480_v26 = vsel %vm2041_vm9, %v7479_v60, %v15688_v19  ;;  %v7483_v47 = vrot.slane %v15683_v6, 5  ;;  %v15708_v7 = vsel %vm216_vm8, %v7340_v18, -1e+30  ;;  %v7485_v21 = vrot.slane %v15692_v36, 4 }
0x1027   :  { %v7482_v12 = vsel %vm2044_vm10, %v7481_v38, %v7480_v26  ;;  %v7487_v41 = vrot.slane %v15696_v59, 3  ;;  %v7489_v0 = vrot.slane %v15703_v35, 2  ;;  %v7491_v58 = vrot.slane %v15708_v7, 1 }
0x1028   :  { %v7484_v20 = vsel %vm2047_vm11, %v7483_v47, %v7482_v12 }
0x1029   :  { %v7486_v50 = vsel %vm2050_vm12, %v7485_v21, %v7484_v20 }
0x102a   :  { %v7488_v51 = vsel %vm2053_vm13, %v7487_v41, %v7486_v50 }
0x102b   :  { %v7490_v44 = vsel %vm2056_vm14, %v7489_v0, %v7488_v51 }
0x102c   :  { %v7492_v53 = vsel %vm2059_vm15, %v7491_v58, %v7490_v44 }
0x102d   :  { %v7506_v1 = vsel %vm1601_vm7, %v7492_v53, -inf }
0x102e   :  { %7507 = vmax.xlane.f32.xlu1 %v7506_v1 }
0x109a   :  { %v7499_v37 = vpop.xlane.xlu0 %7498 }
0x109b   :  { %v7513_v40 = vrot.slane %v7499_v37, 1  ;;  %v7514_v56 = vrot.slane %v7499_v37, 2  ;;  %v7515_v5 = vrot.slane %v7499_v37, 3  ;;  %v7516_v25 = vrot.slane %v7499_v37, 4 }
0x109c   :  { %v7517_v2 = vrot.slane %v7499_v37, 5  ;;  %v7518_v9 = vrot.slane %v7499_v37, 6  ;;  %v7519_v46 = vrot.slane %v7499_v37, 7  ;;  %v7573_v18 = vsub.f32 %v15549_v27, %v7499_v37 }
0x109d   :  { %v7574_v17 = vsub.f32 %v15531_v29, %v7513_v40  ;;  %v7575_v60 = vsub.f32 %v15535_v32, %v7514_v56  ;;  %v7576_v26 = vsub.f32 %v15539_v10, %v7515_v5  ;;  %v7577_v38 = vsub.f32 %v15543_v15, %v7516_v25 }
0x109e   :  { %v7578_v47 = vsub.f32 %v15553_v14, %v7517_v2  ;;  %v7605_v12 = vmul.f32 1.442695, %v7573_v18  ;;  %v7579_v41 = vsub.f32 %v15557_v33, %v7518_v9  ;;  %v7580_v0 = vsub.f32 %v15561_v49, %v7519_v46 }
0x109f   :  { %v7607_v21 = vmul.f32 1.442695, %v7574_v17  ;;  %v7609_v20 = vmul.f32 1.442695, %v7575_v60  ;;  %v7611_v50 = vmul.f32 1.442695, %v7576_v26 }
0x10a0   :  { %13401 = vpow2.f32 %v7605_v12  ;;  %v7613_v27 = vmul.f32 1.442695, %v7577_v38  ;;  %v7615_v29 = vmul.f32 1.442695, %v7578_v47  ;;  %v7617_v32 = vmul.f32 1.442695, %v7579_v41 }
0x10a1   :  { %13403 = vpow2.f32 %v7607_v21  ;;  %v7619_v51 = vmul.f32 1.442695, %v7580_v0 }
0x10a2   :  { %13405 = vpow2.f32 %v7609_v20 }
0x10a3   :  { %13407 = vpow2.f32 %v7611_v50 }
0x10a4   :  { %v7505_v10 = vpop.xlane.xlu0 %7504  ;;  %13409 = vpow2.f32 %v7613_v27 }
0x10a5   :  { %v7527_v15 = vrot.slane %v7505_v10, 1  ;;  %v7528_v14 = vrot.slane %v7505_v10, 2  ;;  %v7529_v58 = vrot.slane %v7505_v10, 3  ;;  %13411 = vpow2.f32 %v7615_v29 }
0x10a6   :  { %v7530_v44 = vrot.slane %v7505_v10, 4  ;;  %v7531_v53 = vrot.slane %v7505_v10, 5  ;;  %v7532_v33 = vrot.slane %v7505_v10, 6  ;;  %v7589_v1 = vsub.f32 %v15592_v45, %v7505_v10 }
0x10a7   :  { %v7590_v49 = vsub.f32 %v15578_v62, %v7527_v15  ;;  %v7591_v37 = vsub.f32 %v15583_v3, %v7528_v14  ;;  %v7592_v40 = vsub.f32 %v15587_v43, %v7529_v58  ;;  %13413 = vpow2.f32 %v7617_v32 }
0x10a8   :  { %v7593_v56 = vsub.f32 %v15596_v63, %v7530_v44  ;;  %v7594_v5 = vsub.f32 %v15600_v61, %v7531_v53  ;;  %v7637_v25 = vmul.f32 1.442695, %v7589_v1  ;;  %13415 = vpow2.f32 %v7619_v51 }
0x10a9   :  { %v7639_v2 = vmul.f32 1.442695, %v7590_v49  ;;  %v7641_v9 = vmul.f32 1.442695, %v7591_v37  ;;  %v7595_v46 = vsub.f32 %v15604_v23, %v7532_v33  ;;  %v7643_v18 = vmul.f32 1.442695, %v7592_v40 }
0x10aa   :  { %13417 = vpow2.f32 %v7637_v25  ;;  %v7645_v45 = vmul.f32 1.442695, %v7593_v56  ;;  %v7533_v17 = vrot.slane %v7505_v10, 7  ;;  %v7647_v62 = vmul.f32 1.442695, %v7594_v5 }
0x10ab   :  { %13419 = vpow2.f32 %v7639_v2  ;;  %v7649_v38 = vmul.f32 1.442695, %v7595_v46 }
0x10ac   :  { %13421 = vpow2.f32 %v7641_v9 }
0x10ad   :  { %v7502_v3 = vpop.xlane.xlu1 %7501  ;;  %v15736_v60 = vpop.eup %13401  ;;  %13423 = vpow2.f32 %v7643_v18 }
0x10ae   :  { %v7520_v43 = vrot.slane %v7502_v3, 1  ;;  %v7521_v63 = vrot.slane %v7502_v3, 2  ;;  %v7522_v26 = vrot.slane %v7502_v3, 3  ;;  %v15738_v61 = vpop.eup %13403  ;;  %v7523_v47 = vrot.slane %v7502_v3, 4 }
0x10af   :  { %v7524_v12 = vrot.slane %v7502_v3, 5  ;;  %v15740_v23 = vpop.eup %13405  ;;  %13425 = vpow2.f32 %v7645_v45  ;;  %v7525_v21 = vrot.slane %v7502_v3, 6  ;;  %v7581_v20 = vsub.f32 %v15644_v55, %v7502_v3 }
0x10b0   :  { %v7582_v41 = vsub.f32 %v15625_v31, %v7520_v43  ;;  %v15744_v50 = vpop.eup %13407  ;;  %13427 = vpow2.f32 %v7647_v62  ;;  %v7583_v0 = vsub.f32 %v15630_v4, %v7521_v63  ;;  %v7584_v27 = vsub.f32 %v15634_v8, %v7522_v26 }
0x10b1   :  { %v7585_v29 = vsub.f32 %v15639_v34, %v7523_v47  ;;  %v15749_v32 = vpop.eup %13409  ;;  %v7586_v10 = vsub.f32 %v15648_v24, %v7524_v12  ;;  %v7621_v51 = vmul.f32 1.442695, %v7581_v20  ;;  %v7701_v14 = vrot.slane %v15738_v61, 7 }
0x10b2   :  { %v7623_v15 = vmul.f32 1.442695, %v7582_v41  ;;  %v15753_v55 = vpop.eup %13411  ;;  %v7526_v31 = vrot.slane %v7502_v3, 7  ;;  %v7625_v58 = vmul.f32 1.442695, %v7583_v0  ;;  %13429 = vpow2.f32 %v7649_v38 }
0x10b3   :  { %13431 = vpow2.f32 %v7621_v51  ;;  %v7627_v44 = vmul.f32 1.442695, %v7584_v27  ;;  %v7596_v4 = vsub.f32 %v15612_v48, %v7533_v17  ;;  %v7587_v34 = vsub.f32 %v15653_v39, %v7525_v21 }
0x10b4   :  { %v15756_v8 = vpop.eup %13413  ;;  %13433 = vpow2.f32 %v7623_v15  ;;  %v7629_v53 = vmul.f32 1.442695, %v7585_v29  ;;  %v7703_v24 = vrot.slane %v15740_v23, 6  ;;  %v7631_v1 = vmul.f32 1.442695, %v7586_v10 }
0x10b5   :  { %v15760_v33 = vpop.eup %13415  ;;  %13435 = vpow2.f32 %v7625_v58  ;;  %v7702_v49 = vsel %vm2041_vm9, %v7701_v14, %v15736_v60  ;;  %v7705_v37 = vrot.slane %v15744_v50, 5  ;;  %v7707_v48 = vrot.slane %v15749_v32, 4 }
0x10b6   :  { %v7709_v56 = vrot.slane %v15753_v55, 3  ;;  %v7711_v39 = vrot.slane %v15756_v8, 2  ;;  %v7588_v5 = vsub.f32 %v15657_v30, %v7526_v31  ;;  %13437 = vpow2.f32 %v7627_v44 }
0x10b7   :  { %v7508_v40 = vpop.xlane.xlu1 %7507  ;;  %v15769_v46 = vpop.eup %13417  ;;  %v7704_v17 = vsel %vm2044_vm10, %v7703_v24, %v7702_v49  ;;  %v7713_v62 = vrot.slane %v15760_v33, 1  ;;  %13439 = vpow2.f32 %v7629_v53  ;;  %v7651_v53 = vmul.f32 1.442695, %v7596_v4 }
0x10b8   :  { %v7534_v25 = vrot.slane %v7508_v40, 1  ;;  %v7535_v2 = vrot.slane %v7508_v40, 2  ;;  %v7536_v9 = vrot.slane %v7508_v40, 3  ;;  %v7537_v18 = vrot.slane %v7508_v40, 4  ;;  %v15773_v3 = vpop.eup %13419 }
0x10b9   :  { %v7538_v45 = vrot.slane %v7508_v40, 5  ;;  %v7597_v43 = vsub.f32 %v15688_v19, %v7508_v40  ;;  %v15778_v26 = vpop.eup %13421  ;;  %v7539_v38 = vrot.slane %v7508_v40, 6  ;;  %v7706_v19 = vsel %vm2047_vm11, %v7705_v37, %v7704_v17 }
0x10ba   :  { %v7598_v63 = vsub.f32 %v15674_v13, %v7534_v25  ;;  %v7599_v30 = vsub.f32 %v15679_v54, %v7535_v2  ;;  %v7600_v47 = vsub.f32 %v15683_v6, %v7536_v9  ;;  %v7601_v12 = vsub.f32 %v15692_v36, %v7537_v18  ;;  %v15783_v20 = vpop.eup %13423 }
0x10bb   :  { %v7602_v21 = vsub.f32 %v15696_v59, %v7538_v45  ;;  %v7653_v41 = vmul.f32 1.442695, %v7597_v43  ;;  %13441 = vpow2.f32 %v7631_v1  ;;  %v7540_v13 = vrot.slane %v7508_v40, 7 }
0x10bc   :  { %v7655_v0 = vmul.f32 1.442695, %v7598_v63  ;;  %v7657_v27 = vmul.f32 1.442695, %v7599_v30  ;;  %v15786_v29 = vpop.eup %13425  ;;  %v7659_v54 = vmul.f32 1.442695, %v7600_v47  ;;  %v7708_v10 = vsel %vm2050_vm12, %v7707_v48, %v7706_v19 }
0x10bd   :  { %v15789_v51 = vpop.eup %13427  ;;  %13443 = vpow2.f32 %v7653_v41  ;;  %v7661_v6 = vmul.f32 1.442695, %v7601_v12  ;;  %v7710_v36 = vsel %vm2053_vm13, %v7709_v56, %v7708_v10  ;;  %v7729_v59 = vrot.slane %v15773_v3, 7 }
0x10be   :  { %v7603_v15 = vsub.f32 %v15703_v35, %v7539_v38  ;;  %13445 = vpow2.f32 %v7655_v0  ;;  %v7663_v14 = vmul.f32 1.442695, %v7602_v21  ;;  %v7712_v31 = vsel %vm2056_vm14, %v7711_v39, %v7710_v36 }
0x10bf   :  { %v15795_v58 = vpop.eup %13429  ;;  %13447 = vpow2.f32 %v7657_v27  ;;  %v7714_v44 = vsel %vm2059_vm15, %v7713_v62, %v7712_v31  ;;  %v7633_v1 = vmul.f32 1.442695, %v7587_v34  ;;  %v7731_v37 = vrot.slane %v15778_v26, 6 }
0x10c0   :  { %v15798_v24 = vpop.eup %13431  ;;  %13449 = vpow2.f32 %v7659_v54  ;;  %v7761_v49 = vsel %vm1601_vm7, %v7714_v44, 0.0  ;;  %v7730_v35 = vsel %vm2041_vm9, %v7729_v59, %v15769_v46  ;;  %v7635_v48 = vmul.f32 1.442695, %v7588_v5 }
0x10c1   :  { %v15802_v40 = vpop.eup %13433  ;;  %13451 = vpow2.f32 %v7661_v6  ;;  %7762 = vadd.xlane.f32.xlu0 %v7761_v49  ;;  %v7665_v4 = vmul.f32 1.442695, %v7603_v15  ;;  %v7604_v34 = vsub.f32 %v15708_v7, %v7540_v13  ;;  %v7732_v2 = vsel %vm2044_vm10, %v7731_v37, %v7730_v35 }
0x10c2   :  { %v15806_v56 = vpop.eup %13435  ;;  %13453 = vpow2.f32 %v7663_v14  ;;  %v7715_v39 = vrot.slane %v15802_v40, 7  ;;  %v7733_v18 = vrot.slane %v15783_v20, 5  ;;  %v7735_v62 = vrot.slane %v15786_v29, 4 }
0x10c3   :  { %13455 = vpow2.f32 %v7651_v53  ;;  %v15810_v25 = vpop.eup %13437  ;;  %v7717_v9 = vrot.slane %v15806_v56, 6  ;;  %v7667_v45 = vmul.f32 1.442695, %v7604_v34  ;;  %v7737_v21 = vrot.slane %v15789_v51, 3 }
0x10c4   :  { %13457 = vpow2.f32 %v7633_v1  ;;  %v7716_v5 = vsel %vm2041_vm9, %v7715_v39, %v15798_v24  ;;  %v15817_v17 = vpop.eup %13439  ;;  %v7734_v7 = vsel %vm2047_vm11, %v7733_v18, %v7732_v2  ;;  %v7719_v30 = vrot.slane %v15810_v25, 5 }
0x10c5   :  { %13459 = vpow2.f32 %v7635_v48  ;;  %v7718_v43 = vsel %vm2044_vm10, %v7717_v9, %v7716_v5  ;;  %v7736_v47 = vsel %vm2050_vm12, %v7735_v62, %v7734_v7  ;;  %v7721_v27 = vrot.slane %v15817_v17, 4 }
0x10c6   :  { %13461 = vpow2.f32 %v7665_v4  ;;  %v7720_v41 = vsel %vm2047_vm11, %v7719_v30, %v7718_v43  ;;  %v7738_v54 = vsel %vm2053_vm13, %v7737_v21, %v7736_v47  ;;  %v7739_v36 = vrot.slane %v15795_v58, 2 }
0x10c7   :  { %13463 = vpow2.f32 %v7667_v45  ;;  %v7722_v59 = vsel %vm2050_vm12, %v7721_v27, %v7720_v41  ;;  %v5981_v47 = vadd.f32 %v15340_v42, %v15323_v11 }
0x10c8   :  { %v15822_v63 = vpop.eup %13441  ;;  %v7740_v37 = vsel %vm2056_vm14, %v7739_v36, %v7738_v54 }
0x10c9   :  { %v7723_v44 = vrot.slane %v15822_v63, 3 }
0x10ca   :  { %v15825_v38 = vpop.eup %13443 }
0x10cb   :  { %v15828_v12 = vpop.eup %13445  ;;  %v7724_v39 = vsel %vm2053_vm13, %v7723_v44, %v7722_v59  ;;  %v5987_v59 = vsel %vm669_vm6, %v5981_v47, 0.0 }
0x10cc   :  { %v15832_v0 = vpop.eup %13447  ;;  %v7743_v19 = vrot.slane %v15828_v12, 7 }
0x10cd   :  { %v15836_v13 = vpop.eup %13449  ;;  %v7745_v10 = vrot.slane %v15832_v0, 6 }
0x10ce   :  { %v15840_v6 = vpop.eup %13451  ;;  %v7744_v15 = vsel %vm2041_vm9, %v7743_v19, %v15825_v38  ;;  %v7747_v14 = vrot.slane %v15836_v13, 5 }
0x10cf   :  { %v15847_v31 = vpop.eup %13453  ;;  %v7746_v53 = vsel %vm2044_vm10, %v7745_v10, %v7744_v15  ;;  %v7749_v1 = vrot.slane %v15840_v6, 4 }
0x10d0   :  { %v15852_v49 = vpop.eup %13455  ;;  %v7748_v35 = vsel %vm2047_vm11, %v7747_v14, %v7746_v53  ;;  %v7751_v2 = vrot.slane %v15847_v31, 3 }
0x10d1   :  { %v15856_v48 = vpop.eup %13457  ;;  %v7741_v4 = vrot.slane %v15852_v49, 1  ;;  %v7750_v34 = vsel %vm2050_vm12, %v7749_v1, %v7748_v35 }
0x10d2   :  { %v15862_v9 = vpop.eup %13459  ;;  %v7725_v18 = vrot.slane %v15856_v48, 2  ;;  %v7752_v62 = vsel %vm2053_vm13, %v7751_v2, %v7750_v34 }
0x10d3   :  { %v15865_v5 = vpop.eup %13461  ;;  %v7742_v45 = vsel %vm2059_vm15, %v7741_v4, %v7740_v37  ;;  %v7727_v7 = vrot.slane %v15862_v9, 1 }
0x10d4   :  { %v15870_v43 = vpop.eup %13463  ;;  %v7767_v30 = vsel %vm1601_vm7, %v7742_v45, 0.0  ;;  %v7726_v21 = vsel %vm2056_vm14, %v7725_v18, %v7724_v39  ;;  %v7753_v41 = vrot.slane %v15865_v5, 2 }
0x10d5   :  { %7768 = vadd.xlane.f32.xlu0 %v7767_v30  ;;  %v7728_v27 = vsel %vm2059_vm15, %v7727_v7, %v7726_v21  ;;  %v7755_v19 = vrot.slane %v15870_v43, 1 }
0x10d6   :  { %v7764_v54 = vsel %vm1601_vm7, %v7728_v27, 0.0  ;;  %v7754_v10 = vsel %vm2056_vm14, %v7753_v41, %v7752_v62 }
0x10d7   :  { %7765 = vadd.xlane.f32.xlu1 %v7764_v54  ;;  %v7756_v36 = vsel %vm2059_vm15, %v7755_v19, %v7754_v10 }
0x10d8   :  { %v7770_v11 = vsel %vm1601_vm7, %v7756_v36, 0.0 }
0x10d9   :  { %5988 = vadd.xlane.f32.xlu0 %v5987_v59 }
0x10db   :  { %7771 = vadd.xlane.f32.xlu1 %v7770_v11 }
0x114a   :  { %v7763_v42 = vpop.xlane.xlu0 %7762 }
0x114b   :  { %13465 = vrcp.f32 %v7763_v42 }
0x1158   :  { %v13466_v15 = vpop.eup %13465 }
0x1159   :  { %v7781_v14 = vrot.slane %v13466_v15, 1  ;;  %v7782_v44 = vrot.slane %v13466_v15, 2  ;;  %v7783_v53 = vrot.slane %v13466_v15, 3  ;;  %v7784_v1 = vrot.slane %v13466_v15, 4 }
0x115a   :  { %v7785_v37 = vrot.slane %v13466_v15, 5  ;;  %v7786_v35 = vrot.slane %v13466_v15, 6  ;;  %v7787_v4 = vrot.slane %v13466_v15, 7  ;;  %v7841_v45 = vmul.f32 %v13466_v15, %v15736_v60 }
0x115b   :  { %v7842_v39 = vmul.f32 %v15738_v61, %v7781_v14  ;;  %v7843_v34 = vmul.f32 %v15740_v23, %v7782_v44  ;;  %v7844_v2 = vmul.f32 %v15744_v50, %v7783_v53  ;;  %v7845_v18 = vmul.f32 %v15749_v32, %v7784_v1 }
0x115c   :  { %v7846_v7 = vmul.f32 %v15753_v55, %v7785_v37  ;;  %v7847_v41 = vmul.f32 %v15756_v8, %v7786_v35  ;;  %v7848_v27 = vmul.f32 %v15760_v33, %v7787_v4  ;;  %v11832_v55 = vld [vmem:[%s16805_s26 + $0x2] ss:$0 sm:$0xff] }
0x115d   :  { %v7881_v62 = vrot.slane %v7842_v39, 7  ;;  %v7883_v30 = vrot.slane %v7843_v34, 6  ;;  %v7885_v23 = vrot.slane %v7844_v2, 5  ;;  %v7887_v32 = vrot.slane %v7845_v18, 4 }
0x115e   :  { %v7769_v21 = vpop.xlane.xlu0 %7768  ;;  %v7889_v54 = vrot.slane %v7846_v7, 3  ;;  %v7891_v59 = vrot.slane %v7847_v41, 2  ;;  %v7893_v33 = vrot.slane %v7848_v27, 1  ;;  %v6928_v15 = vadd.f32 %v11832_v55, %v15518_v57 }
0x115f   :  { %13467 = vrcp.f32 %v7769_v21  ;;  %v7882_v61 = vsel %vm2041_vm9, %v7881_v62, %v7841_v45 }
0x1160   :  { %v7766_v19 = vpop.xlane.xlu1 %7765  ;;  %v7884_v50 = vsel %vm2044_vm10, %v7883_v30, %v7882_v61 }
0x1161   :  { %13469 = vrcp.f32 %v7766_v19  ;;  %v7886_v60 = vsel %vm2047_vm11, %v7885_v23, %v7884_v50 }
0x1162   :  { %v5989_v10 = vpop.xlane.xlu0 %5988  ;;  %v7888_v36 = vsel %vm2050_vm12, %v7887_v32, %v7886_v60 }
0x1163   :  { %v5991_v8 = vmul.f32 0.03125, %v5989_v10  ;;  %v7890_v11 = vsel %vm2053_vm13, %v7889_v54, %v7888_v36 }
0x1164   :  { %v7892_v42 = vsel %vm2056_vm14, %v7891_v59, %v7890_v11  ;;  %v7772_v1 = vpop.xlane.xlu1 %7771 }
0x1165   :  { %v15900_v14 = vsub.f32 %v5981_v47, %v5991_v8  ;;  %v7894_v44 = vsel %vm2059_vm15, %v7893_v33, %v7892_v42  ;;  %13471 = vrcp.f32 %v7772_v1 }
0x1166   :  { %12898 = vmatmul.mubr.msk.f32.vlgmr.msra.gmra.mxu0 %vm1601_vm7, %v7894_v44 }
0x1167   :  { %v5995_v53 = vmul.f32 %v15900_v14, %v15900_v14  ;;  %12906 = vmatpush3.msra.mxu0 %v6928_v15  ;;  %12907 = vmatprep.mubr.msk.f32.mxu0 %vm13644_vm5, %v13643_v28 }
0x1168   :  { %12915 = vmatprep.subr.mxu0 %v13643_v28 }
0x1169   :  { %v5999_v37 = vsel %vm669_vm6, %v5995_v53, 0.0 }
0x116a   :  { %6000 = vadd.xlane.f32.xlu1 %v5999_v37 }
0x116c   :  { %v13468_v57 = vpop.eup %13467 }
0x116d   :  { %v7795_v47 = vrot.slane %v13468_v57, 1  ;;  %v7796_v35 = vrot.slane %v13468_v57, 2  ;;  %v7797_v4 = vrot.slane %v13468_v57, 3  ;;  %v7798_v39 = vrot.slane %v13468_v57, 4 }
0x116e   :  { %v13470_v34 = vpop.eup %13469  ;;  %v7799_v2 = vrot.slane %v13468_v57, 5  ;;  %v7800_v18 = vrot.slane %v13468_v57, 6  ;;  %v7801_v45 = vrot.slane %v13468_v57, 7  ;;  %v7857_v41 = vmul.f32 %v13468_v57, %v15769_v46 }
0x116f   :  { %v7858_v7 = vmul.f32 %v15773_v3, %v7795_v47  ;;  %v7859_v62 = vmul.f32 %v15778_v26, %v7796_v35  ;;  %v7860_v30 = vmul.f32 %v15783_v20, %v7797_v4  ;;  %v7861_v21 = vmul.f32 %v15786_v29, %v7798_v39 }
0x1170   :  { %v7862_v27 = vmul.f32 %v15789_v51, %v7799_v2  ;;  %v7863_v61 = vmul.f32 %v15795_v58, %v7800_v18  ;;  %v7864_v23 = vmul.f32 %v15852_v49, %v7801_v45  ;;  %v7788_v60 = vrot.slane %v13470_v34, 1  ;;  %v11833_v18 = vld [vmem:[%s16805_s26 + $0x3] ss:$0 sm:$0xff] }
0x1171   :  { %v8069_v19 = vrot.slane %v7858_v7, 7  ;;  %v8071_v50 = vrot.slane %v7859_v62, 6  ;;  %v8073_v32 = vrot.slane %v7860_v30, 5  ;;  %v8075_v54 = vrot.slane %v7861_v21, 4 }
0x1172   :  { %v8077_v3 = vrot.slane %v7862_v27, 3  ;;  %v8079_v55 = vrot.slane %v7863_v61, 2  ;;  %v7789_v26 = vrot.slane %v13470_v34, 2  ;;  %v7790_v10 = vrot.slane %v13470_v34, 3  ;;  %v13472_v1 = vpop.eup %13471 }
0x1173   :  { %v8070_v20 = vsel %vm2041_vm9, %v8069_v19, %v7857_v41  ;;  %v7791_v29 = vrot.slane %v13470_v34, 4  ;;  %v7792_v36 = vrot.slane %v13470_v34, 5  ;;  %v8081_v51 = vrot.slane %v7864_v23, 1 }
0x1174   :  { %v8072_v46 = vsel %vm2044_vm10, %v8071_v50, %v8070_v20  ;;  %v7793_v59 = vrot.slane %v13470_v34, 6  ;;  %v7794_v58 = vrot.slane %v13470_v34, 7  ;;  %v7850_v8 = vmul.f32 %v15802_v40, %v7788_v60 }
0x1175   :  { %v8074_v49 = vsel %vm2047_vm11, %v8073_v32, %v8072_v46  ;;  %v7851_v11 = vmul.f32 %v15806_v56, %v7789_v26  ;;  %v7852_v33 = vmul.f32 %v15810_v25, %v7790_v10  ;;  %v7849_v15 = vmul.f32 %v13470_v34, %v15798_v24 }
0x1176   :  { %v8076_v42 = vsel %vm2050_vm12, %v8075_v54, %v8074_v49  ;;  %v7853_v44 = vmul.f32 %v15817_v17, %v7791_v29  ;;  %v7854_v53 = vmul.f32 %v15822_v63, %v7792_v36  ;;  %v7855_v57 = vmul.f32 %v15856_v48, %v7793_v59  ;;  %v8250_v49 = vld [vmem:[%s16806_s28 + $0x8] sm:$0xff] }
0x1177   :  { %v8078_v37 = vsel %vm2053_vm13, %v8077_v3, %v8076_v42  ;;  %v7975_v47 = vrot.slane %v7850_v8, 7  ;;  %v7977_v40 = vrot.slane %v7851_v11, 6  ;;  %v7856_v25 = vmul.f32 %v15862_v9, %v7794_v58  ;;  %v8249_v58 = vld [vmem:[%s16806_s28] sm:$0xff]  ;;  %v8251_v42 = vld [vmem:[%s16806_s28 + $0x10] sm:$0xff] }
0x1178   :  { %v8080_v56 = vsel %vm2056_vm14, %v8079_v55, %v8078_v37  ;;  %v7979_v35 = vrot.slane %v7852_v33, 5  ;;  %v7981_v17 = vrot.slane %v7853_v44, 4  ;;  %v7983_v39 = vrot.slane %v7854_v53, 3  ;;  %v8563_v37 = vld [vmem:[%s16798_s12 + $0x18] sm:$0xff] }
0x1179   :  { %v8082_v4 = vsel %vm2059_vm15, %v8081_v51, %v8080_v56  ;;  %v7976_v24 = vsel %vm2041_vm9, %v7975_v47, %v7849_v15  ;;  %v7802_v34 = vrot.slane %v13472_v1, 1  ;;  %v7803_v2 = vrot.slane %v13472_v1, 2  ;;  %v8562_v47 = vld [vmem:[%s16798_s12 + $0x10] sm:$0xff]  ;;  %v13567_v56 = vld [vmem:[%s16799_s20] ss:$0 sm:$0xff] }
0x117a   :  { %12908 = vmatmul.mubr.msk.f32.vlgmr.msra.gmra.mxu0 %vm1601_vm7, %v8082_v4  ;;  %v7978_v63 = vsel %vm2044_vm10, %v7977_v40, %v7976_v24  ;;  %v7804_v48 = vrot.slane %v13472_v1, 3  ;;  %v7985_v7 = vrot.slane %v7855_v57, 2  ;;  %v7805_v62 = vrot.slane %v13472_v1, 4  ;;  %v8252_v4 = vld [vmem:[%s16806_s28 + $0x18] sm:$0xff] }
0x117b   :  { %v7980_v45 = vsel %vm2047_vm11, %v7979_v35, %v7978_v63  ;;  %v7806_v9 = vrot.slane %v13472_v1, 5  ;;  %12917 = vmatprep.mubr.msk.f32.mxu0 %vm13644_vm5, %v13643_v28  ;;  %v7987_v21 = vrot.slane %v7856_v25, 1  ;;  %v7807_v41 = vrot.slane %v13472_v1, 6  ;;  %12916 = vmatpush3.msra.mxu0 %v8249_v58  ;;  %v8561_v35 = vld [vmem:[%s16798_s12 + $0x8] sm:$0xff]  ;;  %v8571_v63 = vld [vmem:[%s16798_s12 + $0x58] sm:$0xff] }
0x117c   :  { %v7982_v30 = vsel %vm2050_vm12, %v7981_v17, %v7980_v45  ;;  %v7866_v27 = vmul.f32 %v15828_v12, %v7802_v34  ;;  %v7808_v23 = vrot.slane %v13472_v1, 7  ;;  %v7867_v19 = vmul.f32 %v15832_v0, %v7803_v2  ;;  %12925 = vmatprep.subr.mxu0 %v13643_v28  ;;  %v13568_v17 = vld [vmem:[%s16800_s15] ss:$0 sm:$0xff]  ;;  %v8570_v2 = vld [vmem:[%s16798_s12 + $0x50] sm:$0xff]  ;;  %v8567_v45 = vld [vmem:[%s16798_s12 + $0x38] sm:$0xff] }
0x117d   :  { %v7984_v61 = vsel %vm2053_vm13, %v7983_v39, %v7982_v30  ;;  %v7868_v50 = vmul.f32 %v15836_v13, %v7804_v48  ;;  %v6998_v32 = vadd.f32 %v11833_v18, %v15527_v22  ;;  %v7865_v54 = vmul.f32 %v13472_v1, %v15825_v38  ;;  %v8569_v48 = vld [vmem:[%s16798_s12 + $0x48] sm:$0xff]  ;;  %v8568_v18 = vld [vmem:[%s16798_s12 + $0x40] sm:$0xff]  ;;  %v8566_v30 = vld [vmem:[%s16798_s12 + $0x30] sm:$0xff] }
0x117e   :  { %v7986_v60 = vsel %vm2056_vm14, %v7985_v7, %v7984_v61  ;;  %v7869_v3 = vmul.f32 %v15840_v6, %v7805_v62  ;;  %v7870_v26 = vmul.f32 %v15847_v31, %v7806_v9  ;;  %v8163_v12 = vrot.slane %v7866_v27, 7  ;;  %v8890_v62 = vld [vmem:[%s16801_s16 + $0x18] sm:$0xff]  ;;  %v8888_v27 = vld [vmem:[%s16801_s16 + $0x8] sm:$0xff]  ;;  %v8564_v61 = vld [vmem:[%s16798_s12 + $0x20] sm:$0xff] }
0x117f   :  { %v7988_v55 = vsel %vm2059_vm15, %v7987_v21, %v7986_v60  ;;  %v8165_v20 = vrot.slane %v7867_v19, 6  ;;  %v7871_v0 = vmul.f32 %v15865_v5, %v7807_v41  ;;  %v7872_v22 = vmul.f32 %v15870_v43, %v7808_v23  ;;  %v8889_v21 = vld [vmem:[%s16801_s16 + $0x10] sm:$0xff]  ;;  %v8565_v41 = vld [vmem:[%s16798_s12 + $0x28] sm:$0xff]  ;;  %v8887_v23 = vld [vmem:[%s16801_s16] sm:$0xff] }
0x1180   :  { %12903 = vmatmul.mubr.msk.f32.vlgmr.msra.gmra.mxu1 %vm1601_vm7, %v7988_v55  ;;  %v8164_v38 = vsel %vm2041_vm9, %v8163_v12, %v7865_v54  ;;  %v8167_v13 = vrot.slane %v7868_v50, 5  ;;  %v8169_v31 = vrot.slane %v7869_v3, 4  ;;  %v8171_v29 = vrot.slane %v7870_v26, 3  ;;  %v8575_v19 = vld [vmem:[%s16798_s12 + $0x78] sm:$0xff]  ;;  %v8897_v60 = vld [vmem:[%s16801_s16 + $0x50] sm:$0xff]  ;;  %v8573_v54 = vld [vmem:[%s16798_s12 + $0x68] sm:$0xff] }
0x1181   :  { %12911 = vmatpush3.msra.mxu1 %v6998_v32  ;;  %12912 = vmatprep.mubr.msk.f32.mxu1 %vm13644_vm5, %v13643_v28  ;;  %v8166_v6 = vsel %vm2044_vm10, %v8165_v20, %v8164_v38  ;;  %v8173_v36 = vrot.slane %v7871_v0, 2  ;;  %v8175_v43 = vrot.slane %v7872_v22, 1  ;;  %v8898_v50 = vld [vmem:[%s16801_s16 + $0x58] sm:$0xff]  ;;  %v8574_v32 = vld [vmem:[%s16798_s12 + $0x70] sm:$0xff]  ;;  %v8896_v3 = vld [vmem:[%s16801_s16 + $0x48] sm:$0xff] }
0x1182   :  { %12920 = vmatprep.subr.mxu1 %v13643_v28  ;;  %v8168_v10 = vsel %vm2047_vm11, %v8167_v13, %v8166_v6  ;;  %v8572_v55 = vld [vmem:[%s16798_s12 + $0x60] sm:$0xff]  ;;  %v8894_v12 = vld [vmem:[%s16801_s16 + $0x38] sm:$0xff]  ;;  %v8893_v0 = vld [vmem:[%s16801_s16 + $0x30] sm:$0xff] }
0x1183   :  { %v8170_v5 = vsel %vm2050_vm12, %v8169_v31, %v8168_v10  ;;  %v8895_v26 = vld [vmem:[%s16801_s16 + $0x40] sm:$0xff]  ;;  %v9214_v20 = vld [vmem:[%s16802_s18 + $0x18] sm:$0xff]  ;;  %v9213_v22 = vld [vmem:[%s16802_s18 + $0x10] sm:$0xff] }
0x1184   :  { %v8172_v46 = vsel %vm2053_vm13, %v8171_v29, %v8170_v5  ;;  %v8892_v38 = vld [vmem:[%s16801_s16 + $0x28] sm:$0xff]  ;;  %v8891_v6 = vld [vmem:[%s16801_s16 + $0x20] sm:$0xff]  ;;  %v8902_v10 = vld [vmem:[%s16801_s16 + $0x78] sm:$0xff] }
0x1185   :  { %v8174_v51 = vsel %vm2056_vm14, %v8173_v36, %v8172_v46  ;;  %v9212_v13 = vld [vmem:[%s16802_s18 + $0x8] sm:$0xff]  ;;  %v9211_v31 = vld [vmem:[%s16802_s18] sm:$0xff]  ;;  %v9222_v29 = vld [vmem:[%s16802_s18 + $0x58] sm:$0xff] }
0x1186   :  { %v8176_v59 = vsel %vm2059_vm15, %v8175_v43, %v8174_v51  ;;  %v8901_v5 = vld [vmem:[%s16801_s16 + $0x70] sm:$0xff]  ;;  %v8900_v46 = vld [vmem:[%s16801_s16 + $0x68] sm:$0xff]  ;;  %v8899_v51 = vld [vmem:[%s16801_s16 + $0x60] sm:$0xff] }
0x1187   :  { %12913 = vmatmul.mubr.msk.f32.vlgmr.msra.gmra.mxu1 %vm1601_vm7, %v8176_v59  ;;  %v9221_v36 = vld [vmem:[%s16802_s18 + $0x50] sm:$0xff]  ;;  %v9220_v43 = vld [vmem:[%s16802_s18 + $0x48] sm:$0xff]  ;;  %v9219_v59 = vld [vmem:[%s16802_s18 + $0x40] sm:$0xff] }
0x1188   :  { %12922 = vmatprep.mubr.msk.f32.mxu1 %vm13644_vm5, %v13643_v28  ;;  %12921 = vmatpush3.msra.mxu1 %v8250_v49  ;;  %v9218_v58 = vld [vmem:[%s16802_s18 + $0x38] sm:$0xff]  ;;  %v9217_v49 = vld [vmem:[%s16802_s18 + $0x30] sm:$0xff] }
0x1189   :  { %12930 = vmatprep.subr.mxu1 %v13643_v28 }
0x11f3   :  { %v6001_v8 = vpop.xlane.xlu1 %6000 }
0x11f4   :  { %v6003_v11 = vmul.f32 0.03125, %v6001_v8  ;;  %v9216_v8 = vld [vmem:[%s16802_s18 + $0x28] sm:$0xff] }
0x11f6   :  { %v6005_v33 = vadd.f32 1e-05, %v6003_v11  ;;  %v9215_v11 = vld [vmem:[%s16802_s18 + $0x20] sm:$0xff] }
0x11f8   :  { %13473 = vrsqrt.f32 %v6005_v33  ;;  %v9226_v33 = vld [vmem:[%s16802_s18 + $0x78] sm:$0xff] }
0x1205   :  { %v13474_v53 = vpop.eup %13473 }
0x1206   :  { %v6009_v1 = vmul.f32 %v13474_v53, %v15900_v14  ;;  %v8560_v14 = vld [vmem:[%s16798_s12] sm:$0xff] }
0x1208   :  { %v6017_v25 = vmul.f32 %v13567_v56, %v6009_v1 }
0x120a   :  { %v15989_v39 = vadd.f32 %v13568_v17, %v6017_v25 }
0x1226   :  { %v7963_v15 = vpop.f32.mrf.mxu0 }
0x1227   :  { %12918 = vmatmul.mubr.msk.f32.vlgmr.msra.gmra.mxu0 %vm1601_vm7, %v7963_v15  ;;  %v9224_v15 = vld [vmem:[%s16802_s18 + $0x68] sm:$0xff] }
0x1228   :  { %v12899_v44 = vpop.f32.mrf.mxu0  ;;  %12926 = vmatpush3.msra.mxu0 %v8251_v42  ;;  %12927 = vmatprep.mubr.msk.f32.mxu0 %vm13644_vm5, %v13643_v28  ;;  %v9225_v42 = vld [vmem:[%s16802_s18 + $0x70] sm:$0xff] }
0x1229   :  { %12935 = vmatprep.subr.mxu0 %v13643_v28  ;;  %v9223_v44 = vld [vmem:[%s16802_s18 + $0x60] sm:$0xff] }
0x123a   :  { %v8151_v57 = vpop.f32.mrf.mxu0 }
0x123b   :  { %12928 = vmatmul.mubr.msk.f32.vlgmr.msra.gmra.mxu0 %vm1601_vm7, %v8151_v57 }
0x123c   :  { %12936 = vmatpush3.msra.mxu0 %v8563_v37  ;;  %v12909_v40 = vpop.f32.mrf.mxu0  ;;  %12943 = vmatprep.mubr.msk.f32.mxu0 %vm13644_vm5, %v13643_v28 }
0x123d   :  { %12937 = vmatprep.subr.mxu0 %v13643_v28 }
0x123e   :  { %12938 = vmatpush3.msra.mxu0 %v8562_v47 }
0x123f   :  { %12939 = vmatprep.subr.mxu0 %v13643_v28 }
0x1240   :  { %12940 = vmatpush3.msra.mxu0 %v8561_v35  ;;  %v8057_v24 = vpop.f32.mrf.mxu1 }
0x1241   :  { %12941 = vmatprep.subr.mxu0 %v13643_v28  ;;  %12923 = vmatmul.mubr.msk.f32.vlgmr.msra.gmra.mxu1 %vm1601_vm7, %v8057_v24 }
0x1242   :  { %12942 = vmatpush3.msra.mxu0 %v8560_v14  ;;  %v12904_v34 = vpop.f32.mrf.mxu1  ;;  %12931 = vmatpush3.msra.mxu1 %v8252_v4 }
0x1243   :  { %12944 = vmatmul.mubr.msk.f32.vlgmr.msra.gmra.mxu0 %vm669_vm6, %v15989_v39  ;;  %12957 = vmatprep.subr.mxu0 %v13643_v28 }
0x1244   :  { %12958 = vmatpush3.msra.mxu0 %v8571_v63  ;;  %12965 = vmatprep.mubr.msk.f32.mxu0 %vm13644_vm5, %v13643_v28 }
0x1245   :  { %12959 = vmatprep.subr.mxu0 %v13643_v28  ;;  %12932 = vmatprep.mubr.msk.f32.mxu1 %vm13644_vm5, %v13643_v28 }
0x1246   :  { %12960 = vmatpush3.msra.mxu0 %v8570_v2  ;;  %12946 = vmatprep.subr.mxu1 %v13643_v28 }
0x1247   :  { %12961 = vmatprep.subr.mxu0 %v13643_v28  ;;  %v8245_v7 = vpop.f32.mrf.mxu1 }
0x1248   :  { %12962 = vmatpush3.msra.mxu0 %v8569_v48  ;;  %12933 = vmatmul.mubr.msk.f32.vlgmr.msra.gmra.mxu1 %vm1601_vm7, %v8245_v7  ;;  %v11863_v7 = vld [vmem:[%s16803_s22] ss:$0 sm:$0xff] }
0x1249   :  { %12963 = vmatprep.subr.mxu0 %v13643_v28  ;;  %12947 = vmatpush3.msra.mxu1 %v8567_v45  ;;  %v12914_v9 = vpop.f32.mrf.mxu1 }
0x124a   :  { %12964 = vmatpush3.msra.mxu0 %v8568_v18  ;;  %12948 = vmatprep.subr.mxu1 %v13643_v28 }
0x124b   :  { %12966 = vmatmul.mubr.msk.f32.vlgmr.msra.gmra.mxu0 %vm669_vm6, %v15989_v39  ;;  %12979 = vmatprep.subr.mxu0 %v13643_v28 }
0x124c   :  { %12980 = vmatpush3.msra.mxu0 %v8890_v62  ;;  %12949 = vmatpush3.msra.mxu1 %v8566_v30  ;;  %v11855_v30 = vld [vmem:[%s16804_s23] ss:$0 sm:$0xff] }
0x124d   :  { %12981 = vmatprep.subr.mxu0 %v13643_v28  ;;  %12950 = vmatprep.subr.mxu1 %v13643_v28 }
0x124e   :  { %12982 = vmatpush3.msra.mxu0 %v8889_v21  ;;  %12951 = vmatpush3.msra.mxu1 %v8565_v41 }
0x124f   :  { %12983 = vmatprep.subr.mxu0 %v13643_v28  ;;  %12952 = vmatprep.subr.mxu1 %v13643_v28 }
0x1250   :  { %12984 = vmatpush3.msra.mxu0 %v8888_v27  ;;  %12953 = vmatpush3.msra.mxu1 %v8564_v61 }
0x1251   :  { %12985 = vmatprep.subr.mxu0 %v13643_v28  ;;  %12954 = vmatprep.mubr.msk.f32.mxu1 %vm13644_vm5, %v13643_v28 }
0x1252   :  { %12986 = vmatpush3.msra.mxu0 %v8887_v23  ;;  %12987 = vmatprep.mubr.msk.f32.mxu0 %vm13644_vm5, %v13643_v28  ;;  %v11865_v23 = vld [vmem:[%s16803_s22 + $0x2] ss:$0 sm:$0xff] }
0x1253   :  { %12955 = vmatmul.mubr.msk.f32.vlgmr.msra.gmra.mxu1 %vm669_vm6, %v15989_v39  ;;  %12968 = vmatprep.subr.mxu1 %v13643_v28 }
0x1254   :  { %12988 = vmatmul.mubr.msk.f32.vlgmr.msra.gmra.mxu0 %vm669_vm6, %v15989_v39  ;;  %13001 = vmatprep.subr.mxu0 %v13643_v28 }
0x1255   :  { %12969 = vmatpush3.msra.mxu1 %v8575_v19  ;;  %13002 = vmatpush3.msra.mxu0 %v8898_v50 }
0x1256   :  { %12970 = vmatprep.subr.mxu1 %v13643_v28  ;;  %13003 = vmatprep.subr.mxu0 %v13643_v28 }
0x1257   :  { %12971 = vmatpush3.msra.mxu1 %v8574_v32  ;;  %13004 = vmatpush3.msra.mxu0 %v8897_v60  ;;  %v11857_v32 = vld [vmem:[%s16804_s23 + $0x2] ss:$0 sm:$0xff] }
0x1258   :  { %12972 = vmatprep.subr.mxu1 %v13643_v28  ;;  %13005 = vmatprep.subr.mxu0 %v13643_v28 }
0x1259   :  { %12973 = vmatpush3.msra.mxu1 %v8573_v54  ;;  %13006 = vmatpush3.msra.mxu0 %v8896_v3 }
0x125a   :  { %12974 = vmatprep.subr.mxu1 %v13643_v28  ;;  %13007 = vmatprep.subr.mxu0 %v13643_v28 }
0x125b   :  { %12975 = vmatpush3.msra.mxu1 %v8572_v55  ;;  %12976 = vmatprep.mubr.msk.f32.mxu1 %vm13644_vm5, %v13643_v28 }
0x125c   :  { %13008 = vmatpush3.msra.mxu0 %v8895_v26  ;;  %13009 = vmatprep.mubr.msk.f32.mxu0 %vm13644_vm5, %v13643_v28  ;;  %v11864_v26 = vld [vmem:[%s16803_s22 + $0x1] ss:$0 sm:$0xff] }
0x125d   :  { %12977 = vmatmul.mubr.msk.f32.vlgmr.msra.gmra.mxu1 %vm669_vm6, %v15989_v39  ;;  %12990 = vmatprep.subr.mxu1 %v13643_v28 }
0x125e   :  { %13010 = vmatmul.mubr.msk.f32.vlgmr.msra.gmra.mxu0 %vm669_vm6, %v15989_v39  ;;  %13023 = vmatprep.subr.mxu0 %v13643_v28 }
0x125f   :  { %12991 = vmatpush3.msra.mxu1 %v8894_v12  ;;  %13024 = vmatpush3.msra.mxu0 %v9214_v20  ;;  %v11871_v12 = vld [vmem:[%s16805_s26] ss:$0 sm:$0xff] }
0x1260   :  { %12992 = vmatprep.subr.mxu1 %v13643_v28  ;;  %13025 = vmatprep.subr.mxu0 %v13643_v28 }
0x1261   :  { %12993 = vmatpush3.msra.mxu1 %v8893_v0  ;;  %13026 = vmatpush3.msra.mxu0 %v9213_v22  ;;  %v11856_v0 = vld [vmem:[%s16804_s23 + $0x1] ss:$0 sm:$0xff] }
0x1262   :  { %12994 = vmatprep.subr.mxu1 %v13643_v28  ;;  %13027 = vmatprep.subr.mxu0 %v13643_v28 }
0x1263   :  { %12995 = vmatpush3.msra.mxu1 %v8892_v38  ;;  %13028 = vmatpush3.msra.mxu0 %v9212_v13 }
0x1264   :  { %12996 = vmatprep.subr.mxu1 %v13643_v28  ;;  %13029 = vmatprep.subr.mxu0 %v13643_v28 }
0x1265   :  { %12997 = vmatpush3.msra.mxu1 %v8891_v6  ;;  %12998 = vmatprep.mubr.msk.f32.mxu1 %vm13644_vm5, %v13643_v28 }
0x1266   :  { %13030 = vmatpush3.msra.mxu0 %v9211_v31  ;;  %13031 = vmatprep.mubr.msk.f32.mxu0 %vm13644_vm5, %v13643_v28 }
0x1267   :  { %12999 = vmatmul.mubr.msk.f32.vlgmr.msra.gmra.mxu1 %vm669_vm6, %v15989_v39  ;;  %13012 = vmatprep.subr.mxu1 %v13643_v28 }
0x1268   :  { %13032 = vmatmul.mubr.msk.f32.vlgmr.msra.gmra.mxu0 %vm669_vm6, %v15989_v39  ;;  %13045 = vmatprep.subr.mxu0 %v13643_v28 }
0x1269   :  { %13013 = vmatpush3.msra.mxu1 %v8902_v10  ;;  %13046 = vmatpush3.msra.mxu0 %v9222_v29  ;;  %v11866_v29 = vld [vmem:[%s16803_s22 + $0x3] ss:$0 sm:$0xff] }
0x126a   :  { %13014 = vmatprep.subr.mxu1 %v13643_v28  ;;  %13047 = vmatprep.subr.mxu0 %v13643_v28 }
0x126b   :  { %13015 = vmatpush3.msra.mxu1 %v8901_v5  ;;  %13048 = vmatpush3.msra.mxu0 %v9221_v36  ;;  %v11858_v36 = vld [vmem:[%s16804_s23 + $0x3] ss:$0 sm:$0xff] }
0x126c   :  { %13016 = vmatprep.subr.mxu1 %v13643_v28  ;;  %13049 = vmatprep.subr.mxu0 %v13643_v28 }
0x126d   :  { %13017 = vmatpush3.msra.mxu1 %v8900_v46  ;;  %13050 = vmatpush3.msra.mxu0 %v9220_v43 }
0x126e   :  { %13018 = vmatprep.subr.mxu1 %v13643_v28  ;;  %13051 = vmatprep.subr.mxu0 %v13643_v28 }
0x126f   :  { %13019 = vmatpush3.msra.mxu1 %v8899_v51  ;;  %13020 = vmatprep.mubr.msk.f32.mxu1 %vm13644_vm5, %v13643_v28 }
0x1270   :  { %13052 = vmatpush3.msra.mxu0 %v9219_v59  ;;  %13053 = vmatprep.mubr.msk.f32.mxu0 %vm13644_vm5, %v13643_v28 }
0x1271   :  { %13021 = vmatmul.mubr.msk.f32.vlgmr.msra.gmra.mxu1 %vm669_vm6, %v15989_v39  ;;  %13034 = vmatprep.subr.mxu1 %v13643_v28 }
0x1272   :  { %13054 = vmatmul.mubr.msk.f32.vlgmr.msra.gmra.mxu0 %vm669_vm6, %v15989_v39  ;;  %13035 = vmatpush3.msra.mxu1 %v9218_v58 }
0x1273   :  { %13042 = vmatprep.mubr.msk.f32.mxu1 %vm13644_vm5, %v13643_v28  ;;  %13036 = vmatprep.subr.mxu1 %v13643_v28 }
0x1274   :  { %13067 = vmatprep.subr.mxu0 %v13643_v28  ;;  %13037 = vmatpush3.msra.mxu1 %v9217_v49  ;;  %v11872_v49 = vld [vmem:[%s16805_s26 + $0x1] ss:$0 sm:$0xff] }
0x1275   :  { %13069 = vmatprep.mubr.msk.f32.mxu0 %vm13644_vm5, %v13643_v28  ;;  %13038 = vmatprep.subr.mxu1 %v13643_v28 }
0x1276   :  { %13039 = vmatpush3.msra.mxu1 %v9216_v8 }
0x1277   :  { %13040 = vmatprep.subr.mxu1 %v13643_v28 }
0x1278   :  { %13041 = vmatpush3.msra.mxu1 %v9215_v11 }
0x1279   :  { %13043 = vmatmul.mubr.msk.f32.vlgmr.msra.gmra.mxu1 %vm669_vm6, %v15989_v39  ;;  %13056 = vmatprep.subr.mxu1 %v13643_v28 }
0x127a   :  { %13057 = vmatpush3.msra.mxu1 %v9226_v33  ;;  %13064 = vmatprep.mubr.msk.f32.mxu1 %vm13644_vm5, %v13643_v28 }
0x127b   :  { %13058 = vmatprep.subr.mxu1 %v13643_v28 }
0x127c   :  { %13059 = vmatpush3.msra.mxu1 %v9225_v42 }
0x127d   :  { %13060 = vmatprep.subr.mxu1 %v13643_v28 }
0x127e   :  { %13061 = vmatpush3.msra.mxu1 %v9224_v15 }
0x127f   :  { %13062 = vmatprep.subr.mxu1 %v13643_v28 }
0x1280   :  { %13063 = vmatpush3.msra.mxu1 %v9223_v44 }
0x1281   :  { %13065 = vmatmul.mubr.msk.f32.vlgmr.msra.gmra.mxu1 %vm669_vm6, %v15989_v39  ;;  %13072 = vmatprep.subr.mxu1 %v13643_v28 }
0x1282   :  { %13074 = vmatprep.mubr.msk.f32.mxu1 %vm13644_vm5, %v13643_v28 }
0x12e7   :  { %v8322_v53 = vpop.f32.mrf.mxu0 }
0x12e8   :  { %v8545_v40 = vsel %vm669_vm6, %v8322_v53, 0.0 }
0x12e9   :  { %v12919_v1 = vpop.f32.mrf.mxu0 }
0x12fb   :  { %v8468_v37 = vpop.f32.mrf.mxu0 }
0x12fc   :  { %v8548_v4 = vsel %vm669_vm6, %v8468_v37, 0.0 }
0x12fd   :  { %v12929_v57 = vpop.f32.mrf.mxu0 }
0x1301   :  { %v8395_v47 = vpop.f32.mrf.mxu1 }
0x1302   :  { %v8546_v56 = vsel %vm669_vm6, %v8395_v47, 0.0 }
0x1303   :  { %v8673_v25 = vpop.f32.mrf.mxu0  ;;  %v8547_v35 = vadd.f32 %v8546_v56, %v8545_v40  ;;  %v12924_v14 = vpop.f32.mrf.mxu1 }
0x1304   :  { %v8674_v61 = vadd.f32 %v11855_v30, %v8673_v25 }
0x1305   :  { %v12945_v24 = vpop.f32.mrf.mxu0  ;;  %v8549_v17 = vadd.f32 %v8548_v4, %v8547_v35 }
0x1308   :  { %v8541_v63 = vpop.f32.mrf.mxu1 }
0x1309   :  { %v8550_v34 = vsel %vm669_vm6, %v8541_v63, 0.0 }
0x130a   :  { %v16140_v48 = vadd.f32 %v8550_v34, %v8549_v17  ;;  %v12934_v18 = vpop.f32.mrf.mxu1 }
0x130b   :  { %v8813_v2 = vpop.f32.mrf.mxu0 }
0x130c   :  { %v8814_v55 = vadd.f32 %v11857_v32, %v8813_v2 }
0x130d   :  { %v12967_v45 = vpop.f32.mrf.mxu0 }
0x1313   :  { %v8743_v62 = vpop.f32.mrf.mxu1 }
0x1314   :  { %v8997_v9 = vpop.f32.mrf.mxu0  ;;  %v8744_v10 = vadd.f32 %v11856_v0, %v8743_v62 }
0x1315   :  { %v8998_v21 = vadd.f32 %v11863_v7, %v8997_v9  ;;  %v12956_v41 = vpop.f32.mrf.mxu1 }
0x1316   :  { %v12989_v27 = vpop.f32.mrf.mxu0 }
0x1317   :  { %13068 = vmatpush3.xpose.msk.msra.mxu0 %vm1601_vm7, %v8998_v21 }
0x1318   :  { %13077 = vmatprep.subr.mxu0 %v13643_v28 }
0x131a   :  { %13070 = vmatmul.mubr.msk.f32.vlgmr.msra.gmra.mxu0 %vm1601_vm7, %v8674_v61 }
0x131b   :  { %13079 = vmatprep.mubr.msk.f32.mxu0 %vm13644_vm5, %v13643_v28 }
0x131d   :  { %v8883_v19 = vpop.f32.mrf.mxu1 }
0x131e   :  { %v9137_v50 = vpop.f32.mrf.mxu0  ;;  %v8884_v58 = vadd.f32 %v11858_v36, %v8883_v19 }
0x131f   :  { %v9138_v60 = vadd.f32 %v11865_v23, %v9137_v50  ;;  %v12978_v54 = vpop.f32.mrf.mxu1 }
0x1320   :  { %v13011_v3 = vpop.f32.mrf.mxu0 }
0x1321   :  { %13078 = vmatpush3.xpose.msk.msra.mxu0 %vm1601_vm7, %v9138_v60 }
0x1322   :  { %13087 = vmatprep.subr.mxu0 %v13643_v28 }
0x1324   :  { %13080 = vmatmul.mubr.msk.f32.vlgmr.msra.gmra.mxu0 %vm1601_vm7, %v8814_v55 }
0x1325   :  { %13089 = vmatprep.mubr.msk.f32.mxu0 %vm13644_vm5, %v13643_v28 }
0x1327   :  { %v9067_v20 = vpop.f32.mrf.mxu1 }
0x1328   :  { %v9068_v22 = vadd.f32 %v11864_v26, %v9067_v20  ;;  %v9321_v38 = vpop.f32.mrf.mxu0 }
0x1329   :  { %v9322_v13 = vadd.f32 %v11871_v12, %v9321_v38  ;;  %v13000_v6 = vpop.f32.mrf.mxu1 }
0x132a   :  { %v13033_v31 = vpop.f32.mrf.mxu0  ;;  %13073 = vmatpush3.xpose.msk.msra.mxu1 %vm1601_vm7, %v9068_v22 }
0x132b   :  { %13088 = vmatpush3.msra.mxu0 %v9322_v13  ;;  %13082 = vmatprep.subr.mxu1 %v13643_v28 }
0x132c   :  { %13097 = vmatprep.subr.mxu0 %v13643_v28 }
0x132d   :  { %13075 = vmatmul.mubr.msk.f32.vlgmr.msra.gmra.mxu1 %vm1601_vm7, %v8744_v10 }
0x132e   :  { %13084 = vmatprep.mubr.msk.f32.mxu1 %vm13644_vm5, %v13643_v28 }
0x1331   :  { %v9207_v5 = vpop.f32.mrf.mxu1 }
0x1332   :  { %v9208_v46 = vadd.f32 %v11866_v29, %v9207_v5  ;;  %v16167_v43 = vpop.f32.mrf.mxu0 }
0x1333   :  { %v13022_v51 = vpop.f32.mrf.mxu1 }
0x1334   :  { %v13055_v59 = vpop.f32.mrf.mxu0  ;;  %13083 = vmatpush3.xpose.msk.msra.mxu1 %vm1601_vm7, %v9208_v46 }
0x1335   :  { %13092 = vmatprep.subr.mxu1 %v13643_v28 }
0x1337   :  { %13085 = vmatmul.mubr.msk.f32.vlgmr.msra.gmra.mxu1 %vm1601_vm7, %v8884_v58 }
0x1338   :  { %13094 = vmatprep.mubr.msk.f32.mxu1 %vm13644_vm5, %v13643_v28 }
0x1339   :  { %v9391_v8 = vpop.f32.mrf.mxu1 }
0x133a   :  { %v9392_v11 = vadd.f32 %v11872_v49, %v9391_v8 }
0x133b   :  { %v13044_v33 = vpop.f32.mrf.mxu1 }
0x133c   :  { %13093 = vmatpush3.msra.mxu1 %v9392_v11 }
0x133d   :  { %13102 = vmatprep.subr.mxu1 %v13643_v28 }
0x1341   :  { %v16176_v42 = vpop.f32.mrf.mxu1 }
0x1343   :  { %v13066_v15 = vpop.f32.mrf.mxu1 }
0x13da   :  { %v9607_v44 = vpop.f32.mrf.mxu0 }
0x13db   :  { %v9839_v53 = vmul.f32 0.35355338, %v9607_v44 }
0x13dc   :  { %v13071_v1 = vpop.f32.mrf.mxu0 }
0x13dd   :  { %v9847_v37 = vrot.slane %v9839_v53, 7  ;;  %v9848_v57 = vrot.slane %v9839_v53, 1  ;;  %v9849_v47 = vrot.slane %v9839_v53, 2  ;;  %v9850_v40 = vrot.slane %v9839_v53, 3 }
0x13de   :  { %v9851_v56 = vrot.slane %v9839_v53, 4  ;;  %v16180_v25 = vsel %vm216_vm8, %v9839_v53, -1e+30  ;;  %v9852_v35 = vrot.slane %v9839_v53, 5  ;;  %v9853_v50 = vrot.slane %v9839_v53, 6 }
0x13df   :  { %v16184_v14 = vsel %vm216_vm8, %v9848_v57, -1e+30  ;;  %v16188_v4 = vsel %vm216_vm8, %v9849_v47, -1e+30  ;;  %v16192_v24 = vsel %vm216_vm8, %v9847_v37, -1e+30 }
0x13e0   :  { %v16196_v17 = vsel %vm216_vm8, %v9850_v40, -1e+30  ;;  %v9971_v63 = vrot.slane %v16180_v25, 7  ;;  %v9973_v34 = vrot.slane %v16184_v14, 6  ;;  %v9975_v2 = vrot.slane %v16188_v4, 5 }
0x13e1   :  { %v16203_v18 = vsel %vm216_vm8, %v9851_v56, -1e+30  ;;  %v16207_v45 = vsel %vm216_vm8, %v9852_v35, -1e+30  ;;  %v9977_v30 = vrot.slane %v16196_v17, 4 }
0x13e2   :  { %v9972_v7 = vsel %vm2044_vm10, %v9971_v63, %v16192_v24  ;;  %v9979_v27 = vrot.slane %v16203_v18, 3  ;;  %v9981_v19 = vrot.slane %v16207_v45, 2  ;;  %v16244_v5 = vsel %vm216_vm8, %v9853_v50, -1e+30 }
0x13e3   :  { %v9974_v9 = vsel %vm2047_vm11, %v9973_v34, %v9972_v7  ;;  %v9983_v33 = vrot.slane %v16244_v5, 1 }
0x13e4   :  { %v9759_v62 = vpop.f32.mrf.mxu0  ;;  %v9976_v41 = vsel %vm2050_vm12, %v9975_v2, %v9974_v9 }
0x13e5   :  { %v9841_v21 = vmul.f32 0.35355338, %v9759_v62  ;;  %v9978_v23 = vsel %vm2053_vm13, %v9977_v30, %v9976_v41 }
0x13e6   :  { %v13081_v61 = vpop.f32.mrf.mxu0  ;;  %v9980_v32 = vsel %vm2056_vm14, %v9979_v27, %v9978_v23 }
0x13e7   :  { %v9861_v60 = vrot.slane %v9841_v21, 7  ;;  %v9862_v54 = vrot.slane %v9841_v21, 1  ;;  %v9863_v3 = vrot.slane %v9841_v21, 2  ;;  %v9982_v55 = vsel %vm2059_vm15, %v9981_v19, %v9980_v32 }
0x13e8   :  { %v9864_v26 = vrot.slane %v9841_v21, 3  ;;  %v9865_v12 = vrot.slane %v9841_v21, 4  ;;  %v9866_v20 = vrot.slane %v9841_v21, 5  ;;  %v10031_v0 = vsel %vm4641_vm0, %v9982_v55, -inf }
0x13e9   :  { %v16222_v22 = vsel %vm216_vm8, %v9841_v21, -1e+30  ;;  %10032 = vmax.xlane.f32.xlu0 %v10031_v0  ;;  %v16226_v38 = vsel %vm216_vm8, %v9861_v60, -1e+30  ;;  %v16230_v13 = vsel %vm216_vm8, %v9862_v54, -1e+30 }
0x13ea   :  { %v16234_v6 = vsel %vm216_vm8, %v9863_v3, -1e+30  ;;  %v16238_v31 = vsel %vm216_vm8, %v9864_v26, -1e+30  ;;  %v9997_v10 = vrot.slane %v16222_v22, 7  ;;  %v9999_v29 = vrot.slane %v16230_v13, 6 }
0x13eb   :  { %v16248_v36 = vsel %vm216_vm8, %v9865_v12, -1e+30  ;;  %v16252_v46 = vsel %vm216_vm8, %v9866_v20, -1e+30  ;;  %v10001_v51 = vrot.slane %v16234_v6, 5  ;;  %v10003_v11 = vrot.slane %v16238_v31, 4 }
0x13ec   :  { %v9998_v58 = vsel %vm2044_vm10, %v9997_v10, %v16226_v38  ;;  %v10005_v53 = vrot.slane %v16248_v36, 3  ;;  %v10007_v1 = vrot.slane %v16252_v46, 2  ;;  %v9867_v37 = vrot.slane %v9841_v21, 6 }
0x13ed   :  { %v9683_v59 = vpop.f32.mrf.mxu1  ;;  %v10000_v8 = vsel %vm2047_vm11, %v9999_v29, %v9998_v58  ;;  %v10034_v12 = vsel %vm4645_vm1, %v9983_v33, -inf }
0x13ee   :  { %v16257_v49 = vmul.f32 0.35355338, %v9683_v59  ;;  %v10002_v44 = vsel %vm2050_vm12, %v10001_v51, %v10000_v8  ;;  %v16305_v32 = vsel %vm216_vm8, %v9867_v37, -1e+30 }
0x13ef   :  { %v13076_v15 = vpop.f32.mrf.mxu1  ;;  %v10004_v57 = vsel %vm2053_vm13, %v10003_v11, %v10002_v44  ;;  %v10009_v10 = vrot.slane %v16305_v32, 1 }
0x13f0   :  { %v9854_v47 = vrot.slane %v16257_v49, 7  ;;  %v9855_v40 = vrot.slane %v16257_v49, 1  ;;  %v9856_v56 = vrot.slane %v16257_v49, 2  ;;  %v10006_v35 = vsel %vm2056_vm14, %v10005_v53, %v10004_v57 }
0x13f1   :  { %v9857_v63 = vrot.slane %v16257_v49, 3  ;;  %v9858_v34 = vrot.slane %v16257_v49, 4  ;;  %v9859_v2 = vrot.slane %v16257_v49, 5  ;;  %v10008_v7 = vsel %vm2059_vm15, %v10007_v1, %v10006_v35 }
0x13f2   :  { %v16276_v62 = vsel %vm216_vm8, %v9854_v47, -1e+30  ;;  %v16281_v9 = vsel %vm216_vm8, %v16257_v49, -1e+30  ;;  %v16285_v30 = vsel %vm216_vm8, %v9855_v40, -1e+30 }
0x13f3   :  { %v10043_v21 = vsel %vm4641_vm0, %v10008_v7, -inf  ;;  %v16290_v41 = vsel %vm216_vm8, %v9856_v56, -1e+30  ;;  %v16294_v27 = vsel %vm216_vm8, %v9857_v63, -1e+30  ;;  %v9984_v61 = vrot.slane %v16281_v9, 7 }
0x13f4   :  { %10044 = vmax.xlane.f32.xlu0 %v10043_v21  ;;  %v16299_v23 = vsel %vm216_vm8, %v9858_v34, -1e+30  ;;  %v9986_v19 = vrot.slane %v16285_v30, 6  ;;  %v9988_v50 = vrot.slane %v16290_v41, 5  ;;  %v16309_v60 = vsel %vm216_vm8, %v9859_v2, -1e+30 }
0x13f5   :  { %v9985_v54 = vsel %vm2044_vm10, %v9984_v61, %v16276_v62  ;;  %v9990_v55 = vrot.slane %v16294_v27, 4  ;;  %v9992_v0 = vrot.slane %v16299_v23, 3  ;;  %v9994_v59 = vrot.slane %v16309_v60, 2 }
0x13f6   :  { %v9987_v3 = vsel %vm2047_vm11, %v9986_v19, %v9985_v54  ;;  %v10046_v1 = vsel %vm4645_vm1, %v10009_v10, -inf  ;;  %v9860_v19 = vrot.slane %v16257_v49, 6 }
0x13f7   :  { %v9835_v26 = vpop.f32.mrf.mxu1  ;;  %v9989_v20 = vsel %vm2050_vm12, %v9988_v50, %v9987_v3 }
0x13f8   :  { %v9842_v29 = vmul.f32 0.35355338, %v9835_v26  ;;  %10035 = vmax.xlane.f32.xlu0 %v10034_v12  ;;  %v9991_v51 = vsel %vm2053_vm13, %v9990_v55, %v9989_v20  ;;  %v16367_v49 = vsel %vm216_vm8, %v9860_v19, -1e+30 }
0x13f9   :  { %v13086_v58 = vpop.f32.mrf.mxu1  ;;  %v9993_v8 = vsel %vm2056_vm14, %v9992_v0, %v9991_v51 }
0x13fa   :  { %v9995_v11 = vsel %vm2059_vm15, %v9994_v59, %v9993_v8  ;;  %v9868_v15 = vrot.slane %v9842_v29, 7  ;;  %v9869_v44 = vrot.slane %v9842_v29, 1  ;;  %v9870_v33 = vrot.slane %v9842_v29, 2 }
0x13fb   :  { %v10037_v53 = vsel %vm4641_vm0, %v9995_v11, -inf  ;;  %v9871_v37 = vrot.slane %v9842_v29, 3  ;;  %v9872_v57 = vrot.slane %v9842_v29, 4  ;;  %v9873_v47 = vrot.slane %v9842_v29, 5 }
0x13fc   :  { %10038 = vmax.xlane.f32.xlu1 %v10037_v53  ;;  %10047 = vmax.xlane.f32.xlu0 %v10046_v1  ;;  %v16327_v40 = vsel %vm216_vm8, %v9842_v29, -1e+30  ;;  %v16331_v56 = vsel %vm216_vm8, %v9869_v44, -1e+30  ;;  %v16335_v35 = vsel %vm216_vm8, %v9868_v15, -1e+30 }
0x13fd   :  { %v16339_v63 = vsel %vm216_vm8, %v9870_v33, -1e+30  ;;  %v16343_v34 = vsel %vm216_vm8, %v9871_v37, -1e+30  ;;  %v10010_v2 = vrot.slane %v16327_v40, 7  ;;  %v10012_v7 = vrot.slane %v16331_v56, 6 }
0x13fe   :  { %v10014_v21 = vrot.slane %v16339_v63, 5  ;;  %v16350_v61 = vsel %vm216_vm8, %v9872_v57, -1e+30  ;;  %v16355_v50 = vsel %vm216_vm8, %v9873_v47, -1e+30  ;;  %v10016_v55 = vrot.slane %v16343_v34, 4 }
0x13ff   :  { %v10011_v54 = vsel %vm2044_vm10, %v10010_v2, %v16335_v35  ;;  %v10018_v12 = vrot.slane %v16350_v61, 3  ;;  %v10020_v0 = vrot.slane %v16355_v50, 2  ;;  %v9874_v10 = vrot.slane %v9842_v29, 6 }
0x1400   :  { %v10013_v3 = vsel %vm2047_vm11, %v10012_v7, %v10011_v54  ;;  %v9996_v8 = vrot.slane %v16367_v49, 1 }
0x1401   :  { %v10015_v26 = vsel %vm2050_vm12, %v10014_v21, %v10013_v3  ;;  %v16375_v11 = vsel %vm216_vm8, %v9874_v10, -1e+30  ;;  %vm11469_vm8 = vcmask 1040384  }
0x1402   :  { %v10017_v20 = vsel %vm2053_vm13, %v10016_v55, %v10015_v26  ;;  %v10040_v15 = vsel %vm4645_vm1, %v9996_v8, -inf  ;;  %v10022_v44 = vrot.slane %v16375_v11, 1 }
0x1403   :  { %v10019_v51 = vsel %vm2056_vm14, %v10018_v12, %v10017_v20 }
0x1404   :  { %v10021_v59 = vsel %vm2059_vm15, %v10020_v0, %v10019_v51  ;;  %v10052_v29 = vsel %vm4645_vm1, %v10022_v44, -inf }
0x1405   :  { %v10049_v58 = vsel %vm4641_vm0, %v10021_v59, -inf }
0x1406   :  { %10050 = vmax.xlane.f32.xlu1 %v10049_v58 }
0x140a   :  { %10041 = vmax.xlane.f32.xlu1 %v10040_v15 }
0x140e   :  { %10053 = vmax.xlane.f32.xlu1 %v10052_v29 }
0x1472   :  { %v10033_v33 = vpop.xlane.xlu0 %10032 }
0x1473   :  { %v10063_v53 = vrot.slane %v10033_v33, 1  ;;  %v10064_v1 = vrot.slane %v10033_v33, 2  ;;  %v10065_v37 = vrot.slane %v10033_v33, 3  ;;  %v10066_v57 = vrot.slane %v10033_v33, 4 }
0x1474   :  { %v10067_v47 = vrot.slane %v10033_v33, 5  ;;  %v10068_v2 = vrot.slane %v10033_v33, 6  ;;  %v10123_v20 = vsub.f32 %v16192_v24, %v10033_v33 }
0x1475   :  { %v10124_v7 = vsub.f32 %v16180_v25, %v10063_v53  ;;  %v10125_v16 = vsub.f32 %v16184_v14, %v10064_v1  ;;  %v10126_v21 = vsub.f32 %v16188_v4, %v10065_v37  ;;  %v10127_v19 = vsub.f32 %v16196_v17, %v10066_v57 }
0x1476   :  { %v10128_v54 = vsub.f32 %v16203_v18, %v10067_v47  ;;  %v10129_v3 = vsub.f32 %v16207_v45, %v10068_v2  ;;  %v10155_v14 = vmul.f32 1.442695, %v10123_v20 }
0x1477   :  { %v10157_v55 = vmul.f32 1.442695, %v10124_v7  ;;  %v10159_v26 = vmul.f32 1.442695, %v10125_v16  ;;  %v10161_v12 = vmul.f32 1.442695, %v10126_v21 }
0x1478   :  { %v10163_v0 = vmul.f32 1.442695, %v10127_v19  ;;  %v10165_v10 = vmul.f32 1.442695, %v10128_v54  ;;  %v10167_v25 = vmul.f32 1.442695, %v10129_v3 }
0x1479   :  { %13475 = vpow2.f32 %v10157_v55 }
0x147a   :  { %13477 = vpow2.f32 %v10159_v26 }
0x147b   :  { %13479 = vpow2.f32 %v10161_v12 }
0x147c   :  { %13481 = vpow2.f32 %v10163_v0 }
0x147d   :  { %v10045_v4 = vpop.xlane.xlu0 %10044  ;;  %13483 = vpow2.f32 %v10165_v10 }
0x147e   :  { %v10077_v17 = vrot.slane %v10045_v4, 1  ;;  %v10078_v51 = vrot.slane %v10045_v4, 2  ;;  %v10079_v18 = vrot.slane %v10045_v4, 3  ;;  %13485 = vpow2.f32 %v10167_v25 }
0x147f   :  { %v10080_v45 = vrot.slane %v10045_v4, 4  ;;  %v10081_v59 = vrot.slane %v10045_v4, 5  ;;  %v10082_v58 = vrot.slane %v10045_v4, 6  ;;  %v10139_v8 = vsub.f32 %v16226_v38, %v10045_v4 }
0x1480   :  { %v10140_v24 = vsub.f32 %v16222_v22, %v10077_v17  ;;  %v10141_v15 = vsub.f32 %v16230_v13, %v10078_v51  ;;  %v10142_v44 = vsub.f32 %v16234_v6, %v10079_v18  ;;  %13487 = vpow2.f32 %v10155_v14 }
0x1481   :  { %v10143_v29 = vsub.f32 %v16238_v31, %v10080_v45  ;;  %v10144_v33 = vsub.f32 %v16248_v36, %v10081_v59  ;;  %v10145_v53 = vsub.f32 %v16252_v46, %v10082_v58  ;;  %v10036_v1 = vpop.xlane.xlu0 %10035  ;;  %v10187_v37 = vmul.f32 1.442695, %v10139_v8 }
0x1482   :  { %v10189_v57 = vmul.f32 1.442695, %v10140_v24  ;;  %v10191_v47 = vmul.f32 1.442695, %v10141_v15  ;;  %v10193_v2 = vmul.f32 1.442695, %v10142_v44 }
0x1483   :  { %v10069_v7 = vrot.slane %v10036_v1, 7  ;;  %13489 = vpow2.f32 %v10187_v37  ;;  %v10195_v38 = vmul.f32 1.442695, %v10143_v29  ;;  %v10197_v22 = vmul.f32 1.442695, %v10144_v33 }
0x1484   :  { %v10199_v16 = vmul.f32 1.442695, %v10145_v53  ;;  %13491 = vpow2.f32 %v10189_v57 }
0x1485   :  { %v10039_v13 = vpop.xlane.xlu1 %10038  ;;  %v10130_v6 = vsub.f32 %v16244_v5, %v10069_v7  ;;  %13493 = vpow2.f32 %v10191_v47  ;;  %v10048_v51 = vpop.xlane.xlu0 %10047 }
0x1486   :  { %v10070_v21 = vrot.slane %v10039_v13, 1  ;;  %v10071_v31 = vrot.slane %v10039_v13, 2  ;;  %v16395_v19 = vpop.eup %13475  ;;  %v10072_v36 = vrot.slane %v10039_v13, 3  ;;  %v10073_v46 = vrot.slane %v10039_v13, 4 }
0x1487   :  { %v10074_v54 = vrot.slane %v10039_v13, 5  ;;  %v16397_v3 = vpop.eup %13477  ;;  %13495 = vpow2.f32 %v10193_v2  ;;  %v10169_v55 = vmul.f32 1.442695, %v10130_v6  ;;  %v10075_v26 = vrot.slane %v10039_v13, 6 }
0x1488   :  { %v10131_v12 = vsub.f32 %v16276_v62, %v10039_v13  ;;  %v16400_v20 = vpop.eup %13479  ;;  %13497 = vpow2.f32 %v10195_v38  ;;  %v10132_v5 = vsub.f32 %v16281_v9, %v10070_v21  ;;  %v10133_v0 = vsub.f32 %v16285_v30, %v10071_v31 }
0x1489   :  { %v10134_v10 = vsub.f32 %v16290_v41, %v10072_v36  ;;  %v16405_v25 = vpop.eup %13481  ;;  %13499 = vpow2.f32 %v10197_v22  ;;  %v10135_v14 = vsub.f32 %v16294_v27, %v10073_v46  ;;  %v10136_v4 = vsub.f32 %v16299_v23, %v10074_v54 }
0x148a   :  { %v10137_v17 = vsub.f32 %v16309_v60, %v10075_v26  ;;  %v16410_v62 = vpop.eup %13483  ;;  %13501 = vpow2.f32 %v10199_v16  ;;  %v10171_v18 = vmul.f32 1.442695, %v10131_v12  ;;  %v10173_v45 = vmul.f32 1.442695, %v10132_v5 }
0x148b   :  { %v10175_v9 = vmul.f32 1.442695, %v10133_v0  ;;  %v16412_v59 = vpop.eup %13485  ;;  %13503 = vpow2.f32 %v10169_v55  ;;  %v10177_v30 = vmul.f32 1.442695, %v10134_v10  ;;  %v10179_v41 = vmul.f32 1.442695, %v10135_v14 }
0x148c   :  { %13505 = vpow2.f32 %v10171_v18  ;;  %v10181_v58 = vmul.f32 1.442695, %v10136_v4  ;;  %v10083_v8 = vrot.slane %v10048_v51, 7  ;;  %v10251_v27 = vrot.slane %v16395_v19, 7 }
0x148d   :  { %v16415_v23 = vpop.eup %13487  ;;  %13507 = vpow2.f32 %v10173_v45  ;;  %v10183_v60 = vmul.f32 1.442695, %v10137_v17  ;;  %v10253_v24 = vrot.slane %v16397_v3, 6  ;;  %v10255_v15 = vrot.slane %v16400_v20, 5 }
0x148e   :  { %13509 = vpow2.f32 %v10175_v9  ;;  %v10146_v44 = vsub.f32 %v16305_v32, %v10083_v8  ;;  %v10252_v29 = vsel %vm2044_vm10, %v10251_v27, %v16415_v23  ;;  %v10257_v33 = vrot.slane %v16405_v25, 4 }
0x148f   :  { %13511 = vpow2.f32 %v10177_v30  ;;  %v10051_v53 = vpop.xlane.xlu1 %10050  ;;  %v10254_v1 = vsel %vm2047_vm11, %v10253_v24, %v10252_v29  ;;  %v10259_v37 = vrot.slane %v16410_v62, 3  ;;  %v10261_v57 = vrot.slane %v16412_v59, 2 }
0x1490   :  { %13513 = vpow2.f32 %v10179_v41  ;;  %v10201_v47 = vmul.f32 1.442695, %v10146_v44  ;;  %v10084_v2 = vrot.slane %v10051_v53, 1  ;;  %v10085_v7 = vrot.slane %v10051_v53, 2  ;;  %v16426_v38 = vpop.eup %13489 }
0x1491   :  { %13515 = vpow2.f32 %v10181_v58  ;;  %v10086_v32 = vrot.slane %v10051_v53, 3  ;;  %v10087_v22 = vrot.slane %v10051_v53, 4  ;;  %v10088_v16 = vrot.slane %v10051_v53, 5  ;;  %v16428_v13 = vpop.eup %13491 }
0x1492   :  { %13517 = vpow2.f32 %v10183_v60  ;;  %v10089_v6 = vrot.slane %v10051_v53, 6  ;;  %v10147_v21 = vsub.f32 %v16335_v35, %v10051_v53  ;;  %v10148_v31 = vsub.f32 %v16327_v40, %v10084_v2  ;;  %v16432_v36 = vpop.eup %13493 }
0x1493   :  { %13519 = vpow2.f32 %v10201_v47  ;;  %v10149_v46 = vsub.f32 %v16331_v56, %v10085_v7  ;;  %v10150_v54 = vsub.f32 %v16339_v63, %v10086_v32  ;;  %v10151_v55 = vsub.f32 %v16343_v34, %v10087_v22  ;;  %v10042_v26 = vpop.xlane.xlu1 %10041 }
0x1494   :  { %v16437_v12 = vpop.eup %13495  ;;  %v10152_v5 = vsub.f32 %v16350_v61, %v10088_v16  ;;  %v10153_v0 = vsub.f32 %v16355_v50, %v10089_v6  ;;  %v10203_v10 = vmul.f32 1.442695, %v10147_v21  ;;  %v10205_v35 = vmul.f32 1.442695, %v10148_v31 }
0x1495   :  { %v16441_v14 = vpop.eup %13497  ;;  %v10207_v40 = vmul.f32 1.442695, %v10149_v46  ;;  %v10209_v4 = vmul.f32 1.442695, %v10150_v54  ;;  %v10211_v17 = vmul.f32 1.442695, %v10151_v55  ;;  %v10256_v56 = vsel %vm2050_vm12, %v10255_v15, %v10254_v1 }
0x1496   :  { %v16444_v51 = vpop.eup %13499  ;;  %13521 = vpow2.f32 %v10203_v10  ;;  %v10213_v63 = vmul.f32 1.442695, %v10152_v5  ;;  %v10215_v34 = vmul.f32 1.442695, %v10153_v0  ;;  %v10076_v18 = vrot.slane %v10042_v26, 7 }
0x1497   :  { %v16446_v45 = vpop.eup %13501  ;;  %13523 = vpow2.f32 %v10205_v35  ;;  %v10258_v61 = vsel %vm2053_vm13, %v10257_v33, %v10256_v56  ;;  %v10054_v50 = vpop.xlane.xlu1 %10053  ;;  %v10277_v9 = vrot.slane %v16428_v13, 7  ;;  %v10279_v30 = vrot.slane %v16432_v36, 6 }
0x1498   :  { %v16451_v41 = vpop.eup %13503  ;;  %13525 = vpow2.f32 %v10207_v40  ;;  %v10138_v58 = vsub.f32 %v16367_v49, %v10076_v18  ;;  %v10260_v8 = vsel %vm2056_vm14, %v10259_v37, %v10258_v61  ;;  %v10090_v27 = vrot.slane %v10054_v50, 7 }
0x1499   :  { %v16455_v60 = vpop.eup %13505  ;;  %13527 = vpow2.f32 %v10209_v4  ;;  %v10262_v24 = vsel %vm2059_vm15, %v10261_v57, %v10260_v8  ;;  %v10278_v15 = vsel %vm2044_vm10, %v10277_v9, %v16426_v38  ;;  %v10281_v44 = vrot.slane %v16437_v12, 5 }
0x149a   :  { %v16461_v29 = vpop.eup %13507  ;;  %13529 = vpow2.f32 %v10211_v17  ;;  %v10185_v33 = vmul.f32 1.442695, %v10138_v58  ;;  %v10311_v53 = vsel %vm4641_vm0, %v10262_v24, 0.0  ;;  %v10154_v49 = vsub.f32 %v16375_v11, %v10090_v27 }
0x149b   :  { %v16465_v1 = vpop.eup %13509  ;;  %13531 = vpow2.f32 %v10213_v63  ;;  %10312 = vadd.xlane.f32.xlu0 %v10311_v53  ;;  %v10280_v37 = vsel %vm2047_vm11, %v10279_v30, %v10278_v15  ;;  %v10283_v57 = vrot.slane %v16441_v14, 4  ;;  %v10285_v47 = vrot.slane %v16444_v51, 3 }
0x149c   :  { %v16470_v2 = vpop.eup %13511  ;;  %13533 = vpow2.f32 %v10215_v34  ;;  %v10217_v7 = vmul.f32 1.442695, %v10154_v49  ;;  %v10282_v32 = vsel %vm2050_vm12, %v10281_v44, %v10280_v37  ;;  %v10287_v22 = vrot.slane %v16446_v45, 2 }
0x149d   :  { %v16474_v16 = vpop.eup %13513  ;;  %13535 = vpow2.f32 %v10185_v33  ;;  %v10284_v11 = vsel %vm2053_vm13, %v10283_v57, %v10282_v32  ;;  %v10264_v6 = vrot.slane %v16461_v29, 7  ;;  %v10266_v21 = vrot.slane %v16465_v1, 6 }
0x149e   :  { %v16479_v31 = vpop.eup %13515  ;;  %13537 = vpow2.f32 %v10217_v7  ;;  %v10286_v46 = vsel %vm2056_vm14, %v10285_v47, %v10284_v11  ;;  %v10268_v5 = vrot.slane %v16470_v2, 5  ;;  %v10270_v40 = vrot.slane %v16474_v16, 4  ;;  %v11854_v47 = vld [vmem:[%s16807_s1] ss:$0 sm:$0xff] }
0x149f   :  { %v16482_v54 = vpop.eup %13517  ;;  %v10288_v55 = vsel %vm2059_vm15, %v10287_v22, %v10286_v46  ;;  %v10265_v26 = vsel %vm2044_vm10, %v10264_v6, %v16455_v60  ;;  %v10272_v17 = vrot.slane %v16479_v31, 3  ;;  %v10263_v58 = vrot.slane %v16451_v41, 1 }
0x14a0   :  { %v16488_v0 = vpop.eup %13519  ;;  %v10323_v10 = vsel %vm4641_vm0, %v10288_v55, 0.0  ;;  %v10267_v35 = vsel %vm2047_vm11, %v10266_v21, %v10265_v26  ;;  %v10274_v63 = vrot.slane %v16482_v54, 2 }
0x14a1   :  { %10324 = vadd.xlane.f32.xlu0 %v10323_v10  ;;  %v10269_v4 = vsel %vm2050_vm12, %v10268_v5, %v10267_v35  ;;  %v10314_v7 = vsel %vm4645_vm1, %v10263_v58, 0.0  ;;  %v8559_v5 = vadd.f32 %v11854_v47, %v16140_v48 }
0x14a2   :  { %v10271_v56 = vsel %vm2053_vm13, %v10270_v40, %v10269_v4 }
0x14a3   :  { %v16497_v34 = vpop.eup %13521  ;;  %v10273_v18 = vsel %vm2056_vm14, %v10272_v17, %v10271_v56  ;;  %v10289_v17 = vrot.slane %v16488_v0, 1 }
0x14a4   :  { %v16500_v61 = vpop.eup %13523  ;;  %v10275_v50 = vsel %vm2059_vm15, %v10274_v63, %v10273_v18  ;;  %v16543_v18 = vadd.f32 %v8559_v5, %v15363_v52 }
0x14a5   :  { %v16503_v9 = vpop.eup %13525  ;;  %v10317_v30 = vsel %vm4641_vm0, %v10275_v50, 0.0  ;;  %v10290_v8 = vrot.slane %v16500_v61, 7  ;;  %v10326_v63 = vsel %vm4645_vm1, %v10289_v17, 0.0 }
0x14a6   :  { %v16508_v27 = vpop.eup %13527  ;;  %10318 = vadd.xlane.f32.xlu1 %v10317_v30  ;;  %v10292_v24 = vrot.slane %v16503_v9, 6  ;;  %v11134_v48 = vsel %vm669_vm6, %v16543_v18, 0.0 }
0x14a7   :  { %v16511_v15 = vpop.eup %13529  ;;  %v10291_v44 = vsel %vm2044_vm10, %v10290_v8, %v16497_v34  ;;  %v10294_v33 = vrot.slane %v16508_v27, 5 }
0x14a8   :  { %v16516_v53 = vpop.eup %13531  ;;  %v10293_v49 = vsel %vm2047_vm11, %v10292_v24, %v10291_v44  ;;  %v10296_v37 = vrot.slane %v16511_v15, 4 }
0x14a9   :  { %v16520_v57 = vpop.eup %13533  ;;  %v10295_v32 = vsel %vm2050_vm12, %v10294_v33, %v10293_v49  ;;  %v10298_v22 = vrot.slane %v16516_v53, 3 }
0x14aa   :  { %v16526_v11 = vpop.eup %13535  ;;  %10315 = vadd.xlane.f32.xlu1 %v10314_v7  ;;  %v10297_v6 = vsel %vm2053_vm13, %v10296_v37, %v10295_v32  ;;  %v10300_v21 = vrot.slane %v16520_v57, 2  ;;  %v11873_v32 = vld [vmem:[%s16805_s26 + $0x2] ss:$0 sm:$0xff] }
0x14ab   :  { %v16530_v46 = vpop.eup %13537  ;;  %v10299_v55 = vsel %vm2056_vm14, %v10298_v22, %v10297_v6  ;;  %v10276_v26 = vrot.slane %v16526_v11, 1 }
0x14ac   :  { %v10301_v10 = vsel %vm2059_vm15, %v10300_v21, %v10299_v55  ;;  %v10302_v4 = vrot.slane %v16530_v46, 1 }
0x14ad   :  { %v10329_v35 = vsel %vm4641_vm0, %v10301_v10, 0.0  ;;  %v10320_v40 = vsel %vm4645_vm1, %v10276_v26, 0.0 }
0x14ae   :  { %10330 = vadd.xlane.f32.xlu0 %v10329_v35  ;;  %10321 = vadd.xlane.f32.xlu1 %v10320_v40  ;;  %v10332_v56 = vsel %vm4645_vm1, %v10302_v4, 0.0 }
0x14b2   :  { %10333 = vadd.xlane.f32.xlu1 %v10332_v56  ;;  %10327 = vadd.xlane.f32.xlu0 %v10326_v63 }
0x14b6   :  { %11135 = vadd.xlane.f32.xlu0 %v11134_v48 }
0x1524   :  { %v10313_v50 = vpop.xlane.xlu0 %10312 }
0x1525   :  { %13539 = vrcp.f32 %v10313_v50 }
0x152a   :  { %v10325_v30 = vpop.xlane.xlu0 %10324 }
0x152b   :  { %13541 = vrcp.f32 %v10325_v30 }
0x152f   :  { %v10319_v58 = vpop.xlane.xlu1 %10318 }
0x1530   :  { %13543 = vrcp.f32 %v10319_v58 }
0x1532   :  { %v13540_v8 = vpop.eup %13539 }
0x1533   :  { %v10316_v24 = vpop.xlane.xlu1 %10315  ;;  %v10351_v44 = vrot.slane %v13540_v8, 1  ;;  %v10352_v33 = vrot.slane %v13540_v8, 2  ;;  %v10353_v49 = vrot.slane %v13540_v8, 3  ;;  %v10354_v52 = vrot.slane %v13540_v8, 4 }
0x1534   :  { %13545 = vrcp.f32 %v10316_v24  ;;  %v10355_v37 = vrot.slane %v13540_v8, 5  ;;  %v10356_v47 = vrot.slane %v13540_v8, 6  ;;  %v10411_v7 = vmul.f32 %v13540_v8, %v16415_v23 }
0x1535   :  { %v10412_v22 = vmul.f32 %v16395_v19, %v10351_v44  ;;  %v10413_v6 = vmul.f32 %v16397_v3, %v10352_v33  ;;  %v10414_v21 = vmul.f32 %v16400_v20, %v10353_v49  ;;  %v10415_v55 = vmul.f32 %v16405_v25, %v10354_v52 }
0x1536   :  { %v10416_v26 = vmul.f32 %v16410_v62, %v10355_v37  ;;  %v10417_v5 = vmul.f32 %v16412_v59, %v10356_v47  ;;  %v10451_v10 = vrot.slane %v10411_v7, 1  ;;  %v16556_v23 = vadd.f32 %v11873_v32, %v16167_v43 }
0x1537   :  { %v10322_v35 = vpop.xlane.xlu1 %10321  ;;  %v10331_v40 = vpop.xlane.xlu0 %10330  ;;  %v10453_v4 = vrot.slane %v10413_v6, 7  ;;  %v10455_v17 = vrot.slane %v10414_v21, 6  ;;  %v10457_v3 = vrot.slane %v10415_v55, 5 }
0x1538   :  { %v13542_v56 = vpop.eup %13541  ;;  %13547 = vrcp.f32 %v10322_v35  ;;  %v10452_v19 = vsel %vm2041_vm9, %v10412_v22, %v10451_v10  ;;  %v10459_v63 = vrot.slane %v10416_v26, 4  ;;  %v10461_v48 = vrot.slane %v10417_v5, 3 }
0x1539   :  { %13549 = vrcp.f32 %v10331_v40  ;;  %v10454_v20 = vsel %vm2044_vm10, %v10453_v4, %v10452_v19  ;;  %v10365_v25 = vrot.slane %v13542_v56, 1  ;;  %v10366_v62 = vrot.slane %v13542_v56, 2 }
0x153a   :  { %v10456_v59 = vsel %vm2047_vm11, %v10455_v17, %v10454_v20  ;;  %v10367_v50 = vrot.slane %v13542_v56, 3  ;;  %v10368_v43 = vrot.slane %v13542_v56, 4  ;;  %v10369_v24 = vrot.slane %v13542_v56, 5 }
0x153b   :  { %v10334_v30 = vpop.xlane.xlu1 %10333  ;;  %v10328_v58 = vpop.xlane.xlu0 %10327  ;;  %v10458_v8 = vsel %vm2050_vm12, %v10457_v3, %v10456_v59  ;;  %v10370_v44 = vrot.slane %v13542_v56, 6  ;;  %v10427_v49 = vmul.f32 %v13542_v56, %v16426_v38  ;;  %v10428_v52 = vmul.f32 %v16428_v13, %v10365_v25 }
0x153c   :  { %13551 = vrcp.f32 %v10334_v30  ;;  %v10460_v33 = vsel %vm2053_vm13, %v10459_v63, %v10458_v8  ;;  %v10429_v7 = vmul.f32 %v16432_v36, %v10366_v62  ;;  %v10430_v32 = vmul.f32 %v16437_v12, %v10367_v50 }
0x153d   :  { %v13544_v37 = vpop.eup %13543  ;;  %13553 = vrcp.f32 %v10328_v58  ;;  %v10462_v47 = vsel %vm2056_vm14, %v10461_v48, %v10460_v33  ;;  %v10431_v38 = vmul.f32 %v16441_v14, %v10368_v43  ;;  %v10432_v3 = vmul.f32 %v16444_v51, %v10369_v24 }
0x153e   :  { %v10358_v22 = vrot.slane %v13544_v37, 1  ;;  %v10359_v6 = vrot.slane %v13544_v37, 2  ;;  %v10360_v21 = vrot.slane %v13544_v37, 3  ;;  %v10361_v55 = vrot.slane %v13544_v37, 4 }
0x153f   :  { %v11136_v26 = vpop.xlane.xlu0 %11135  ;;  %v10362_v5 = vrot.slane %v13544_v37, 5  ;;  %v10363_v10 = vrot.slane %v13544_v37, 6  ;;  %v10419_v35 = vmul.f32 %v13544_v37, %v16455_v60  ;;  %v10639_v59 = vrot.slane %v10427_v49, 1  ;;  %v11874_v49 = vld [vmem:[%s16805_s26 + $0x3] ss:$0 sm:$0xff] }
0x1540   :  { %v11140_v13 = vmul.f32 0.03125, %v11136_v26  ;;  %v10420_v40 = vmul.f32 %v16461_v29, %v10358_v22  ;;  %v10421_v4 = vmul.f32 %v16465_v1, %v10359_v6  ;;  %v10422_v36 = vmul.f32 %v16470_v2, %v10360_v21 }
0x1541   :  { %v13546_v17 = vpop.eup %13545  ;;  %v10423_v12 = vmul.f32 %v16474_v16, %v10361_v55  ;;  %v10424_v56 = vmul.f32 %v16479_v31, %v10362_v5  ;;  %v10545_v19 = vrot.slane %v10419_v35, 1  ;;  %v10425_v29 = vmul.f32 %v16482_v54, %v10363_v10 }
0x1542   :  { %v10357_v20 = vrot.slane %v13546_v17, 7  ;;  %v16577_v60 = vsub.f32 %v16543_v18, %v11140_v13  ;;  %v10547_v14 = vrot.slane %v10421_v4, 7  ;;  %v10549_v25 = vrot.slane %v10422_v36, 6 }
0x1543   :  { %v10546_v1 = vsel %vm2041_vm9, %v10420_v40, %v10545_v19  ;;  %v10551_v62 = vrot.slane %v10423_v12, 5  ;;  %v16582_v2 = vmul.f32 %v16446_v45, %v10370_v44  ;;  %v10553_v48 = vrot.slane %v10424_v56, 4 }
0x1544   :  { %v10418_v16 = vmul.f32 %v16451_v41, %v10357_v20  ;;  %v11144_v31 = vmul.f32 %v16577_v60, %v16577_v60  ;;  %v10548_v51 = vsel %vm2044_vm10, %v10547_v14, %v10546_v1  ;;  %v10641_v54 = vrot.slane %v10429_v7, 7 }
0x1545   :  { %v13548_v18 = vpop.eup %13547  ;;  %v10550_v63 = vsel %vm2047_vm11, %v10549_v25, %v10548_v51  ;;  %v10643_v50 = vrot.slane %v10430_v32, 6  ;;  %v10555_v24 = vrot.slane %v10425_v29, 3  ;;  %v10640_v44 = vsel %vm2041_vm9, %v10428_v52, %v10639_v59 }
0x1546   :  { %v13550_v30 = vpop.eup %13549  ;;  %v10463_v58 = vrot.slane %v10418_v16, 2  ;;  %v10364_v8 = vrot.slane %v13548_v18, 7  ;;  %v11146_v45 = vsel %vm669_vm6, %v11144_v31, 0.0  ;;  %v10552_v41 = vsel %vm2050_vm12, %v10551_v62, %v10550_v63 }
0x1547   :  { %11147 = vadd.xlane.f32.xlu0 %v11146_v45  ;;  %v10554_v43 = vsel %vm2053_vm13, %v10553_v48, %v10552_v41  ;;  %v10645_v33 = vrot.slane %v10431_v38, 5  ;;  %v10642_v32 = vsel %vm2044_vm10, %v10641_v54, %v10640_v44  ;;  %v10647_v22 = vrot.slane %v10432_v3, 4  ;;  %v10819_v48 = vld [vmem:[%s16806_s28] sm:$0xff]  ;;  %v10820_v54 = vld [vmem:[%s16806_s28 + $0x8] sm:$0xff]  ;;  %v10821_v45 = vld [vmem:[%s16806_s28 + $0x10] sm:$0xff] }
0x1548   :  { %v10426_v37 = vmul.f32 %v16526_v11, %v10364_v8  ;;  %v10464_v7 = vsel %vm2059_vm15, %v10463_v58, %v10462_v47  ;;  %v10644_v21 = vsel %vm2047_vm11, %v10643_v50, %v10642_v32  ;;  %v10372_v55 = vrot.slane %v13550_v30, 1  ;;  %v16647_v44 = vld [vmem:[%s16808_s2] ss:$0 sm:$0xff] }
0x1549   :  { %v13552_v6 = vpop.eup %13551  ;;  %13090 = vmatmul.mubr.msk.f32.vlgmr.msra.gmra.mxu0 %vm1601_vm7, %v10464_v7  ;;  %v10373_v26 = vrot.slane %v13550_v30, 2  ;;  %v10374_v5 = vrot.slane %v13550_v30, 3  ;;  %v10646_v11 = vsel %vm2050_vm12, %v10645_v33, %v10644_v21  ;;  %v10375_v47 = vrot.slane %v13550_v30, 4  ;;  %v10822_v33 = vld [vmem:[%s16806_s28 + $0x18] sm:$0xff]  ;;  %v16655_v32 = vld [vmem:[%s16809_s7] ss:$0 sm:$0xff] }
0x154a   :  { %v13554_v10 = vpop.eup %13553  ;;  %v10557_v35 = vrot.slane %v10426_v37, 2  ;;  %v10378_v52 = vrot.slane %v13552_v6, 7  ;;  %13098 = vmatpush3.msra.mxu0 %v16556_v23  ;;  %13099 = vmatprep.mubr.msk.f32.mxu0 %vm13644_vm5, %v13643_v28  ;;  %v9532_v38 = vadd.f32 %v11874_v49, %v16176_v42  ;;  %v10556_v40 = vsel %vm2056_vm14, %v10555_v24, %v10554_v43 }
0x154b   :  { %v10371_v13 = vrot.slane %v13554_v10, 7  ;;  %v10376_v4 = vrot.slane %v13550_v30, 5  ;;  %13107 = vmatprep.subr.mxu0 %v13643_v28  ;;  %v10648_v17 = vsel %vm2053_vm13, %v10647_v22, %v10646_v11  ;;  %v10377_v12 = vrot.slane %v13550_v30, 6 }
0x154c   :  { %v10558_v36 = vsel %vm2059_vm15, %v10557_v35, %v10556_v40  ;;  %v10435_v23 = vmul.f32 %v13550_v30, %v16497_v34  ;;  %v10436_v19 = vmul.f32 %v16500_v61, %v10372_v55  ;;  %v10437_v42 = vmul.f32 %v16503_v9, %v10373_v26 }
0x154d   :  { %v10434_v56 = vmul.f32 %v16488_v0, %v10371_v13  ;;  %13095 = vmatmul.mubr.msk.f32.vlgmr.msra.gmra.mxu1 %vm1601_vm7, %v10558_v36  ;;  %v10438_v3 = vmul.f32 %v16508_v27, %v10374_v5  ;;  %v10442_v20 = vmul.f32 %v16530_v46, %v10378_v52  ;;  %v10649_v14 = vrot.slane %v16582_v2, 3 }
0x154e   :  { %13103 = vmatpush3.msra.mxu1 %v9532_v38  ;;  %13104 = vmatprep.mubr.msk.f32.mxu1 %vm13644_vm5, %v13643_v28  ;;  %v10439_v34 = vmul.f32 %v16511_v15, %v10375_v47  ;;  %v10440_v0 = vmul.f32 %v16516_v53, %v10376_v4  ;;  %v10733_v29 = vrot.slane %v10435_v23, 1  ;;  %v10735_v1 = vrot.slane %v10437_v42, 7 }
0x154f   :  { %v10651_v25 = vrot.slane %v10434_v56, 2  ;;  %v10737_v61 = vrot.slane %v10438_v3, 6  ;;  %13112 = vmatprep.subr.mxu1 %v13643_v28  ;;  %v10650_v9 = vsel %vm2056_vm14, %v10649_v14, %v10648_v17  ;;  %v10441_v27 = vmul.f32 %v16520_v57, %v10377_v12  ;;  %v11895_v12 = vld [vmem:[%s16807_s1] ss:$0 sm:$0xff] }
0x1550   :  { %v10734_v62 = vsel %vm2041_vm9, %v10436_v19, %v10733_v29  ;;  %v10739_v53 = vrot.slane %v10439_v34, 5  ;;  %v10745_v2 = vrot.slane %v10442_v20, 2  ;;  %v10741_v31 = vrot.slane %v10440_v0, 4  ;;  %v11179_v29 = vld [vmem:[%s16810_s10 + $0x18] sm:$0xff] }
0x1551   :  { %v10652_v46 = vsel %vm2059_vm15, %v10651_v25, %v10650_v9  ;;  %v10736_v15 = vsel %vm2044_vm10, %v10735_v1, %v10734_v62  ;;  %v10743_v51 = vrot.slane %v10441_v27, 3  ;;  %v11178_v1 = vld [vmem:[%s16810_s10 + $0x10] sm:$0xff]  ;;  %v11277_v9 = vld [vmem:[%s16811_s11 + $0x38] sm:$0xff]  ;;  %v11274_v62 = vld [vmem:[%s16811_s11 + $0x20] sm:$0xff] }
0x1552   :  { %13100 = vmatmul.mubr.msk.f32.vlgmr.msra.gmra.mxu0 %vm1601_vm7, %v10652_v46  ;;  %v10738_v16 = vsel %vm2047_vm11, %v10737_v61, %v10736_v15  ;;  %v11177_v61 = vld [vmem:[%s16810_s10 + $0x8] sm:$0xff]  ;;  %v11276_v27 = vld [vmem:[%s16811_s11 + $0x30] sm:$0xff] }
0x1553   :  { %13109 = vmatprep.mubr.msk.f32.mxu0 %vm13644_vm5, %v13643_v28  ;;  %v10740_v57 = vsel %vm2050_vm12, %v10739_v53, %v10738_v16  ;;  %13108 = vmatpush3.msra.mxu0 %v10819_v48  ;;  %v11275_v46 = vld [vmem:[%s16811_s11 + $0x28] sm:$0xff]  ;;  %v11270_v48 = vld [vmem:[%s16811_s11] sm:$0xff] }
0x1554   :  { %v10742_v59 = vsel %vm2053_vm13, %v10741_v31, %v10740_v57  ;;  %13117 = vmatprep.subr.mxu0 %v13643_v28 }
0x1555   :  { %v10744_v18 = vsel %vm2056_vm14, %v10743_v51, %v10742_v59  ;;  %v11273_v59 = vld [vmem:[%s16811_s11 + $0x18] sm:$0xff] }
0x1556   :  { %v10746_v63 = vsel %vm2059_vm15, %v10745_v2, %v10744_v18  ;;  %v11272_v18 = vld [vmem:[%s16811_s11 + $0x10] sm:$0xff] }
0x1557   :  { %13105 = vmatmul.mubr.msk.f32.vlgmr.msra.gmra.mxu1 %vm1601_vm7, %v10746_v63  ;;  %v11271_v63 = vld [vmem:[%s16811_s11 + $0x8] sm:$0xff] }
0x1558   :  { %13114 = vmatprep.mubr.msk.f32.mxu1 %vm13644_vm5, %v13643_v28  ;;  %13113 = vmatpush3.msra.mxu1 %v10820_v54  ;;  %v11898_v54 = vld [vmem:[%s16812_s0] ss:$0 sm:$0xff] }
0x1559   :  { %13122 = vmatprep.subr.mxu1 %v13643_v28 }
0x15d0   :  { %v11148_v50 = vpop.xlane.xlu0 %11147 }
0x15d1   :  { %v11152_v30 = vmul.f32 0.03125, %v11148_v50 }
0x15d3   :  { %v11154_v58 = vadd.f32 1e-05, %v11152_v30 }
0x15d5   :  { %13555 = vrsqrt.f32 %v11154_v58 }
0x15e2   :  { %v13556_v8 = vpop.eup %13555 }
0x15e3   :  { %v11158_v43 = vmul.f32 %v13556_v8, %v16577_v60 }
0x15e5   :  { %v11166_v37 = vmul.f32 %v16647_v44, %v11158_v43  ;;  %v11901_v43 = vld [vmem:[%s16813_s5] ss:$0 sm:$0xff] }
0x15e7   :  { %v16658_v22 = vadd.f32 %v16655_v32, %v11166_v37 }
0x1609   :  { %v10533_v41 = vpop.f32.mrf.mxu0 }
0x160a   :  { %13110 = vmatmul.mubr.msk.f32.vlgmr.msra.gmra.mxu0 %vm1601_vm7, %v10533_v41 }
0x160b   :  { %v13091_v24 = vpop.f32.mrf.mxu0  ;;  %13118 = vmatpush3.msra.mxu0 %v10821_v45  ;;  %13119 = vmatprep.mubr.msk.f32.mxu0 %vm13644_vm5, %v13643_v28 }
0x160c   :  { %13127 = vmatprep.subr.mxu0 %v11179_v29 }
0x160d   :  { %v10627_v49 = vpop.f32.mrf.mxu1 }
0x160e   :  { %13115 = vmatmul.mubr.msk.f32.vlgmr.msra.gmra.mxu1 %vm1601_vm7, %v10627_v49 }
0x160f   :  { %v13096_v7 = vpop.f32.mrf.mxu1  ;;  %13123 = vmatpush3.msra.mxu1 %v10822_v33  ;;  %13124 = vmatprep.mubr.msk.f32.mxu1 %vm13644_vm5, %v13643_v28 }
0x1610   :  { %13138 = vmatprep.subr.mxu1 %v11277_v9 }
0x1612   :  { %v10721_v60 = vpop.f32.mrf.mxu0 }
0x1613   :  { %13120 = vmatmul.mubr.msk.f32.vlgmr.msra.gmra.mxu0 %vm1601_vm7, %v10721_v60 }
0x1614   :  { %v13101_v6 = vpop.f32.mrf.mxu0  ;;  %13135 = vmatprep.mubr.msk.f32.mxu0 %vm669_vm6, %v16658_v22  ;;  %13128 = vmatpush3.msra.mxu0 %v11179_v29 }
0x1615   :  { %13129 = vmatprep.subr.mxu0 %v11178_v1  ;;  %v207_v6 = vld [vmem:[%s16814_s9] sm:$0xff] }
0x1616   :  { %13130 = vmatpush3.msra.mxu0 %v11178_v1  ;;  %vm209_vm3 = vcmp.ne.f32.partialorder %v207_v6, -1.0 }
0x1617   :  { %v10815_v21 = vpop.f32.mrf.mxu1  ;;  %13131 = vmatprep.subr.mxu0 %v11177_v61 }
0x1618   :  { %13125 = vmatmul.mubr.msk.f32.vlgmr.msra.gmra.mxu1 %vm1601_vm7, %v10815_v21  ;;  %13132 = vmatpush3.msra.mxu0 %v11177_v61  ;;  %v208_v21 = vld [vmem:[%s16814_s9 + $0x8] sm:$0xff] }
0x1619   :  { %v13106_v55 = vpop.f32.mrf.mxu1  ;;  %13139 = vmatpush3.msra.mxu1 %v11277_v9  ;;  %vm210_vm7 = vcmp.ne.f32.partialorder %v208_v21, -1.0  ;;  %v11473_v9 = vld [vmem:[%s16815_s29 + $0x10] sm:$0xff] }
0x161a   :  { %13140 = vmatprep.subr.mxu1 %v11276_v27  ;;  %v11706_v55 = vsel %vm209_vm3, 1.0, %v13643_v28 }
0x161b   :  { %13141 = vmatpush3.msra.mxu1 %v11276_v27  ;;  %v11472_v27 = vld [vmem:[%s16815_s29 + $0x8] sm:$0xff] }
0x161c   :  { %13142 = vmatprep.subr.mxu1 %v11275_v46 }
0x161d   :  { %13143 = vmatpush3.msra.mxu1 %v11275_v46  ;;  %v11471_v46 = vld [vmem:[%s16815_s29] sm:$0xff] }
0x161e   :  { %13144 = vmatprep.subr.mxu1 %v11274_v62 }
0x161f   :  { %13145 = vmatpush3.msra.mxu1 %v11274_v62 }
0x1620   :  { %13146 = vmatprep.subr.mxu1 %v11273_v59 }
0x1621   :  { %13147 = vmatpush3.msra.mxu1 %v11273_v59 }
0x1622   :  { %13148 = vmatprep.subr.mxu1 %v11272_v18 }
0x1623   :  { %13149 = vmatpush3.msra.mxu1 %v11272_v18 }
0x1624   :  { %13150 = vmatprep.subr.mxu1 %v11271_v63 }
0x1625   :  { %13151 = vmatpush3.msra.mxu1 %v11271_v63 }
0x1626   :  { %13152 = vmatprep.subr.mxu1 %v11270_v48 }
0x1627   :  { %13153 = vmatpush3.msra.mxu1 %v11270_v48 }
0x16ca   :  { %v10892_v26 = vpop.f32.mrf.mxu0 }
0x16cb   :  { %v11115_v47 = vsel %vm669_vm6, %v10892_v26, 0.0  ;;  %v11425_v26 = vsel %vm11424_vm4, %v11706_v55, 0.0 }
0x16cc   :  { %v13111_v5 = vpop.f32.mrf.mxu0 }
0x16cd   :  { %v11707_v5 = vsel %vm210_vm7, 1.0, %v13643_v28 }
0x16ce   :  { %v10965_v10 = vpop.f32.mrf.mxu1  ;;  %v13238_v61 = vpack.i.bf16 %v11707_v5, %v11706_v55 }
0x16cf   :  { %v11116_v52 = vsel %vm669_vm6, %v10965_v10, 0.0  ;;  %v11426_v10 = vrot.slane %v11425_v26, 4 }
0x16d0   :  { %v13116_v35 = vpop.f32.mrf.mxu1  ;;  %v11117_v13 = vadd.f32 %v11116_v52, %v11115_v47 }
0x16d1   :  { %v11447_v35 = vsel %vm11424_vm4, %v11707_v5, 0.0  ;;  %v11427_v47 = vadd.f32 %v11426_v10, %v11425_v26 }
0x16d3   :  { %v11038_v11 = vpop.f32.mrf.mxu0 }
0x16d4   :  { %v11118_v38 = vsel %vm669_vm6, %v11038_v11, 0.0 }
0x16d5   :  { %v13121_v40 = vpop.f32.mrf.mxu0  ;;  %v11119_v4 = vadd.f32 %v11118_v38, %v11117_v13 }
0x16d8   :  { %v11111_v36 = vpop.f32.mrf.mxu1 }
0x16d9   :  { %v11120_v17 = vsel %vm669_vm6, %v11111_v36, 0.0 }
0x16da   :  { %v11121_v23 = vadd.f32 %v11120_v17, %v11119_v4  ;;  %v13126_v56 = vpop.f32.mrf.mxu1  ;;  %v11428_v17 = vrot.slane %v11427_v47, 2 }
0x16dc   :  { %v11129_v19 = vadd.f32 %v11895_v12, %v11121_v23 }
0x16de   :  { %v11131_v42 = vadd.f32 %v11129_v19, %v15989_v39  ;;  %v11176_v39 = vld [vmem:[%s16810_s10] sm:$0xff] }
0x16df   :  { %13133 = vmatprep.subr.mxu0 %v11176_v39 }
0x16e0   :  { %v11137_v3 = vsel %vm669_vm6, %v11131_v42, 0.0  ;;  %13134 = vmatpush3.msra.mxu0 %v11176_v39  ;;  %v11474_v39 = vld [vmem:[%s16815_s29 + $0x18] sm:$0xff] }
0x16e1   :  { %11138 = vadd.xlane.f32.xlu1 %v11137_v3  ;;  %13157 = vmatprep.subr.mxu0 %v13643_v28 }
0x176a   :  { %v11139_v20 = vpop.xlane.xlu1 %11138 }
0x176b   :  { %v11141_v14 = vmul.f32 0.03125, %v11139_v20 }
0x176d   :  { %v11143_v34 = vsub.f32 %v11131_v42, %v11141_v14  ;;  %v11429_v42 = vadd.f32 %v11428_v17, %v11427_v47  ;;  %v11557_v17 = vld [vmem:[%s13894_s27 + $0x8] sm:$0xff] }
0x176f   :  { %v11145_v0 = vmul.f32 %v11143_v34, %v11143_v34  ;;  %v11430_v20 = vrot.slane %v11429_v42, 1 }
0x1771   :  { %v11149_v25 = vsel %vm669_vm6, %v11145_v0, 0.0 }
0x1772   :  { %11150 = vadd.xlane.f32.xlu1 %v11149_v25 }
0x17fb   :  { %v11151_v15 = vpop.xlane.xlu1 %11150 }
0x17fc   :  { %v11153_v53 = vmul.f32 0.03125, %v11151_v15 }
0x17fe   :  { %v11155_v2 = vadd.f32 1e-05, %v11153_v53 }
0x1800   :  { %13557 = vrsqrt.f32 %v11155_v2 }
0x180d   :  { %v13558_v16 = vpop.eup %13557 }
0x180e   :  { %v11159_v31 = vmul.f32 %v13558_v16, %v11143_v34  ;;  %v11431_v34 = vadd.f32 %v11430_v20, %v11429_v42  ;;  %v11908_v20 = vld [vmem:[%s13899_s4] ss:$0 sm:$0xff] }
0x1810   :  { %v11167_v57 = vmul.f32 %v16647_v44, %v11159_v31  ;;  %v11432_v25 = vmax.f32 %v11431_v34, 1.0 }
0x1812   :  { %v11175_v51 = vadd.f32 %v16655_v32, %v11167_v57 }
0x1814   :  { %13136 = vmatmul.mubr.msk.f32.vlgmr.msra.gmra.mxu0 %vm669_vm6, %v11175_v51 }
0x1815   :  { %13165 = vmatprep.mubr.msk.f32.mxu0 %vm13644_vm5, %v13643_v28  ;;  %13158 = vmatpush3.msra.mxu0 %v11474_v39 }
0x1816   :  { %13159 = vmatprep.subr.mxu0 %v13643_v28 }
0x1817   :  { %13160 = vmatpush3.msra.mxu0 %v11473_v9 }
0x1818   :  { %13161 = vmatprep.subr.mxu0 %v13643_v28 }
0x1819   :  { %13162 = vmatpush3.msra.mxu0 %v11472_v27 }
0x181a   :  { %13163 = vmatprep.subr.mxu0 %v13643_v28 }
0x181b   :  { %13164 = vmatpush3.msra.mxu0 %v11471_v46 }
0x181c   :  { %13168 = vmatprep.subr.mxu0 %v13643_v28 }
0x18d4   :  { %v13137_v50 = vpop.f32.mrf.mxu0 }
0x18d5   :  { %v11265_v30 = vadd.f32 %v13137_v50, %v11898_v54 }
0x18d6   :  { %v11259_v58 = vpop.f32.mrf.mxu0 }
0x18d7   :  { %v11260_v8 = vadd.f32 %v11898_v54, %v11259_v58  ;;  %v11269_v41 = vmax.f32 %v11265_v30, 0.0  ;;  %v11905_v54 = vld [vmem:[%s16817_s13] ss:$0 sm:$0xff] }
0x18d9   :  { %v11268_v45 = vmax.f32 %v11260_v8, 0.0 }
0x18db   :  { %13154 = vmatprep.mubr.msk.f32.mxu1 %vm5898_vm2, %v11268_v45 }
0x18dc   :  { %13155 = vmatmul.mubr.msk.f32.vlgmr.msra.gmra.mxu1 %vm5898_vm2, %v11269_v41 }
0x199c   :  { %v13156_v24 = vpop.f32.mrf.mxu1 }
0x199d   :  { %v11363_v44 = vadd.f32 %v13156_v24, %v11901_v43 }
0x199e   :  { %v11357_v33 = vpop.f32.mrf.mxu1 }
0x199f   :  { %v11358_v49 = vadd.f32 %v11901_v43, %v11357_v33  ;;  %v11367_v37 = vadd.f32 %v11363_v44, %v11175_v51  ;;  %v11904_v51 = vld [vmem:[%s16816_s3] ss:$0 sm:$0xff] }
0x19a1   :  { %v11373_v7 = vsel %vm669_vm6, %v11367_v37, 0.0  ;;  %v11366_v32 = vadd.f32 %v11358_v49, %v16658_v22  ;;  %v11448_v22 = vrot.slane %v11447_v35, 4 }
0x19a2   :  { %11374 = vadd.xlane.f32.xlu1 %v11373_v7 }
0x19a3   :  { %v11370_v60 = vsel %vm669_vm6, %v11366_v32, 0.0  ;;  %v11449_v12 = vadd.f32 %v11448_v22, %v11447_v35 }
0x19a4   :  { %11371 = vadd.xlane.f32.xlu0 %v11370_v60 }
0x19a5   :  { %v11450_v3 = vrot.slane %v11449_v12, 2 }
0x19a7   :  { %v11451_v14 = vadd.f32 %v11450_v3, %v11449_v12  ;;  %v11556_v12 = vld [vmem:[%s13894_s27] sm:$0xff] }
0x19a9   :  { %v11452_v0 = vrot.slane %v11451_v14, 1 }
0x19ab   :  { %v11453_v29 = vadd.f32 %v11452_v0, %v11451_v14 }
0x19ad   :  { %v11454_v1 = vmax.f32 %v11453_v29, 1.0 }
0x1a2b   :  { %v11375_v52 = vpop.xlane.xlu1 %11374 }
0x1a2c   :  { %v11377_v11 = vmul.f32 0.03125, %v11375_v52 }
0x1a2d   :  { %v11372_v38 = vpop.xlane.xlu0 %11371 }
0x1a2e   :  { %v11379_v13 = vsub.f32 %v11367_v37, %v11377_v11  ;;  %v11376_v40 = vmul.f32 0.03125, %v11372_v38 }
0x1a30   :  { %v11378_v4 = vsub.f32 %v11366_v32, %v11376_v40  ;;  %v11381_v36 = vmul.f32 %v11379_v13, %v11379_v13  ;;  %v11559_v40 = vld [vmem:[%s13894_s27 + $0x18] sm:$0xff] }
0x1a32   :  { %v11385_v23 = vsel %vm669_vm6, %v11381_v36, 0.0  ;;  %v11380_v56 = vmul.f32 %v11378_v4, %v11378_v4  ;;  %v11558_v36 = vld [vmem:[%s13894_s27 + $0x10] sm:$0xff]  ;;  %s13569_s27 = scalar_lea.vmem %s11649_s8, 32 }
0x1a33   :  { %11386 = vadd.xlane.f32.xlu1 %v11385_v23  ;;  %v11906_v23 = vld [vmem:[%s13889_s21] ss:$0 sm:$0xff]  ;;  %p13570_p0 = scmp.ne.s32.totalorder %s11649_s8, %s13569_s27  ;;  %p13575_p2 = scmp.lt.s32.totalorder %s13569_s27, %s13569_s27 }
0x1a34   :  { %v11382_v19 = vsel %vm669_vm6, %v11380_v56, 0.0 }
0x1a35   :  { %11383 = vadd.xlane.f32.xlu0 %v11382_v19  ;;  %p13576_p3 = por %p13575_p2, %p13574_p1 }
0x1a37   :  { %p13577_p4 = pnand %p13576_p3, %p13570_p0 }
0x1a44   :  { %11442 = vperm.xlu1 %13236, %v11432_v25  }
0x1a48   :  { %11464 = vperm.xlu1 %13236, %v11454_v1  }
0x1a4b   :  { %13239 = vperm.xlu0 %13237, %v13238_v61  }
0x1abc   :  { %v11387_v62 = vpop.xlane.xlu1 %11386 }
0x1abd   :  { %v11389_v15 = vmul.f32 0.03125, %v11387_v62 }
0x1abe   :  { %v11384_v53 = vpop.xlane.xlu0 %11383 }
0x1abf   :  { %v11391_v2 = vadd.f32 1e-05, %v11389_v15  ;;  %v11388_v16 = vmul.f32 0.03125, %v11384_v53 }
0x1ac0   :  { %v11443_v18 = vpop.permute.xlu1 %11442 }
0x1ac1   :  { %13559 = vrsqrt.f32 %v11391_v2  ;;  %v11390_v31 = vadd.f32 1e-05, %v11388_v16 }
0x1ac3   :  { %13561 = vrsqrt.f32 %v11390_v31 }
0x1ac4   :  { %v11465_v43 = vpop.permute.xlu1 %11464  ;;  %13563 = vrcp.f32 %v11443_v18 }
0x1ac5   :  { %13565 = vrcp.f32 %v11465_v43 }
0x1ac6   :  { %v13240_v59 = vpop.permute.xlu0 %13239 }
0x1ac7   :  { %v13242_v58 = vunpack.i.h.bf16 %v13240_v59  ;;  %v13241_v41 = vunpack.i.l.bf16 %v13240_v59 }
0x1ace   :  { %v13560_v57 = vpop.eup %13559 }
0x1acf   :  { %v11395_v63 = vmul.f32 %v13560_v57, %v11379_v13 }
0x1ad0   :  { %v13562_v48 = vpop.eup %13561 }
0x1ad1   :  { %v11394_v50 = vmul.f32 %v13562_v48, %v11378_v4  ;;  %v11403_v30 = vmul.f32 %v11904_v51, %v11395_v63  ;;  %v13564_v11 = vpop.eup %13563 }
0x1ad2   :  { %v13566_v22 = vpop.eup %13565 }
0x1ad3   :  { %v11402_v8 = vmul.f32 %v11904_v51, %v11394_v50  ;;  %v11411_v45 = vadd.f32 %v11905_v54, %v11403_v30 }
0x1ad5   :  { %v11410_v24 = vadd.f32 %v11905_v54, %v11402_v8  ;;  %v11423_v44 = vmul.f32 %v13242_v58, %v11411_v45 }
0x1ad7   :  { %v11455_v33 = vsel %vm669_vm6, %v11423_v44, 0.0  ;;  %v11422_v49 = vmul.f32 %v13241_v41, %v11410_v24 }
0x1ad8   :  { %v11456_v37 = vrot.slane %v11455_v33, 4 }
0x1ad9   :  { %v11433_v7 = vsel %vm669_vm6, %v11422_v49, 0.0 }
0x1ada   :  { %v11457_v32 = vadd.f32 %v11456_v37, %v11455_v33  ;;  %v11434_v60 = vrot.slane %v11433_v7, 4 }
0x1adc   :  { %v11458_v6 = vrot.slane %v11457_v32, 2  ;;  %v11435_v21 = vadd.f32 %v11434_v60, %v11433_v7 }
0x1ade   :  { %v11459_v55 = vadd.f32 %v11458_v6, %v11457_v32  ;;  %v11436_v26 = vrot.slane %v11435_v21, 2 }
0x1ae0   :  { %v11460_v5 = vrot.slane %v11459_v55, 1  ;;  %v11437_v10 = vadd.f32 %v11436_v26, %v11435_v21 }
0x1ae2   :  { %v11461_v35 = vadd.f32 %v11460_v5, %v11459_v55  ;;  %v11438_v52 = vrot.slane %v11437_v10, 1 }
0x1ae4   :  { %v11439_v47 = vadd.f32 %v11438_v52, %v11437_v10  ;;  %v11468_v13 = vmul.f32 %v13566_v22, %v11461_v35 }
0x1ae6   :  { %v11446_v38 = vmul.f32 %v13564_v11, %v11439_v47 }
0x1ae8   :  { %v11470_v4 = vsel %vm11469_vm8, %v11446_v38, %v11468_v13 }
0x1ae9   :  { %13166 = vmatmul.mubr.msk.f32.vlgmr.msra.gmra.mxu0 %vm669_vm6, %v11470_v4 }
0x1aea   :  { %13169 = vmatpush3.msra.mxu0 %v11559_v40  ;;  %13176 = vmatprep.mubr.msk.f32.mxu0 %vm13644_vm5, %v13643_v28  ;;  %vm11640_vm5 = vcmask 9216  }
0x1aeb   :  { %13170 = vmatprep.subr.mxu0 %v13643_v28 }
0x1aec   :  { %13171 = vmatpush3.msra.mxu0 %v11558_v36 }
0x1aed   :  { %13172 = vmatprep.subr.mxu0 %v13643_v28 }
0x1aee   :  { %13173 = vmatpush3.msra.mxu0 %v11557_v17 }
0x1aef   :  { %13174 = vmatprep.subr.mxu0 %v13643_v28 }
0x1af0   :  { %13175 = vmatpush3.msra.mxu0 %v11556_v12 }
0x1ba9   :  { %v11551_v56 = vpop.f32.mrf.mxu0 }
0x1baa   :  { %v11552_v19 = vadd.f32 %v11906_v23, %v11551_v56 }
0x1bab   :  { %v13167_v42 = vpop.f32.mrf.mxu0 }
0x1bac   :  { %v11555_v3 = vmax.f32 %v11552_v19, 0.0 }
0x1bae   :  { %13177 = vmatmul.mubr.msk.f32.vlgmr.msra.gmra.mxu0 %vm669_vm6, %v11555_v3 }
0x1c6e   :  { %v11636_v14 = vpop.f32.mrf.mxu0 }
0x1c6f   :  { %v11637_v34 = vadd.f32 %v11908_v20, %v11636_v14 }
0x1c70   :  { %v13178_v0 = vpop.f32.mrf.mxu0 }
0x1c71   :  { %11641 = vst.msk [vmem:[#allocation2] sm:$0x3] %vm11640_vm5, %v11637_v34 }
0x1c72   :  { %13580 = shalt.err (!%p13577_p4)
}
0x1c73   :  { %11651 = dma.vmem_to_hbm [thread:$0]  %s11649_s8, 32, %s13904_s17, [#allocation3]  }
0x1c74   :  { %13589 = dma.done.wait [#allocation3], 32  }
0x1c75   :  { %13590 = vsyncadd [#allocation3], 4294967264 }
0x1c76   :  { %11655 = vsyncpa [#allocation3], 1 }

</bundles_post_ra>
